<compile_context>
chip_gen: v5e
topology: v5e:2x2
jax: 0.10.0
libtpu: 0.0.40
codegen_flags: <defaults>
</compile_context>

<pallas_src>
import jax
import jax.numpy as jnp
import numpy as np
from jax.experimental import pallas as pl
from jax.experimental.pallas import tpu as pltpu

BN_EPS = 1e-5
LANE = 128
VMEM_LIMIT = 32 * 1024 * 1024


def _tile8(n, target):
    """Largest divisor of n that is a multiple of 8 and <= target; else n (full)."""
    t = min(n, target)
    t -= t % 8
    while t >= 8:
        if n % t == 0:
            return t
        t -= 8
    return n


# ---------------------------------------------------------------------------
# Kernel 1: 3x3 conv (no bias; it cancels under training-mode BN) on a full
#           padded image per batch, emitting per-batch BN partial statistics.
# ---------------------------------------------------------------------------
def conv3x3_stats_kernel(xp_ref, w_ref, y_ref, stats_ref):
    # xp   : (1, H+2, W+2, CP)  bf16 spatially padded input
    # w    : (3, 3*CP, CP)      bf16, [kh, kw*CP + c_in, c_out]
    # y    : (1, H, W, CP)      bf16 conv output
    # stats: (1, 2, CP)         f32, row 0 = sum, row 1 = sum of squares
    _, H, W, CP = y_ref.shape
    xp = xp_ref[0]                                          # (H+2, W+2, CP)
    # kw-shifted views materialized once each (<=2 sublane relayouts), then
    # lane-concatenated so each kh tap is one K=3*CP MXU dot.
    xcat = jnp.concatenate(
        [xp[:, 0:W, :], xp[:, 1:W + 1, :], xp[:, 2:W + 2, :]],
        axis=-1)                                            # (H+2, W, 3*CP) bf16
    acc = jnp.zeros((H * W, CP), jnp.float32)
    for kh in range(3):                                     # leading-dim slices: cheap
        patch = xcat[kh:kh + H].reshape(H * W, 3 * CP)
        acc = acc + jnp.dot(patch, w_ref[kh],
                            preferred_element_type=jnp.float32)
    y_ref[0] = acc.reshape(H, W, CP).astype(y_ref.dtype)
    stats_ref[0] = jnp.concatenate(
        [jnp.sum(acc, axis=0, keepdims=True),
         jnp.sum(acc * acc, axis=0, keepdims=True)], axis=0)  # (2, CP)


def conv3x3_stats(xpad, w_cat):
    B, Hp, Wp, CP = xpad.shape
    H, W = Hp - 2, Wp - 2
    return pl.pallas_call(
        conv3x3_stats_kernel,
        out_shape=(jax.ShapeDtypeStruct((B, H, W, CP), jnp.bfloat16),
                   jax.ShapeDtypeStruct((B, 2, CP), jnp.float32)),
        grid=(B,),
        in_specs=[
            pl.BlockSpec((1, Hp, Wp, CP), lambda b: (b, 0, 0, 0)),
            pl.BlockSpec((3, 3 * CP, CP), lambda b: (0, 0, 0)),
        ],
        out_specs=(
            pl.BlockSpec((1, H, W, CP), lambda b: (b, 0, 0, 0)),
            pl.BlockSpec((1, 2, CP), lambda b: (b, 0, 0)),
        ),
        compiler_params=pltpu.CompilerParams(
            dimension_semantics=("parallel",),
            vmem_limit_bytes=VMEM_LIMIT),
    )(xpad, w_cat)


def finalize_bn_stats(stats, count):
    # stats: (B, 2, CP) partials -> global (1, CP) mean and rsqrt(var + eps).
    # NOTE: padded channels get inv = 1/sqrt(eps); harmless because their
    # affine gamma/beta are zero.
    s = jnp.sum(stats[:, 0, :], axis=0)
    ss = jnp.sum(stats[:, 1, :], axis=0)
    mean = s / count
    var = jnp.maximum(ss / count - mean * mean, 0.0)   # guard f32 cancellation
    inv = jax.lax.rsqrt(var + BN_EPS)
    return mean.reshape(1, -1), inv.reshape(1, -1)


# ---------------------------------------------------------------------------
# Kernel 2: BN + ReLU fused with the fused QKV projection (N, CP) @ (CP, 3CP).
# ---------------------------------------------------------------------------
def bnrelu_qkv_kernel(y_ref, mean_ref, inv_ref, g_ref, beta_ref,
                      w_ref, b_ref, f_ref, qkv_ref):
    y = y_ref[0].astype(jnp.float32)                        # (TR, CP)
    f = jnp.maximum((y - mean_ref[...]) * inv_ref[...] * g_ref[...]
                    + beta_ref[...], 0.0)
    f_ref[0] = f.astype(f_ref.dtype)
    qkv = jnp.dot(f.astype(jnp.bfloat16), w_ref[...],
                  preferred_element_type=jnp.float32) + b_ref[...]
    qkv_ref[0] = qkv.astype(qkv_ref.dtype)


def bnrelu_qkv(y, mean, inv, g, beta, wqkv, bqkv, tr):
    B, N, CP = y.shape
    nr = N // tr
    vec = pl.BlockSpec((1, CP), lambda b_, r: (0, 0))
    return pl.pallas_call(
        bnrelu_qkv_kernel,
        out_shape=(jax.ShapeDtypeStruct((B, N, CP), jnp.bfloat16),
                   jax.ShapeDtypeStruct((B, N, 3 * CP), jnp.bfloat16)),
        grid=(B, nr),
        in_specs=[
            pl.BlockSpec((1, tr, CP), lambda b_, r: (b_, r, 0)),
            vec, vec, vec, vec,
            pl.BlockSpec((CP, 3 * CP), lambda b_, r: (0, 0)),
            pl.BlockSpec((1, 3 * CP), lambda b_, r: (0, 0)),
        ],
        out_specs=(
            pl.BlockSpec((1, tr, CP), lambda b_, r: (b_, r, 0)),
            pl.BlockSpec((1, tr, 3 * CP), lambda b_, r: (b_, r, 0)),
        ),
        compiler_params=pltpu.CompilerParams(
            dimension_semantics=("parallel", "parallel"),
            vmem_limit_bytes=VMEM_LIMIT),
    )(y, mean, inv, g, beta, wqkv, bqkv)


# ---------------------------------------------------------------------------
# Kernel 3: flash-style PAM attention (online softmax over kv tiles) + residual.
#   energy[i, j] = sum_c Q[i, c] * K[j, c];  attn = softmax_j;  out = attn @ V
#   o = gamma * out + F
# ---------------------------------------------------------------------------
def pam_flash_kernel(gamma_ref, q_ref, k_ref, v_ref, f_ref, o_ref,
                     m_sc, l_sc, acc_sc):
    ki = pl.program_id(2)

    @pl.when(ki == 0)
    def _():
        m_sc[...] = jnp.full(m_sc.shape, -jnp.inf, jnp.float32)
        l_sc[...] = jnp.zeros(l_sc.shape, jnp.float32)
        acc_sc[...] = jnp.zeros(acc_sc.shape, jnp.float32)

    q = q_ref[0]                                            # (Tq, CP) bf16
    k = k_ref[0]                                            # (Tk, CP) bf16
    v = v_ref[0]                                            # (Tk, CP) bf16
    s = jax.lax.dot_general(q, k, (((1,), (1,)), ((), ())),
                            preferred_element_type=jnp.float32)   # (Tq, Tk) f32
    m_prev = m_sc[...]
    m_new = jnp.maximum(m_prev, jnp.max(s, axis=-1, keepdims=True))
    alpha = jnp.exp(m_prev - m_new)
    p = jnp.exp(s - m_new)                                  # f32 (EUP)
    l_sc[...] = alpha * l_sc[...] + jnp.sum(p, axis=-1, keepdims=True)
    acc_sc[...] = alpha * acc_sc[...] + jnp.dot(
        p.astype(jnp.bfloat16), v, preferred_element_type=jnp.float32)
    m_sc[...] = m_new

    @pl.when(ki == pl.num_programs(2) - 1)
    def _():
        inv_l = pl.reciprocal(l_sc[...], approx=True)
        o = gamma_ref[0, 0] * (acc_sc[...] * inv_l) + f_ref[0].astype(jnp.float32)
        o_ref[0] = o.astype(o_ref.dtype)


def pam_attention_flash(f, qkv, gamma, tq, tk):
    B, N, CP = f.shape
    nq, nk = N // tq, N // tk
    return pl.pallas_call(
        pam_flash_kernel,
        out_shape=jax.ShapeDtypeStruct((B, N, CP), jnp.bfloat16),
        grid=(B, nq, nk),
        in_specs=[
            pl.BlockSpec(memory_space=pltpu.MemorySpace.SMEM),          # gamma
            pl.BlockSpec((1, tq, CP), lambda b_, qi, ki: (b_, qi, 0)),  # Q
            pl.BlockSpec((1, tk, CP), lambda b_, qi, ki: (b_, ki, 1)),  # K
            pl.BlockSpec((1, tk, CP), lambda b_, qi, ki: (b_, ki, 2)),  # V
            pl.BlockSpec((1, tq, CP), lambda b_, qi, ki: (b_, qi, 0)),  # F (res)
        ],
        out_specs=pl.BlockSpec((1, tq, CP), lambda b_, qi, ki: (b_, qi, 0)),
        scratch_shapes=[pltpu.VMEM((tq, 1), jnp.float32),
                        pltpu.VMEM((tq, 1), jnp.float32),
                        pltpu.VMEM((tq, CP), jnp.float32)],
        compiler_params=pltpu.CompilerParams(
            dimension_semantics=("parallel", "parallel", "arbitrary"),
            vmem_limit_bytes=VMEM_LIMIT),
    )(gamma, qkv, qkv, qkv, f)


# ---------------------------------------------------------------------------
# Kernel 4: final BN + ReLU (elementwise, row-tiled).
# ---------------------------------------------------------------------------
def bn_relu_kernel(y_ref, mean_ref, inv_ref, g_ref, beta_ref, o_ref):
    y = y_ref[0].astype(jnp.float32)
    o_ref[0] = jnp.maximum((y - mean_ref[...]) * inv_ref[...] * g_ref[...]
                           + beta_ref[...], 0.0)


def bn_relu(y, mean, inv, g, beta, tr):
    B, N, CP = y.shape
    nr = N // tr
    vec = pl.BlockSpec((1, CP), lambda b_, r: (0, 0))
    return pl.pallas_call(
        bn_relu_kernel,
        out_shape=jax.ShapeDtypeStruct((B, N, CP), jnp.float32),
        grid=(B, nr),
        in_specs=[pl.BlockSpec((1, tr, CP), lambda b_, r: (b_, r, 0)),
                  vec, vec, vec, vec],
        out_specs=pl.BlockSpec((1, tr, CP), lambda b_, r: (b_, r, 0)),
        compiler_params=pltpu.CompilerParams(
            dimension_semantics=("parallel", "parallel"),
            vmem_limit_bytes=VMEM_LIMIT),
    )(y, mean, inv, g, beta)


# ---------------------------------------------------------------------------
# Full PAM_CAM_Layer forward (use_pam=True).
# ---------------------------------------------------------------------------
def pam_cam_layer_forward(x_nchw, kp):
    B, C, H, W = x_nchw.shape
    CP = kp["bn1_g"].shape[1]
    N = H * W
    tr = _tile8(N, 2048)   # elementwise / projection row tile
    tq = _tile8(N, 512)    # attention q / kv tile

    # Module boundary: NCHW -> channel-last, zero-pad channels to CP and
    # spatially by 1 (one fused XLA pass), cast to bf16 for HBM + MXU.
    xh = jnp.pad(jnp.transpose(x_nchw, (0, 2, 3, 1)),
                 ((0, 0), (1, 1), (1, 1), (0, CP - C))).astype(jnp.bfloat16)

    # Block 1: conv3x3 (+ per-batch BN partials), exact global BN stats in XLA.
    y1, st1 = conv3x3_stats(xh, kp["w_cat1"])
    mean1, inv1 = finalize_bn_stats(st1, B * H * W)

    # BN + ReLU fused with the fused QKV projection (lane-dense (B,N,CP)).
    f, qkv = bnrelu_qkv(y1.reshape(B, N, CP), mean1, inv1,
                        kp["bn1_g"], kp["bn1_b"], kp["wqkv"], kp["bqkv"], tr)

    # Flash-tiled PAM attention + residual.
    o = pam_attention_flash(f, qkv, kp["gamma"], tq, tq)

    # Block 2: spatial pad (bf16), conv3x3 (+ stats), then BN + ReLU.
    oh = jnp.pad(o.reshape(B, H, W, CP), ((0, 0), (1, 1), (1, 1), (0, 0)))
    y2, st2 = conv3x3_stats(oh, kp["w_cat2"])
    mean2, inv2 = finalize_bn_stats(st2, B * H * W)
    z = bn_relu(y2.reshape(B, N, CP), mean2, inv2, kp["bn2_g"], kp["bn2_b"], tr)

    # Module boundary: drop channel padding, back to NCHW (f32).
    return jnp.transpose(z.reshape(B, H, W, CP)[..., :C], (0, 3, 1, 2))


# ---------------------------------------------------------------------------
# Pure-JAX reference (mirrors the PyTorch forward) for correctness check.
# ---------------------------------------------------------------------------
def reference_forward(x, P):
    def conv3x3(x, w, b):
        y = jax.lax.conv_general_dilated(
            x, w, (1, 1), ((1, 1), (1, 1)),
            dimension_numbers=("NCHW", "OIHW", "NCHW"))
        return y + b[None, :, None, None]

    def bn_relu_ref(y, g, beta):
        mean = jnp.mean(y, axis=(0, 2, 3), keepdims=True)
        var = jnp.mean((y - mean) ** 2, axis=(0, 2, 3), keepdims=True)
        yn = (y - mean) * jax.lax.rsqrt(var + BN_EPS)
        return jnp.maximum(yn * g[None, :, None, None]
                           + beta[None, :, None, None], 0.0)

    y = bn_relu_ref(conv3x3(x, P["w1"], P["b1"]), P["bn1_g"], P["bn1_b"])
    B, C, H, W = y.shape
    yf = y.reshape(B, C, H * W)

    def proj(w, b):
        return jnp.einsum("oc,bcn->bon", w, yf) + b[None, :, None]

    q = proj(P["wq"], P["bq"])
    k = proj(P["wk"], P["bk"])
    v = proj(P["wv"], P["bv"])
    energy = jnp.einsum("bci,bcj->bij", q, k)
    attn = jax.nn.softmax(energy, axis=-1)
    out = jnp.einsum("bcj,bij->bci", v, attn)
    out = P["gamma"] * out.reshape(B, C, H, W) + y
    return bn_relu_ref(conv3x3(out, P["w2"], P["b2"]),
                       P["bn2_g"], P["bn2_b"])


# ---------------------------------------------------------------------------
def make_params(key, C, CP):
    ks = jax.random.split(key, 14)
    f32 = jnp.float32

    def nrm(k, shape, scale=0.2):
        return (scale * jax.random.normal(k, shape)).astype(f32)

    raw = dict(
        w1=nrm(ks[0], (C, C, 3, 3)), b1=nrm(ks[1], (C,), 0.1),
        bn1_g=1.0 + nrm(ks[2], (C,), 0.1), bn1_b=nrm(ks[3], (C,), 0.1),
        wq=nrm(ks[4], (C, C)), bq=nrm(ks[5], (C,), 0.1),
        wk=nrm(ks[6], (C, C)), bk=nrm(ks[7], (C,), 0.1),
        wv=nrm(ks[8], (C, C)), bv=nrm(ks[9], (C,), 0.1),
        # PyTorch inits gamma to 0; deterministic non-zero value (documented).
        gamma=jnp.float32(0.3),
        w2=nrm(ks[10], (C, C, 3, 3)), b2=nrm(ks[11], (C,), 0.1),
        bn2_g=1.0 + nrm(ks[12], (C,), 0.1), bn2_b=nrm(ks[13], (C,), 0.1),
    )

    def pad_vec(v):                       # (C,) -> (1, CP), zero padded
        return jnp.zeros((1, CP), f32).at[0, :C].set(v)

    def conv_cat(w):                      # (O, I, 3, 3) -> (3, 3*CP, CP) bf16
        cat = jnp.zeros((3, 3 * CP, CP), f32)
        for kh in range(3):
            for kw in range(3):
                cat = cat.at[kh, kw * CP:kw * CP + C, :C].set(w[:, :, kh, kw].T)
        return cat.astype(jnp.bfloat16)

    wqkv = jnp.zeros((CP, 3 * CP), f32)
    bqkv = jnp.zeros((1, 3 * CP), f32)
    for idx, (w, b) in enumerate([(raw["wq"], raw["bq"]),
                                  (raw["wk"], raw["bk"]),
                                  (raw["wv"], raw["bv"])]):
        wqkv = wqkv.at[:C, idx * CP:idx * CP + C].set(w.T)
        bqkv = bqkv.at[0, idx * CP:idx * CP + C].set(b)

    ker = dict(
        # Conv biases deliberately omitted from the kernel path: training-mode
        # BN subtracts the batch mean right after, so they cancel exactly.
        w_cat1=conv_cat(raw["w1"]),
        bn1_g=pad_vec(raw["bn1_g"]), bn1_b=pad_vec(raw["bn1_b"]),
        wqkv=wqkv.astype(jnp.bfloat16), bqkv=bqkv,
        gamma=jnp.full((1, 1), raw["gamma"], f32),
        w_cat2=conv_cat(raw["w2"]),
        bn2_g=pad_vec(raw["bn2_g"]), bn2_b=pad_vec(raw["bn2_b"]),
    )
    return raw, ker


if __name__ == "__main__":
    B, C, H, W = 2, 4, 16, 16
    CP = LANE * ((C + LANE - 1) // LANE)

    key = jax.random.PRNGKey(0)
    kx, kp = jax.random.split(key)
    x = jax.random.normal(kx, (B, C, H, W), dtype=jnp.float32)
    raw, ker = make_params(kp, C, CP)

    out = jax.block_until_ready(jax.jit(pam_cam_layer_forward)(x, ker))
    ref = jax.block_until_ready(jax.jit(reference_forward)(x, raw))

    # Tolerance loosened vs. the pure-f32 variant: matmul operands and HBM
    # activations are bf16 (intentional, per perf review).
    np.testing.assert_allclose(np.asarray(out), np.asarray(ref),
                               rtol=5e-2, atol=5e-2)
    assert out.shape == (B, C, H, W) and out.dtype == jnp.float32
    print("KERNEL_OK")
</pallas_src>

<mosaic_0001>
module attributes {stable_mosaic.version = 11 : i64} {
  func.func @conv3x3_stats_kernel(%arg0: i32, %arg1: memref<1x18x18x128xbf16, #tpu.memory_space<vmem>>, %arg2: memref<3x384x128xbf16, #tpu.memory_space<vmem>>, %arg3: memref<1x16x16x128xbf16, #tpu.memory_space<vmem>>, %arg4: memref<1x2x128xf32, #tpu.memory_space<vmem>>) attributes {dimension_semantics = [#tpu.dimension_semantics<parallel>], iteration_bounds = array<i64: 2>, scalar_prefetch = 0 : i64, scratch_operands = 0 : i64, tpu.core_type = #tpu.core_type<tc>, window_params = [{transform_indices = @transform_0, window_bounds = array<i64: 1, 18, 18, 128>}, {pipeline_mode = #tpu.pipeline_mode<synchronous>, transform_indices = @transform_1, window_bounds = array<i64: 3, 384, 128>}, {transform_indices = @transform_2, window_bounds = array<i64: 1, 16, 16, 128>}, {transform_indices = @transform_3, window_bounds = array<i64: 1, 2, 128>}]} {
    %c0 = arith.constant 0 : index
    %c0_0 = arith.constant 0 : index
    %c0_1 = arith.constant 0 : index
    %c0_2 = arith.constant 0 : index
    %0 = vector.load %arg1[%c0, %c0_0, %c0_1, %c0_2] : memref<1x18x18x128xbf16, #tpu.memory_space<vmem>>, vector<1x18x18x128xbf16>
    %1 = vector.shape_cast %0 : vector<1x18x18x128xbf16> to vector<18x18x128xbf16>
    %2 = vector.extract_strided_slice %1 {offsets = [0, 0, 0], sizes = [18, 16, 128], strides = [1, 1, 1]} : vector<18x18x128xbf16> to vector<18x16x128xbf16>
    %3 = vector.extract_strided_slice %1 {offsets = [0, 1, 0], sizes = [18, 16, 128], strides = [1, 1, 1]} : vector<18x18x128xbf16> to vector<18x16x128xbf16>
    %4 = vector.extract_strided_slice %1 {offsets = [0, 2, 0], sizes = [18, 16, 128], strides = [1, 1, 1]} : vector<18x18x128xbf16> to vector<18x16x128xbf16>
    %5 = tpu.concatenate %2, %3, %4 in 2 : vector<18x16x128xbf16>, vector<18x16x128xbf16>, vector<18x16x128xbf16> -> vector<18x16x384xbf16>
    %cst = arith.constant 0.000000e+00 : f32
    %6 = vector.broadcast %cst : f32 to vector<256x128xf32>
    %7 = vector.extract_strided_slice %5 {offsets = [0, 0, 0], sizes = [16, 16, 384], strides = [1, 1, 1]} : vector<18x16x384xbf16> to vector<16x16x384xbf16>
    %8 = vector.shape_cast %7 : vector<16x16x384xbf16> to vector<256x384xbf16>
    %c0_3 = arith.constant 0 : index
    %c0_4 = arith.constant 0 : index
    %c0_5 = arith.constant 0 : index
    %9 = vector.load %arg2[%c0_3, %c0_4, %c0_5] : memref<3x384x128xbf16, #tpu.memory_space<vmem>>, vector<1x384x128xbf16>
    %10 = vector.shape_cast %9 : vector<1x384x128xbf16> to vector<384x128xbf16>
    %cst_6 = arith.constant dense<0.000000e+00> : vector<256x128xf32>
    %11 = tpu.matmul %8, %10, %cst_6 {dimension_numbers = #tpu.dot_dimension_numbers<[1], [0], [0], [1], [0, 0, 1, 1], [], []>} : vector<256x384xbf16>, vector<384x128xbf16>, vector<256x128xf32> -> vector<256x128xf32>
    %12 = arith.addf %6, %11 : vector<256x128xf32>
    %13 = vector.extract_strided_slice %5 {offsets = [1, 0, 0], sizes = [16, 16, 384], strides = [1, 1, 1]} : vector<18x16x384xbf16> to vector<16x16x384xbf16>
    %14 = vector.shape_cast %13 : vector<16x16x384xbf16> to vector<256x384xbf16>
    %c1 = arith.constant 1 : index
    %c0_7 = arith.constant 0 : index
    %c0_8 = arith.constant 0 : index
    %15 = vector.load %arg2[%c1, %c0_7, %c0_8] : memref<3x384x128xbf16, #tpu.memory_space<vmem>>, vector<1x384x128xbf16>
    %16 = vector.shape_cast %15 : vector<1x384x128xbf16> to vector<384x128xbf16>
    %cst_9 = arith.constant dense<0.000000e+00> : vector<256x128xf32>
    %17 = tpu.matmul %14, %16, %cst_9 {dimension_numbers = #tpu.dot_dimension_numbers<[1], [0], [0], [1], [0, 0, 1, 1], [], []>} : vector<256x384xbf16>, vector<384x128xbf16>, vector<256x128xf32> -> vector<256x128xf32>
    %18 = arith.addf %12, %17 : vector<256x128xf32>
    %19 = vector.extract_strided_slice %5 {offsets = [2, 0, 0], sizes = [16, 16, 384], strides = [1, 1, 1]} : vector<18x16x384xbf16> to vector<16x16x384xbf16>
    %20 = vector.shape_cast %19 : vector<16x16x384xbf16> to vector<256x384xbf16>
    %c2 = arith.constant 2 : index
    %c0_10 = arith.constant 0 : index
    %c0_11 = arith.constant 0 : index
    %21 = vector.load %arg2[%c2, %c0_10, %c0_11] : memref<3x384x128xbf16, #tpu.memory_space<vmem>>, vector<1x384x128xbf16>
    %22 = vector.shape_cast %21 : vector<1x384x128xbf16> to vector<384x128xbf16>
    %cst_12 = arith.constant dense<0.000000e+00> : vector<256x128xf32>
    %23 = tpu.matmul %20, %22, %cst_12 {dimension_numbers = #tpu.dot_dimension_numbers<[1], [0], [0], [1], [0, 0, 1, 1], [], []>} : vector<256x384xbf16>, vector<384x128xbf16>, vector<256x128xf32> -> vector<256x128xf32>
    %24 = arith.addf %18, %23 : vector<256x128xf32>
    %25 = vector.shape_cast %24 : vector<256x128xf32> to vector<16x16x128xf32>
    %26 = arith.truncf %25 : vector<16x16x128xf32> to vector<16x16x128xbf16>
    %c0_13 = arith.constant 0 : index
    %c0_14 = arith.constant 0 : index
    %c0_15 = arith.constant 0 : index
    %c0_16 = arith.constant 0 : index
    %27 = vector.load %arg3[%c0_13, %c0_14, %c0_15, %c0_16] : memref<1x16x16x128xbf16, #tpu.memory_space<vmem>>, vector<1x16x16x128xbf16>
    %28 = vector.shape_cast %27 : vector<1x16x16x128xbf16> to vector<16x16x128xbf16>
    %29 = vector.shape_cast %26 : vector<16x16x128xbf16> to vector<1x16x16x128xbf16>
    tpu.vector_store %arg3[%c0_13, %c0_14, %c0_15, %c0_16], %29 {strides = array<i32>} : memref<1x16x16x128xbf16, #tpu.memory_space<vmem>>, vector<1x16x16x128xbf16>,
    %cst_17 = arith.constant dense<0.000000e+00> : vector<128xf32>
    %30 = vector.multi_reduction <add>, %24, %cst_17 [0] : vector<256x128xf32> to vector<128xf32>
    %31 = vector.shape_cast %30 : vector<128xf32> to vector<1x128xf32>
    %32 = arith.mulf %24, %24 : vector<256x128xf32>
    %cst_18 = arith.constant dense<0.000000e+00> : vector<128xf32>
    %33 = vector.multi_reduction <add>, %32, %cst_18 [0] : vector<256x128xf32> to vector<128xf32>
    %34 = vector.shape_cast %33 : vector<128xf32> to vector<1x128xf32>
    %35 = tpu.concatenate %31, %34 in 0 : vector<1x128xf32>, vector<1x128xf32> -> vector<2x128xf32>
    %c0_19 = arith.constant 0 : index
    %c0_20 = arith.constant 0 : index
    %c0_21 = arith.constant 0 : index
    %36 = vector.load %arg4[%c0_19, %c0_20, %c0_21] : memref<1x2x128xf32, #tpu.memory_space<vmem>>, vector<1x2x128xf32>
    %37 = vector.shape_cast %36 : vector<1x2x128xf32> to vector<2x128xf32>
    %38 = vector.shape_cast %35 : vector<2x128xf32> to vector<1x2x128xf32>
    tpu.vector_store %arg4[%c0_19, %c0_20, %c0_21], %38 {strides = array<i32>} : memref<1x2x128xf32, #tpu.memory_space<vmem>>, vector<1x2x128xf32>,
    return
  }
  func.func @transform_0(%arg0: i32) -> (i32, i32, i32, i32) {
    %c0_i32 = arith.constant 0 : i32
    %c0_i32_0 = arith.constant 0 : i32
    %c0_i32_1 = arith.constant 0 : i32
    %c0_i32_2 = arith.constant 0 : i32
    return %arg0, %c0_i32, %c0_i32_0, %c0_i32_1 : i32, i32, i32, i32
  }
  func.func @transform_1(%arg0: i32) -> (i32, i32, i32) {
    %c0_i32 = arith.constant 0 : i32
    %c0_i32_0 = arith.constant 0 : i32
    %c0_i32_1 = arith.constant 0 : i32
    %c0_i32_2 = arith.constant 0 : i32
    return %c0_i32, %c0_i32_0, %c0_i32_1 : i32, i32, i32
  }
  func.func @transform_2(%arg0: i32) -> (i32, i32, i32, i32) {
    %c0_i32 = arith.constant 0 : i32
    %c0_i32_0 = arith.constant 0 : i32
    %c0_i32_1 = arith.constant 0 : i32
    %c0_i32_2 = arith.constant 0 : i32
    return %arg0, %c0_i32, %c0_i32_0, %c0_i32_1 : i32, i32, i32, i32
  }
  func.func @transform_3(%arg0: i32) -> (i32, i32, i32) {
    %c0_i32 = arith.constant 0 : i32
    %c0_i32_0 = arith.constant 0 : i32
    %c0_i32_1 = arith.constant 0 : i32
    return %arg0, %c0_i32, %c0_i32_0 : i32, i32, i32
  }
}

module attributes {stable_mosaic.version = 11 : i64} {
  func.func @bnrelu_qkv_kernel(%arg0: i32, %arg1: i32, %arg2: memref<1x256x128xbf16, #tpu.memory_space<vmem>>, %arg3: memref<1x128xf32, #tpu.memory_space<vmem>>, %arg4: memref<1x128xf32, #tpu.memory_space<vmem>>, %arg5: memref<1x128xf32, #tpu.memory_space<vmem>>, %arg6: memref<1x128xf32, #tpu.memory_space<vmem>>, %arg7: memref<128x384xbf16, #tpu.memory_space<vmem>>, %arg8: memref<1x384xf32, #tpu.memory_space<vmem>>, %arg9: memref<1x256x128xbf16, #tpu.memory_space<vmem>>, %arg10: memref<1x256x384xbf16, #tpu.memory_space<vmem>>) attributes {dimension_semantics = [#tpu.dimension_semantics<parallel>, #tpu.dimension_semantics<parallel>], iteration_bounds = array<i64: 2, 1>, scalar_prefetch = 0 : i64, scratch_operands = 0 : i64, tpu.core_type = #tpu.core_type<tc>, window_params = [{transform_indices = @transform_0, window_bounds = array<i64: 1, 256, 128>}, {pipeline_mode = #tpu.pipeline_mode<synchronous>, transform_indices = @transform_1, window_bounds = array<i64: 1, 128>}, {pipeline_mode = #tpu.pipeline_mode<synchronous>, transform_indices = @transform_2, window_bounds = array<i64: 1, 128>}, {pipeline_mode = #tpu.pipeline_mode<synchronous>, transform_indices = @transform_3, window_bounds = array<i64: 1, 128>}, {pipeline_mode = #tpu.pipeline_mode<synchronous>, transform_indices = @transform_4, window_bounds = array<i64: 1, 128>}, {pipeline_mode = #tpu.pipeline_mode<synchronous>, transform_indices = @transform_5, window_bounds = array<i64: 128, 384>}, {pipeline_mode = #tpu.pipeline_mode<synchronous>, transform_indices = @transform_6, window_bounds = array<i64: 1, 384>}, {transform_indices = @transform_7, window_bounds = array<i64: 1, 256, 128>}, {transform_indices = @transform_8, window_bounds = array<i64: 1, 256, 384>}]} {
    %c0 = arith.constant 0 : index
    %c0_0 = arith.constant 0 : index
    %c0_1 = arith.constant 0 : index
    %0 = vector.load %arg2[%c0, %c0_0, %c0_1] : memref<1x256x128xbf16, #tpu.memory_space<vmem>>, vector<1x256x128xbf16>
    %1 = vector.shape_cast %0 : vector<1x256x128xbf16> to vector<256x128xbf16>
    %2 = arith.extf %1 : vector<256x128xbf16> to vector<256x128xf32>
    %c0_2 = arith.constant 0 : index
    %c0_3 = arith.constant 0 : index
    %3 = vector.load %arg3[%c0_2, %c0_3] : memref<1x128xf32, #tpu.memory_space<vmem>>, vector<1x128xf32>
    %4 = vector.broadcast %3 : vector<1x128xf32> to vector<256x128xf32>
    %5 = arith.subf %2, %4 : vector<256x128xf32>
    %c0_4 = arith.constant 0 : index
    %c0_5 = arith.constant 0 : index
    %6 = vector.load %arg4[%c0_4, %c0_5] : memref<1x128xf32, #tpu.memory_space<vmem>>, vector<1x128xf32>
    %7 = vector.broadcast %6 : vector<1x128xf32> to vector<256x128xf32>
    %8 = arith.mulf %5, %7 : vector<256x128xf32>
    %c0_6 = arith.constant 0 : index
    %c0_7 = arith.constant 0 : index
    %9 = vector.load %arg5[%c0_6, %c0_7] : memref<1x128xf32, #tpu.memory_space<vmem>>, vector<1x128xf32>
    %10 = vector.broadcast %9 : vector<1x128xf32> to vector<256x128xf32>
    %11 = arith.mulf %8, %10 : vector<256x128xf32>
    %c0_8 = arith.constant 0 : index
    %c0_9 = arith.constant 0 : index
    %12 = vector.load %arg6[%c0_8, %c0_9] : memref<1x128xf32, #tpu.memory_space<vmem>>, vector<1x128xf32>
    %13 = vector.broadcast %12 : vector<1x128xf32> to vector<256x128xf32>
    %14 = arith.addf %11, %13 : vector<256x128xf32>
    %cst = arith.constant 0.000000e+00 : f32
    %15 = vector.broadcast %cst : f32 to vector<256x128xf32>
    %16 = arith.maximumf %14, %15 : vector<256x128xf32>
    %17 = arith.truncf %16 : vector<256x128xf32> to vector<256x128xbf16>
    %c0_10 = arith.constant 0 : index
    %c0_11 = arith.constant 0 : index
    %c0_12 = arith.constant 0 : index
    %18 = vector.load %arg9[%c0_10, %c0_11, %c0_12] : memref<1x256x128xbf16, #tpu.memory_space<vmem>>, vector<1x256x128xbf16>
    %19 = vector.shape_cast %18 : vector<1x256x128xbf16> to vector<256x128xbf16>
    %20 = vector.shape_cast %17 : vector<256x128xbf16> to vector<1x256x128xbf16>
    tpu.vector_store %arg9[%c0_10, %c0_11, %c0_12], %20 {strides = array<i32>} : memref<1x256x128xbf16, #tpu.memory_space<vmem>>, vector<1x256x128xbf16>,
    %21 = arith.truncf %16 : vector<256x128xf32> to vector<256x128xbf16>
    %c0_13 = arith.constant 0 : index
    %c0_14 = arith.constant 0 : index
    %22 = vector.load %arg7[%c0_13, %c0_14] : memref<128x384xbf16, #tpu.memory_space<vmem>>, vector<128x384xbf16>
    %cst_15 = arith.constant dense<0.000000e+00> : vector<256x384xf32>
    %23 = tpu.matmul %21, %22, %cst_15 {dimension_numbers = #tpu.dot_dimension_numbers<[1], [0], [0], [1], [0, 0, 1, 1], [], []>} : vector<256x128xbf16>, vector<128x384xbf16>, vector<256x384xf32> -> vector<256x384xf32>
    %c0_16 = arith.constant 0 : index
    %c0_17 = arith.constant 0 : index
    %24 = vector.load %arg8[%c0_16, %c0_17] : memref<1x384xf32, #tpu.memory_space<vmem>>, vector<1x384xf32>
    %25 = vector.broadcast %24 : vector<1x384xf32> to vector<256x384xf32>
    %26 = arith.addf %23, %25 : vector<256x384xf32>
    %27 = arith.truncf %26 : vector<256x384xf32> to vector<256x384xbf16>
    %c0_18 = arith.constant 0 : index
    %c0_19 = arith.constant 0 : index
    %c0_20 = arith.constant 0 : index
    %28 = vector.load %arg10[%c0_18, %c0_19, %c0_20] : memref<1x256x384xbf16, #tpu.memory_space<vmem>>, vector<1x256x384xbf16>
    %29 = vector.shape_cast %28 : vector<1x256x384xbf16> to vector<256x384xbf16>
    %30 = vector.shape_cast %27 : vector<256x384xbf16> to vector<1x256x384xbf16>
    tpu.vector_store %arg10[%c0_18, %c0_19, %c0_20], %30 {strides = array<i32>} : memref<1x256x384xbf16, #tpu.memory_space<vmem>>, vector<1x256x384xbf16>,
    return
  }
  func.func @transform_0(%arg0: i32, %arg1: i32) -> (i32, i32, i32) {
    %c0_i32 = arith.constant 0 : i32
    %c0_i32_0 = arith.constant 0 : i32
    return %arg0, %arg1, %c0_i32 : i32, i32, i32
  }
  func.func @transform_1(%arg0: i32, %arg1: i32) -> (i32, i32) {
    %c0_i32 = arith.constant 0 : i32
    %c0_i32_0 = arith.constant 0 : i32
    %c0_i32_1 = arith.constant 0 : i32
    return %c0_i32, %c0_i32_0 : i32, i32
  }
  func.func @transform_2(%arg0: i32, %arg1: i32) -> (i32, i32) {
    %c0_i32 = arith.constant 0 : i32
    %c0_i32_0 = arith.constant 0 : i32
    %c0_i32_1 = arith.constant 0 : i32
    return %c0_i32, %c0_i32_0 : i32, i32
  }
  func.func @transform_3(%arg0: i32, %arg1: i32) -> (i32, i32) {
    %c0_i32 = arith.constant 0 : i32
    %c0_i32_0 = arith.constant 0 : i32
    %c0_i32_1 = arith.constant 0 : i32
    return %c0_i32, %c0_i32_0 : i32, i32
  }
  func.func @transform_4(%arg0: i32, %arg1: i32) -> (i32, i32) {
    %c0_i32 = arith.constant 0 : i32
    %c0_i32_0 = arith.constant 0 : i32
    %c0_i32_1 = arith.constant 0 : i32
    return %c0_i32, %c0_i32_0 : i32, i32
  }
  func.func @transform_5(%arg0: i32, %arg1: i32) -> (i32, i32) {
    %c0_i32 = arith.constant 0 : i32
    %c0_i32_0 = arith.constant 0 : i32
    %c0_i32_1 = arith.constant 0 : i32
    return %c0_i32, %c0_i32_0 : i32, i32
  }
  func.func @transform_6(%arg0: i32, %arg1: i32) -> (i32, i32) {
    %c0_i32 = arith.constant 0 : i32
    %c0_i32_0 = arith.constant 0 : i32
    %c0_i32_1 = arith.constant 0 : i32
    return %c0_i32, %c0_i32_0 : i32, i32
  }
  func.func @transform_7(%arg0: i32, %arg1: i32) -> (i32, i32, i32) {
    %c0_i32 = arith.constant 0 : i32
    %c0_i32_0 = arith.constant 0 : i32
    return %arg0, %arg1, %c0_i32 : i32, i32, i32
  }
  func.func @transform_8(%arg0: i32, %arg1: i32) -> (i32, i32, i32) {
    %c0_i32 = arith.constant 0 : i32
    %c0_i32_0 = arith.constant 0 : i32
    return %arg0, %arg1, %c0_i32 : i32, i32, i32
  }
}

module attributes {stable_mosaic.version = 11 : i64} {
  func.func @pam_flash_kernel(%arg0: i32, %arg1: i32, %arg2: i32, %arg3: memref<1x1xf32, #tpu.memory_space<smem>>, %arg4: memref<1x256x128xbf16, #tpu.memory_space<vmem>>, %arg5: memref<1x256x128xbf16, #tpu.memory_space<vmem>>, %arg6: memref<1x256x128xbf16, #tpu.memory_space<vmem>>, %arg7: memref<1x256x128xbf16, #tpu.memory_space<vmem>>, %arg8: memref<1x256x128xbf16, #tpu.memory_space<vmem>>, %arg9: memref<256x1xf32, #tpu.memory_space<vmem>>, %arg10: memref<256x1xf32, #tpu.memory_space<vmem>>, %arg11: memref<256x128xf32, #tpu.memory_space<vmem>>) attributes {dimension_semantics = [#tpu.dimension_semantics<parallel>, #tpu.dimension_semantics<parallel>, #tpu.dimension_semantics<arbitrary>], iteration_bounds = array<i64: 2, 1, 1>, scalar_prefetch = 0 : i64, scratch_operands = 3 : i64, tpu.core_type = #tpu.core_type<tc>, window_params = [{transform_indices = @transform_0, window_bounds = array<i64: 1, 1>}, {transform_indices = @transform_1, window_bounds = array<i64: 1, 256, 128>}, {transform_indices = @transform_2, window_bounds = array<i64: 1, 256, 128>}, {transform_indices = @transform_3, window_bounds = array<i64: 1, 256, 128>}, {transform_indices = @transform_4, window_bounds = array<i64: 1, 256, 128>}, {transform_indices = @transform_5, window_bounds = array<i64: 1, 256, 128>}]} {
    %c0_i32 = arith.constant 0 : i32
    %0 = arith.cmpi eq, %arg2, %c0_i32 : i32
    %1 = arith.extui %0 : i1 to i32
    %c0_i32_0 = arith.constant 0 : i32
    %2 = arith.cmpi ne, %1, %c0_i32_0 : i32
    scf.if %2 {
      %cst_26 = arith.constant 0xFF800000 : f32
      %36 = vector.broadcast %cst_26 : f32 to vector<256x1xf32>
      %c0_27 = arith.constant 0 : index
      %c0_28 = arith.constant 0 : index
      %37 = vector.load %arg9[%c0_27, %c0_28] : memref<256x1xf32, #tpu.memory_space<vmem>>, vector<256x1xf32>
      tpu.vector_store %arg9[%c0_27, %c0_28], %36 {strides = array<i32>} : memref<256x1xf32, #tpu.memory_space<vmem>>, vector<256x1xf32>,
      %cst_29 = arith.constant 0.000000e+00 : f32
      %38 = vector.broadcast %cst_29 : f32 to vector<256x1xf32>
      %c0_30 = arith.constant 0 : index
      %c0_31 = arith.constant 0 : index
      %39 = vector.load %arg10[%c0_30, %c0_31] : memref<256x1xf32, #tpu.memory_space<vmem>>, vector<256x1xf32>
      tpu.vector_store %arg10[%c0_30, %c0_31], %38 {strides = array<i32>} : memref<256x1xf32, #tpu.memory_space<vmem>>, vector<256x1xf32>,
      %cst_32 = arith.constant 0.000000e+00 : f32
      %40 = vector.broadcast %cst_32 : f32 to vector<256x128xf32>
      %c0_33 = arith.constant 0 : index
      %c0_34 = arith.constant 0 : index
      %41 = vector.load %arg11[%c0_33, %c0_34] : memref<256x128xf32, #tpu.memory_space<vmem>>, vector<256x128xf32>
      tpu.vector_store %arg11[%c0_33, %c0_34], %40 {strides = array<i32>} : memref<256x128xf32, #tpu.memory_space<vmem>>, vector<256x128xf32>,
    } else {
    }
    %c0 = arith.constant 0 : index
    %c0_1 = arith.constant 0 : index
    %c0_2 = arith.constant 0 : index
    %3 = vector.load %arg4[%c0, %c0_1, %c0_2] : memref<1x256x128xbf16, #tpu.memory_space<vmem>>, vector<1x256x128xbf16>
    %4 = vector.shape_cast %3 : vector<1x256x128xbf16> to vector<256x128xbf16>
    %c0_3 = arith.constant 0 : index
    %c0_4 = arith.constant 0 : index
    %c0_5 = arith.constant 0 : index
    %5 = vector.load %arg5[%c0_3, %c0_4, %c0_5] : memref<1x256x128xbf16, #tpu.memory_space<vmem>>, vector<1x256x128xbf16>
    %6 = vector.shape_cast %5 : vector<1x256x128xbf16> to vector<256x128xbf16>
    %c0_6 = arith.constant 0 : index
    %c0_7 = arith.constant 0 : index
    %c0_8 = arith.constant 0 : index
    %7 = vector.load %arg6[%c0_6, %c0_7, %c0_8] : memref<1x256x128xbf16, #tpu.memory_space<vmem>>, vector<1x256x128xbf16>
    %8 = vector.shape_cast %7 : vector<1x256x128xbf16> to vector<256x128xbf16>
    %cst = arith.constant dense<0.000000e+00> : vector<256x256xf32>
    %9 = tpu.matmul %4, %6, %cst {dimension_numbers = #tpu.dot_dimension_numbers<[1], [1], [0], [0], [0, 0, 1, 0], [], []>} : vector<256x128xbf16>, vector<256x128xbf16>, vector<256x256xf32> -> vector<256x256xf32>
    %c0_9 = arith.constant 0 : index
    %c0_10 = arith.constant 0 : index
    %10 = vector.load %arg9[%c0_9, %c0_10] : memref<256x1xf32, #tpu.memory_space<vmem>>, vector<256x1xf32>
    %cst_11 = arith.constant dense<0xFF800000> : vector<256xf32>
    %11 = vector.multi_reduction <maximumf>, %9, %cst_11 [1] : vector<256x256xf32> to vector<256xf32>
    %12 = vector.shape_cast %11 : vector<256xf32> to vector<256x1xf32>
    %13 = arith.maximumf %10, %12 : vector<256x1xf32>
    %14 = arith.subf %10, %13 : vector<256x1xf32>
    %15 = math.exp %14 : vector<256x1xf32>
    %16 = vector.broadcast %13 : vector<256x1xf32> to vector<256x256xf32>
    %17 = arith.subf %9, %16 : vector<256x256xf32>
    %18 = math.exp %17 : vector<256x256xf32>
    %c0_12 = arith.constant 0 : index
    %c0_13 = arith.constant 0 : index
    %19 = vector.load %arg10[%c0_12, %c0_13] : memref<256x1xf32, #tpu.memory_space<vmem>>, vector<256x1xf32>
    %20 = arith.mulf %15, %19 : vector<256x1xf32>
    %cst_14 = arith.constant dense<0.000000e+00> : vector<256xf32>
    %21 = vector.multi_reduction <add>, %18, %cst_14 [1] : vector<256x256xf32> to vector<256xf32>
    %22 = vector.shape_cast %21 : vector<256xf32> to vector<256x1xf32>
    %23 = arith.addf %20, %22 : vector<256x1xf32>
    %c0_15 = arith.constant 0 : index
    %c0_16 = arith.constant 0 : index
    %24 = vector.load %arg10[%c0_15, %c0_16] : memref<256x1xf32, #tpu.memory_space<vmem>>, vector<256x1xf32>
    tpu.vector_store %arg10[%c0_15, %c0_16], %23 {strides = array<i32>} : memref<256x1xf32, #tpu.memory_space<vmem>>, vector<256x1xf32>,
    %c0_17 = arith.constant 0 : index
    %c0_18 = arith.constant 0 : index
    %25 = vector.load %arg11[%c0_17, %c0_18] : memref<256x128xf32, #tpu.memory_space<vmem>>, vector<256x128xf32>
    %26 = vector.broadcast %15 : vector<256x1xf32> to vector<256x128xf32>
    %27 = arith.mulf %26, %25 : vector<256x128xf32>
    %28 = arith.truncf %18 : vector<256x256xf32> to vector<256x256xbf16>
    %cst_19 = arith.constant dense<0.000000e+00> : vector<256x128xf32>
    %29 = tpu.matmul %28, %8, %cst_19 {dimension_numbers = #tpu.dot_dimension_numbers<[1], [0], [0], [1], [0, 0, 1, 1], [], []>} : vector<256x256xbf16>, vector<256x128xbf16>, vector<256x128xf32> -> vector<256x128xf32>
    %30 = arith.addf %27, %29 : vector<256x128xf32>
    %c0_20 = arith.constant 0 : index
    %c0_21 = arith.constant 0 : index
    %31 = vector.load %arg11[%c0_20, %c0_21] : memref<256x128xf32, #tpu.memory_space<vmem>>, vector<256x128xf32>
    tpu.vector_store %arg11[%c0_20, %c0_21], %30 {strides = array<i32>} : memref<256x128xf32, #tpu.memory_space<vmem>>, vector<256x128xf32>,
    %c0_22 = arith.constant 0 : index
    %c0_23 = arith.constant 0 : index
    %32 = vector.load %arg9[%c0_22, %c0_23] : memref<256x1xf32, #tpu.memory_space<vmem>>, vector<256x1xf32>
    tpu.vector_store %arg9[%c0_22, %c0_23], %13 {strides = array<i32>} : memref<256x1xf32, #tpu.memory_space<vmem>>, vector<256x1xf32>,
    %c0_i32_24 = arith.constant 0 : i32
    %33 = arith.cmpi eq, %arg2, %c0_i32_24 : i32
    %34 = arith.extui %33 : i1 to i32
    %c0_i32_25 = arith.constant 0 : i32
    %35 = arith.cmpi ne, %34, %c0_i32_25 : i32
    scf.if %35 {
      %c0_26 = arith.constant 0 : index
      %c0_27 = arith.constant 0 : index
      %36 = vector.load %arg10[%c0_26, %c0_27] : memref<256x1xf32, #tpu.memory_space<vmem>>, vector<256x1xf32>
      %37 = tpu.reciprocal %36 {approx = true} : vector<256x1xf32> -> vector<256x1xf32>
      %c0_28 = arith.constant 0 : index
      %c0_29 = arith.constant 0 : index
      %38 = memref.load %arg3[%c0_28, %c0_29] : memref<1x1xf32, #tpu.memory_space<smem>>
      %c0_30 = arith.constant 0 : index
      %c0_31 = arith.constant 0 : index
      %39 = vector.load %arg11[%c0_30, %c0_31] : memref<256x128xf32, #tpu.memory_space<vmem>>, vector<256x128xf32>
      %40 = vector.broadcast %37 : vector<256x1xf32> to vector<256x128xf32>
      %41 = arith.mulf %39, %40 : vector<256x128xf32>
      %42 = vector.broadcast %38 : f32 to vector<256x128xf32>
      %43 = arith.mulf %42, %41 : vector<256x128xf32>
      %c0_32 = arith.constant 0 : index
      %c0_33 = arith.constant 0 : index
      %c0_34 = arith.constant 0 : index
      %44 = vector.load %arg7[%c0_32, %c0_33, %c0_34] : memref<1x256x128xbf16, #tpu.memory_space<vmem>>, vector<1x256x128xbf16>
      %45 = vector.shape_cast %44 : vector<1x256x128xbf16> to vector<256x128xbf16>
      %46 = arith.extf %45 : vector<256x128xbf16> to vector<256x128xf32>
      %47 = arith.addf %43, %46 : vector<256x128xf32>
      %48 = arith.truncf %47 : vector<256x128xf32> to vector<256x128xbf16>
      %c0_35 = arith.constant 0 : index
      %c0_36 = arith.constant 0 : index
      %c0_37 = arith.constant 0 : index
      %49 = vector.load %arg8[%c0_35, %c0_36, %c0_37] : memref<1x256x128xbf16, #tpu.memory_space<vmem>>, vector<1x256x128xbf16>
      %50 = vector.shape_cast %49 : vector<1x256x128xbf16> to vector<256x128xbf16>
      %51 = vector.shape_cast %48 : vector<256x128xbf16> to vector<1x256x128xbf16>
      tpu.vector_store %arg8[%c0_35, %c0_36, %c0_37], %51 {strides = array<i32>} : memref<1x256x128xbf16, #tpu.memory_space<vmem>>, vector<1x256x128xbf16>,
    } else {
    }
    return
  }
  func.func @transform_0(%arg0: i32, %arg1: i32, %arg2: i32) -> (i32, i32) {
    %c0_i32 = arith.constant 0 : i32
    %c0_i32_0 = arith.constant 0 : i32
    %c0_i32_1 = arith.constant 0 : i32
    return %c0_i32, %c0_i32_0 : i32, i32
  }
  func.func @transform_1(%arg0: i32, %arg1: i32, %arg2: i32) -> (i32, i32, i32) {
    %c0_i32 = arith.constant 0 : i32
    %c0_i32_0 = arith.constant 0 : i32
    return %arg0, %arg1, %c0_i32 : i32, i32, i32
  }
  func.func @transform_2(%arg0: i32, %arg1: i32, %arg2: i32) -> (i32, i32, i32) {
    %c1_i32 = arith.constant 1 : i32
    %c0_i32 = arith.constant 0 : i32
    return %arg0, %arg2, %c1_i32 : i32, i32, i32
  }
  func.func @transform_3(%arg0: i32, %arg1: i32, %arg2: i32) -> (i32, i32, i32) {
    %c2_i32 = arith.constant 2 : i32
    %c0_i32 = arith.constant 0 : i32
    return %arg0, %arg2, %c2_i32 : i32, i32, i32
  }
  func.func @transform_4(%arg0: i32, %arg1: i32, %arg2: i32) -> (i32, i32, i32) {
    %c0_i32 = arith.constant 0 : i32
    %c0_i32_0 = arith.constant 0 : i32
    return %arg0, %arg1, %c0_i32 : i32, i32, i32
  }
  func.func @transform_5(%arg0: i32, %arg1: i32, %arg2: i32) -> (i32, i32, i32) {
    %c0_i32 = arith.constant 0 : i32
    %c0_i32_0 = arith.constant 0 : i32
    return %arg0, %arg1, %c0_i32 : i32, i32, i32
  }
}

module attributes {stable_mosaic.version = 11 : i64} {
  func.func @bn_relu_kernel(%arg0: i32, %arg1: i32, %arg2: memref<1x256x128xbf16, #tpu.memory_space<vmem>>, %arg3: memref<1x128xf32, #tpu.memory_space<vmem>>, %arg4: memref<1x128xf32, #tpu.memory_space<vmem>>, %arg5: memref<1x128xf32, #tpu.memory_space<vmem>>, %arg6: memref<1x128xf32, #tpu.memory_space<vmem>>, %arg7: memref<1x256x128xf32, #tpu.memory_space<vmem>>) attributes {dimension_semantics = [#tpu.dimension_semantics<parallel>, #tpu.dimension_semantics<parallel>], iteration_bounds = array<i64: 2, 1>, scalar_prefetch = 0 : i64, scratch_operands = 0 : i64, tpu.core_type = #tpu.core_type<tc>, window_params = [{transform_indices = @transform_0, window_bounds = array<i64: 1, 256, 128>}, {pipeline_mode = #tpu.pipeline_mode<synchronous>, transform_indices = @transform_1, window_bounds = array<i64: 1, 128>}, {pipeline_mode = #tpu.pipeline_mode<synchronous>, transform_indices = @transform_2, window_bounds = array<i64: 1, 128>}, {pipeline_mode = #tpu.pipeline_mode<synchronous>, transform_indices = @transform_3, window_bounds = array<i64: 1, 128>}, {pipeline_mode = #tpu.pipeline_mode<synchronous>, transform_indices = @transform_4, window_bounds = array<i64: 1, 128>}, {transform_indices = @transform_5, window_bounds = array<i64: 1, 256, 128>}]} {
    %c0 = arith.constant 0 : index
    %c0_0 = arith.constant 0 : index
    %c0_1 = arith.constant 0 : index
    %0 = vector.load %arg2[%c0, %c0_0, %c0_1] : memref<1x256x128xbf16, #tpu.memory_space<vmem>>, vector<1x256x128xbf16>
    %1 = vector.shape_cast %0 : vector<1x256x128xbf16> to vector<256x128xbf16>
    %2 = arith.extf %1 : vector<256x128xbf16> to vector<256x128xf32>
    %c0_2 = arith.constant 0 : index
    %c0_3 = arith.constant 0 : index
    %3 = vector.load %arg3[%c0_2, %c0_3] : memref<1x128xf32, #tpu.memory_space<vmem>>, vector<1x128xf32>
    %4 = vector.broadcast %3 : vector<1x128xf32> to vector<256x128xf32>
    %5 = arith.subf %2, %4 : vector<256x128xf32>
    %c0_4 = arith.constant 0 : index
    %c0_5 = arith.constant 0 : index
    %6 = vector.load %arg4[%c0_4, %c0_5] : memref<1x128xf32, #tpu.memory_space<vmem>>, vector<1x128xf32>
    %7 = vector.broadcast %6 : vector<1x128xf32> to vector<256x128xf32>
    %8 = arith.mulf %5, %7 : vector<256x128xf32>
    %c0_6 = arith.constant 0 : index
    %c0_7 = arith.constant 0 : index
    %9 = vector.load %arg5[%c0_6, %c0_7] : memref<1x128xf32, #tpu.memory_space<vmem>>, vector<1x128xf32>
    %10 = vector.broadcast %9 : vector<1x128xf32> to vector<256x128xf32>
    %11 = arith.mulf %8, %10 : vector<256x128xf32>
    %c0_8 = arith.constant 0 : index
    %c0_9 = arith.constant 0 : index
    %12 = vector.load %arg6[%c0_8, %c0_9] : memref<1x128xf32, #tpu.memory_space<vmem>>, vector<1x128xf32>
    %13 = vector.broadcast %12 : vector<1x128xf32> to vector<256x128xf32>
    %14 = arith.addf %11, %13 : vector<256x128xf32>
    %cst = arith.constant 0.000000e+00 : f32
    %15 = vector.broadcast %cst : f32 to vector<256x128xf32>
    %16 = arith.maximumf %14, %15 : vector<256x128xf32>
    %c0_10 = arith.constant 0 : index
    %c0_11 = arith.constant 0 : index
    %c0_12 = arith.constant 0 : index
    %17 = vector.load %arg7[%c0_10, %c0_11, %c0_12] : memref<1x256x128xf32, #tpu.memory_space<vmem>>, vector<1x256x128xf32>
    %18 = vector.shape_cast %17 : vector<1x256x128xf32> to vector<256x128xf32>
    %19 = vector.shape_cast %16 : vector<256x128xf32> to vector<1x256x128xf32>
    tpu.vector_store %arg7[%c0_10, %c0_11, %c0_12], %19 {strides = array<i32>} : memref<1x256x128xf32, #tpu.memory_space<vmem>>, vector<1x256x128xf32>,
    return
  }
  func.func @transform_0(%arg0: i32, %arg1: i32) -> (i32, i32, i32) {
    %c0_i32 = arith.constant 0 : i32
    %c0_i32_0 = arith.constant 0 : i32
    return %arg0, %arg1, %c0_i32 : i32, i32, i32
  }
  func.func @transform_1(%arg0: i32, %arg1: i32) -> (i32, i32) {
    %c0_i32 = arith.constant 0 : i32
    %c0_i32_0 = arith.constant 0 : i32
    %c0_i32_1 = arith.constant 0 : i32
    return %c0_i32, %c0_i32_0 : i32, i32
  }
  func.func @transform_2(%arg0: i32, %arg1: i32) -> (i32, i32) {
    %c0_i32 = arith.constant 0 : i32
    %c0_i32_0 = arith.constant 0 : i32
    %c0_i32_1 = arith.constant 0 : i32
    return %c0_i32, %c0_i32_0 : i32, i32
  }
  func.func @transform_3(%arg0: i32, %arg1: i32) -> (i32, i32) {
    %c0_i32 = arith.constant 0 : i32
    %c0_i32_0 = arith.constant 0 : i32
    %c0_i32_1 = arith.constant 0 : i32
    return %c0_i32, %c0_i32_0 : i32, i32
  }
  func.func @transform_4(%arg0: i32, %arg1: i32) -> (i32, i32) {
    %c0_i32 = arith.constant 0 : i32
    %c0_i32_0 = arith.constant 0 : i32
    %c0_i32_1 = arith.constant 0 : i32
    return %c0_i32, %c0_i32_0 : i32, i32
  }
  func.func @transform_5(%arg0: i32, %arg1: i32) -> (i32, i32, i32) {
    %c0_i32 = arith.constant 0 : i32
    %c0_i32_0 = arith.constant 0 : i32
    return %arg0, %arg1, %c0_i32 : i32, i32, i32
  }
}

</mosaic_0001>

<bundles_post_ra>
// kernel: pam_cam_layer_forward.6
= control target key start
LH: loop header
LB: loop body
LE: loop exit
PB: predicated region body
PF: predicated region fallthrough
CT: control target
= control target key end

     0   :  { %s1907_s27 = smov 0   ;;  %s1909_s28 = smov 0   ;;  %s2577_s0 = inlined_call_operand.vmem [shape: bf16[2,256,128], index: 0, kind: input, shape index: {}]   ;;  %s2578_s1 = inlined_call_operand.vmem [shape: f32[1,128], index: 1, kind: input, shape index: {}]   ;;  %s2579_s2 = inlined_call_operand.vmem [shape: f32[1,128], index: 2, kind: input, shape index: {}]   ;;  %s2580_s3 = inlined_call_operand.vmem [shape: f32[1,128], index: 3, kind: input, shape index: {}]   ;;  %s2581_s4 = inlined_call_operand.vmem [shape: f32[1,128], index: 4, kind: input, shape index: {}]   ;;  %s2582_s5 = inlined_call_operand.vmem [shape: bf16[128,384], index: 5, kind: input, shape index: {}]   ;;  %s2583_s6 = inlined_call_operand.vmem [shape: f32[1,384], index: 6, kind: input, shape index: {}]   ;;  %s2584_s7 = inlined_call_operand.vmem [shape: bf16[2,256,128], index: 7, kind: output, shape index: {0}]   ;;  %s2585_s8 = inlined_call_operand.vmem [shape: bf16[2,256,384], index: 8, kind: output, shape index: {1}]  }
   0x1   :  { %s1911_s29 = smov 0  }
   0x2 LB: > { %s31_s30 = sadd.s32 1, %s1856_s28  ;;  %p1481_p0 = scmp.ge.s32.totalorder %s1860_s29, 1  ;;  %s1860_s29 = sphi %s1911_s29, %s19_s29   ;;  %s1856_s28 = sphi %s1909_s28, %s2587_s28   ;;  %s1852_s27 = sphi %s1907_s27, %s2586_s27  }
   0x3   : > { %p33_p1 = scmp.ge.s32.totalorder %s31_s30, 2  ;;  %p288_p2 = scmp.lt.s32.totalorder %s1860_s29, 3 }
   0x5   : > { %s2589_s30 = smov (%p33_p1, %s31_s30), 0  ;;  %p289_p3 = pnand %p1481_p0, %p288_p2 }
   0x6   : > { %p341_p4 = scmp.lt.s32.totalorder (!%p289_p3), %s1852_s27, 1 }
   0x7   : > { %292 = sbr.rel (%p289_p3) target bundleno = 373 (0x175), region = 48 }
   0xc   : > { %v1573_v0 = vld [vmem:[%s2582_s5 + $0xa8] sm:$0xf]  ;;  %v1609_v1 = vld [vmem:[%s2582_s5 + $0xb0] sm:$0xf0]  ;;  %v1608_v2 = vld [vmem:[%s2582_s5 + $0xac] sm:$0xf] }
   0xd   : > { %v1574_v3 = vor.u32 %v1609_v1, %v1573_v0  ;;  %v1575_v4 = vld [vmem:[%s2582_s5 + $0xb4] sm:$0xf0]  ;;  %v1581_v5 = vld [vmem:[%s2582_s5 + $0xb0] sm:$0xf]  ;;  %v1610_v6 = vld [vmem:[%s2582_s5 + $0xb8] sm:$0xf0] }
   0xe   : > { %v1945_v7 = vor.u32 %v1608_v2, %v1575_v4  ;;  %v1947_v8 = vor.u32 %v1610_v6, %v1581_v5  ;;  %v1561_v9 = vld [vmem:[%s2582_s5 + $0x90] sm:$0xf]  ;;  %v1606_v10 = vld [vmem:[%s2582_s5 + $0x98] sm:$0xf0]  ;;  %v1605_v11 = vld [vmem:[%s2582_s5 + $0x94] sm:$0xf] }
   0xf   : > { %939 = vmatpush.bf16.msra.mxu0 %v1574_v3  ;;  %1785 = vmatpush.bf16.msra.mxu3 %v1574_v3  ;;  %v1562_v12 = vor.u32 %v1606_v10, %v1561_v9  ;;  %v1563_v13 = vld [vmem:[%s2582_s5 + $0x9c] sm:$0xf0]  ;;  %v1569_v14 = vld [vmem:[%s2582_s5 + $0x98] sm:$0xf]  ;;  %v1607_v15 = vld [vmem:[%s2582_s5 + $0xa0] sm:$0xf0] }
  0x10   : > { %1028 = vmatpush.bf16.msra.mxu1 %v1945_v7  ;;  %1117 = vmatpush.bf16.msra.mxu2 %v1947_v8  ;;  %v1969_v16 = vor.u32 %v1605_v11, %v1563_v13  ;;  %v1971_v17 = vor.u32 %v1607_v15, %v1569_v14  ;;  %v1549_v18 = vld [vmem:[%s2582_s5 + $0x78] sm:$0xf]  ;;  %v1603_v19 = vld [vmem:[%s2582_s5 + $0x80] sm:$0xf0]  ;;  %v1602_v20 = vld [vmem:[%s2582_s5 + $0x7c] sm:$0xf] }
  0x11   : > { %v1551_v21 = vld [vmem:[%s2582_s5 + $0x84] sm:$0xf0]  ;;  %v1557_v22 = vld [vmem:[%s2582_s5 + $0x80] sm:$0xf]  ;;  %v1604_v23 = vld [vmem:[%s2582_s5 + $0x88] sm:$0xf0]  ;;  %v1550_v24 = vor.u32 %v1603_v19, %v1549_v18 }
  0x12   : > { %v1993_v25 = vor.u32 %v1602_v20, %v1551_v21  ;;  %v1995_v26 = vor.u32 %v1604_v23, %v1557_v22  ;;  %v1537_v27 = vld [vmem:[%s2582_s5 + $0x60] sm:$0xf]  ;;  %v1600_v28 = vld [vmem:[%s2582_s5 + $0x68] sm:$0xf0]  ;;  %v1599_v29 = vld [vmem:[%s2582_s5 + $0x64] sm:$0xf] }
  0x13   : > { %940 = vmatpush.bf16.msra.mxu0 %v1562_v12  ;;  %1786 = vmatpush.bf16.msra.mxu3 %v1562_v12  ;;  %v1539_v30 = vld [vmem:[%s2582_s5 + $0x6c] sm:$0xf0]  ;;  %v1545_v31 = vld [vmem:[%s2582_s5 + $0x68] sm:$0xf]  ;;  %v1601_v32 = vld [vmem:[%s2582_s5 + $0x70] sm:$0xf0]  ;;  %v1538_v33 = vor.u32 %v1600_v28, %v1537_v27 }
  0x14   : > { %1029 = vmatpush.bf16.msra.mxu1 %v1969_v16  ;;  %1118 = vmatpush.bf16.msra.mxu2 %v1971_v17  ;;  %v2017_v34 = vor.u32 %v1599_v29, %v1539_v30  ;;  %v2019_v35 = vor.u32 %v1601_v32, %v1545_v31  ;;  %v1525_v36 = vld [vmem:[%s2582_s5 + $0x48] sm:$0xf]  ;;  %v1597_v37 = vld [vmem:[%s2582_s5 + $0x50] sm:$0xf0]  ;;  %v1596_v38 = vld [vmem:[%s2582_s5 + $0x4c] sm:$0xf] }
  0x15   : > { %v1527_v39 = vld [vmem:[%s2582_s5 + $0x54] sm:$0xf0]  ;;  %v1533_v40 = vld [vmem:[%s2582_s5 + $0x50] sm:$0xf]  ;;  %v1598_v41 = vld [vmem:[%s2582_s5 + $0x58] sm:$0xf0]  ;;  %v1526_v44 = vor.u32 %v1597_v37, %v1525_v36 }
  0x16   : > { %v1513_v42 = vld [vmem:[%s2582_s5 + $0x30] sm:$0xf]  ;;  %v1594_v43 = vld [vmem:[%s2582_s5 + $0x38] sm:$0xf0]  ;;  %v1593_v45 = vld [vmem:[%s2582_s5 + $0x34] sm:$0xf]  ;;  %v2059_v49 = vor.u32 %v1596_v38, %v1527_v39  ;;  %v2061_v50 = vor.u32 %v1598_v41, %v1533_v40 }
  0x17   : > { %941 = vmatpush.bf16.msra.mxu0 %v1550_v24  ;;  %1787 = vmatpush.bf16.msra.mxu3 %v1550_v24  ;;  %v1515_v46 = vld [vmem:[%s2582_s5 + $0x3c] sm:$0xf0]  ;;  %v1521_v47 = vld [vmem:[%s2582_s5 + $0x38] sm:$0xf]  ;;  %v1595_v48 = vld [vmem:[%s2582_s5 + $0x40] sm:$0xf0]  ;;  %v1514_v60 = vor.u32 %v1594_v43, %v1513_v42 }
  0x18   : > { %1030 = vmatpush.bf16.msra.mxu1 %v1993_v25  ;;  %1119 = vmatpush.bf16.msra.mxu2 %v1995_v26  ;;  %v1501_v51 = vld [vmem:[%s2582_s5 + $0x18] sm:$0xf]  ;;  %v1591_v52 = vld [vmem:[%s2582_s5 + $0x20] sm:$0xf0]  ;;  %v1590_v53 = vld [vmem:[%s2582_s5 + $0x1c] sm:$0xf]  ;;  %v2105_v0 = vor.u32 %v1593_v45, %v1515_v46  ;;  %v2107_v1 = vor.u32 %v1595_v48, %v1521_v47 }
  0x19   : > { %v1503_v54 = vld [vmem:[%s2582_s5 + $0x24] sm:$0xf0]  ;;  %v1509_v55 = vld [vmem:[%s2582_s5 + $0x20] sm:$0xf]  ;;  %v1592_v56 = vld [vmem:[%s2582_s5 + $0x28] sm:$0xf0]  ;;  %v1502_v2 = vor.u32 %v1591_v52, %v1501_v51 }
  0x1a   : > { %v1489_v57 = vld [vmem:[%s2582_s5] sm:$0xf]  ;;  %v1588_v58 = vld [vmem:[%s2582_s5 + $0x8] sm:$0xf0]  ;;  %v1587_v59 = vld [vmem:[%s2582_s5 + $0x4] sm:$0xf]  ;;  %v2110_v3 = vor.u32 %v1590_v53, %v1503_v54  ;;  %v2124_v5 = vor.u32 %v1592_v56, %v1509_v55 }
  0x1b   : > { %942 = vmatpush.bf16.msra.mxu0 %v1538_v33  ;;  %1788 = vmatpush.bf16.msra.mxu3 %v1538_v33  ;;  %s2591_s27 = smov (!%p341_p4, %s1852_s27), 1  ;;  %v1491_v61 = vld [vmem:[%s2582_s5 + $0xc] sm:$0xf0]  ;;  %v1497_v62 = vld [vmem:[%s2582_s5 + $0x8] sm:$0xf]  ;;  %v1490_v6 = vor.u32 %v1588_v58, %v1489_v57 }
  0x1c   : > { %1031 = vmatpush.bf16.msra.mxu1 %v2017_v34  ;;  %1120 = vmatpush.bf16.msra.mxu2 %v2019_v35  ;;  %v1589_v63 = vld [vmem:[%s2582_s5 + $0x10] sm:$0xf0]  ;;  %s1585_s15 = sshll.u32 %s2591_s27, 7  ;;  %v2122_v4 = vld [vmem:[%s2578_s1] ss:$0 sm:$0xff]  ;;  %v2126_v9 = vor.u32 %v1587_v59, %v1491_v61  ;;  %s1809_s14 = smul.u32 384, %s2591_s27 }
  0x1d   : > { %s2117_s18 = scalar_lea.vmem %s2577_s0, %s1585_s15  ;;  %v2128_v10 = vor.u32 %v1589_v63, %v1497_v62  ;;  %v2136_v18 = vld [vmem:[%s2579_s2] ss:$0 sm:$0xff]  ;;  %s2192_s11 = scalar_lea.vmem %s2584_s7, %s1585_s15 }
  0x1e   : > { %v1612_v11 = vld [vmem:[%s2117_s18] sm:$0xff]   ;;  %v1755_v13 = vld [vmem:[%s2117_s18 + $0x8] sm:$0xff]   ;;  %v1756_v46 = vld [vmem:[%s2117_s18 + $0x10] sm:$0xff]   ;;  %s2368_s17 = scalar_lea.vmem %s2585_s8, %s1809_s14 }
  0x1f   : > { %943 = vmatpush.bf16.msra.mxu0 %v1526_v44  ;;  %1789 = vmatpush.bf16.msra.mxu3 %v1526_v44  ;;  %v1766_v12 = vld [vmem:[%s2117_s18 + $0x60] sm:$0xff]   ;;  %v1613_v14 = vunpack.c.l.bf16 %v1612_v11  ;;  %v1614_v15 = vunpack.c.h.bf16 %v1612_v11  ;;  %v1767_v21 = vld [vmem:[%s2117_s18 + $0x68] sm:$0xff]   ;;  %v1617_v22 = vunpack.c.l.bf16 %v1755_v13  ;;  %v1618_v23 = vunpack.c.h.bf16 %v1755_v13 }
  0x20   : > { %1032 = vmatpush.bf16.msra.mxu1 %v2059_v49  ;;  %1121 = vmatpush.bf16.msra.mxu2 %v2061_v50  ;;  %v1661_v19 = vunpack.c.l.bf16 %v1766_v12  ;;  %v1662_v20 = vunpack.c.h.bf16 %v1766_v12  ;;  %v1665_v24 = vunpack.c.l.bf16 %v1767_v21  ;;  %v1666_v27 = vunpack.c.h.bf16 %v1767_v21  ;;  %v2146_v30 = vld [vmem:[%s2580_s3] ss:$0 sm:$0xff] }
  0x21   : > { %v439_v28 = vsub.f32 %v1613_v14, %v2122_v4  ;;  %v440_v29 = vsub.f32 %v1614_v15, %v2122_v4  ;;  %v441_v33 = vsub.f32 %v1617_v22, %v2122_v4  ;;  %v442_v36 = vsub.f32 %v1618_v23, %v2122_v4  ;;  %v2159_v41 = vld [vmem:[%s2581_s4] ss:$0 sm:$0xff]  ;;  %v1768_v14 = vld [vmem:[%s2117_s18 + $0x70] sm:$0xff]  }
  0x22   : > { %v463_v31 = vsub.f32 %v1661_v19, %v2122_v4  ;;  %v464_v32 = vsub.f32 %v1662_v20, %v2122_v4  ;;  %v465_v37 = vsub.f32 %v1665_v24, %v2122_v4  ;;  %v466_v38 = vsub.f32 %v1666_v27, %v2122_v4 }
  0x23   : > { %944 = vmatpush.bf16.msra.mxu0 %v1514_v60  ;;  %1790 = vmatpush.bf16.msra.mxu3 %v1514_v60  ;;  %v475_v39 = vmul.f32 %v2136_v18, %v439_v28  ;;  %v476_v40 = vmul.f32 %v2136_v18, %v440_v29  ;;  %v477_v44 = vmul.f32 %v2136_v18, %v441_v33  ;;  %v1621_v60 = vunpack.c.l.bf16 %v1756_v46 }
  0x24   : > { %1033 = vmatpush.bf16.msra.mxu1 %v2105_v0  ;;  %1122 = vmatpush.bf16.msra.mxu2 %v2107_v1  ;;  %v499_v42 = vmul.f32 %v2136_v18, %v463_v31  ;;  %v500_v43 = vmul.f32 %v2136_v18, %v464_v32  ;;  %v478_v45 = vmul.f32 %v2136_v18, %v442_v36  ;;  %v1669_v29 = vunpack.c.l.bf16 %v1768_v14 }
  0x25   : > { %v511_v47 = vmul.f32 %v2146_v30, %v475_v39  ;;  %v512_v48 = vmul.f32 %v2146_v30, %v476_v40  ;;  %v501_v52 = vmul.f32 %v2136_v18, %v465_v37  ;;  %v513_v54 = vmul.f32 %v2146_v30, %v477_v44 }
  0x26   : > { %v535_v51 = vmul.f32 %v2146_v30, %v499_v42  ;;  %v536_v53 = vmul.f32 %v2146_v30, %v500_v43  ;;  %v514_v55 = vmul.f32 %v2146_v30, %v478_v45  ;;  %v502_v56 = vmul.f32 %v2136_v18, %v466_v38  ;;  %v1757_v45 = vld [vmem:[%s2117_s18 + $0x18] sm:$0xff]  }
  0x27   : > { %945 = vmatpush.bf16.msra.mxu0 %v1502_v2  ;;  %1791 = vmatpush.bf16.msra.mxu3 %v1502_v2  ;;  %v547_v57 = vadd.f32 %v2159_v41, %v511_v47  ;;  %v548_v58 = vadd.f32 %v2159_v41, %v512_v48  ;;  %v549_v62 = vadd.f32 %v2159_v41, %v513_v54  ;;  %v1622_v2 = vunpack.c.h.bf16 %v1756_v46 }
  0x28   : > { %1034 = vmatpush.bf16.msra.mxu1 %v2110_v3  ;;  %1123 = vmatpush.bf16.msra.mxu2 %v2124_v5  ;;  %v571_v59 = vadd.f32 %v2159_v41, %v535_v51  ;;  %v572_v61 = vadd.f32 %v2159_v41, %v536_v53  ;;  %v550_v63 = vadd.f32 %v2159_v41, %v514_v55  ;;  %v1670_v31 = vunpack.c.h.bf16 %v1768_v14 }
  0x29   : > { %v580_v11 = vmax.f32 %v548_v58, 0.0  ;;  %v537_v13 = vmul.f32 %v2146_v30, %v501_v52  ;;  %v581_v19 = vmax.f32 %v549_v62, 0.0  ;;  %v538_v21 = vmul.f32 %v2146_v30, %v502_v56  ;;  %v1769_v62 = vld [vmem:[%s2117_s18 + $0x78] sm:$0xff]  }
  0x2a   : > { %v603_v12 = vmax.f32 %v571_v59, 0.0  ;;  %v604_v15 = vmax.f32 %v572_v61, 0.0  ;;  %v2194_v20 = vmax.f32 %v550_v63, 0.0  ;;  %v443_v43 = vsub.f32 %v1621_v60, %v2122_v4 }
  0x2b   : > { %946 = vmatpush.bf16.msra.mxu0 %v1490_v6  ;;  %1792 = vmatpush.bf16.msra.mxu3 %v1490_v6  ;;  %v579_v6 = vmax.f32 %v547_v57, 0.0  ;;  %v612_v23 = vpack.c.bf16 %v580_v11, %v580_v11  ;;  %v573_v39 = vadd.f32 %v2159_v41, %v537_v13  ;;  %v574_v42 = vadd.f32 %v2159_v41, %v538_v21 }
  0x2c   : > { %1035 = vmatpush.bf16.msra.mxu1 %v2126_v9  ;;  %1124 = vmatpush.bf16.msra.mxu2 %v2128_v10  ;;  %v635_v24 = vpack.c.bf16 %v603_v12, %v603_v12  ;;  %v636_v27 = vpack.c.bf16 %v604_v15, %v604_v15  ;;  %v1738_v28 = vpack.c.bf16 %v604_v15, %v603_v12  ;;  %v1625_v56 = vunpack.c.l.bf16 %v1757_v45 }
  0x2d   : > { %v611_v22 = vpack.c.bf16 %v579_v6, %v579_v6  ;;  %v748_v33 = vunpack.c.l.b16 %v612_v23  ;;  %v1683_v37 = vpack.c.bf16 %v2194_v20, %v581_v19  ;;  %v444_v44 = vsub.f32 %v1622_v2, %v2122_v4 }
  0x2e   : > { %v771_v36 = vunpack.c.l.b16 %v635_v24  ;;  %1781 = vst [vmem:[%s2192_s11 + $0x60] sm:$0xff] %v1738_v28   ;;  %v772_v38 = vunpack.c.l.b16 %v636_v27  ;;  %v605_v47 = vmax.f32 %v573_v39, 0.0  ;;  %v606_v48 = vmax.f32 %v574_v42, 0.0 }
  0x2f   : > { %1793 = vmatpush.bf16.msrb.mxu3 %v1945_v7  ;;  %v1678_v7 = vpack.c.bf16 %v580_v11, %v579_v6  ;;  %v747_v32 = vunpack.c.l.b16 %v611_v22  ;;  %1770 = vst [vmem:[%s2192_s11 + $0x8] sm:$0xff] %v1683_v37   ;;  %v479_v51 = vmul.f32 %v2136_v18, %v443_v43  ;;  %v480_v52 = vmul.f32 %v2136_v18, %v444_v44 }
  0x30   : > { %v2207_v46 = vpack.c.b16 %v772_v38, %v771_v36  ;;  %v468_v53 = vsub.f32 %v1670_v31, %v2122_v4  ;;  %v613_v54 = vpack.c.bf16 %v581_v19, %v581_v19  ;;  %v1626_v57 = vunpack.c.h.bf16 %v1757_v45 }
  0x31   : > { %1679 = vst [vmem:[%s2192_s11] sm:$0xff] %v1678_v7   ;;  %v779_v40 = vpack.c.b16 %v748_v33, %v747_v32  ;;  %v614_v58 = vpack.c.bf16 %v2194_v20, %v2194_v20  ;;  %v1743_v59 = vpack.c.bf16 %v606_v48, %v605_v47  ;;  %v515_v60 = vmul.f32 %v2146_v30, %v479_v51 }
  0x32   : > { %1007 = vmatmul.bf16.vlgmr.msra.gmra.mxu3 %v2207_v46  ;;  %v516_v61 = vmul.f32 %v2146_v30, %v480_v52  ;;  %v637_v63 = vpack.c.bf16 %v605_v47, %v605_v47  ;;  %v504_v2 = vmul.f32 %v2136_v18, %v468_v53  ;;  %v445_v11 = vsub.f32 %v1625_v56, %v2122_v4 }
  0x33   : > { %1794 = vmatpush.bf16.msrb.mxu3 %v1969_v16  ;;  %v467_v16 = vsub.f32 %v1669_v29, %v2122_v4  ;;  %947 = vmatmul.bf16.vlgmr.msra.gmra.mxu0 %v779_v40  ;;  %v638_v12 = vpack.c.bf16 %v606_v48, %v606_v48  ;;  %1782 = vst [vmem:[%s2192_s11 + $0x68] sm:$0xff] %v1743_v59   ;;  %v1673_v21 = vunpack.c.l.bf16 %v1769_v62  ;;  %v749_v22 = vunpack.c.l.b16 %v613_v54 }
  0x34   : > { %1036 = vmatmul.bf16.vlgmr.msra.gmra.mxu1 %v779_v40  ;;  %1125 = vmatmul.bf16.vlgmr.msra.gmra.mxu2 %v779_v40  ;;  %v551_v13 = vadd.f32 %v2159_v41, %v515_v60  ;;  %v552_v14 = vadd.f32 %v2159_v41, %v516_v61  ;;  %v540_v15 = vmul.f32 %v2146_v30, %v504_v2  ;;  %v750_v27 = vunpack.c.l.b16 %v614_v58 }
  0x35   : > { %v503_v55 = vmul.f32 %v2136_v18, %v467_v16  ;;  %v481_v20 = vmul.f32 %v2136_v18, %v445_v11  ;;  %v1674_v31 = vunpack.c.h.bf16 %v1769_v62  ;;  %v773_v32 = vunpack.c.l.b16 %v637_v63 }
  0x36   : > { %v583_v23 = vmax.f32 %v551_v13, 0.0  ;;  %v584_v7 = vmax.f32 %v552_v14, 0.0  ;;  %v576_v28 = vadd.f32 %v2159_v41, %v540_v15  ;;  %v774_v33 = vunpack.c.l.b16 %v638_v12 }
  0x37   : > { %1795 = vmatpush.bf16.msrb.mxu3 %v1993_v25  ;;  %v539_v6 = vmul.f32 %v2146_v30, %v503_v55  ;;  %v446_v25 = vsub.f32 %v1626_v57, %v2122_v4  ;;  %v517_v29 = vmul.f32 %v2146_v30, %v481_v20  ;;  %v469_v40 = vsub.f32 %v1673_v21, %v2122_v4  ;;  %v1758_v55 = vld [vmem:[%s2117_s18 + $0x20] sm:$0xff]  }
  0x38   : > { %v1688_v36 = vpack.c.bf16 %v584_v7, %v583_v23  ;;  %v608_v39 = vmax.f32 %v576_v28, 0.0  ;;  %v470_v43 = vsub.f32 %v1674_v31, %v2122_v4  ;;  %v780_v44 = vpack.c.b16 %v750_v27, %v749_v22 }
  0x39   : > { %v575_v19 = vadd.f32 %v2159_v41, %v539_v6  ;;  %v482_v24 = vmul.f32 %v2136_v18, %v446_v25  ;;  %v505_v48 = vmul.f32 %v2136_v18, %v469_v40  ;;  %v2248_v52 = vpack.c.b16 %v774_v33, %v773_v32 }
  0x3a   : > { %1771 = vst [vmem:[%s2192_s11 + $0x10] sm:$0xff] %v1688_v36   ;;  %v506_v51 = vmul.f32 %v2136_v18, %v470_v43  ;;  %v1629_v56 = vunpack.c.l.bf16 %v1758_v55  ;;  %v1630_v57 = vunpack.c.h.bf16 %v1758_v55  ;;  %v615_v6 = vpack.c.bf16 %v583_v23, %v583_v23 }
  0x3b   : > { %1796 = vmatpush.bf16.msrb.mxu3 %v2017_v34  ;;  %v518_v37 = vmul.f32 %v2146_v30, %v482_v24  ;;  %v607_v38 = vmax.f32 %v575_v19, 0.0  ;;  %v553_v34 = vadd.f32 %v2159_v41, %v517_v29  ;;  %v541_v53 = vmul.f32 %v2146_v30, %v505_v48 }
  0x3c   : > { %v542_v54 = vmul.f32 %v2146_v30, %v506_v51  ;;  %v448_v60 = vsub.f32 %v1630_v57, %v2122_v4  ;;  %v616_v11 = vpack.c.bf16 %v584_v7, %v584_v7  ;;  %v640_v14 = vpack.c.bf16 %v608_v39, %v608_v39 }
  0x3d   : > { %v554_v42 = vadd.f32 %v2159_v41, %v518_v37  ;;  %v1748_v45 = vpack.c.bf16 %v608_v39, %v607_v38  ;;  %v2242_v47 = vmax.f32 %v553_v34, 0.0  ;;  %v577_v58 = vadd.f32 %v2159_v41, %v541_v53 }
  0x3e   : > { %v578_v59 = vadd.f32 %v2159_v41, %v542_v54  ;;  %v484_v2 = vmul.f32 %v2136_v18, %v448_v60  ;;  %v639_v13 = vpack.c.bf16 %v607_v38, %v607_v38  ;;  %v751_v20 = vunpack.c.l.b16 %v615_v6  ;;  %v1760_v54 = vld [vmem:[%s2117_s18 + $0x30] sm:$0xff]  }
  0x3f   : > { %1797 = vmatpush.bf16.msrb.mxu3 %v2059_v49  ;;  %v2244_v16 = vmax.f32 %v554_v42, 0.0  ;;  %1783 = vst [vmem:[%s2192_s11 + $0x70] sm:$0xff] %v1748_v45   ;;  %v609_v61 = vmax.f32 %v577_v58, 0.0  ;;  %v752_v21 = vunpack.c.l.b16 %v616_v11  ;;  %v776_v23 = vunpack.c.l.b16 %v640_v14  ;;  %v1761_v14 = vld [vmem:[%s2117_s18 + $0x38] sm:$0xff]  }
  0x40   : > { %v610_v62 = vmax.f32 %v578_v59, 0.0  ;;  %v520_v15 = vmul.f32 %v2146_v30, %v484_v2  ;;  %v775_v22 = vunpack.c.l.b16 %v639_v13  ;;  %v617_v37 = vpack.c.bf16 %v2242_v47, %v2242_v47 }
  0x41   : > { %v1693_v49 = vpack.c.bf16 %v2244_v16, %v2242_v47  ;;  %v781_v28 = vpack.c.b16 %v752_v21, %v751_v20  ;;  %v641_v38 = vpack.c.bf16 %v609_v61, %v609_v61  ;;  %v1637_v55 = vunpack.c.l.bf16 %v1760_v54 }
  0x42   : > { %1012 = vmatmul.bf16.gmra.mxu3 %v2248_v52  ;;  %v1753_v12 = vpack.c.bf16 %v610_v62, %v609_v61  ;;  %v556_v19 = vadd.f32 %v2159_v41, %v520_v15  ;;  %v2274_v29 = vpack.c.b16 %v776_v23, %v775_v22  ;;  %v642_v39 = vpack.c.bf16 %v610_v62, %v610_v62 }
  0x43   : > { %1798 = vmatpush.bf16.msrb.mxu3 %v2105_v0  ;;  %952 = vmatmul.bf16.gmra.mxu0 %v780_v44  ;;  %1772 = vst [vmem:[%s2192_s11 + $0x18] sm:$0xff] %v1693_v49   ;;  %v447_v0 = vsub.f32 %v1629_v56, %v2122_v4  ;;  %v777_v45 = vunpack.c.l.b16 %v641_v38  ;;  %v1638_v56 = vunpack.c.h.bf16 %v1760_v54 }
  0x44   : > { %1041 = vmatmul.bf16.gmra.mxu1 %v780_v44  ;;  %1130 = vmatmul.bf16.gmra.mxu2 %v780_v44  ;;  %1784 = vst [vmem:[%s2192_s11 + $0x78] sm:$0xff] %v1753_v12   ;;  %v588_v24 = vmax.f32 %v556_v19, 0.0  ;;  %v778_v47 = vunpack.c.l.b16 %v642_v39 }
  0x45   : > { %v483_v63 = vmul.f32 %v2136_v18, %v447_v0  ;;  %v452_v57 = vsub.f32 %v1638_v56, %v2122_v4 }
  0x46   : > { %v2295_v53 = vpack.c.b16 %v778_v47, %v777_v45  ;;  %v620_v0 = vpack.c.bf16 %v588_v24, %v588_v24 }
  0x47   : > { %1799 = vmatpush.bf16.msrb.mxu3 %v2110_v3  ;;  %v519_v25 = vmul.f32 %v2146_v30, %v483_v63  ;;  %v488_v58 = vmul.f32 %v2136_v18, %v452_v57 }
  0x48   : > { %v756_v2 = vunpack.c.l.b16 %v620_v0 }
  0x49   : > { %v555_v3 = vadd.f32 %v2159_v41, %v519_v25  ;;  %v524_v60 = vmul.f32 %v2146_v30, %v488_v58  ;;  %v1641_v25 = vunpack.c.l.bf16 %v1761_v14 }
  0x4b   : > { %1800 = vmatpush.bf16.msrb.mxu3 %v2126_v9  ;;  %v587_v7 = vmax.f32 %v555_v3, 0.0  ;;  %v1759_v9 = vld [vmem:[%s2117_s18 + $0x28] sm:$0xff]   ;;  %v560_v62 = vadd.f32 %v2159_v41, %v524_v60  ;;  %v453_v15 = vsub.f32 %v1641_v25, %v2122_v4 }
  0x4c   : > { %v1633_v31 = vunpack.c.l.bf16 %v1759_v9  ;;  %v1634_v32 = vunpack.c.h.bf16 %v1759_v9 }
  0x4d   : > { %v1698_v27 = vpack.c.bf16 %v588_v24, %v587_v7  ;;  %v619_v59 = vpack.c.bf16 %v587_v7, %v587_v7  ;;  %v592_v11 = vmax.f32 %v560_v62, 0.0  ;;  %v489_v19 = vmul.f32 %v2136_v18, %v453_v15 }
  0x4e   : > { %v450_v33 = vsub.f32 %v1634_v32, %v2122_v4 }
  0x4f   : > { %1801 = vmatpush.bf16.msra.mxu3 %v1947_v8  ;;  %1773 = vst [vmem:[%s2192_s11 + $0x20] sm:$0xff] %v1698_v27   ;;  %v449_v8 = vsub.f32 %v1633_v31, %v2122_v4  ;;  %v755_v63 = vunpack.c.l.b16 %v619_v59  ;;  %v525_v23 = vmul.f32 %v2146_v30, %v489_v19 }
  0x50   : > { %v486_v36 = vmul.f32 %v2136_v18, %v450_v33 }
  0x51   : > { %v783_v13 = vpack.c.b16 %v756_v2, %v755_v63  ;;  %v561_v24 = vadd.f32 %v2159_v41, %v525_v23 }
  0x52   : > { %1017 = vmatmul.bf16.gmra.mxu3 %v2274_v29  ;;  %v522_v40 = vmul.f32 %v2146_v30, %v486_v36 }
  0x53   : > { %1802 = vmatpush.bf16.msra.mxu3 %v1971_v17  ;;  %957 = vmatmul.bf16.gmra.mxu0 %v781_v28  ;;  %v485_v17 = vmul.f32 %v2136_v18, %v449_v8  ;;  %v593_v31 = vmax.f32 %v561_v24, 0.0 }
  0x54   : > { %1046 = vmatmul.bf16.gmra.mxu1 %v781_v28  ;;  %1135 = vmatmul.bf16.gmra.mxu2 %v781_v28  ;;  %v558_v43 = vadd.f32 %v2159_v41, %v522_v40 }
  0x55   : > { %v521_v34 = vmul.f32 %v2146_v30, %v485_v17  ;;  %v1762_v17 = vld [vmem:[%s2117_s18 + $0x40] sm:$0xff]   ;;  %v625_v58 = vpack.c.bf16 %v593_v31, %v593_v31 }
  0x56   : > { %v1645_v36 = vunpack.c.l.bf16 %v1762_v17 }
  0x57   : > { %1803 = vmatpush.bf16.msra.mxu3 %v1995_v26  ;;  %v618_v26 = vpack.c.bf16 %v2244_v16, %v2244_v16  ;;  %v557_v42 = vadd.f32 %v2159_v41, %v521_v34  ;;  %v590_v16 = vmax.f32 %v558_v43, 0.0  ;;  %v624_v34 = vpack.c.bf16 %v592_v11, %v592_v11 }
  0x58   : > { %v761_v60 = vunpack.c.l.b16 %v625_v58 }
  0x59   : > { %v754_v44 = vunpack.c.l.b16 %v618_v26  ;;  %v589_v48 = vmax.f32 %v557_v42, 0.0  ;;  %v622_v22 = vpack.c.bf16 %v590_v16, %v590_v16  ;;  %v455_v26 = vsub.f32 %v1645_v36, %v2122_v4 }
  0x5b   : > { %1804 = vmatpush.bf16.msra.mxu3 %v2019_v35  ;;  %v753_v35 = vunpack.c.l.b16 %v617_v37  ;;  %v1703_v51 = vpack.c.bf16 %v590_v16, %v589_v48  ;;  %v621_v21 = vpack.c.bf16 %v589_v48, %v589_v48  ;;  %v758_v9 = vunpack.c.l.b16 %v622_v22 }
  0x5c   : > { %v1646_v37 = vunpack.c.h.bf16 %v1762_v17  ;;  %v491_v40 = vmul.f32 %v2136_v18, %v455_v26 }
  0x5d   : > { %v782_v49 = vpack.c.b16 %v754_v44, %v753_v35  ;;  %1774 = vst [vmem:[%s2192_s11 + $0x28] sm:$0xff] %v1703_v51   ;;  %v757_v28 = vunpack.c.l.b16 %v621_v21  ;;  %v760_v35 = vunpack.c.l.b16 %v624_v34  ;;  %v1763_v51 = vld [vmem:[%s2117_s18 + $0x48] sm:$0xff]  }
  0x5e   : > { %v456_v38 = vsub.f32 %v1646_v37, %v2122_v4  ;;  %v527_v44 = vmul.f32 %v2146_v30, %v491_v40  ;;  %v1650_v54 = vunpack.c.h.bf16 %v1763_v51 }
  0x5f   : > { %1805 = vmatpush.bf16.msra.mxu3 %v2061_v50  ;;  %v451_v50 = vsub.f32 %v1637_v55, %v2122_v4  ;;  %v784_v33 = vpack.c.b16 %v758_v9, %v757_v28 }
  0x60   : > { %v492_v42 = vmul.f32 %v2136_v18, %v456_v38  ;;  %v563_v48 = vadd.f32 %v2159_v41, %v527_v44  ;;  %v458_v57 = vsub.f32 %v1650_v54, %v2122_v4 }
  0x62   : > { %1022 = vmatmul.bf16.gmra.mxu3 %v2295_v53  ;;  %v528_v45 = vmul.f32 %v2146_v30, %v492_v42  ;;  %v595_v55 = vmax.f32 %v563_v48, 0.0 }
  0x63   : > { %1806 = vmatpush.bf16.msra.mxu3 %v2107_v1  ;;  %962 = vmatmul.bf16.gmra.mxu0 %v782_v49  ;;  %v487_v1 = vmul.f32 %v2136_v18, %v451_v50 }
  0x64   : > { %1051 = vmatmul.bf16.gmra.mxu1 %v782_v49  ;;  %1140 = vmatmul.bf16.gmra.mxu2 %v782_v49  ;;  %v564_v16 = vadd.f32 %v2159_v41, %v528_v45  ;;  %v1649_v49 = vunpack.c.l.bf16 %v1763_v51 }
  0x66   : > { %v596_v56 = vmax.f32 %v564_v16, 0.0  ;;  %v457_v50 = vsub.f32 %v1649_v49, %v2122_v4 }
  0x67   : > { %1807 = vmatpush.bf16.msra.mxu3 %v2124_v5  ;;  %v523_v5 = vmul.f32 %v2146_v30, %v487_v1 }
  0x68   : > { %v1718_v1 = vpack.c.bf16 %v596_v56, %v595_v55  ;;  %v493_v0 = vmul.f32 %v2136_v18, %v457_v50  ;;  %v628_v21 = vpack.c.bf16 %v596_v56, %v596_v56 }
  0x69   : > { %v559_v61 = vadd.f32 %v2159_v41, %v523_v5  ;;  %v494_v5 = vmul.f32 %v2136_v18, %v458_v57 }
  0x6a   : > { %1777 = vst [vmem:[%s2192_s11 + $0x40] sm:$0xff] %v1718_v1   ;;  %v529_v62 = vmul.f32 %v2146_v30, %v493_v0 }
  0x6b   : > { %1808 = vmatpush.bf16.msra.mxu3 %v2128_v10  ;;  %v591_v6 = vmax.f32 %v559_v61, 0.0  ;;  %v1642_v10 = vunpack.c.h.bf16 %v1761_v14  ;;  %v530_v63 = vmul.f32 %v2146_v30, %v494_v5 }
  0x6d   : > { %v1708_v12 = vpack.c.bf16 %v592_v11, %v591_v6  ;;  %v454_v3 = vsub.f32 %v1642_v10, %v2122_v4  ;;  %v623_v39 = vpack.c.bf16 %v591_v6, %v591_v6  ;;  %v565_v6 = vadd.f32 %v2159_v41, %v529_v62 }
  0x6e   : > { %v566_v11 = vadd.f32 %v2159_v41, %v530_v63 }
  0x6f   : > { %1775 = vst [vmem:[%s2192_s11 + $0x30] sm:$0xff] %v1708_v12   ;;  %v490_v20 = vmul.f32 %v2136_v18, %v454_v3  ;;  %v759_v43 = vunpack.c.l.b16 %v623_v39  ;;  %v1764_v12 = vld [vmem:[%s2117_s18 + $0x50] sm:$0xff]   ;;  %v597_v25 = vmax.f32 %v565_v6, 0.0  ;;  %v1765_v39 = vld [vmem:[%s2117_s18 + $0x58] sm:$0xff]  }
  0x70   : > { %v1654_v14 = vunpack.c.h.bf16 %v1764_v12  ;;  %v598_v10 = vmax.f32 %v566_v11, 0.0  ;;  %v1657_v34 = vunpack.c.l.bf16 %v1765_v39  ;;  %v1658_v40 = vunpack.c.h.bf16 %v1765_v39 }
  0x71   : > { %v526_v7 = vmul.f32 %v2146_v30, %v490_v20  ;;  %v785_v47 = vpack.c.b16 %v760_v35, %v759_v43  ;;  %v627_v20 = vpack.c.bf16 %v595_v55, %v595_v55  ;;  %v629_v16 = vpack.c.bf16 %v597_v25, %v597_v25 }
  0x72   : > { %1096 = vmatmul.bf16.vlgmr.msrb.gmra.mxu3 %v2207_v46  ;;  %v460_v3 = vsub.f32 %v1654_v14, %v2122_v4  ;;  %v1723_v19 = vpack.c.bf16 %v598_v10, %v597_v25  ;;  %v461_v45 = vsub.f32 %v1657_v34, %v2122_v4  ;;  %v630_v54 = vpack.c.bf16 %v598_v10, %v598_v10 }
  0x73   : > { %967 = vmatmul.bf16.gmra.mxu0 %v783_v13  ;;  %v562_v27 = vadd.f32 %v2159_v41, %v526_v7  ;;  %v707_v7 = vld [vmem:[%s2583_s6] sm:$0x7]  ;;  %v763_v24 = vunpack.c.l.b16 %v627_v20 }
  0x74   : > { %1056 = vmatmul.bf16.gmra.mxu1 %v783_v13  ;;  %1145 = vmatmul.bf16.gmra.mxu2 %v783_v13  ;;  %v1653_v13 = vunpack.c.l.bf16 %v1764_v12  ;;  %1778 = vst [vmem:[%s2192_s11 + $0x48] sm:$0xff] %v1723_v19   ;;  %v496_v23 = vmul.f32 %v2136_v18, %v460_v3  ;;  %v2371_v44 = vperm.slane %v707_v7, 2  ;;  %v497_v55 = vmul.f32 %v2136_v18, %v461_v45 }
  0x75   : > { %v594_v32 = vmax.f32 %v562_v27, 0.0  ;;  %v764_v27 = vunpack.c.l.b16 %v628_v21  ;;  %v766_v5 = vunpack.c.l.b16 %v630_v54 }
  0x76   : > { %v459_v15 = vsub.f32 %v1653_v13, %v2122_v4  ;;  %v532_v9 = vmul.f32 %v2146_v30, %v496_v23 }
  0x77   : > { %v1713_v8 = vpack.c.bf16 %v594_v32, %v593_v31  ;;  %v626_v59 = vpack.c.bf16 %v594_v32, %v594_v32  ;;  %v2355_v31 = vperm.slane %v707_v7, 0  ;;  %v2357_v32 = vperm.slane %v707_v7, 1 }
  0x78   : > { %v495_v22 = vmul.f32 %v2136_v18, %v459_v15  ;;  %v568_v17 = vadd.f32 %v2159_v41, %v532_v9 }
  0x79   : > { %1776 = vst [vmem:[%s2192_s11 + $0x38] sm:$0xff] %v1713_v8   ;;  %v762_v61 = vunpack.c.l.b16 %v626_v59  ;;  %v787_v8 = vpack.c.b16 %v764_v27, %v763_v24  ;;  %v765_v59 = vunpack.c.l.b16 %v629_v16 }
  0x7a   : > { %v531_v28 = vmul.f32 %v2146_v30, %v495_v22  ;;  %v600_v35 = vmax.f32 %v568_v17, 0.0 }
  0x7b   : > { %v786_v2 = vpack.c.b16 %v762_v61, %v761_v60  ;;  %v533_v60 = vmul.f32 %v2146_v30, %v497_v55  ;;  %v788_v63 = vpack.c.b16 %v766_v5, %v765_v59 }
  0x7c   : > { %v632_v22 = vpack.c.bf16 %v600_v35, %v600_v35 }
  0x82   : > { %1101 = vmatmul.bf16.gmra.mxu3 %v2248_v52 }
  0x83   : > { %972 = vmatmul.bf16.gmra.mxu0 %v784_v33 }
  0x84   : > { %1061 = vmatmul.bf16.gmra.mxu1 %v784_v33  ;;  %1150 = vmatmul.bf16.gmra.mxu2 %v784_v33  ;;  %v567_v33 = vadd.f32 %v2159_v41, %v531_v28 }
  0x86   : > { %v599_v43 = vmax.f32 %v567_v33, 0.0  ;;  %v768_v33 = vunpack.c.l.b16 %v632_v22 }
  0x88   : > { %v1728_v48 = vpack.c.bf16 %v600_v35, %v599_v43  ;;  %v631_v21 = vpack.c.bf16 %v599_v43, %v599_v43 }
  0x8a   : > { %1779 = vst [vmem:[%s2192_s11 + $0x50] sm:$0xff] %v1728_v48  }
  0x92   : > { %1106 = vmatmul.bf16.gmra.mxu3 %v2274_v29 }
  0x93   : > { %977 = vmatmul.bf16.gmra.mxu0 %v785_v47 }
  0x94   : > { %1066 = vmatmul.bf16.gmra.mxu1 %v785_v47  ;;  %1155 = vmatmul.bf16.gmra.mxu2 %v785_v47  ;;  %v462_v47 = vsub.f32 %v1658_v40, %v2122_v4 }
  0xa2   : > { %1111 = vmatmul.bf16.gmra.mxu3 %v2295_v53 }
  0xa3   : > { %982 = vmatmul.bf16.gmra.mxu0 %v786_v2 }
  0xa4   : > { %1071 = vmatmul.bf16.gmra.mxu1 %v786_v2  ;;  %1160 = vmatmul.bf16.gmra.mxu2 %v786_v2  ;;  %v569_v2 = vadd.f32 %v2159_v41, %v533_v60 }
  0xa6   : > { %v601_v15 = vmax.f32 %v569_v2, 0.0 }
  0xb0   : > { %v948_v36 = vpop.f32.mrf.mxu0 }
  0xb1   : > { %v1037_v37 = vpop.f32.mrf.mxu1  ;;  %v949_v26 = vadd.f32 %v948_v36, %v2355_v31 }
  0xb2   : > { %v1038_v38 = vadd.f32 %v1037_v37, %v2357_v32  ;;  %1185 = vmatmul.bf16.vlgmr.msra.gmra.mxu3 %v2207_v46  ;;  %v498_v46 = vmul.f32 %v2136_v18, %v462_v47  ;;  %v633_v47 = vpack.c.bf16 %v601_v15, %v601_v15 }
  0xb3   : > { %987 = vmatmul.bf16.gmra.mxu0 %v787_v8 }
  0xb4   : > { %v1206_v42 = vpack.c.bf16 %v1038_v38, %v949_v26  ;;  %1076 = vmatmul.bf16.gmra.mxu1 %v787_v8  ;;  %1165 = vmatmul.bf16.gmra.mxu2 %v787_v8  ;;  %v534_v61 = vmul.f32 %v2146_v30, %v498_v46  ;;  %v767_v8 = vunpack.c.l.b16 %v631_v21 }
  0xb5   : > { %v2376_v51 = vpop.f32.mrf.mxu3 }
  0xb6   : > { %1270 = vst [vmem:[%s2368_s17] sm:$0xff] %v1206_v42  ;;  %v570_v6 = vadd.f32 %v2159_v41, %v534_v61  ;;  %v789_v37 = vpack.c.b16 %v768_v33, %v767_v8 }
  0xb7   : > { %v1126_v49 = vpop.f32.mrf.mxu2 }
  0xb8   : > { %v1127_v56 = vadd.f32 %v1126_v49, %v2371_v44  ;;  %v950_v50 = vpop.f32.mrf.mxu0  ;;  %v602_v3 = vmax.f32 %v570_v6, 0.0 }
  0xb9   : > { %v1039_v57 = vpop.f32.mrf.mxu1  ;;  %v951_v4 = vadd.f32 %v950_v50, %v2355_v31 }
  0xba   : > { %v1040_v1 = vadd.f32 %v1039_v57, %v2357_v32  ;;  %v1207_v58 = vpack.c.bf16 %v1127_v56, %v1127_v56  ;;  %v1733_v41 = vpack.c.bf16 %v602_v3, %v601_v15  ;;  %v634_v48 = vpack.c.bf16 %v602_v3, %v602_v3 }
  0xbb   : > { %v769_v57 = vunpack.c.l.b16 %v633_v47 }
  0xbc   : > { %v1208_v0 = vpack.c.bf16 %v1040_v1, %v951_v4  ;;  %1271 = vst [vmem:[%s2368_s17 + $0x8] sm:$0xf] %v1207_v58 }
  0xbd   : > { %v2388_v62 = vpop.f32.mrf.mxu3  ;;  %1780 = vst [vmem:[%s2192_s11 + $0x58] sm:$0xff] %v1733_v41  }
  0xbe   : > { %1272 = vst [vmem:[%s2368_s17 + $0xc] sm:$0xff] %v1208_v0 }
  0xbf   : > { %v1128_v18 = vpop.f32.mrf.mxu2 }
  0xc0   : > { %v1129_v11 = vadd.f32 %v1128_v18, %v2371_v44  ;;  %v953_v12 = vpop.f32.mrf.mxu0 }
  0xc1   : > { %v1042_v13 = vpop.f32.mrf.mxu1  ;;  %v954_v14 = vadd.f32 %v953_v12, %v2355_v31 }
  0xc2   : > { %v1043_v30 = vadd.f32 %v1042_v13, %v2357_v32  ;;  %v1209_v25 = vpack.c.bf16 %v1129_v11, %v1129_v11  ;;  %1190 = vmatmul.bf16.gmra.mxu3 %v2248_v52 }
  0xc3   : > { %992 = vmatmul.bf16.gmra.mxu0 %v788_v63 }
  0xc4   : > { %v1210_v10 = vpack.c.bf16 %v1043_v30, %v954_v14  ;;  %1081 = vmatmul.bf16.gmra.mxu1 %v788_v63  ;;  %1273 = vst [vmem:[%s2368_s17 + $0x14] sm:$0xf] %v1209_v25  ;;  %1170 = vmatmul.bf16.gmra.mxu2 %v788_v63 }
  0xc5   : > { %v2398_v19 = vpop.f32.mrf.mxu3 }
  0xc6   : > { %1274 = vst [vmem:[%s2368_s17 + $0x18] sm:$0xff] %v1210_v10 }
  0xc7   : > { %v1131_v20 = vpop.f32.mrf.mxu2 }
  0xc8   : > { %v1132_v23 = vadd.f32 %v1131_v20, %v2371_v44  ;;  %v955_v7 = vpop.f32.mrf.mxu0 }
  0xc9   : > { %v1044_v24 = vpop.f32.mrf.mxu1  ;;  %v956_v27 = vadd.f32 %v955_v7, %v2355_v31 }
  0xca   : > { %v1045_v28 = vadd.f32 %v1044_v24, %v2357_v32  ;;  %v1211_v9 = vpack.c.bf16 %v1132_v23, %v1132_v23 }
  0xcc   : > { %v1212_v52 = vpack.c.bf16 %v1045_v28, %v956_v27  ;;  %1275 = vst [vmem:[%s2368_s17 + $0x20] sm:$0xf] %v1211_v9  ;;  %v1009_v28 = vadd.f32 %v2376_v51, %v2355_v31 }
  0xcd   : > { %v2406_v17 = vpop.f32.mrf.mxu3 }
  0xce   : > { %1276 = vst [vmem:[%s2368_s17 + $0x24] sm:$0xff] %v1212_v52 }
  0xcf   : > { %v1133_v36 = vpop.f32.mrf.mxu2 }
  0xd0   : > { %v1134_v26 = vadd.f32 %v1133_v36, %v2371_v44  ;;  %v958_v38 = vpop.f32.mrf.mxu0 }
  0xd1   : > { %v1047_v39 = vpop.f32.mrf.mxu1  ;;  %v959_v34 = vadd.f32 %v958_v38, %v2355_v31 }
  0xd2   : > { %v1048_v40 = vadd.f32 %v1047_v39, %v2357_v32  ;;  %v1213_v42 = vpack.c.bf16 %v1134_v26, %v1134_v26  ;;  %1195 = vmatmul.bf16.gmra.mxu3 %v2274_v29  ;;  %v770_v29 = vunpack.c.l.b16 %v634_v48 }
  0xd3   : > { %997 = vmatmul.bf16.gmra.mxu0 %v789_v37 }
  0xd4   : > { %v1214_v43 = vpack.c.bf16 %v1048_v40, %v959_v34  ;;  %1086 = vmatmul.bf16.gmra.mxu1 %v789_v37  ;;  %1277 = vst [vmem:[%s2368_s17 + $0x2c] sm:$0xf] %v1213_v42  ;;  %1175 = vmatmul.bf16.gmra.mxu2 %v789_v37  ;;  %v790_v58 = vpack.c.b16 %v770_v29, %v769_v57 }
  0xd5   : > { %v2414_v35 = vpop.f32.mrf.mxu3  ;;  %v1011_v40 = vadd.f32 %v2388_v62, %v2355_v31 }
  0xd6   : > { %1278 = vst [vmem:[%s2368_s17 + $0x30] sm:$0xff] %v1214_v43 }
  0xd7   : > { %v1136_v45 = vpop.f32.mrf.mxu2 }
  0xd8   : > { %v1137_v16 = vadd.f32 %v1136_v45, %v2371_v44  ;;  %v960_v49 = vpop.f32.mrf.mxu0 }
  0xd9   : > { %v1049_v54 = vpop.f32.mrf.mxu1  ;;  %v961_v55 = vadd.f32 %v960_v49, %v2355_v31 }
  0xda   : > { %v1050_v46 = vadd.f32 %v1049_v54, %v2357_v32  ;;  %v1215_v56 = vpack.c.bf16 %v1137_v16, %v1137_v16 }
  0xdc   : > { %v1216_v50 = vpack.c.bf16 %v1050_v46, %v961_v55  ;;  %1279 = vst [vmem:[%s2368_s17 + $0x38] sm:$0xf] %v1215_v56  ;;  %v1014_v56 = vadd.f32 %v2398_v19, %v2355_v31 }
  0xdd   : > { %v2421_v4 = vpop.f32.mrf.mxu3 }
  0xde   : > { %1280 = vst [vmem:[%s2368_s17 + $0x3c] sm:$0xff] %v1216_v50 }
  0xdf   : > { %v1138_v1 = vpop.f32.mrf.mxu2 }
  0xe0   : > { %v1139_v59 = vadd.f32 %v1138_v1, %v2371_v44  ;;  %v963_v0 = vpop.f32.mrf.mxu0 }
  0xe1   : > { %v1052_v5 = vpop.f32.mrf.mxu1  ;;  %v964_v60 = vadd.f32 %v963_v0, %v2355_v31 }
  0xe2   : > { %v1053_v61 = vadd.f32 %v1052_v5, %v2357_v32  ;;  %v1217_v18 = vpack.c.bf16 %v1139_v59, %v1139_v59  ;;  %1200 = vmatmul.bf16.gmra.mxu3 %v2295_v53 }
  0xe3   : > { %1002 = vmatmul.bf16.gmra.mxu0 %v790_v58 }
  0xe4   : > { %v1218_v63 = vpack.c.bf16 %v1053_v61, %v964_v60  ;;  %1091 = vmatmul.bf16.gmra.mxu1 %v790_v58  ;;  %1281 = vst [vmem:[%s2368_s17 + $0x44] sm:$0xf] %v1217_v18  ;;  %1180 = vmatmul.bf16.gmra.mxu2 %v790_v58  ;;  %v1016_v18 = vadd.f32 %v2406_v17, %v2355_v31 }
  0xe5   : > { %v2429_v2 = vpop.f32.mrf.mxu3 }
  0xe6   : > { %1282 = vst [vmem:[%s2368_s17 + $0x48] sm:$0xff] %v1218_v63 }
  0xe7   : > { %v1141_v6 = vpop.f32.mrf.mxu2 }
  0xe8   : > { %v1142_v11 = vadd.f32 %v1141_v6, %v2371_v44  ;;  %v965_v12 = vpop.f32.mrf.mxu0 }
  0xe9   : > { %v1054_v13 = vpop.f32.mrf.mxu1  ;;  %v966_v14 = vadd.f32 %v965_v12, %v2355_v31 }
  0xea   : > { %v1055_v30 = vadd.f32 %v1054_v13, %v2357_v32  ;;  %v1219_v25 = vpack.c.bf16 %v1142_v11, %v1142_v11 }
  0xec   : > { %v1220_v10 = vpack.c.bf16 %v1055_v30, %v966_v14  ;;  %1283 = vst [vmem:[%s2368_s17 + $0x50] sm:$0xf] %v1219_v25 }
  0xed   : > { %v2436_v15 = vpop.f32.mrf.mxu3 }
  0xee   : > { %1284 = vst [vmem:[%s2368_s17 + $0x54] sm:$0xff] %v1220_v10 }
  0xef   : > { %v1143_v53 = vpop.f32.mrf.mxu2 }
  0xf0   : > { %v1144_v3 = vadd.f32 %v1143_v53, %v2371_v44  ;;  %v968_v41 = vpop.f32.mrf.mxu0 }
  0xf1   : > { %v1057_v20 = vpop.f32.mrf.mxu1  ;;  %v969_v21 = vadd.f32 %v968_v41, %v2355_v31 }
  0xf2   : > { %v1058_v22 = vadd.f32 %v1057_v20, %v2357_v32  ;;  %v1221_v23 = vpack.c.bf16 %v1144_v3, %v1144_v3  ;;  %v1019_v3 = vadd.f32 %v2414_v35, %v2355_v31 }
  0xf4   : > { %v1222_v7 = vpack.c.bf16 %v1058_v22, %v969_v21  ;;  %1285 = vst [vmem:[%s2368_s17 + $0x5c] sm:$0xf] %v1221_v23 }
  0xf5   : > { %v1097_v24 = vpop.f32.mrf.mxu3 }
  0xf6   : > { %1286 = vst [vmem:[%s2368_s17 + $0x60] sm:$0xff] %v1222_v7  ;;  %v1098_v9 = vadd.f32 %v1097_v24, %v2357_v32 }
  0xf7   : > { %v1146_v27 = vpop.f32.mrf.mxu2 }
  0xf8   : > { %v1147_v52 = vadd.f32 %v1146_v27, %v2371_v44  ;;  %v970_v8 = vpop.f32.mrf.mxu0  ;;  %v1254_v26 = vpack.c.bf16 %v1098_v9, %v1009_v28 }
  0xf9   : > { %v1059_v33 = vpop.f32.mrf.mxu1  ;;  %v971_v36 = vadd.f32 %v970_v8, %v2355_v31 }
  0xfa   : > { %v1060_v37 = vadd.f32 %v1059_v33, %v2357_v32  ;;  %v1223_v38 = vpack.c.bf16 %v1147_v52, %v1147_v52  ;;  %1318 = vst [vmem:[%s2368_s17 + $0x120] sm:$0xff] %v1254_v26  ;;  %v1021_v52 = vadd.f32 %v2421_v4, %v2355_v31 }
  0xfc   : > { %v1224_v39 = vpack.c.bf16 %v1060_v37, %v971_v36  ;;  %1287 = vst [vmem:[%s2368_s17 + $0x68] sm:$0xf] %v1223_v38 }
  0xfd   : > { %v1099_v51 = vpop.f32.mrf.mxu3 }
  0xfe   : > { %1288 = vst [vmem:[%s2368_s17 + $0x6c] sm:$0xff] %v1224_v39  ;;  %v1100_v42 = vadd.f32 %v1099_v51, %v2357_v32 }
  0xff   : > { %v1148_v34 = vpop.f32.mrf.mxu2 }
 0x100   : > { %v1149_v43 = vadd.f32 %v1148_v34, %v2371_v44  ;;  %v973_v45 = vpop.f32.mrf.mxu0  ;;  %v1256_v49 = vpack.c.bf16 %v1100_v42, %v1011_v40  ;;  %v1024_v42 = vadd.f32 %v2429_v2, %v2355_v31 }
 0x101   : > { %v1062_v47 = vpop.f32.mrf.mxu1  ;;  %v974_v48 = vadd.f32 %v973_v45, %v2355_v31 }
 0x102   : > { %v1063_v16 = vadd.f32 %v1062_v47, %v2357_v32  ;;  %v1225_v54 = vpack.c.bf16 %v1149_v43, %v1149_v43  ;;  %1320 = vst [vmem:[%s2368_s17 + $0x12c] sm:$0xff] %v1256_v49 }
 0x104   : > { %v1226_v55 = vpack.c.bf16 %v1063_v16, %v974_v48  ;;  %1289 = vst [vmem:[%s2368_s17 + $0x74] sm:$0xf] %v1225_v54 }
 0x105   : > { %v1102_v62 = vpop.f32.mrf.mxu3 }
 0x106   : > { %1290 = vst [vmem:[%s2368_s17 + $0x78] sm:$0xff] %v1226_v55  ;;  %v1103_v50 = vadd.f32 %v1102_v62, %v2357_v32 }
 0x107   : > { %v1151_v46 = vpop.f32.mrf.mxu2 }
 0x108   : > { %v1152_v57 = vadd.f32 %v1151_v46, %v2371_v44  ;;  %v975_v29 = vpop.f32.mrf.mxu0  ;;  %v1258_v0 = vpack.c.bf16 %v1103_v50, %v1014_v56  ;;  %v1026_v56 = vadd.f32 %v2436_v15, %v2355_v31 }
 0x109   : > { %v1064_v1 = vpop.f32.mrf.mxu1  ;;  %v976_v58 = vadd.f32 %v975_v29, %v2355_v31 }
 0x10a   : > { %v1065_v59 = vadd.f32 %v1064_v1, %v2357_v32  ;;  %v1227_v5 = vpack.c.bf16 %v1152_v57, %v1152_v57  ;;  %1322 = vst [vmem:[%s2368_s17 + $0x138] sm:$0xff] %v1258_v0 }
 0x10c   : > { %v1228_v60 = vpack.c.bf16 %v1065_v59, %v976_v58  ;;  %1291 = vst [vmem:[%s2368_s17 + $0x80] sm:$0xf] %v1227_v5 }
 0x10d   : > { %v1104_v19 = vpop.f32.mrf.mxu3 }
 0x10e   : > { %1292 = vst [vmem:[%s2368_s17 + $0x84] sm:$0xff] %v1228_v60  ;;  %v1105_v63 = vadd.f32 %v1104_v19, %v2357_v32 }
 0x10f   : > { %v1153_v61 = vpop.f32.mrf.mxu2 }
 0x110   : > { %v1154_v6 = vadd.f32 %v1153_v61, %v2371_v44  ;;  %v978_v11 = vpop.f32.mrf.mxu0  ;;  %v1260_v30 = vpack.c.bf16 %v1105_v63, %v1016_v18 }
 0x111   : > { %v1067_v12 = vpop.f32.mrf.mxu1  ;;  %v979_v13 = vadd.f32 %v978_v11, %v2355_v31 }
 0x112   : > { %v1068_v14 = vadd.f32 %v1067_v12, %v2357_v32  ;;  %v1229_v25 = vpack.c.bf16 %v1154_v6, %v1154_v6  ;;  %1324 = vst [vmem:[%s2368_s17 + $0x144] sm:$0xff] %v1260_v30 }
 0x114   : > { %v1230_v10 = vpack.c.bf16 %v1068_v14, %v979_v13  ;;  %1293 = vst [vmem:[%s2368_s17 + $0x8c] sm:$0xf] %v1229_v25 }
 0x115   : > { %v1107_v17 = vpop.f32.mrf.mxu3 }
 0x116   : > { %1294 = vst [vmem:[%s2368_s17 + $0x90] sm:$0xff] %v1230_v10  ;;  %v1108_v41 = vadd.f32 %v1107_v17, %v2357_v32 }
 0x117   : > { %v1156_v53 = vpop.f32.mrf.mxu2 }
 0x118   : > { %v1157_v20 = vadd.f32 %v1156_v53, %v2371_v44  ;;  %v980_v21 = vpop.f32.mrf.mxu0  ;;  %v1262_v24 = vpack.c.bf16 %v1108_v41, %v1019_v3 }
 0x119   : > { %v1069_v22 = vpop.f32.mrf.mxu1  ;;  %v981_v23 = vadd.f32 %v980_v21, %v2355_v31 }
 0x11a   : > { %v1070_v7 = vadd.f32 %v1069_v22, %v2357_v32  ;;  %v1231_v27 = vpack.c.bf16 %v1157_v20, %v1157_v20  ;;  %1326 = vst [vmem:[%s2368_s17 + $0x150] sm:$0xff] %v1262_v24 }
 0x11c   : > { %v1232_v28 = vpack.c.bf16 %v1070_v7, %v981_v23  ;;  %1295 = vst [vmem:[%s2368_s17 + $0x98] sm:$0xf] %v1231_v27 }
 0x11d   : > { %v1109_v35 = vpop.f32.mrf.mxu3 }
 0x11e   : > { %1296 = vst [vmem:[%s2368_s17 + $0x9c] sm:$0xff] %v1232_v28  ;;  %v1110_v8 = vadd.f32 %v1109_v35, %v2357_v32 }
 0x11f   : > { %v1158_v9 = vpop.f32.mrf.mxu2 }
 0x120   : > { %v1159_v33 = vadd.f32 %v1158_v9, %v2371_v44  ;;  %v983_v36 = vpop.f32.mrf.mxu0  ;;  %v1264_v39 = vpack.c.bf16 %v1110_v8, %v1021_v52 }
 0x121   : > { %v1072_v37 = vpop.f32.mrf.mxu1  ;;  %v984_v26 = vadd.f32 %v983_v36, %v2355_v31 }
 0x122   : > { %v1073_v38 = vadd.f32 %v1072_v37, %v2357_v32  ;;  %v1233_v51 = vpack.c.bf16 %v1159_v33, %v1159_v33  ;;  %1328 = vst [vmem:[%s2368_s17 + $0x15c] sm:$0xff] %v1264_v39 }
 0x124   : > { %v1234_v34 = vpack.c.bf16 %v1073_v38, %v984_v26  ;;  %1297 = vst [vmem:[%s2368_s17 + $0xa4] sm:$0xf] %v1233_v51 }
 0x125   : > { %v1112_v4 = vpop.f32.mrf.mxu3 }
 0x126   : > { %1298 = vst [vmem:[%s2368_s17 + $0xa8] sm:$0xff] %v1234_v34  ;;  %v1113_v43 = vadd.f32 %v1112_v4, %v2357_v32 }
 0x127   : > { %v1161_v40 = vpop.f32.mrf.mxu2 }
 0x128   : > { %v1162_v45 = vadd.f32 %v1161_v40, %v2371_v44  ;;  %v985_v47 = vpop.f32.mrf.mxu0  ;;  %v1266_v54 = vpack.c.bf16 %v1113_v43, %v1024_v42 }
 0x129   : > { %v1074_v48 = vpop.f32.mrf.mxu1  ;;  %v986_v16 = vadd.f32 %v985_v47, %v2355_v31 }
 0x12a   : > { %v1075_v49 = vadd.f32 %v1074_v48, %v2357_v32  ;;  %v1235_v55 = vpack.c.bf16 %v1162_v45, %v1162_v45  ;;  %1330 = vst [vmem:[%s2368_s17 + $0x168] sm:$0xff] %v1266_v54 }
 0x12c   : > { %v1236_v62 = vpack.c.bf16 %v1075_v49, %v986_v16  ;;  %1299 = vst [vmem:[%s2368_s17 + $0xb0] sm:$0xf] %v1235_v55 }
 0x12d   : > { %v1114_v2 = vpop.f32.mrf.mxu3 }
 0x12e   : > { %1300 = vst [vmem:[%s2368_s17 + $0xb4] sm:$0xff] %v1236_v62  ;;  %v1115_v50 = vadd.f32 %v1114_v2, %v2357_v32 }
 0x12f   : > { %v1163_v46 = vpop.f32.mrf.mxu2 }
 0x130   : > { %v1164_v57 = vadd.f32 %v1163_v46, %v2371_v44  ;;  %v988_v29 = vpop.f32.mrf.mxu0  ;;  %v1268_v0 = vpack.c.bf16 %v1115_v50, %v1026_v56 }
 0x131   : > { %v1077_v1 = vpop.f32.mrf.mxu1  ;;  %v989_v58 = vadd.f32 %v988_v29, %v2355_v31 }
 0x132   : > { %v1078_v59 = vadd.f32 %v1077_v1, %v2357_v32  ;;  %v1237_v5 = vpack.c.bf16 %v1164_v57, %v1164_v57  ;;  %1332 = vst [vmem:[%s2368_s17 + $0x174] sm:$0xff] %v1268_v0 }
 0x134   : > { %v1238_v60 = vpack.c.bf16 %v1078_v59, %v989_v58  ;;  %1301 = vst [vmem:[%s2368_s17 + $0xbc] sm:$0xf] %v1237_v5 }
 0x135   : > { %v1186_v19 = vpop.f32.mrf.mxu3 }
 0x136   : > { %1302 = vst [vmem:[%s2368_s17 + $0xc0] sm:$0xff] %v1238_v60  ;;  %v1187_v18 = vadd.f32 %v1186_v19, %v2371_v44 }
 0x137   : > { %v1166_v15 = vpop.f32.mrf.mxu2 }
 0x138   : > { %v1167_v61 = vadd.f32 %v1166_v15, %v2371_v44  ;;  %v990_v63 = vpop.f32.mrf.mxu0  ;;  %v1255_v14 = vpack.c.bf16 %v1187_v18, %v1187_v18 }
 0x139   : > { %v1079_v6 = vpop.f32.mrf.mxu1  ;;  %v991_v11 = vadd.f32 %v990_v63, %v2355_v31 }
 0x13a   : > { %v1080_v12 = vadd.f32 %v1079_v6, %v2357_v32  ;;  %v1239_v13 = vpack.c.bf16 %v1167_v61, %v1167_v61  ;;  %1319 = vst [vmem:[%s2368_s17 + $0x128] sm:$0xf] %v1255_v14 }
 0x13c   : > { %v1240_v30 = vpack.c.bf16 %v1080_v12, %v991_v11  ;;  %1303 = vst [vmem:[%s2368_s17 + $0xc8] sm:$0xf] %v1239_v13 }
 0x13d   : > { %v1188_v10 = vpop.f32.mrf.mxu3 }
 0x13e   : > { %1304 = vst [vmem:[%s2368_s17 + $0xcc] sm:$0xff] %v1240_v30  ;;  %v1189_v53 = vadd.f32 %v1188_v10, %v2371_v44 }
 0x13f   : > { %v1168_v25 = vpop.f32.mrf.mxu2 }
 0x140   : > { %v1169_v17 = vadd.f32 %v1168_v25, %v2371_v44  ;;  %v993_v3 = vpop.f32.mrf.mxu0  ;;  %v1257_v23 = vpack.c.bf16 %v1189_v53, %v1189_v53 }
 0x141   : > { %v1082_v41 = vpop.f32.mrf.mxu1  ;;  %v994_v20 = vadd.f32 %v993_v3, %v2355_v31 }
 0x142   : > { %v1083_v21 = vadd.f32 %v1082_v41, %v2357_v32  ;;  %v1241_v22 = vpack.c.bf16 %v1169_v17, %v1169_v17  ;;  %1321 = vst [vmem:[%s2368_s17 + $0x134] sm:$0xf] %v1257_v23 }
 0x144   : > { %v1242_v7 = vpack.c.bf16 %v1083_v21, %v994_v20  ;;  %1305 = vst [vmem:[%s2368_s17 + $0xd4] sm:$0xf] %v1241_v22 }
 0x145   : > { %v1191_v27 = vpop.f32.mrf.mxu3 }
 0x146   : > { %1306 = vst [vmem:[%s2368_s17 + $0xd8] sm:$0xff] %v1242_v7  ;;  %v1192_v35 = vadd.f32 %v1191_v27, %v2371_v44 }
 0x147   : > { %v1171_v24 = vpop.f32.mrf.mxu2 }
 0x148   : > { %v1172_v28 = vadd.f32 %v1171_v24, %v2371_v44  ;;  %v995_v9 = vpop.f32.mrf.mxu0  ;;  %v1259_v37 = vpack.c.bf16 %v1192_v35, %v1192_v35 }
 0x149   : > { %v1084_v52 = vpop.f32.mrf.mxu1  ;;  %v996_v8 = vadd.f32 %v995_v9, %v2355_v31 }
 0x14a   : > { %v1085_v33 = vadd.f32 %v1084_v52, %v2357_v32  ;;  %v1243_v36 = vpack.c.bf16 %v1172_v28, %v1172_v28  ;;  %1323 = vst [vmem:[%s2368_s17 + $0x140] sm:$0xf] %v1259_v37 }
 0x14c   : > { %v1244_v26 = vpack.c.bf16 %v1085_v33, %v996_v8  ;;  %1307 = vst [vmem:[%s2368_s17 + $0xe0] sm:$0xf] %v1243_v36 }
 0x14d   : > { %v1193_v39 = vpop.f32.mrf.mxu3 }
 0x14e   : > { %1308 = vst [vmem:[%s2368_s17 + $0xe4] sm:$0xff] %v1244_v26  ;;  %v1194_v34 = vadd.f32 %v1193_v39, %v2371_v44 }
 0x14f   : > { %v1173_v38 = vpop.f32.mrf.mxu2 }
 0x150   : > { %v1174_v51 = vadd.f32 %v1173_v38, %v2371_v44  ;;  %v998_v4 = vpop.f32.mrf.mxu0  ;;  %v1261_v47 = vpack.c.bf16 %v1194_v34, %v1194_v34 }
 0x151   : > { %v1087_v40 = vpop.f32.mrf.mxu1  ;;  %v999_v42 = vadd.f32 %v998_v4, %v2355_v31 }
 0x152   : > { %v1088_v43 = vadd.f32 %v1087_v40, %v2357_v32  ;;  %v1245_v45 = vpack.c.bf16 %v1174_v51, %v1174_v51  ;;  %1325 = vst [vmem:[%s2368_s17 + $0x14c] sm:$0xf] %v1261_v47 }
 0x154   : > { %v1246_v48 = vpack.c.bf16 %v1088_v43, %v999_v42  ;;  %1309 = vst [vmem:[%s2368_s17 + $0xec] sm:$0xf] %v1245_v45 }
 0x155   : > { %v1196_v49 = vpop.f32.mrf.mxu3 }
 0x156   : > { %1310 = vst [vmem:[%s2368_s17 + $0xf0] sm:$0xff] %v1246_v48  ;;  %v1197_v55 = vadd.f32 %v1196_v49, %v2371_v44 }
 0x157   : > { %v1176_v16 = vpop.f32.mrf.mxu2 }
 0x158   : > { %v1177_v54 = vadd.f32 %v1176_v16, %v2371_v44  ;;  %v1000_v62 = vpop.f32.mrf.mxu0  ;;  %v1263_v57 = vpack.c.bf16 %v1197_v55, %v1197_v55 }
 0x159   : > { %v1089_v2 = vpop.f32.mrf.mxu1  ;;  %v1001_v46 = vadd.f32 %v1000_v62, %v2355_v31 }
 0x15a   : > { %v1090_v56 = vadd.f32 %v1089_v2, %v2357_v32  ;;  %v1247_v50 = vpack.c.bf16 %v1177_v54, %v1177_v54  ;;  %1327 = vst [vmem:[%s2368_s17 + $0x158] sm:$0xf] %v1263_v57 }
 0x15c   : > { %v1248_v29 = vpack.c.bf16 %v1090_v56, %v1001_v46  ;;  %1311 = vst [vmem:[%s2368_s17 + $0xf8] sm:$0xf] %v1247_v50 }
 0x15d   : > { %v1198_v58 = vpop.f32.mrf.mxu3 }
 0x15e   : > { %1312 = vst [vmem:[%s2368_s17 + $0xfc] sm:$0xff] %v1248_v29  ;;  %v1199_v0 = vadd.f32 %v1198_v58, %v2371_v44 }
 0x15f   : > { %v1178_v1 = vpop.f32.mrf.mxu2 }
 0x160   : > { %v1179_v59 = vadd.f32 %v1178_v1, %v2371_v44  ;;  %v1003_v5 = vpop.f32.mrf.mxu0  ;;  %v1265_v18 = vpack.c.bf16 %v1199_v0, %v1199_v0 }
 0x161   : > { %v1092_v60 = vpop.f32.mrf.mxu1  ;;  %v1004_v15 = vadd.f32 %v1003_v5, %v2355_v31 }
 0x162   : > { %v1093_v19 = vadd.f32 %v1092_v60, %v2357_v32  ;;  %v1249_v61 = vpack.c.bf16 %v1179_v59, %v1179_v59  ;;  %1329 = vst [vmem:[%s2368_s17 + $0x164] sm:$0xf] %v1265_v18 }
 0x164   : > { %v1250_v63 = vpack.c.bf16 %v1093_v19, %v1004_v15  ;;  %1313 = vst [vmem:[%s2368_s17 + $0x104] sm:$0xf] %v1249_v61 }
 0x165   : > { %v1201_v11 = vpop.f32.mrf.mxu3 }
 0x166   : > { %1314 = vst [vmem:[%s2368_s17 + $0x108] sm:$0xff] %v1250_v63  ;;  %v1202_v13 = vadd.f32 %v1201_v11, %v2371_v44 }
 0x167   : > { %v1181_v6 = vpop.f32.mrf.mxu2 }
 0x168   : > { %v1182_v12 = vadd.f32 %v1181_v6, %v2371_v44  ;;  %v1005_v14 = vpop.f32.mrf.mxu0  ;;  %v1267_v53 = vpack.c.bf16 %v1202_v13, %v1202_v13 }
 0x169   : > { %v1094_v30 = vpop.f32.mrf.mxu1  ;;  %v1006_v25 = vadd.f32 %v1005_v14, %v2355_v31 }
 0x16a   : > { %v1095_v10 = vadd.f32 %v1094_v30, %v2357_v32  ;;  %v1251_v17 = vpack.c.bf16 %v1182_v12, %v1182_v12  ;;  %1331 = vst [vmem:[%s2368_s17 + $0x170] sm:$0xf] %v1267_v53 }
 0x16c   : > { %v1252_v3 = vpack.c.bf16 %v1095_v10, %v1006_v25  ;;  %1315 = vst [vmem:[%s2368_s17 + $0x110] sm:$0xf] %v1251_v17 }
 0x16d   : > { %v1203_v20 = vpop.f32.mrf.mxu3 }
 0x16e   : > { %1316 = vst [vmem:[%s2368_s17 + $0x114] sm:$0xff] %v1252_v3  ;;  %v1204_v22 = vadd.f32 %v1203_v20, %v2371_v44 }
 0x16f   : > { %v1183_v41 = vpop.f32.mrf.mxu2 }
 0x170   : > { %v1184_v21 = vadd.f32 %v1183_v41, %v2371_v44  ;;  %v1269_v7 = vpack.c.bf16 %v1204_v22, %v1204_v22 }
 0x172   : > { %v1253_v23 = vpack.c.bf16 %v1184_v21, %v1184_v21  ;;  %1333 = vst [vmem:[%s2368_s17 + $0x17c] sm:$0xf] %v1269_v7 }
 0x174   : > { %1317 = vst [vmem:[%s2368_s17 + $0x11c] sm:$0xf] %v1253_v23 }
 0x175 PF: > { %s19_s29 = sadd.s32 1, %s1860_s29   ;;  %s2586_s27 = smov %s1856_s28 }
 0x176   : > { %p16_p5 = scmp.ge.s32.totalorder %s19_s29, 4   ;;  %s2587_s28 = smov %s2589_s30 }
 0x178   :  { %18 = sbr.rel (!%p16_p5) target bundleno = 2 (0x2), region = 90 }

// kernel: pam_cam_layer_forward.5
= control target key start
LH: loop header
LB: loop body
LE: loop exit
PB: predicated region body
PF: predicated region fallthrough
CT: control target
= control target key end

     0   :  { %s3105_s12 = smov 0   ;;  %s3928_s0 = inlined_call_operand.vmem [shape: bf16[2,18,18,128], index: 0, kind: input, shape index: {}]   ;;  %s3929_s1 = inlined_call_operand.vmem [shape: bf16[3,384,128], index: 1, kind: input, shape index: {}]   ;;  %s3930_s2 = inlined_call_operand.vmem [shape: bf16[2,16,16,128], index: 2, kind: output, shape index: {0}]   ;;  %s3931_s3 = inlined_call_operand.vmem [shape: f32[2,2,128], index: 3, kind: output, shape index: {1}]  }
   0x1 LB: > { %s2376_s13 = sadd.s32 4294967295, %s3083_s12   ;;  %p2380_p0 = scmp.ge.s32.totalorder %s3083_s12, 1  ;;  %s3083_s12 = sphi %s3105_s12, %s14_s12  }
   0x2   : > { %p140_p1 = scmp.lt.s32.totalorder %s3083_s12, 3 }
   0x4   : > { %p141_p2 = pnand %p2380_p0, %p140_p1 }
   0x6   : > { %144 = sbr.rel (%p141_p2) target bundleno = 768 (0x300), region = 28 }
   0xb   : > { %v2893_v0 = vld [vmem:[%s3929_s1 + $0xf8] sm:$0xff]  ;;  %v2892_v1 = vld [vmem:[%s3929_s1 + $0xf0] sm:$0xff]  ;;  %v2891_v2 = vld [vmem:[%s3929_s1 + $0xe8] sm:$0xff]  ;;  %p168_p3 = scmp.lt.s32.totalorder %s2376_s13, 1  ;;  %vm398_vm0 = vsmask.f32 7424 }
   0xc   : > { %947 = vmatpush.bf16.msra.mxu0 %v2893_v0  ;;  %3029 = vmatpush.bf16.msra.mxu1 %v2893_v0  ;;  %v2890_v3 = vld [vmem:[%s3929_s1 + $0xe0] sm:$0xff]  ;;  %v2889_v4 = vld [vmem:[%s3929_s1 + $0xd8] sm:$0xff]  ;;  %v2888_v5 = vld [vmem:[%s3929_s1 + $0xd0] sm:$0xff]  ;;  %vm633_vm1 = vcmask 1046528   ;;  %vm2287_vm2 = vcmask 1040384  }
   0xd   : > { %3030 = vmatpush.bf16.msra.mxu2 %v2893_v0  ;;  %3031 = vmatpush.bf16.msra.mxu3 %v2893_v0  ;;  %s3998_s13 = smov (!%p168_p3, %s2376_s13), 1  ;;  %v2887_v6 = vld [vmem:[%s3929_s1 + $0xc8] sm:$0xff]  ;;  %v2886_v7 = vld [vmem:[%s3929_s1 + $0xc0] sm:$0xff]  ;;  %v2909_v8 = vld [vmem:[%s3929_s1 + $0x178] sm:$0xff] }
   0xe   : > { %s3053_s28 = smul.u32 216, %s3998_s13  ;;  %v2869_v9 = vld [vmem:[%s3929_s1 + $0x38] sm:$0xff]  ;;  %v2908_v16 = vld [vmem:[%s3929_s1 + $0x170] sm:$0xff]  ;;  %v2907_v20 = vld [vmem:[%s3929_s1 + $0x168] sm:$0xff]  ;;  %s2843_s17 = sshll.u32 %s3998_s13, 7 }
   0xf   : > { %v2901_v14 = vld [vmem:[%s3929_s1 + $0x138] sm:$0xff]  ;;  %v2868_v17 = vld [vmem:[%s3929_s1 + $0x30] sm:$0xff]  ;;  %v2867_v21 = vld [vmem:[%s3929_s1 + $0x28] sm:$0xff]  ;;  %s3848_s20 = scalar_lea.vmem %s3930_s2, %s2843_s17 }
  0x10   : > { %948 = vmatpush.bf16.msra.mxu0 %v2892_v1  ;;  %3032 = vmatpush.bf16.msra.mxu1 %v2892_v1  ;;  %s3147_s6 = scalar_lea.vmem %s3928_s0, %s3053_s28  ;;  %v2877_v15 = vld [vmem:[%s3929_s1 + $0x78] sm:$0xff]  ;;  %v2900_v18 = vld [vmem:[%s3929_s1 + $0x130] sm:$0xff]  ;;  %v2899_v22 = vld [vmem:[%s3929_s1 + $0x128] sm:$0xff] }
  0x11   : > { %3033 = vmatpush.bf16.msra.mxu2 %v2892_v1  ;;  %3034 = vmatpush.bf16.msra.mxu3 %v2892_v1  ;;  %v3156_v10 = vld [vmem:[%s3147_s6 + $0xc] sm:$0xff]  ;;  %v3159_v11 = vld [vmem:[%s3147_s6 + $0x3c] sm:$0xff]  ;;  %v3278_v48 = vld [vmem:[%s3147_s6 + $0x24] sm:$0xff] }
  0x12   : > { %v3162_v12 = vld [vmem:[%s3147_s6 + $0x6c] sm:$0xff]  ;;  %v3165_v13 = vld [vmem:[%s3147_s6 + $0x9c] sm:$0xff]  ;;  %v3281_v49 = vld [vmem:[%s3147_s6 + $0x54] sm:$0xff]  ;;  %v414_v1 = vshll.u32 %v3156_v10, 16 }
  0x13   : > { %v2876_v19 = vld [vmem:[%s3929_s1 + $0x70] sm:$0xff]  ;;  %v2875_v23 = vld [vmem:[%s3929_s1 + $0x68] sm:$0xff]  ;;  %v2906_v24 = vld [vmem:[%s3929_s1 + $0x160] sm:$0xff] }
  0x14   : > { %949 = vmatpush.bf16.msra.mxu0 %v2891_v2  ;;  %3035 = vmatpush.bf16.msra.mxu1 %v2891_v2  ;;  %v2866_v25 = vld [vmem:[%s3929_s1 + $0x20] sm:$0xff]  ;;  %v2905_v28 = vld [vmem:[%s3929_s1 + $0x158] sm:$0xff]  ;;  %v3223_v31 = vld [vmem:[%s3147_s6 + $0x48] sm:$0xff] }
  0x15   : > { %3036 = vmatpush.bf16.msra.mxu2 %v2891_v2  ;;  %3037 = vmatpush.bf16.msra.mxu3 %v2891_v2  ;;  %v2898_v26 = vld [vmem:[%s3929_s1 + $0x120] sm:$0xff]  ;;  %v2865_v29 = vld [vmem:[%s3929_s1 + $0x18] sm:$0xff]  ;;  %v3229_v33 = vld [vmem:[%s3147_s6 + $0xa8] sm:$0xff] }
  0x16   : > { %v2874_v27 = vld [vmem:[%s3929_s1 + $0x60] sm:$0xff]  ;;  %v3220_v30 = vld [vmem:[%s3147_s6 + $0x18] sm:$0xff]  ;;  %v2904_v36 = vld [vmem:[%s3929_s1 + $0x150] sm:$0xff] }
  0x17   : > { %v3226_v32 = vld [vmem:[%s3147_s6 + $0x78] sm:$0xff]  ;;  %v2864_v37 = vld [vmem:[%s3929_s1 + $0x10] sm:$0xff]  ;;  %v2903_v40 = vld [vmem:[%s3929_s1 + $0x148] sm:$0xff] }
  0x18   : > { %950 = vmatpush.bf16.msra.mxu0 %v2890_v3  ;;  %3038 = vmatpush.bf16.msra.mxu1 %v2890_v3  ;;  %v2897_v34 = vld [vmem:[%s3929_s1 + $0x118] sm:$0xff]  ;;  %v2896_v38 = vld [vmem:[%s3929_s1 + $0x110] sm:$0xff]  ;;  %v2863_v41 = vld [vmem:[%s3929_s1 + $0x8] sm:$0xff] }
  0x19   : > { %3039 = vmatpush.bf16.msra.mxu2 %v2890_v3  ;;  %3040 = vmatpush.bf16.msra.mxu3 %v2890_v3  ;;  %v2873_v35 = vld [vmem:[%s3929_s1 + $0x58] sm:$0xff]  ;;  %v2872_v39 = vld [vmem:[%s3929_s1 + $0x50] sm:$0xff]  ;;  %v2895_v42 = vld [vmem:[%s3929_s1 + $0x108] sm:$0xff] }
  0x1a   : > { %v2871_v43 = vld [vmem:[%s3929_s1 + $0x48] sm:$0xff]  ;;  %v2902_v44 = vld [vmem:[%s3929_s1 + $0x140] sm:$0xff]  ;;  %v3287_v51 = vld [vmem:[%s3147_s6 + $0xb4] sm:$0xff] }
  0x1b   : > { %v2862_v45 = vld [vmem:[%s3929_s1] sm:$0xff]  ;;  %v2917_v52 = vld [vmem:[%s3929_s1 + $0x1b8] sm:$0xff]  ;;  %v187_v56 = vld [vmem:[%s3147_s6 + $0x14] sm:$0x1] }
  0x1c   : > { %951 = vmatpush.bf16.msra.mxu0 %v2889_v4  ;;  %3041 = vmatpush.bf16.msra.mxu1 %v2889_v4  ;;  %v2894_v46 = vld [vmem:[%s3929_s1 + $0x100] sm:$0xff]  ;;  %v2925_v53 = vld [vmem:[%s3929_s1 + $0x1f8] sm:$0xff]  ;;  %v184_v57 = vld [vmem:[%s3147_s6 + $0x8] sm:$0x1]  ;;  %v363_v62 = vunpack.c.l.b16 %v187_v56 }
  0x1d   : > { %3042 = vmatpush.bf16.msra.mxu2 %v2889_v4  ;;  %3043 = vmatpush.bf16.msra.mxu3 %v2889_v4  ;;  %v2870_v47 = vld [vmem:[%s3929_s1 + $0x40] sm:$0xff]  ;;  %v2885_v54 = vld [vmem:[%s3929_s1 + $0xb8] sm:$0xff]  ;;  %v3308_v58 = vld [vmem:[%s3147_s6 + $0x30] sm:$0xff]  ;;  %v362_v0 = vunpack.c.l.b16 %v184_v57 }
  0x1e   : > { %v3284_v50 = vld [vmem:[%s3147_s6 + $0x84] sm:$0xff]  ;;  %v2933_v55 = vld [vmem:[%s3929_s1 + $0x238] sm:$0xff]  ;;  %v3314_v60 = vld [vmem:[%s3147_s6 + $0x90] sm:$0xff]  ;;  %v381_v2 = vpack.c.b16 %v363_v62, %v363_v62  ;;  %v643_v62 = vrot.slane %v3278_v48, 1 }
  0x1f   : > { %v3311_v59 = vld [vmem:[%s3147_s6 + $0x60] sm:$0xff]  ;;  %v3327_v3 = vpack.c.b16 %v362_v0, %v362_v0 }
  0x20   : > { %952 = vmatpush.bf16.msra.mxu0 %v2888_v5  ;;  %3044 = vmatpush.bf16.msra.mxu1 %v2888_v5  ;;  %v3317_v61 = vld [vmem:[%s3147_s6 + $0xc0] sm:$0xff] }
  0x21   : > { %3045 = vmatpush.bf16.msra.mxu2 %v2888_v5  ;;  %3046 = vmatpush.bf16.msra.mxu3 %v2888_v5  ;;  %v3320_v63 = vld [vmem:[%s3147_s6] sm:$0xff]  ;;  %v412_v5 = vshrl.u32 %v3156_v10, 16 }
  0x22   : > { %v402_v4 = vshll.u32 %v3320_v63, 16 }
  0x24   : > { %953 = vmatpush.bf16.msra.mxu0 %v2887_v6  ;;  %3047 = vmatpush.bf16.msra.mxu1 %v2887_v6 }
  0x25   : > { %3048 = vmatpush.bf16.msra.mxu2 %v2887_v6  ;;  %3049 = vmatpush.bf16.msra.mxu3 %v2887_v6  ;;  %v416_v6 = vrot.slane %v414_v1, 1  ;;  %v196_v1 = vld [vmem:[%s3147_s6 + $0x38] sm:$0x1] }
  0x28   : > { %954 = vmatpush.bf16.msra.mxu0 %v2886_v7  ;;  %3050 = vmatpush.bf16.msra.mxu1 %v2886_v7 }
  0x29   : > { %3051 = vmatpush.bf16.msra.mxu2 %v2886_v7  ;;  %3052 = vmatpush.bf16.msra.mxu3 %v2886_v7  ;;  %v419_v7 = vshll.u32 %v381_v2, 16 }
  0x2b   : > { %955 = vmatmul.bf16.vlgmr.msra.gmra.mxu0 %v3156_v10  ;;  %975 = vmatmul.bf16.vlgmr.msra.gmra.mxu1 %v3159_v11 }
  0x2c   : > { %995 = vmatmul.bf16.vlgmr.msra.gmra.mxu2 %v3162_v12  ;;  %1015 = vmatmul.bf16.vlgmr.msra.gmra.mxu3 %v3165_v13 }
  0x2d   : > { %1125 = vmatpush.bf16.msrb.mxu2 %v2909_v8  ;;  %1358 = vmatpush.bf16.msrb.mxu3 %v2869_v9  ;;  %v400_v8 = vshrl.u32 %v3320_v63, 16  ;;  %v404_v9 = vrot.slane %v402_v4, 1  ;;  %v366_v4 = vunpack.c.l.b16 %v196_v1  ;;  %v2882_v1 = vld [vmem:[%s3929_s1 + $0xa0] sm:$0xff] }
  0x2e   : > { %1036 = vmatpush.bf16.msrb.mxu1 %v2901_v14  ;;  %1447 = vmatpush.bf16.msrb.mxu0 %v2877_v15  ;;  %v407_v14 = vshll.u32 %v3327_v3, 16  ;;  %v417_v15 = vor.u32 %v416_v6, %v412_v5  ;;  %v450_v6 = vshll.u32 %v3308_v58, 16 }
  0x31   : > { %1126 = vmatpush.bf16.msrb.mxu2 %v2908_v16  ;;  %1359 = vmatpush.bf16.msrb.mxu3 %v2868_v17  ;;  %v421_v16 = vrot.slane %v419_v7, 1  ;;  %v405_v17 = vor.u32 %v404_v9, %v400_v8  ;;  %v2915_v7 = vld [vmem:[%s3929_s1 + $0x1a8] sm:$0xff]  ;;  %v448_v9 = vshrl.u32 %v3308_v58, 16 }
  0x32   : > { %1037 = vmatpush.bf16.msrb.mxu1 %v2900_v18  ;;  %1448 = vmatpush.bf16.msrb.mxu0 %v2876_v19  ;;  %v409_v18 = vrot.slane %v407_v14, 1  ;;  %v637_v19 = vrot.slane %v3156_v10, 1  ;;  %v2923_v8 = vld [vmem:[%s3929_s1 + $0x1e8] sm:$0xff]  ;;  %v452_v14 = vrot.slane %v450_v6, 1 }
  0x35   : > { %1127 = vmatpush.bf16.msrb.mxu2 %v2907_v20  ;;  %1360 = vmatpush.bf16.msrb.mxu3 %v2867_v21  ;;  %v638_v20 = vrot.slane %v381_v2, 1  ;;  %v190_v21 = vld [vmem:[%s3147_s6 + $0x20] sm:$0x1] }
  0x36   : > { %1038 = vmatpush.bf16.msrb.mxu1 %v2899_v22  ;;  %1449 = vmatpush.bf16.msrb.mxu0 %v2875_v23  ;;  %v422_v22 = vsel %vm398_vm0, %v417_v15, %v421_v16  ;;  %v410_v23 = vsel %vm398_vm0, %v405_v17, %v409_v18  ;;  %v2931_v16 = vld [vmem:[%s3929_s1 + $0x228] sm:$0xff]  ;;  %v453_v17 = vor.u32 %v452_v14, %v448_v9  ;;  %v205_v9 = vld [vmem:[%s3147_s6 + $0x5c] sm:$0x1] }
  0x39   : > { %1128 = vmatpush.bf16.msrb.mxu2 %v2906_v24  ;;  %1361 = vmatpush.bf16.msrb.mxu3 %v2866_v25  ;;  %v364_v24 = vunpack.c.l.b16 %v190_v21  ;;  %v3338_v25 = vsel %vm633_vm1, %v637_v19, %v638_v20  ;;  %v646_v19 = vrot.slane %v3308_v58, 1  ;;  %v199_v21 = vld [vmem:[%s3147_s6 + $0x44] sm:$0x1] }
  0x3a   : > { %1039 = vmatpush.bf16.msrb.mxu1 %v2898_v26  ;;  %1450 = vmatpush.bf16.msrb.mxu0 %v2874_v27  ;;  %v426_v27 = vshll.u32 %v3220_v30, 16 }
  0x3b   : > { %960 = vmatmul.bf16.gmra.mxu0 %v3220_v30  ;;  %980 = vmatmul.bf16.gmra.mxu1 %v3223_v31  ;;  %v382_v26 = vpack.c.b16 %v364_v24, %v364_v24 }
  0x3c   : > { %1000 = vmatmul.bf16.gmra.mxu2 %v3226_v32  ;;  %1020 = vmatmul.bf16.gmra.mxu3 %v3229_v33 }
  0x3d   : > { %1129 = vmatpush.bf16.msrb.mxu2 %v2905_v28  ;;  %1362 = vmatpush.bf16.msrb.mxu3 %v2865_v29  ;;  %v2916_v28 = vld [vmem:[%s3929_s1 + $0x1b0] sm:$0xff] }
  0x3e   : > { %1040 = vmatpush.bf16.msrb.mxu1 %v2897_v34  ;;  %1451 = vmatpush.bf16.msrb.mxu0 %v2873_v35  ;;  %v2924_v29 = vld [vmem:[%s3929_s1 + $0x1f0] sm:$0xff] }
  0x3f   : > { %v2884_v34 = vld [vmem:[%s3929_s1 + $0xb0] sm:$0xff] }
  0x40   : > { %v2932_v35 = vld [vmem:[%s3929_s1 + $0x230] sm:$0xff] }
  0x41   : > { %1130 = vmatpush.bf16.msrb.mxu2 %v2904_v36  ;;  %1363 = vmatpush.bf16.msrb.mxu3 %v2864_v37  ;;  %v424_v36 = vshrl.u32 %v3220_v30, 16  ;;  %v428_v37 = vrot.slane %v426_v27, 1  ;;  %v462_v27 = vshll.u32 %v3159_v11, 16 }
  0x42   : > { %1041 = vmatpush.bf16.msrb.mxu1 %v2896_v38  ;;  %1452 = vmatpush.bf16.msrb.mxu0 %v2872_v39  ;;  %v431_v38 = vshll.u32 %v382_v26, 16 }
  0x43   : > { %v429_v39 = vor.u32 %v428_v37, %v424_v36  ;;  %v649_v37 = vrot.slane %v3159_v11, 1 }
  0x45   : > { %1131 = vmatpush.bf16.msrb.mxu2 %v2903_v40  ;;  %1364 = vmatpush.bf16.msrb.mxu3 %v2863_v41  ;;  %v433_v40 = vrot.slane %v431_v38, 1  ;;  %v640_v41 = vrot.slane %v3220_v30, 1 }
  0x46   : > { %1042 = vmatpush.bf16.msrb.mxu1 %v2895_v42  ;;  %1453 = vmatpush.bf16.msrb.mxu0 %v2871_v43  ;;  %v641_v42 = vrot.slane %v382_v26, 1  ;;  %v193_v43 = vld [vmem:[%s3147_s6 + $0x2c] sm:$0x1] }
  0x49   : > { %1132 = vmatpush.bf16.msrb.mxu2 %v2902_v44  ;;  %1365 = vmatpush.bf16.msrb.mxu3 %v2862_v45  ;;  %v3359_v44 = vsel %vm398_vm0, %v429_v39, %v433_v40  ;;  %v365_v45 = vunpack.c.l.b16 %v193_v43  ;;  %v202_v39 = vld [vmem:[%s3147_s6 + $0x50] sm:$0x1] }
  0x4a   : > { %1043 = vmatpush.bf16.msrb.mxu1 %v2894_v46  ;;  %1454 = vmatpush.bf16.msrb.mxu0 %v2870_v47  ;;  %v3362_v46 = vsel %vm633_vm1, %v640_v41, %v641_v42 }
  0x4b   : > { %965 = vmatmul.bf16.gmra.mxu0 %v3278_v48  ;;  %985 = vmatmul.bf16.gmra.mxu1 %v3281_v49  ;;  %v383_v47 = vpack.c.b16 %v365_v45, %v365_v45 }
  0x4c   : > { %1005 = vmatmul.bf16.gmra.mxu2 %v3284_v50  ;;  %1025 = vmatmul.bf16.gmra.mxu3 %v3287_v51 }
  0x4d   : > { %1818 = vmatpush.bf16.msra.mxu2 %v2917_v52  ;;  %1907 = vmatpush.bf16.msra.mxu3 %v2925_v53  ;;  %v438_v52 = vshll.u32 %v3278_v48, 16  ;;  %v436_v53 = vshrl.u32 %v3278_v48, 16  ;;  %v644_v0 = vrot.slane %v383_v47, 1 }
  0x4e   : > { %1536 = vmatpush.bf16.msra.mxu1 %v2885_v54  ;;  %1996 = vmatpush.bf16.msra.mxu0 %v2933_v55  ;;  %v443_v55 = vshll.u32 %v383_v47, 16  ;;  %v474_v47 = vshll.u32 %v3223_v31, 16 }
  0x4f   : > { %v440_v54 = vrot.slane %v438_v52, 1  ;;  %v3375_v5 = vsel %vm633_vm1, %v643_v62, %v644_v0  ;;  %v2914_v52 = vld [vmem:[%s3929_s1 + $0x1a0] sm:$0xff] }
  0x50   : > { %v445_v57 = vrot.slane %v443_v55, 1  ;;  %v476_v62 = vrot.slane %v474_v47, 1 }
  0x51   : > { %1819 = vmatpush.bf16.msra.mxu2 %v2916_v28  ;;  %1908 = vmatpush.bf16.msra.mxu3 %v2924_v29  ;;  %v441_v56 = vor.u32 %v440_v54, %v436_v53  ;;  %v460_v28 = vshrl.u32 %v3159_v11, 16  ;;  %v464_v29 = vrot.slane %v462_v27, 1  ;;  %v2922_v53 = vld [vmem:[%s3929_s1 + $0x1e0] sm:$0xff] }
  0x52   : > { %1537 = vmatpush.bf16.msra.mxu1 %v2884_v34  ;;  %1997 = vmatpush.bf16.msra.mxu0 %v2932_v35 }
  0x53   : > { %v3372_v2 = vsel %vm398_vm0, %v441_v56, %v445_v57  ;;  %v465_v35 = vor.u32 %v464_v29, %v460_v28  ;;  %v472_v57 = vshrl.u32 %v3223_v31, 16  ;;  %v484_v29 = vshrl.u32 %v3281_v49, 16 }
  0x55   : > { %1820 = vmatpush.bf16.msra.mxu2 %v2915_v7  ;;  %1909 = vmatpush.bf16.msra.mxu3 %v2923_v8  ;;  %v652_v7 = vrot.slane %v3223_v31, 1 }
  0x56   : > { %1998 = vmatpush.bf16.msra.mxu0 %v2931_v16 }
  0x59   : > { %1821 = vmatpush.bf16.msra.mxu2 %v2914_v52  ;;  %1910 = vmatpush.bf16.msra.mxu3 %v2922_v53 }
  0x5b   : > { %970 = vmatmul.bf16.gmra.mxu0 %v3308_v58  ;;  %990 = vmatmul.bf16.gmra.mxu1 %v3311_v59 }
  0x5c   : > { %1010 = vmatmul.bf16.gmra.mxu2 %v3314_v60  ;;  %1030 = vmatmul.bf16.gmra.mxu3 %v3317_v61 }
  0x6b   : > { %1044 = vmatmul.bf16.vlgmr.msrb.gmra.mxu1 %v422_v22  ;;  %1455 = vmatmul.bf16.vlgmr.msrb.gmra.mxu0 %v410_v23  ;;  %v367_v23 = vunpack.c.l.b16 %v199_v21  ;;  %v486_v21 = vshll.u32 %v3281_v49, 16 }
  0x6c   : > { %1133 = vmatmul.bf16.vlgmr.msrb.gmra.mxu2 %v3338_v25  ;;  %1366 = vmatmul.bf16.vlgmr.msrb.gmra.mxu3 %v3320_v63 }
  0x6d   : > { %v385_v26 = vpack.c.b16 %v367_v23, %v367_v23 }
  0x6f   : > { %v467_v34 = vshll.u32 %v385_v26, 16  ;;  %v650_v38 = vrot.slane %v385_v26, 1 }
  0x71   : > { %v469_v36 = vrot.slane %v467_v34, 1  ;;  %v3419_v43 = vsel %vm633_vm1, %v649_v37, %v650_v38  ;;  %v488_v34 = vrot.slane %v486_v21, 1  ;;  %v655_v38 = vrot.slane %v3281_v49, 1  ;;  %v2881_v21 = vld [vmem:[%s3929_s1 + $0x98] sm:$0xff] }
  0x73   : > { %v3416_v42 = vsel %vm398_vm0, %v465_v35, %v469_v36  ;;  %v489_v36 = vor.u32 %v488_v34, %v484_v29  ;;  %v2929_v29 = vld [vmem:[%s3929_s1 + $0x218] sm:$0xff] }
  0x7b   : > { %1049 = vmatmul.bf16.gmra.mxu1 %v3359_v44  ;;  %1460 = vmatmul.bf16.gmra.mxu0 %v422_v22 }
  0x7c   : > { %1138 = vmatmul.bf16.gmra.mxu2 %v3362_v46  ;;  %1371 = vmatmul.bf16.gmra.mxu3 %v3156_v10  ;;  %v384_v10 = vpack.c.b16 %v366_v4, %v366_v4  ;;  %v2930_v4 = vld [vmem:[%s3929_s1 + $0x220] sm:$0xff] }
  0x7d   : > { %1999 = vmatpush.bf16.msra.mxu0 %v2930_v4  ;;  %v2913_v4 = vld [vmem:[%s3929_s1 + $0x198] sm:$0xff] }
  0x7e   : > { %v455_v15 = vshll.u32 %v384_v10, 16  ;;  %v647_v20 = vrot.slane %v384_v10, 1  ;;  %v477_v10 = vor.u32 %v476_v62, %v472_v57  ;;  %1822 = vmatpush.bf16.msra.mxu2 %v2913_v4 }
  0x80   : > { %v457_v18 = vrot.slane %v455_v15, 1  ;;  %v3401_v24 = vsel %vm633_vm1, %v646_v19, %v647_v20 }
  0x81   : > { %2000 = vmatpush.bf16.msra.mxu0 %v2929_v29 }
  0x82   : > { %v3398_v22 = vsel %vm398_vm0, %v453_v17, %v457_v18  ;;  %v369_v18 = vunpack.c.l.b16 %v205_v9  ;;  %v496_v9 = vshrl.u32 %v3311_v59, 16 }
  0x84   : > { %v387_v20 = vpack.c.b16 %v369_v18, %v369_v18 }
  0x86   : > { %v491_v35 = vshll.u32 %v387_v20, 16 }
  0x88   : > { %v493_v37 = vrot.slane %v491_v35, 1 }
  0x8a   : > { %v3488_v53 = vsel %vm398_vm0, %v489_v36, %v493_v37  ;;  %v658_v36 = vrot.slane %v3311_v59, 1 }
  0x8b   : > { %1054 = vmatmul.bf16.gmra.mxu1 %v3372_v2  ;;  %1465 = vmatmul.bf16.gmra.mxu0 %v3359_v44  ;;  %3953 = vst [vmem:[#allocation8_spill] sm:$0xff] %v3488_v53 }
  0x8c   : > { %1143 = vmatmul.bf16.gmra.mxu2 %v3375_v5  ;;  %1376 = vmatmul.bf16.gmra.mxu3 %v3220_v30  ;;  %v2883_v30 = vld [vmem:[%s3929_s1 + $0xa8] sm:$0xff] }
  0x8d   : > { %1538 = vmatpush.bf16.msra.mxu1 %v2883_v30 }
  0x91   : > { %1539 = vmatpush.bf16.msra.mxu1 %v2882_v1  ;;  %v498_v1 = vshll.u32 %v3311_v59, 16 }
  0x93   : > { %v500_v18 = vrot.slane %v498_v1, 1 }
  0x95   : > { %v501_v34 = vor.u32 %v500_v18, %v496_v9  ;;  %1540 = vmatpush.bf16.msra.mxu1 %v2881_v21  ;;  %v510_v18 = vshll.u32 %v3162_v12, 16 }
  0x9b   : > { %1059 = vmatmul.bf16.gmra.mxu1 %v3398_v22  ;;  %1470 = vmatmul.bf16.gmra.mxu0 %v3372_v2 }
  0x9c   : > { %1148 = vmatmul.bf16.gmra.mxu2 %v3401_v24  ;;  %1381 = vmatmul.bf16.gmra.mxu3 %v3278_v48  ;;  %v368_v48 = vunpack.c.l.b16 %v202_v39  ;;  %v208_v39 = vld [vmem:[%s3147_s6 + $0x68] sm:$0x1] }
  0x9d   : > { %v370_v57 = vunpack.c.l.b16 %v208_v39 }
  0x9e   : > { %v386_v45 = vpack.c.b16 %v368_v48, %v368_v48 }
  0xa0   : > { %v479_v0 = vshll.u32 %v386_v45, 16  ;;  %v653_v8 = vrot.slane %v386_v45, 1 }
  0xa2   : > { %v481_v6 = vrot.slane %v479_v0, 1  ;;  %v3461_v19 = vsel %vm633_vm1, %v652_v7, %v653_v8  ;;  %v388_v0 = vpack.c.b16 %v370_v57, %v370_v57 }
  0xa3   : > { %3950 = vst [vmem:[#allocation5_spill] sm:$0xff] %v3461_v19 }
  0xa4   : > { %v3458_v17 = vsel %vm398_vm0, %v477_v10, %v481_v6  ;;  %v2921_v10 = vld [vmem:[%s3929_s1 + $0x1d8] sm:$0xff]  ;;  %v659_v37 = vrot.slane %v388_v0, 1 }
  0xa5   : > { %3949 = vst [vmem:[#allocation4_spill] sm:$0xff] %v3458_v17  ;;  %1911 = vmatpush.bf16.msra.mxu3 %v2921_v10 }
  0xa6   : > { %v3533_v9 = vsel %vm633_vm1, %v658_v36, %v659_v37  ;;  %v512_v36 = vrot.slane %v510_v18, 1 }
  0xa7   : > { %3958 = vst [vmem:[#allocation13_spill] sm:$0xff] %v3533_v9 }
  0xa8   : > { %v3411_v40 = vpop.f32.mrf.mxu0  ;;  %v3413_v41 = vpop.f32.mrf.mxu1 }
  0xab   : > { %1064 = vmatmul.bf16.gmra.mxu1 %v3416_v42  ;;  %1475 = vmatmul.bf16.gmra.mxu0 %v3398_v22 }
  0xac   : > { %1153 = vmatmul.bf16.gmra.mxu2 %v3419_v43  ;;  %1386 = vmatmul.bf16.gmra.mxu3 %v3308_v58 }
  0xaf   : > { %v3432_v54 = vpop.f32.mrf.mxu2  ;;  %v3434_v55 = vpop.f32.mrf.mxu3 }
  0xb0   : > { %3947 = vst [vmem:[#allocation2_spill] sm:$0xff] %v3434_v55  ;;  %v3436_v56 = vpop.f32.mrf.mxu0  ;;  %v3438_v58 = vpop.f32.mrf.mxu1  ;;  %v217_v55 = vld [vmem:[%s3147_s6 + $0x8c] sm:$0x1] }
  0xb7   : > { %v3449_v14 = vpop.f32.mrf.mxu2  ;;  %v3451_v15 = vpop.f32.mrf.mxu3 }
  0xb8   : > { %3948 = vst [vmem:[#allocation3_spill] sm:$0xff] %v3451_v15  ;;  %v3453_v30 = vpop.f32.mrf.mxu0  ;;  %v3455_v16 = vpop.f32.mrf.mxu1 }
  0xbb   : > { %1069 = vmatmul.bf16.gmra.mxu1 %v3458_v17  ;;  %1480 = vmatmul.bf16.gmra.mxu0 %v3416_v42 }
  0xbc   : > { %1158 = vmatmul.bf16.gmra.mxu2 %v3461_v19  ;;  %1391 = vmatmul.bf16.gmra.mxu3 %v3159_v11  ;;  %v656_v11 = vrot.slane %v387_v20, 1  ;;  %v503_v20 = vshll.u32 %v388_v0, 16 }
  0xbe   : > { %v3491_v62 = vsel %vm633_vm1, %v655_v38, %v656_v11  ;;  %v505_v35 = vrot.slane %v503_v20, 1  ;;  %v211_v38 = vld [vmem:[%s3147_s6 + $0x74] sm:$0x1] }
  0xbf   : > { %v3468_v23 = vpop.f32.mrf.mxu2  ;;  %v3470_v26 = vpop.f32.mrf.mxu3  ;;  %3954 = vst [vmem:[#allocation9_spill] sm:$0xff] %v3491_v62  ;;  %v371_v10 = vunpack.c.l.b16 %v211_v38 }
  0xc0   : > { %3951 = vst [vmem:[#allocation6_spill] sm:$0xff] %v3470_v26  ;;  %v3472_v27 = vpop.f32.mrf.mxu0  ;;  %v3474_v28 = vpop.f32.mrf.mxu1  ;;  %v3530_v4 = vsel %vm398_vm0, %v501_v34, %v505_v35  ;;  %v508_v35 = vshrl.u32 %v3162_v12, 16 }
  0xc1   : > { %3957 = vst [vmem:[#allocation12_spill] sm:$0xff] %v3530_v4  ;;  %v389_v0 = vpack.c.b16 %v371_v10, %v371_v10  ;;  %v214_v10 = vld [vmem:[%s3147_s6 + $0x80] sm:$0x1] }
  0xc2   : > { %v513_v38 = vor.u32 %v512_v36, %v508_v35  ;;  %v522_v35 = vshll.u32 %v3226_v32, 16 }
  0xc3   : > { %v515_v37 = vshll.u32 %v389_v0, 16 }
  0xc7   : > { %v3479_v48 = vpop.f32.mrf.mxu2  ;;  %v3481_v45 = vpop.f32.mrf.mxu3 }
  0xc8   : > { %3952 = vst [vmem:[#allocation7_spill] sm:$0xff] %v3481_v45  ;;  %v3483_v47 = vpop.f32.mrf.mxu0  ;;  %v3485_v52 = vpop.f32.mrf.mxu1 }
  0xcb   : > { %1074 = vmatmul.bf16.gmra.mxu1 %v3488_v53  ;;  %1485 = vmatmul.bf16.gmra.mxu0 %v3458_v17 }
  0xcc   : > { %1163 = vmatmul.bf16.gmra.mxu2 %v3491_v62  ;;  %1396 = vmatmul.bf16.gmra.mxu3 %v3223_v31  ;;  %v372_v62 = vunpack.c.l.b16 %v214_v10 }
  0xcf   : > { %v3504_v6 = vpop.f32.mrf.mxu2  ;;  %v3506_v7 = vpop.f32.mrf.mxu3 }
  0xd0   : > { %3955 = vst [vmem:[#allocation10_spill] sm:$0xff] %v3506_v7  ;;  %v3508_v8 = vpop.f32.mrf.mxu0  ;;  %v3510_v31 = vpop.f32.mrf.mxu1  ;;  %v661_v7 = vrot.slane %v3162_v12, 1 }
  0xd7   : > { %v3521_v11 = vpop.f32.mrf.mxu2  ;;  %v3523_v39 = vpop.f32.mrf.mxu3 }
  0xd8   : > { %3956 = vst [vmem:[#allocation11_spill] sm:$0xff] %v3523_v39  ;;  %v3525_v57 = vpop.f32.mrf.mxu0  ;;  %v3527_v1 = vpop.f32.mrf.mxu1  ;;  %v517_v39 = vrot.slane %v515_v37, 1 }
  0xdb   : > { %1079 = vmatmul.bf16.gmra.mxu1 %v3530_v4  ;;  %1490 = vmatmul.bf16.gmra.mxu0 %v3488_v53  ;;  %v3556_v53 = vsel %vm398_vm0, %v513_v38, %v517_v39  ;;  %v2912_v39 = vld [vmem:[%s3929_s1 + $0x190] sm:$0xff] }
  0xdc   : > { %1168 = vmatmul.bf16.gmra.mxu2 %v3533_v9  ;;  %1401 = vmatmul.bf16.gmra.mxu3 %v3281_v49  ;;  %v662_v49 = vrot.slane %v389_v0, 1  ;;  %v390_v0 = vpack.c.b16 %v372_v62, %v372_v62  ;;  %v524_v62 = vrot.slane %v522_v35, 1  ;;  %v664_v35 = vrot.slane %v3226_v32, 1 }
  0xdd   : > { %1823 = vmatpush.bf16.msra.mxu2 %v2912_v39  ;;  %v2928_v39 = vld [vmem:[%s3929_s1 + $0x210] sm:$0xff] }
  0xde   : > { %v3560_v18 = vsel %vm633_vm1, %v661_v7, %v662_v49  ;;  %v527_v49 = vshll.u32 %v390_v0, 16  ;;  %2001 = vmatpush.bf16.msra.mxu0 %v2928_v39  ;;  %v532_v39 = vshrl.u32 %v3284_v50, 16 }
  0xdf   : > { %v3540_v20 = vpop.f32.mrf.mxu2  ;;  %v3542_v21 = vpop.f32.mrf.mxu3  ;;  %3962 = vst [vmem:[#allocation17_spill] sm:$0xff] %v3560_v18 }
  0xe0   : > { %3959 = vst [vmem:[#allocation14_spill] sm:$0xff] %v3542_v21  ;;  %v3544_v29 = vpop.f32.mrf.mxu0  ;;  %v3546_v34 = vpop.f32.mrf.mxu1 }
  0xe7   : > { %v3551_v9 = vpop.f32.mrf.mxu2  ;;  %v3553_v45 = vpop.f32.mrf.mxu3 }
  0xe8   : > { %3960 = vst [vmem:[#allocation15_spill] sm:$0xff] %v3551_v9  ;;  %v1045_v26 = vpop.f32.mrf.mxu1  ;;  %v1456_v21 = vpop.f32.mrf.mxu0  ;;  %v373_v9 = vunpack.c.l.b16 %v217_v55 }
  0xe9   : > { %3961 = vst [vmem:[#allocation16_spill] sm:$0xff] %v3553_v45  ;;  %v1046_v15 = vadd.f32 %v1045_v26, %v3411_v40  ;;  %v2920_v40 = vld [vmem:[%s3929_s1 + $0x1d0] sm:$0xff] }
  0xea   : > { %1912 = vmatpush.bf16.msra.mxu3 %v2920_v40 }
  0xeb   : > { %1084 = vmatmul.bf16.gmra.mxu1 %v3556_v53  ;;  %1495 = vmatmul.bf16.gmra.mxu0 %v3530_v4  ;;  %v665_v4 = vrot.slane %v390_v0, 1  ;;  %v534_v0 = vshll.u32 %v3284_v50, 16 }
  0xec   : > { %1173 = vmatmul.bf16.gmra.mxu2 %v3560_v18  ;;  %1406 = vmatmul.bf16.gmra.mxu3 %v3311_v59  ;;  %v520_v59 = vshrl.u32 %v3226_v32, 16  ;;  %v2880_v18 = vld [vmem:[%s3929_s1 + $0x90] sm:$0xff] }
  0xed   : > { %1541 = vmatpush.bf16.msra.mxu1 %v2880_v18  ;;  %v3590_v18 = vsel %vm633_vm1, %v664_v35, %v665_v4 }
  0xee   : > { %v525_v40 = vor.u32 %v524_v62, %v520_v59  ;;  %3964 = vst [vmem:[#allocation19_spill] sm:$0xff] %v3590_v18 }
  0xef   : > { %v1134_v26 = vpop.f32.mrf.mxu2  ;;  %v1367_v7 = vpop.f32.mrf.mxu3 }
  0xf0   : > { %v1135_v36 = vadd.f32 %v1134_v26, %v1046_v15  ;;  %v1047_v37 = vpop.f32.mrf.mxu1  ;;  %v1458_v38 = vpop.f32.mrf.mxu0  ;;  %v529_v15 = vrot.slane %v527_v49, 1 }
  0xf1   : > { %v1048_v10 = vadd.f32 %v1047_v37, %v3436_v56 }
  0xf2   : > { %v1368_v45 = vadd.f32 %v1367_v7, %v1135_v36  ;;  %v3586_v19 = vsel %vm398_vm0, %v525_v40, %v529_v15  ;;  %v536_v40 = vrot.slane %v534_v0, 1 }
  0xf4   : > { %v3581_v26 = vadd.f32 %v1456_v21, %v1368_v45  ;;  %v391_v21 = vpack.c.b16 %v373_v9, %v373_v9 }
  0xf6   : > { %3963 = vst [vmem:[#allocation18_spill] sm:$0xff] %v3581_v26  ;;  %v539_v15 = vshll.u32 %v391_v21, 16 }
  0xf7   : > { %v1136_v56 = vpop.f32.mrf.mxu2  ;;  %v1369_v7 = vpop.f32.mrf.mxu3 }
  0xf8   : > { %v1137_v36 = vadd.f32 %v1136_v56, %v1048_v10  ;;  %v1050_v37 = vpop.f32.mrf.mxu1  ;;  %v1461_v17 = vpop.f32.mrf.mxu0 }
  0xf9   : > { %v1051_v59 = vadd.f32 %v1050_v37, %v3453_v30  ;;  %v220_v37 = vld [vmem:[%s3147_s6 + $0x98] sm:$0x1] }
  0xfa   : > { %v1370_v45 = vadd.f32 %v1369_v7, %v1137_v36  ;;  %v537_v7 = vor.u32 %v536_v40, %v532_v39  ;;  %v668_v36 = vrot.slane %v391_v21, 1  ;;  %v374_v0 = vunpack.c.l.b16 %v220_v37  ;;  %v2927_v37 = vld [vmem:[%s3929_s1 + $0x208] sm:$0xff] }
  0xfb   : > { %1089 = vmatmul.bf16.gmra.mxu1 %v3586_v19  ;;  %1500 = vmatmul.bf16.gmra.mxu0 %v3556_v53 }
  0xfc   : > { %1178 = vmatmul.bf16.gmra.mxu2 %v3590_v18  ;;  %1411 = vmatmul.bf16.gmra.mxu3 %v3162_v12  ;;  %v3597_v62 = vadd.f32 %v1458_v38, %v1370_v45  ;;  %v541_v12 = vrot.slane %v539_v15, 1  ;;  %v667_v38 = vrot.slane %v3284_v50, 1  ;;  %v392_v21 = vpack.c.b16 %v374_v0, %v374_v0 }
  0xfd   : > { %2002 = vmatpush.bf16.msra.mxu0 %v2927_v37  ;;  %v670_v0 = vrot.slane %v3314_v60, 1 }
  0xfe   : > { %3965 = vst [vmem:[#allocation20_spill] sm:$0xff] %v3597_v62  ;;  %v3606_v18 = vsel %vm398_vm0, %v537_v7, %v541_v12  ;;  %v551_v12 = vshll.u32 %v392_v21, 16 }
  0xff   : > { %v1139_v55 = vpop.f32.mrf.mxu2  ;;  %v1372_v30 = vpop.f32.mrf.mxu3 }
 0x100   : > { %v1140_v49 = vadd.f32 %v1139_v55, %v1051_v59  ;;  %v1052_v4 = vpop.f32.mrf.mxu1  ;;  %v1463_v10 = vpop.f32.mrf.mxu0 }
 0x101   : > { %v1053_v35 = vadd.f32 %v1052_v4, %v3472_v27  ;;  %v2911_v4 = vld [vmem:[%s3929_s1 + $0x188] sm:$0xff] }
 0x102   : > { %v1373_v56 = vadd.f32 %v1372_v30, %v1140_v49  ;;  %v3610_v30 = vsel %vm633_vm1, %v667_v38, %v668_v36  ;;  %v546_v49 = vshll.u32 %v3314_v60, 16  ;;  %1824 = vmatpush.bf16.msra.mxu2 %v2911_v4 }
 0x104   : > { %v3601_v9 = vadd.f32 %v1461_v17, %v1373_v56  ;;  %v544_v56 = vshrl.u32 %v3314_v60, 16  ;;  %v548_v7 = vrot.slane %v546_v49, 1 }
 0x107   : > { %v1141_v45 = vpop.f32.mrf.mxu2  ;;  %v1374_v62 = vpop.f32.mrf.mxu3 }
 0x108   : > { %v1142_v59 = vadd.f32 %v1141_v45, %v1053_v35  ;;  %v1055_v55 = vpop.f32.mrf.mxu1  ;;  %v1466_v26 = vpop.f32.mrf.mxu0  ;;  %v549_v45 = vor.u32 %v548_v7, %v544_v56  ;;  %v558_v7 = vshll.u32 %v3165_v13, 16 }
 0x109   : > { %v1056_v27 = vadd.f32 %v1055_v55, %v3483_v47  ;;  %v2919_v47 = vld [vmem:[%s3929_s1 + $0x1c8] sm:$0xff] }
 0x10a   : > { %v1375_v17 = vadd.f32 %v1374_v62, %v1142_v59  ;;  %1913 = vmatpush.bf16.msra.mxu3 %v2919_v47  ;;  %v553_v59 = vrot.slane %v551_v12, 1 }
 0x10b   : > { %1094 = vmatmul.bf16.gmra.mxu1 %v3606_v18  ;;  %1505 = vmatmul.bf16.gmra.mxu0 %v3586_v19 }
 0x10c   : > { %1183 = vmatmul.bf16.gmra.mxu2 %v3610_v30  ;;  %1416 = vmatmul.bf16.gmra.mxu3 %v3226_v32  ;;  %v3623_v62 = vadd.f32 %v1463_v10, %v1375_v17  ;;  %v2879_v10 = vld [vmem:[%s3929_s1 + $0x88] sm:$0xff]  ;;  %v223_v17 = vld [vmem:[%s3147_s6 + $0xa4] sm:$0x1] }
 0x10d   : > { %1542 = vmatpush.bf16.msra.mxu1 %v2879_v10 }
 0x10f   : > { %v1144_v39 = vpop.f32.mrf.mxu2  ;;  %v1377_v40 = vpop.f32.mrf.mxu3 }
 0x110   : > { %v1145_v15 = vadd.f32 %v1144_v39, %v1056_v27  ;;  %v1057_v35 = vpop.f32.mrf.mxu1  ;;  %v1468_v32 = vpop.f32.mrf.mxu0  ;;  %v671_v27 = vrot.slane %v392_v21, 1 }
 0x111   : > { %v1058_v38 = vadd.f32 %v1057_v35, %v3508_v8 }
 0x112   : > { %v1378_v36 = vadd.f32 %v1377_v40, %v1145_v15  ;;  %v3638_v40 = vsel %vm398_vm0, %v549_v45, %v553_v59  ;;  %v375_v15 = vunpack.c.l.b16 %v223_v17  ;;  %v3642_v56 = vsel %vm633_vm1, %v670_v0, %v671_v27 }
 0x113   : > { %v556_v45 = vshrl.u32 %v3165_v13, 16  ;;  %v560_v59 = vrot.slane %v558_v7, 1 }
 0x114   : > { %v3633_v55 = vadd.f32 %v1466_v26, %v1378_v36  ;;  %v393_v21 = vpack.c.b16 %v375_v15, %v375_v15 }
 0x116   : > { %3966 = vst [vmem:[#allocation21_spill] sm:$0xff] %v3633_v55  ;;  %v563_v0 = vshll.u32 %v393_v21, 16 }
 0x117   : > { %v1146_v8 = vpop.f32.mrf.mxu2  ;;  %v1379_v49 = vpop.f32.mrf.mxu3 }
 0x118   : > { %v1147_v4 = vadd.f32 %v1146_v8, %v1058_v38  ;;  %v1060_v47 = vpop.f32.mrf.mxu1  ;;  %v1471_v39 = vpop.f32.mrf.mxu0  ;;  %v561_v8 = vor.u32 %v560_v59, %v556_v45 }
 0x119   : > { %v1061_v35 = vadd.f32 %v1060_v47, %v3525_v57  ;;  %v226_v47 = vld [vmem:[%s3147_s6 + $0xb0] sm:$0x1] }
 0x11a   : > { %v1380_v26 = vadd.f32 %v1379_v49, %v1147_v4  ;;  %v674_v4 = vrot.slane %v393_v21, 1  ;;  %v376_v7 = vunpack.c.l.b16 %v226_v47  ;;  %v2910_v21 = vld [vmem:[%s3929_s1 + $0x180] sm:$0xff] }
 0x11b   : > { %1099 = vmatmul.bf16.gmra.mxu1 %v3638_v40  ;;  %1510 = vmatmul.bf16.gmra.mxu0 %v3606_v18 }
 0x11c   : > { %1188 = vmatmul.bf16.gmra.mxu2 %v3642_v56  ;;  %1421 = vmatmul.bf16.gmra.mxu3 %v3284_v50  ;;  %v3649_v12 = vadd.f32 %v1468_v32, %v1380_v26  ;;  %v565_v50 = vrot.slane %v563_v0, 1  ;;  %v673_v32 = vrot.slane %v3165_v13, 1  ;;  %v394_v13 = vpack.c.b16 %v376_v7, %v376_v7  ;;  %v229_v7 = vld [vmem:[%s3147_s6 + $0xbc] sm:$0x1] }
 0x11d   : > { %1825 = vmatpush.bf16.msra.mxu2 %v2910_v21 }
 0x11e   : > { %3967 = vst [vmem:[#allocation22_spill] sm:$0xff] %v3649_v12  ;;  %v3658_v55 = vsel %vm398_vm0, %v561_v8, %v565_v50  ;;  %v568_v8 = vshrl.u32 %v3229_v33, 16 }
 0x11f   : > { %v1149_v38 = vpop.f32.mrf.mxu2  ;;  %v1382_v57 = vpop.f32.mrf.mxu3 }
 0x120   : > { %v1150_v36 = vadd.f32 %v1149_v38, %v1061_v35  ;;  %v1062_v10 = vpop.f32.mrf.mxu1  ;;  %v1473_v37 = vpop.f32.mrf.mxu0 }
 0x121   : > { %v1063_v27 = vadd.f32 %v1062_v10, %v3544_v29  ;;  %v3661_v29 = vsel %vm633_vm1, %v673_v32, %v674_v4  ;;  %v575_v32 = vshll.u32 %v394_v13, 16 }
 0x122   : > { %v1383_v17 = vadd.f32 %v1382_v57, %v1150_v36  ;;  %v2918_v36 = vld [vmem:[%s3929_s1 + $0x1c0] sm:$0xff] }
 0x123   : > { %1914 = vmatpush.bf16.msra.mxu3 %v2918_v36 }
 0x124   : > { %v3653_v49 = vadd.f32 %v1471_v39, %v1383_v17  ;;  %v570_v39 = vshll.u32 %v3229_v33, 16 }
 0x126   : > { %v572_v50 = vrot.slane %v570_v39, 1 }
 0x127   : > { %v1151_v15 = vpop.f32.mrf.mxu2  ;;  %v1384_v26 = vpop.f32.mrf.mxu3 }
 0x128   : > { %v1152_v35 = vadd.f32 %v1151_v15, %v1063_v27  ;;  %v1065_v38 = vpop.f32.mrf.mxu1  ;;  %v1476_v12 = vpop.f32.mrf.mxu0  ;;  %v573_v47 = vor.u32 %v572_v50, %v568_v8  ;;  %v577_v15 = vrot.slane %v575_v32, 1 }
 0x129   : > { %v1066_v45 = vadd.f32 %v1065_v38, %v3413_v41  ;;  %v2926_v41 = vld [vmem:[%s3929_s1 + $0x200] sm:$0xff]  ;;  %v677_v38 = vrot.slane %v394_v13, 1  ;;  %v582_v13 = vshll.u32 %v3287_v51, 16 }
 0x12a   : > { %v1385_v57 = vadd.f32 %v1384_v26, %v1152_v35  ;;  %2003 = vmatpush.bf16.msra.mxu0 %v2926_v41  ;;  %v676_v35 = vrot.slane %v3229_v33, 1  ;;  %v3699_v33 = vld [vmem:[%s3147_s6 + $0x9c] sm:$0xff] }
 0x12b   : > { %1104 = vmatmul.bf16.gmra.mxu1 %v3658_v55  ;;  %1515 = vmatmul.bf16.gmra.mxu0 %v3638_v40 }
 0x12c   : > { %1193 = vmatmul.bf16.gmra.mxu2 %v3661_v29  ;;  %1426 = vmatmul.bf16.gmra.mxu3 %v3314_v60  ;;  %v3674_v10 = vadd.f32 %v1473_v37, %v1385_v57  ;;  %v2878_v37 = vld [vmem:[%s3929_s1 + $0x80] sm:$0xff]  ;;  %v3693_v8 = vsel %vm633_vm1, %v676_v35, %v677_v38  ;;  %v584_v35 = vrot.slane %v582_v13, 1 }
 0x12d   : > { %1543 = vmatpush.bf16.msra.mxu1 %v2878_v37 }
 0x12f   : > { %v1154_v59 = vpop.f32.mrf.mxu2  ;;  %v1387_v0 = vpop.f32.mrf.mxu3 }
 0x130   : > { %v1155_v60 = vadd.f32 %v1154_v59, %v1066_v45  ;;  %v1067_v27 = vpop.f32.mrf.mxu1  ;;  %v1478_v17 = vpop.f32.mrf.mxu0 }
 0x131   : > { %v1068_v57 = vadd.f32 %v1067_v27, %v3438_v58 }
 0x132   : > { %v1388_v4 = vadd.f32 %v1387_v0, %v1155_v60  ;;  %v3690_v0 = vsel %vm398_vm0, %v573_v47, %v577_v15  ;;  %v377_v60 = vunpack.c.l.b16 %v229_v7  ;;  %v580_v15 = vshrl.u32 %v3287_v51, 16 }
 0x134   : > { %v3684_v26 = vadd.f32 %v1476_v12, %v1388_v4  ;;  %v395_v58 = vpack.c.b16 %v377_v60, %v377_v60  ;;  %v232_v60 = vld [vmem:[%s3147_s6 + $0xc8] sm:$0x1] }
 0x136   : > { %v587_v38 = vshll.u32 %v395_v58, 16 }
 0x137   : > { %v1156_v39 = vpop.f32.mrf.mxu2  ;;  %v1389_v21 = vpop.f32.mrf.mxu3 }
 0x138   : > { %v1157_v36 = vadd.f32 %v1156_v39, %v1068_v57  ;;  %v1070_v45 = vpop.f32.mrf.mxu1  ;;  %v1481_v59 = vpop.f32.mrf.mxu0  ;;  %v585_v57 = vor.u32 %v584_v35, %v580_v15  ;;  %v589_v39 = vrot.slane %v587_v38, 1 }
 0x139   : > { %v1071_v50 = vadd.f32 %v1070_v45, %v3455_v16 }
 0x13a   : > { %v1390_v12 = vadd.f32 %v1389_v21, %v1157_v36  ;;  %v680_v36 = vrot.slane %v395_v58, 1  ;;  %v3713_v13 = vsel %vm398_vm0, %v585_v57, %v589_v39 }
 0x13b   : > { %1109 = vmatmul.bf16.gmra.mxu1 %v3690_v0  ;;  %1520 = vmatmul.bf16.gmra.mxu0 %v3658_v55 }
 0x13c   : > { %1198 = vmatmul.bf16.gmra.mxu2 %v3693_v8  ;;  %1431 = vmatmul.bf16.gmra.mxu3 %v3699_v33  ;;  %v3703_v27 = vadd.f32 %v1478_v17, %v1390_v12  ;;  %v679_v17 = vrot.slane %v3287_v51, 1 }
 0x13e   : > { %3968 = vst [vmem:[#allocation23_spill] sm:$0xff] %v3703_v27 }
 0x13f   : > { %v1159_v32 = vpop.f32.mrf.mxu2  ;;  %v1392_v4 = vpop.f32.mrf.mxu3 }
 0x140   : > { %v1160_v37 = vadd.f32 %v1159_v32, %v1071_v50  ;;  %v1072_v41 = vpop.f32.mrf.mxu1  ;;  %v1483_v47 = vpop.f32.mrf.mxu0 }
 0x141   : > { %v1073_v16 = vadd.f32 %v1072_v41, %v3474_v28  ;;  %v3722_v28 = vld [vmem:[%s3147_s6 + $0xa8] sm:$0xff]  ;;  %v594_v41 = vshll.u32 %v3317_v61, 16 }
 0x142   : > { %v1393_v7 = vadd.f32 %v1392_v4, %v1160_v37  ;;  %v378_v4 = vunpack.c.l.b16 %v232_v60  ;;  %v3716_v37 = vsel %vm633_vm1, %v679_v17, %v680_v36  ;;  %v592_v36 = vshrl.u32 %v3317_v61, 16 }
 0x143   : > { %3970 = vst [vmem:[#allocation25_spill] sm:$0xff] %v3716_v37  ;;  %v596_v60 = vrot.slane %v594_v41, 1 }
 0x144   : > { %v3707_v21 = vadd.f32 %v1481_v59, %v1393_v7  ;;  %v396_v58 = vpack.c.b16 %v378_v4, %v378_v4  ;;  %v682_v4 = vrot.slane %v3317_v61, 1 }
 0x146   : > { %3969 = vst [vmem:[#allocation24_spill] sm:$0xff] %v3707_v21 }
 0x147   : > { %v1161_v45 = vpop.f32.mrf.mxu2  ;;  %v1394_v12 = vpop.f32.mrf.mxu3 }
 0x148   : > { %v1162_v50 = vadd.f32 %v1161_v45, %v1073_v16  ;;  %v1075_v32 = vpop.f32.mrf.mxu1  ;;  %v1486_v27 = vpop.f32.mrf.mxu0  ;;  %v599_v16 = vshll.u32 %v396_v58, 16 }
 0x149   : > { %v1076_v35 = vadd.f32 %v1075_v32, %v3485_v52 }
 0x14a   : > { %v1395_v59 = vadd.f32 %v1394_v12, %v1162_v50  ;;  %v597_v12 = vor.u32 %v596_v60, %v592_v36  ;;  %v601_v50 = vrot.slane %v599_v16, 1  ;;  %v635_v16 = vrot.slane %v3327_v3, 1 }
 0x14b   : > { %1114 = vmatmul.bf16.gmra.mxu1 %v3713_v13  ;;  %1525 = vmatmul.bf16.gmra.mxu0 %v3690_v0 }
 0x14c   : > { %1203 = vmatmul.bf16.gmra.mxu2 %v3716_v37  ;;  %1436 = vmatmul.bf16.gmra.mxu3 %v3722_v28  ;;  %v3726_v15 = vadd.f32 %v1483_v47, %v1395_v59  ;;  %v683_v47 = vrot.slane %v396_v58, 1  ;;  %v3735_v37 = vsel %vm398_vm0, %v597_v12, %v601_v50 }
 0x14e   : > { %3971 = vst [vmem:[#allocation26_spill] sm:$0xff] %v3726_v15  ;;  %v3738_v41 = vsel %vm633_vm1, %v682_v4, %v683_v47 }
 0x14f   : > { %v1164_v38 = vpop.f32.mrf.mxu2  ;;  %v1397_v7 = vpop.f32.mrf.mxu3 }
 0x150   : > { %v1165_v57 = vadd.f32 %v1164_v38, %v1076_v35  ;;  %v1077_v39 = vpop.f32.mrf.mxu1  ;;  %v1488_v17 = vpop.f32.mrf.mxu0 }
 0x151   : > { %v1078_v59 = vadd.f32 %v1077_v39, %v3510_v31 }
 0x152   : > { %v1398_v45 = vadd.f32 %v1397_v7, %v1165_v57 }
 0x154   : > { %v3730_v21 = vadd.f32 %v1486_v27, %v1398_v45 }
 0x157   : > { %v1166_v52 = vpop.f32.mrf.mxu2  ;;  %v1399_v32 = vpop.f32.mrf.mxu3 }
 0x158   : > { %v1167_v15 = vadd.f32 %v1166_v52, %v1078_v59  ;;  %v1080_v35 = vpop.f32.mrf.mxu1  ;;  %v1491_v38 = vpop.f32.mrf.mxu0  ;;  %v3064_v52 = vld [vmem:[%s3147_s6 + $0x18] sm:$0xff] }
 0x159   : > { %v1081_v31 = vadd.f32 %v1080_v35, %v3527_v1 }
 0x15a   : > { %v1400_v7 = vadd.f32 %v1399_v32, %v1167_v15  ;;  %v634_v15 = vrot.slane %v3320_v63, 1 }
 0x15b   : > { %1119 = vmatmul.bf16.gmra.mxu1 %v3735_v37  ;;  %1530 = vmatmul.bf16.gmra.mxu0 %v3713_v13 }
 0x15c   : > { %1208 = vmatmul.bf16.gmra.mxu2 %v3738_v41  ;;  %1441 = vmatmul.bf16.gmra.mxu3 %v3287_v51  ;;  %v3744_v61 = vadd.f32 %v1488_v17, %v1400_v7  ;;  %v636_v47 = vsel %vm633_vm1, %v634_v15, %v635_v16 }
 0x15f   : > { %v1169_v27 = vpop.f32.mrf.mxu2  ;;  %v1402_v58 = vpop.f32.mrf.mxu3 }
 0x160   : > { %v1170_v57 = vadd.f32 %v1169_v27, %v1081_v31  ;;  %v1082_v39 = vpop.f32.mrf.mxu1  ;;  %v1493_v36 = vpop.f32.mrf.mxu0 }
 0x161   : > { %v1083_v12 = vadd.f32 %v1082_v39, %v3546_v34 }
 0x162   : > { %v1403_v60 = vadd.f32 %v1402_v58, %v1170_v57 }
 0x164   : > { %v3749_v45 = vadd.f32 %v1491_v38, %v1403_v60 }
 0x167   : > { %v1171_v51 = vpop.f32.mrf.mxu2  ;;  %v1404_v17 = vpop.f32.mrf.mxu3 }
 0x168   : > { %v1172_v50 = vadd.f32 %v1171_v51, %v1083_v12  ;;  %v1085_v4 = vpop.f32.mrf.mxu1  ;;  %v1496_v1 = vpop.f32.mrf.mxu0 }
 0x169   : > { %v1086_v3 = vadd.f32 %v1085_v4, %v3432_v54  ;;  %v3065_v54 = vld [vmem:[%s3147_s6 + $0x24] sm:$0xff] }
 0x16a   : > { %v1405_v59 = vadd.f32 %v1404_v17, %v1172_v50 }
 0x16b   : > { %1544 = vmatmul.bf16.vlgmr.msra.gmra.mxu1 %v636_v47  ;;  %2004 = vmatmul.bf16.vlgmr.msra.gmra.mxu0 %v3362_v46 }
 0x16c   : > { %1826 = vmatmul.bf16.vlgmr.msra.gmra.mxu2 %v3064_v52  ;;  %1915 = vmatmul.bf16.vlgmr.msra.gmra.mxu3 %v3359_v44  ;;  %v3756_v63 = vadd.f32 %v1493_v36, %v1405_v59 }
 0x16f   : > { %v1174_v34 = vpop.f32.mrf.mxu2  ;;  %v1407_v32 = vpop.f32.mrf.mxu3 }
 0x170   : > { %v1175_v35 = vadd.f32 %v1174_v34, %v1086_v3  ;;  %v1087_v38 = vpop.f32.mrf.mxu1  ;;  %v1498_v7 = vpop.f32.mrf.mxu0 }
 0x171   : > { %v1088_v58 = vadd.f32 %v1087_v38, %v3449_v14 }
 0x172   : > { %v1408_v31 = vadd.f32 %v1407_v32, %v1175_v35 }
 0x174   : > { %v3759_v27 = vadd.f32 %v1496_v1, %v1408_v31 }
 0x177   : > { %v1176_v57 = vpop.f32.mrf.mxu2  ;;  %v1409_v39 = vpop.f32.mrf.mxu3 }
 0x178   : > { %v1177_v60 = vadd.f32 %v1176_v57, %v1088_v58  ;;  %v1090_v15 = vpop.f32.mrf.mxu1  ;;  %v1501_v44 = vpop.f32.mrf.mxu0 }
 0x179   : > { %v1091_v12 = vadd.f32 %v1090_v15, %v3468_v23  ;;  %v3066_v23 = vld [vmem:[%s3147_s6 + $0x30] sm:$0xff] }
 0x17a   : > { %v1410_v36 = vadd.f32 %v1409_v39, %v1177_v60 }
 0x17b   : > { %1549 = vmatmul.bf16.gmra.mxu1 %v3338_v25  ;;  %2009 = vmatmul.bf16.gmra.mxu0 %v3375_v5 }
 0x17c   : > { %1831 = vmatmul.bf16.gmra.mxu2 %v3065_v54  ;;  %1920 = vmatmul.bf16.gmra.mxu3 %v3372_v2  ;;  %v3766_v16 = vadd.f32 %v1498_v7, %v1410_v36 }
 0x17f   : > { %v1179_v51 = vpop.f32.mrf.mxu2  ;;  %v1412_v14 = vpop.f32.mrf.mxu3 }
 0x180   : > { %v1180_v17 = vadd.f32 %v1179_v51, %v1091_v12  ;;  %v1092_v50 = vpop.f32.mrf.mxu1  ;;  %v1503_v4 = vpop.f32.mrf.mxu0 }
 0x181   : > { %v1093_v25 = vadd.f32 %v1092_v50, %v3479_v48 }
 0x182   : > { %v1413_v1 = vadd.f32 %v1412_v14, %v1180_v17 }
 0x184   : > { %v3769_v47 = vadd.f32 %v1501_v44, %v1413_v1 }
 0x187   : > { %v1181_v59 = vpop.f32.mrf.mxu2  ;;  %v1414_v52 = vpop.f32.mrf.mxu3 }
 0x188   : > { %v1182_v3 = vadd.f32 %v1181_v59, %v1093_v25  ;;  %v1095_v34 = vpop.f32.mrf.mxu1  ;;  %v1506_v2 = vpop.f32.mrf.mxu0 }
 0x189   : > { %v1096_v38 = vadd.f32 %v1095_v34, %v3504_v6  ;;  %v3067_v6 = vld [vmem:[%s3147_s6 + $0x3c] sm:$0xff] }
 0x18a   : > { %v1415_v32 = vadd.f32 %v1414_v52, %v1182_v3 }
 0x18b   : > { %1554 = vmatmul.bf16.gmra.mxu1 %v3362_v46  ;;  %2014 = vmatmul.bf16.gmra.mxu0 %v3401_v24 }
 0x18c   : > { %1836 = vmatmul.bf16.gmra.mxu2 %v3066_v23  ;;  %1925 = vmatmul.bf16.gmra.mxu3 %v3398_v22  ;;  %v3776_v35 = vadd.f32 %v1503_v4, %v1415_v32 }
 0x18f   : > { %v1184_v7 = vpop.f32.mrf.mxu2  ;;  %v1417_v48 = vpop.f32.mrf.mxu3 }
 0x190   : > { %v1185_v31 = vadd.f32 %v1184_v7, %v1096_v38  ;;  %v1097_v58 = vpop.f32.mrf.mxu1  ;;  %v1508_v57 = vpop.f32.mrf.mxu0  ;;  %v3068_v38 = vld [vmem:[%s3147_s6 + $0x48] sm:$0xff]  ;;  %v3974_v7 = vld [vmem:[#allocation4_spill] sm:$0xff] }
 0x191   : > { %v1098_v46 = vadd.f32 %v1097_v58, %v3521_v11 }
 0x192   : > { %v1418_v39 = vadd.f32 %v1417_v48, %v1185_v31  ;;  %v3975_v31 = vld [vmem:[#allocation2_spill] sm:$0xff] }
 0x194   : > { %v3779_v60 = vadd.f32 %v1506_v2, %v1418_v39 }
 0x197   : > { %v1186_v15 = vpop.f32.mrf.mxu2  ;;  %v1419_v44 = vpop.f32.mrf.mxu3 }
 0x198   : > { %v1187_v36 = vadd.f32 %v1186_v15, %v1098_v46  ;;  %v1100_v54 = vpop.f32.mrf.mxu1  ;;  %v1511_v22 = vpop.f32.mrf.mxu0 }
 0x199   : > { %v1101_v14 = vadd.f32 %v1100_v54, %v3540_v20  ;;  %v3973_v20 = vld [vmem:[#allocation5_spill] sm:$0xff] }
 0x19a   : > { %v1420_v12 = vadd.f32 %v1419_v44, %v1187_v36 }
 0x19b   : > { %1559 = vmatmul.bf16.gmra.mxu1 %v3375_v5  ;;  %2019 = vmatmul.bf16.gmra.mxu0 %v3419_v43  ;;  %v3972_v5 = vld [vmem:[#allocation15_spill] sm:$0xff] }
 0x19c   : > { %1841 = vmatmul.bf16.gmra.mxu2 %v3067_v6  ;;  %1930 = vmatmul.bf16.gmra.mxu3 %v3416_v42  ;;  %v3786_v51 = vadd.f32 %v1508_v57, %v1420_v12 }
 0x19f   : > { %v1189_v17 = vpop.f32.mrf.mxu2  ;;  %v1422_v11 = vpop.f32.mrf.mxu3 }
 0x1a0   : > { %v1190_v50 = vadd.f32 %v1189_v17, %v1101_v14  ;;  %v1102_v4 = vpop.f32.mrf.mxu1  ;;  %v1513_v1 = vpop.f32.mrf.mxu0 }
 0x1a1   : > { %v1103_v52 = vadd.f32 %v1102_v4, %v3972_v5  ;;  %v3977_v4 = vld [vmem:[#allocation9_spill] sm:$0xff] }
 0x1a2   : > { %v1423_v25 = vadd.f32 %v1422_v11, %v1190_v50 }
 0x1a4   : > { %v3789_v59 = vadd.f32 %v1511_v22, %v1423_v25  ;;  %v3978_v25 = vld [vmem:[#allocation8_spill] sm:$0xff] }
 0x1a7   : > { %v1191_v3 = vpop.f32.mrf.mxu2  ;;  %v1424_v34 = vpop.f32.mrf.mxu3 }
 0x1a8   : > { %v1192_v2 = vadd.f32 %v1191_v3, %v1103_v52  ;;  %v1105_v32 = vpop.f32.mrf.mxu1  ;;  %v1516_v42 = vpop.f32.mrf.mxu0  ;;  %v3979_v52 = vld [vmem:[#allocation6_spill] sm:$0xff] }
 0x1a9   : > { %v1106_v58 = vadd.f32 %v1105_v32, %v3975_v31 }
 0x1aa   : > { %v1425_v23 = vadd.f32 %v1424_v34, %v1192_v2 }
 0x1ab   : > { %1564 = vmatmul.bf16.gmra.mxu1 %v3401_v24  ;;  %2024 = vmatmul.bf16.gmra.mxu0 %v3973_v20  ;;  %v3976_v24 = vld [vmem:[#allocation3_spill] sm:$0xff] }
 0x1ac   : > { %1846 = vmatmul.bf16.gmra.mxu2 %v3068_v38  ;;  %1935 = vmatmul.bf16.gmra.mxu3 %v3974_v7  ;;  %v3796_v48 = vadd.f32 %v1513_v1, %v1425_v23  ;;  %v3069_v1 = vld [vmem:[%s3147_s6 + $0x54] sm:$0xff] }
 0x1af   : > { %v1194_v57 = vpop.f32.mrf.mxu2  ;;  %v1427_v39 = vpop.f32.mrf.mxu3 }
 0x1b0   : > { %v1195_v46 = vadd.f32 %v1194_v57, %v1106_v58  ;;  %v1107_v15 = vpop.f32.mrf.mxu1  ;;  %v1518_v44 = vpop.f32.mrf.mxu0 }
 0x1b1   : > { %v1108_v22 = vadd.f32 %v1107_v15, %v3976_v24  ;;  %v3070_v24 = vld [vmem:[%s3147_s6 + $0x60] sm:$0xff] }
 0x1b2   : > { %v1428_v36 = vadd.f32 %v1427_v39, %v1195_v46 }
 0x1b4   : > { %v3799_v54 = vadd.f32 %v1516_v42, %v1428_v36  ;;  %v3981_v36 = vld [vmem:[#allocation13_spill] sm:$0xff] }
 0x1b7   : > { %v1196_v12 = vpop.f32.mrf.mxu2  ;;  %v1429_v6 = vpop.f32.mrf.mxu3 }
 0x1b8   : > { %v1197_v14 = vadd.f32 %v1196_v12, %v1108_v22  ;;  %v1110_v17 = vpop.f32.mrf.mxu1  ;;  %v1521_v11 = vpop.f32.mrf.mxu0  ;;  %v3982_v22 = vld [vmem:[#allocation12_spill] sm:$0xff] }
 0x1b9   : > { %v1111_v3 = vadd.f32 %v1110_v17, %v3979_v52 }
 0x1ba   : > { %v1430_v50 = vadd.f32 %v1429_v6, %v1197_v14  ;;  %v3983_v6 = vld [vmem:[#allocation10_spill] sm:$0xff] }
 0x1bb   : > { %1569 = vmatmul.bf16.gmra.mxu1 %v3419_v43  ;;  %2029 = vmatmul.bf16.gmra.mxu0 %v3977_v4  ;;  %v3980_v43 = vld [vmem:[#allocation7_spill] sm:$0xff] }
 0x1bc   : > { %1851 = vmatmul.bf16.gmra.mxu2 %v3069_v1  ;;  %1940 = vmatmul.bf16.gmra.mxu3 %v3978_v25  ;;  %v3806_v5 = vadd.f32 %v1518_v44, %v1430_v50 }
 0x1bf   : > { %v1199_v34 = vpop.f32.mrf.mxu2  ;;  %v1432_v2 = vpop.f32.mrf.mxu3 }
 0x1c0   : > { %v1200_v32 = vadd.f32 %v1199_v34, %v1111_v3  ;;  %v1112_v42 = vpop.f32.mrf.mxu1  ;;  %v1523_v23 = vpop.f32.mrf.mxu0 }
 0x1c1   : > { %v1113_v31 = vadd.f32 %v1112_v42, %v3980_v43 }
 0x1c2   : > { %v1433_v38 = vadd.f32 %v1432_v2, %v1200_v32 }
 0x1c4   : > { %v3809_v7 = vadd.f32 %v1521_v11, %v1433_v38 }
 0x1c7   : > { %v1201_v58 = vpop.f32.mrf.mxu2  ;;  %v1434_v57 = vpop.f32.mrf.mxu3 }
 0x1c8   : > { %v1202_v39 = vadd.f32 %v1201_v58, %v1113_v31  ;;  %v1115_v46 = vpop.f32.mrf.mxu1  ;;  %v1526_v15 = vpop.f32.mrf.mxu0  ;;  %v3985_v31 = vld [vmem:[#allocation17_spill] sm:$0xff]  ;;  %v3071_v58 = vld [vmem:[%s3147_s6 + $0x6c] sm:$0xff] }
 0x1c9   : > { %v1116_v14 = vadd.f32 %v1115_v46, %v3983_v6 }
 0x1ca   : > { %v1435_v44 = vadd.f32 %v1434_v57, %v1202_v39  ;;  %v3986_v39 = vld [vmem:[#allocation14_spill] sm:$0xff] }
 0x1cb   : > { %1574 = vmatmul.bf16.gmra.mxu1 %v3973_v20  ;;  %2034 = vmatmul.bf16.gmra.mxu0 %v3981_v36  ;;  %v3984_v20 = vld [vmem:[#allocation11_spill] sm:$0xff] }
 0x1cc   : > { %1856 = vmatmul.bf16.gmra.mxu2 %v3070_v24  ;;  %1945 = vmatmul.bf16.gmra.mxu3 %v3982_v22  ;;  %v3816_v12 = vadd.f32 %v1523_v23, %v1435_v44 }
 0x1cf   : > { %v1204_v17 = vpop.f32.mrf.mxu2  ;;  %v1437_v11 = vpop.f32.mrf.mxu3 }
 0x1d0   : > { %v1205_v50 = vadd.f32 %v1204_v17, %v1116_v14  ;;  %v1117_v1 = vpop.f32.mrf.mxu1  ;;  %v1528_v25 = vpop.f32.mrf.mxu0 }
 0x1d1   : > { %v1118_v34 = vadd.f32 %v1117_v1, %v3984_v20 }
 0x1d2   : > { %v1438_v52 = vadd.f32 %v1437_v11, %v1205_v50 }
 0x1d4   : > { %v3819_v3 = vadd.f32 %v1526_v15, %v1438_v52 }
 0x1d7   : > { %v1206_v2 = vpop.f32.mrf.mxu2  ;;  %v1439_v32 = vpop.f32.mrf.mxu3 }
 0x1d8   : > { %v1207_v42 = vadd.f32 %v1206_v2, %v1118_v34  ;;  %v1120_v38 = vpop.f32.mrf.mxu1  ;;  %v1531_v43 = vpop.f32.mrf.mxu0  ;;  %v3988_v34 = vld [vmem:[#allocation19_spill] sm:$0xff]  ;;  %v3072_v2 = vld [vmem:[%s3147_s6 + $0x78] sm:$0xff] }
 0x1d9   : > { %v1121_v46 = vadd.f32 %v1120_v38, %v3986_v39 }
 0x1da   : > { %v1440_v23 = vadd.f32 %v1439_v32, %v1207_v42 }
 0x1db   : > { %1579 = vmatmul.bf16.gmra.mxu1 %v3977_v4  ;;  %2039 = vmatmul.bf16.gmra.mxu0 %v3985_v31  ;;  %v3987_v4 = vld [vmem:[#allocation16_spill] sm:$0xff] }
 0x1dc   : > { %1861 = vmatmul.bf16.gmra.mxu2 %v3071_v58  ;;  %1950 = vmatmul.bf16.gmra.mxu3 %v3556_v53  ;;  %v3826_v57 = vadd.f32 %v1528_v25, %v1440_v23 }
 0x1df   : > { %v1209_v15 = vpop.f32.mrf.mxu2  ;;  %v1442_v44 = vpop.f32.mrf.mxu3 }
 0x1e0   : > { %v1210_v24 = vadd.f32 %v1209_v15, %v1121_v46  ;;  %v1122_v22 = vpop.f32.mrf.mxu1  ;;  %v1533_v6 = vpop.f32.mrf.mxu0 }
 0x1e1   : > { %v1123_v11 = vadd.f32 %v1122_v22, %v3987_v4 }
 0x1e2   : > { %v1443_v14 = vadd.f32 %v1442_v44, %v1210_v24  ;;  %v3989_v44 = vld [vmem:[#allocation18_spill] sm:$0xff] }
 0x1e4   : > { %v3829_v17 = vadd.f32 %v1531_v43, %v1443_v14 }
 0x1e7   : > { %v1211_v50 = vpop.f32.mrf.mxu2  ;;  %v1444_v1 = vpop.f32.mrf.mxu3 }
 0x1e8   : > { %v1212_v52 = vadd.f32 %v1211_v50, %v1123_v11  ;;  %v1545_v20 = vpop.f32.mrf.mxu1  ;;  %v2005_v53 = vpop.f32.mrf.mxu0  ;;  %v3990_v11 = vld [vmem:[#allocation20_spill] sm:$0xff] }
 0x1ea   : > { %v1445_v25 = vadd.f32 %v1444_v1, %v1212_v52  ;;  %v3073_v1 = vld [vmem:[%s3147_s6 + $0x84] sm:$0xff] }
 0x1eb   : > { %1584 = vmatmul.bf16.gmra.mxu1 %v3981_v36  ;;  %2044 = vmatmul.bf16.gmra.mxu0 %v3988_v34  ;;  %v1546_v36 = vadd.f32 %v1545_v20, %v3989_v44 }
 0x1ec   : > { %1866 = vmatmul.bf16.gmra.mxu2 %v3072_v2  ;;  %1955 = vmatmul.bf16.gmra.mxu3 %v3586_v19  ;;  %v3836_v32 = vadd.f32 %v1533_v6, %v1445_v25 }
 0x1ef   : > { %v1827_v42 = vpop.f32.mrf.mxu2  ;;  %v1916_v38 = vpop.f32.mrf.mxu3 }
 0x1f0   : > { %v1547_v43 = vpop.f32.mrf.mxu1  ;;  %v2007_v23 = vpop.f32.mrf.mxu0  ;;  %v1917_v58 = vadd.f32 %v1916_v38, %v1827_v42 }
 0x1f1   : > { %v1548_v19 = vadd.f32 %v1547_v43, %v3990_v11 }
 0x1f2   : > { %v2006_v39 = vadd.f32 %v2005_v53, %v1917_v58 }
 0x1f4   : > { %v2085_v4 = vadd.f32 %v2006_v39, %v1546_v36 }
 0x1f6   : > { %v2218_v52 = vmul.f32 %v2085_v4, %v2085_v4 }
 0x1f7   : > { %v1829_v46 = vpop.f32.mrf.mxu2  ;;  %v1918_v15 = vpop.f32.mrf.mxu3 }
 0x1f8   : > { %v1919_v24 = vadd.f32 %v1918_v15, %v1829_v46  ;;  %v1550_v22 = vpop.f32.mrf.mxu1  ;;  %v2010_v14 = vpop.f32.mrf.mxu0 }
 0x1f9   : > { %v1551_v58 = vadd.f32 %v1550_v22, %v3601_v9  ;;  %v3074_v22 = vld [vmem:[%s3147_s6 + $0x90] sm:$0xff] }
 0x1fa   : > { %v2008_v6 = vadd.f32 %v2007_v23, %v1919_v24 }
 0x1fb   : > { %1589 = vmatmul.bf16.gmra.mxu1 %v3985_v31  ;;  %2049 = vmatmul.bf16.gmra.mxu0 %v3610_v30 }
 0x1fc   : > { %v2086_v50 = vadd.f32 %v2008_v6, %v1548_v19  ;;  %1871 = vmatmul.bf16.gmra.mxu2 %v3073_v1  ;;  %1960 = vmatmul.bf16.gmra.mxu3 %v3606_v18 }
 0x1fe   : > { %v2937_v20 = vpack.c.bf16 %v2086_v50, %v2085_v4  ;;  %v2181_v53 = vadd.f32 %v2086_v50, %v2085_v4  ;;  %v2219_v25 = vmul.f32 %v2086_v50, %v2086_v50 }
 0x1ff   : > { %v1832_v2 = vpop.f32.mrf.mxu2  ;;  %v1921_v42 = vpop.f32.mrf.mxu3 }
 0x200   : > { %2938 = vst [vmem:[%s3848_s20] sm:$0xff] %v2937_v20   ;;  %v2250_v31 = vadd.f32 %v2219_v25, %v2218_v52  ;;  %v1922_v38 = vadd.f32 %v1921_v42, %v1832_v2  ;;  %v1552_v43 = vpop.f32.mrf.mxu1  ;;  %v2012_v23 = vpop.f32.mrf.mxu0 }
 0x201   : > { %v1553_v6 = vadd.f32 %v1552_v43, %v3623_v62 }
 0x202   : > { %v2011_v18 = vadd.f32 %v2010_v14, %v1922_v38 }
 0x204   : > { %v2087_v39 = vadd.f32 %v2011_v18, %v1551_v58 }
 0x206   : > { %v2182_v46 = vadd.f32 %v2181_v53, %v2087_v39  ;;  %v2220_v15 = vmul.f32 %v2087_v39, %v2087_v39 }
 0x207   : > { %v1834_v44 = vpop.f32.mrf.mxu2  ;;  %v1923_v36 = vpop.f32.mrf.mxu3 }
 0x208   : > { %v2251_v24 = vadd.f32 %v2250_v31, %v2220_v15  ;;  %v1924_v11 = vadd.f32 %v1923_v36, %v1834_v44  ;;  %v1555_v4 = vpop.f32.mrf.mxu1  ;;  %v2015_v19 = vpop.f32.mrf.mxu0  ;;  %v3991_v31 = vld [vmem:[#allocation21_spill] sm:$0xff]  ;;  %v3992_v36 = vld [vmem:[#allocation22_spill] sm:$0xff] }
 0x209   : > { %v1556_v38 = vadd.f32 %v1555_v4, %v3991_v31 }
 0x20a   : > { %v2013_v50 = vadd.f32 %v2012_v23, %v1924_v11 }
 0x20b   : > { %1594 = vmatmul.bf16.gmra.mxu1 %v3988_v34  ;;  %2054 = vmatmul.bf16.gmra.mxu0 %v3642_v56 }
 0x20c   : > { %v2088_v9 = vadd.f32 %v2013_v50, %v1553_v6  ;;  %1876 = vmatmul.bf16.gmra.mxu2 %v3074_v22  ;;  %1965 = vmatmul.bf16.gmra.mxu3 %v3638_v40 }
 0x20e   : > { %v2942_v14 = vpack.c.bf16 %v2088_v9, %v2087_v39  ;;  %v2183_v1 = vadd.f32 %v2182_v46, %v2088_v9  ;;  %v2221_v52 = vmul.f32 %v2088_v9, %v2088_v9 }
 0x20f   : > { %v1837_v20 = vpop.f32.mrf.mxu2  ;;  %v1926_v53 = vpop.f32.mrf.mxu3 }
 0x210   : > { %3014 = vst [vmem:[%s3848_s20 + $0x8] sm:$0xff] %v2942_v14   ;;  %v2252_v25 = vadd.f32 %v2251_v24, %v2221_v52  ;;  %v1927_v2 = vadd.f32 %v1926_v53, %v1837_v20  ;;  %v1557_v42 = vpop.f32.mrf.mxu1  ;;  %v2017_v62 = vpop.f32.mrf.mxu0 }
 0x211   : > { %v1558_v11 = vadd.f32 %v1557_v42, %v3992_v36 }
 0x212   : > { %v2016_v34 = vadd.f32 %v2015_v19, %v1927_v2 }
 0x214   : > { %v2089_v43 = vadd.f32 %v2016_v34, %v1556_v38 }
 0x216   : > { %v2184_v23 = vadd.f32 %v2183_v1, %v2089_v43  ;;  %v2222_v58 = vmul.f32 %v2089_v43, %v2089_v43 }
 0x217   : > { %v1839_v18 = vpop.f32.mrf.mxu2  ;;  %v1928_v15 = vpop.f32.mrf.mxu3 }
 0x218   : > { %v2253_v44 = vadd.f32 %v2252_v25, %v2222_v58  ;;  %v1929_v40 = vadd.f32 %v1928_v15, %v1839_v18  ;;  %v1560_v39 = vpop.f32.mrf.mxu1  ;;  %v2020_v46 = vpop.f32.mrf.mxu0 }
 0x219   : > { %v1561_v53 = vadd.f32 %v1560_v39, %v3653_v49 }
 0x21a   : > { %v2018_v6 = vadd.f32 %v2017_v62, %v1929_v40 }
 0x21b   : > { %1599 = vmatmul.bf16.gmra.mxu1 %v3610_v30  ;;  %2059 = vmatmul.bf16.gmra.mxu0 %v3661_v29 }
 0x21c   : > { %v2090_v24 = vadd.f32 %v2018_v6, %v1558_v11  ;;  %1881 = vmatmul.bf16.gmra.mxu2 %v3699_v33  ;;  %1970 = vmatmul.bf16.gmra.mxu3 %v3658_v55 }
 0x21e   : > { %v2947_v4 = vpack.c.bf16 %v2090_v24, %v2089_v43  ;;  %v2185_v19 = vadd.f32 %v2184_v23, %v2090_v24  ;;  %v2223_v50 = vmul.f32 %v2090_v24, %v2090_v24 }
 0x21f   : > { %v1842_v9 = vpop.f32.mrf.mxu2  ;;  %v1931_v22 = vpop.f32.mrf.mxu3 }
 0x220   : > { %3015 = vst [vmem:[%s3848_s20 + $0x10] sm:$0xff] %v2947_v4   ;;  %v2254_v14 = vadd.f32 %v2253_v44, %v2223_v50  ;;  %v1932_v1 = vadd.f32 %v1931_v22, %v1842_v9  ;;  %v1562_v52 = vpop.f32.mrf.mxu1  ;;  %v2022_v20 = vpop.f32.mrf.mxu0 }
 0x221   : > { %v1563_v43 = vadd.f32 %v1562_v52, %v3674_v10 }
 0x222   : > { %v2021_v30 = vadd.f32 %v2020_v46, %v1932_v1 }
 0x224   : > { %v2091_v25 = vadd.f32 %v2021_v30, %v1561_v53  ;;  %v3075_v53 = vld [vmem:[%s3147_s6 + $0xb4] sm:$0xff] }
 0x226   : > { %v2186_v2 = vadd.f32 %v2185_v19, %v2091_v25  ;;  %v2224_v42 = vmul.f32 %v2091_v25, %v2091_v25 }
 0x227   : > { %v1844_v62 = vpop.f32.mrf.mxu2  ;;  %v1933_v33 = vpop.f32.mrf.mxu3 }
 0x228   : > { %v2255_v31 = vadd.f32 %v2254_v14, %v2224_v42  ;;  %v1934_v55 = vadd.f32 %v1933_v33, %v1844_v62  ;;  %v1565_v38 = vpop.f32.mrf.mxu1  ;;  %v2025_v34 = vpop.f32.mrf.mxu0  ;;  %v3993_v14 = vld [vmem:[#allocation23_spill] sm:$0xff] }
 0x229   : > { %v1566_v11 = vadd.f32 %v1565_v38, %v3684_v26 }
 0x22a   : > { %v2023_v23 = vadd.f32 %v2022_v20, %v1934_v55  ;;  %v3994_v20 = vld [vmem:[#allocation25_spill] sm:$0xff] }
 0x22b   : > { %1604 = vmatmul.bf16.gmra.mxu1 %v3642_v56  ;;  %2064 = vmatmul.bf16.gmra.mxu0 %v3693_v8 }
 0x22c   : > { %v2092_v58 = vadd.f32 %v2023_v23, %v1563_v43  ;;  %1886 = vmatmul.bf16.gmra.mxu2 %v3722_v28  ;;  %1975 = vmatmul.bf16.gmra.mxu3 %v3690_v0 }
 0x22e   : > { %v2952_v49 = vpack.c.bf16 %v2092_v58, %v2091_v25  ;;  %v2187_v18 = vadd.f32 %v2186_v2, %v2092_v58  ;;  %v2225_v15 = vmul.f32 %v2092_v58, %v2092_v58 }
 0x22f   : > { %v1847_v44 = vpop.f32.mrf.mxu2  ;;  %v1936_v40 = vpop.f32.mrf.mxu3 }
 0x230   : > { %3016 = vst [vmem:[%s3848_s20 + $0x18] sm:$0xff] %v2952_v49   ;;  %v2256_v39 = vadd.f32 %v2255_v31, %v2225_v15  ;;  %v1937_v46 = vadd.f32 %v1936_v40, %v1847_v44  ;;  %v1567_v36 = vpop.f32.mrf.mxu1  ;;  %v2027_v10 = vpop.f32.mrf.mxu0 }
 0x231   : > { %v1568_v1 = vadd.f32 %v1567_v36, %v3993_v14  ;;  %v2861_v36 = vld [vmem:[%s3147_s6 + $0xcc] sm:$0xff] }
 0x232   : > { %v2026_v56 = vadd.f32 %v2025_v34, %v1937_v46 }
 0x234   : > { %v2093_v6 = vadd.f32 %v2026_v56, %v1566_v11  ;;  %v3996_v11 = vld [vmem:[#allocation26_spill] sm:$0xff] }
 0x236   : > { %v2188_v24 = vadd.f32 %v2187_v18, %v2093_v6  ;;  %v2226_v4 = vmul.f32 %v2093_v6, %v2093_v6 }
 0x237   : > { %v1849_v28 = vpop.f32.mrf.mxu2  ;;  %v1938_v19 = vpop.f32.mrf.mxu3 }
 0x238   : > { %v2257_v0 = vadd.f32 %v2256_v39, %v2226_v4  ;;  %v1939_v50 = vadd.f32 %v1938_v19, %v1849_v28  ;;  %v1570_v9 = vpop.f32.mrf.mxu1  ;;  %v2030_v22 = vpop.f32.mrf.mxu0  ;;  %v3076_v4 = vld [vmem:[%s3147_s6 + $0xc0] sm:$0xff]  ;;  %v606_v19 = vshll.u32 %v2861_v36, 16 }
 0x23a   : > { %v2028_v52 = vadd.f32 %v2027_v10, %v1939_v50 }
 0x23b   : > { %1609 = vmatmul.bf16.gmra.mxu1 %v3661_v29  ;;  %2069 = vmatmul.bf16.gmra.mxu0 %v3994_v20  ;;  %v3995_v29 = vld [vmem:[#allocation24_spill] sm:$0xff] }
 0x23c   : > { %v2094_v26 = vadd.f32 %v2028_v52, %v1568_v1  ;;  %1891 = vmatmul.bf16.gmra.mxu2 %v3075_v53  ;;  %1980 = vmatmul.bf16.gmra.mxu3 %v3713_v13  ;;  %v1571_v34 = vadd.f32 %v1570_v9, %v3995_v29  ;;  %v235_v13 = vld [vmem:[%s3147_s6 + $0xd4] sm:$0x1]  ;;  %s2384_s6 = sshll.u32 %s3998_s13, 1 }
 0x23d   : > { %v379_v10 = vunpack.c.l.b16 %v235_v13  ;;  %s181_s23 = scalar_lea.vmem %s3931_s3, %s2384_s6 }
 0x23e   : > { %v2957_v30 = vpack.c.bf16 %v2094_v26, %v2093_v6  ;;  %v2189_v25 = vadd.f32 %v2188_v24, %v2094_v26  ;;  %v2227_v2 = vmul.f32 %v2094_v26, %v2094_v26 }
 0x23f   : > { %v1852_v42 = vpop.f32.mrf.mxu2  ;;  %v1941_v62 = vpop.f32.mrf.mxu3  ;;  %v397_v28 = vpack.c.b16 %v379_v10, %v379_v10 }
 0x240   : > { %3017 = vst [vmem:[%s3848_s20 + $0x20] sm:$0xff] %v2957_v30   ;;  %v2258_v33 = vadd.f32 %v2257_v0, %v2227_v2  ;;  %v1942_v31 = vadd.f32 %v1941_v62, %v1852_v42  ;;  %v1572_v55 = vpop.f32.mrf.mxu1  ;;  %v2032_v38 = vpop.f32.mrf.mxu0  ;;  %v608_v30 = vrot.slane %v606_v19, 1 }
 0x241   : > { %v1573_v56 = vadd.f32 %v1572_v55, %v3996_v11  ;;  %v686_v62 = vrot.slane %v397_v28, 1 }
 0x242   : > { %v2031_v43 = vadd.f32 %v2030_v22, %v1942_v31 }
 0x244   : > { %v2095_v23 = vadd.f32 %v2031_v43, %v1571_v34 }
 0x246   : > { %v2190_v58 = vadd.f32 %v2189_v25, %v2095_v23  ;;  %v2228_v49 = vmul.f32 %v2095_v23, %v2095_v23 }
 0x247   : > { %v1854_v18 = vpop.f32.mrf.mxu2  ;;  %v1943_v15 = vpop.f32.mrf.mxu3 }
 0x248   : > { %v2259_v44 = vadd.f32 %v2258_v33, %v2228_v49  ;;  %v1944_v40 = vadd.f32 %v1943_v15, %v1854_v18  ;;  %v1575_v39 = vpop.f32.mrf.mxu1  ;;  %v2035_v46 = vpop.f32.mrf.mxu0 }
 0x249   : > { %v1576_v25 = vadd.f32 %v1575_v39, %v3730_v21 }
 0x24a   : > { %v2033_v6 = vadd.f32 %v2032_v38, %v1944_v40 }
 0x24b   : > { %1614 = vmatmul.bf16.gmra.mxu1 %v3693_v8  ;;  %2074 = vmatmul.bf16.gmra.mxu0 %v3738_v41  ;;  %v604_v8 = vshrl.u32 %v2861_v36, 16  ;;  %v611_v41 = vshll.u32 %v397_v28, 16 }
 0x24c   : > { %v2096_v24 = vadd.f32 %v2033_v6, %v1573_v56  ;;  %1896 = vmatmul.bf16.gmra.mxu2 %v3076_v4  ;;  %1985 = vmatmul.bf16.gmra.mxu3 %v3735_v37  ;;  %v685_v37 = vrot.slane %v2861_v36, 1 }
 0x24d   : > { %v609_v33 = vor.u32 %v608_v30, %v604_v8  ;;  %v613_v31 = vrot.slane %v611_v41, 1 }
 0x24e   : > { %v2962_v0 = vpack.c.bf16 %v2096_v24, %v2095_v23  ;;  %v2191_v50 = vadd.f32 %v2190_v58, %v2096_v24  ;;  %v2229_v9 = vmul.f32 %v2096_v24, %v2096_v24  ;;  %v687_v13 = vsel %vm633_vm1, %v685_v37, %v686_v62 }
 0x24f   : > { %v1857_v22 = vpop.f32.mrf.mxu2  ;;  %v1946_v14 = vpop.f32.mrf.mxu3  ;;  %v614_v18 = vsel %vm398_vm0, %v609_v33, %v613_v31 }
 0x250   : > { %3018 = vst [vmem:[%s3848_s20 + $0x28] sm:$0xff] %v2962_v0   ;;  %v2260_v1 = vadd.f32 %v2259_v44, %v2229_v9  ;;  %v1947_v52 = vadd.f32 %v1946_v14, %v1857_v22  ;;  %v1577_v26 = vpop.f32.mrf.mxu1  ;;  %v2037_v53 = vpop.f32.mrf.mxu0 }
 0x251   : > { %v1578_v21 = vadd.f32 %v1577_v26, %v3744_v61 }
 0x252   : > { %v2036_v2 = vadd.f32 %v2035_v46, %v1947_v52 }
 0x254   : > { %v2097_v42 = vadd.f32 %v2036_v2, %v1576_v25 }
 0x256   : > { %v2192_v55 = vadd.f32 %v2191_v50, %v2097_v42  ;;  %v2230_v38 = vmul.f32 %v2097_v42, %v2097_v42 }
 0x257   : > { %v1859_v29 = vpop.f32.mrf.mxu2  ;;  %v1948_v34 = vpop.f32.mrf.mxu3 }
 0x258   : > { %v2261_v43 = vadd.f32 %v2260_v1, %v2230_v38  ;;  %v1949_v23 = vadd.f32 %v1948_v34, %v1859_v29  ;;  %v1580_v58 = vpop.f32.mrf.mxu1  ;;  %v2040_v49 = vpop.f32.mrf.mxu0 }
 0x259   : > { %v1581_v28 = vadd.f32 %v1580_v58, %v3749_v45 }
 0x25a   : > { %v2038_v15 = vadd.f32 %v2037_v53, %v1949_v23 }
 0x25b   : > { %1619 = vmatmul.bf16.gmra.mxu1 %v3994_v20  ;;  %2079 = vmatmul.bf16.gmra.mxu0 %v687_v13 }
 0x25c   : > { %v2098_v44 = vadd.f32 %v2038_v15, %v1578_v21  ;;  %1901 = vmatmul.bf16.gmra.mxu2 %v2861_v36  ;;  %1990 = vmatmul.bf16.gmra.mxu3 %v614_v18 }
 0x25e   : > { %v2967_v40 = vpack.c.bf16 %v2098_v44, %v2097_v42  ;;  %v2193_v39 = vadd.f32 %v2192_v55, %v2098_v44  ;;  %v2231_v46 = vmul.f32 %v2098_v44, %v2098_v44 }
 0x25f   : > { %v1862_v10 = vpop.f32.mrf.mxu2  ;;  %v1951_v11 = vpop.f32.mrf.mxu3 }
 0x260   : > { %3019 = vst [vmem:[%s3848_s20 + $0x30] sm:$0xff] %v2967_v40   ;;  %v2262_v56 = vadd.f32 %v2261_v43, %v2231_v46  ;;  %v1952_v6 = vadd.f32 %v1951_v11, %v1862_v10  ;;  %v1582_v24 = vpop.f32.mrf.mxu1  ;;  %v2042_v4 = vpop.f32.mrf.mxu0 }
 0x261   : > { %v1583_v52 = vadd.f32 %v1582_v24, %v3756_v63 }
 0x262   : > { %v2041_v61 = vadd.f32 %v2040_v49, %v1952_v6 }
 0x264   : > { %v2099_v19 = vadd.f32 %v2041_v61, %v1581_v28 }
 0x266   : > { %v2194_v0 = vadd.f32 %v2193_v39, %v2099_v19  ;;  %v2232_v20 = vmul.f32 %v2099_v19, %v2099_v19 }
 0x267   : > { %v1864_v50 = vpop.f32.mrf.mxu2  ;;  %v1953_v36 = vpop.f32.mrf.mxu3 }
 0x268   : > { %v2263_v9 = vadd.f32 %v2262_v56, %v2232_v20  ;;  %v1954_v22 = vadd.f32 %v1953_v36, %v1864_v50  ;;  %v1585_v14 = vpop.f32.mrf.mxu1  ;;  %v2045_v1 = vpop.f32.mrf.mxu0 }
 0x269   : > { %v1586_v33 = vadd.f32 %v1585_v14, %v3759_v27 }
 0x26a   : > { %v2043_v26 = vadd.f32 %v2042_v4, %v1954_v22 }
 0x26c   : > { %v2100_v53 = vadd.f32 %v2043_v26, %v1583_v52 }
 0x26e   : > { %v2972_v8 = vpack.c.bf16 %v2100_v53, %v2099_v19  ;;  %v2195_v30 = vadd.f32 %v2194_v0, %v2100_v53  ;;  %v2233_v41 = vmul.f32 %v2100_v53, %v2100_v53 }
 0x26f   : > { %v1867_v25 = vpop.f32.mrf.mxu2  ;;  %v1956_v45 = vpop.f32.mrf.mxu3 }
 0x270   : > { %3020 = vst [vmem:[%s3848_s20 + $0x38] sm:$0xff] %v2972_v8   ;;  %v2264_v2 = vadd.f32 %v2263_v9, %v2233_v41  ;;  %v1957_v42 = vadd.f32 %v1956_v45, %v1867_v25  ;;  %v1587_v37 = vpop.f32.mrf.mxu1  ;;  %v2047_v62 = vpop.f32.mrf.mxu0 }
 0x271   : > { %v1588_v13 = vadd.f32 %v1587_v37, %v3766_v16 }
 0x272   : > { %v2046_v31 = vadd.f32 %v2045_v1, %v1957_v42 }
 0x274   : > { %v2101_v55 = vadd.f32 %v2046_v31, %v1586_v33 }
 0x276   : > { %v2196_v38 = vadd.f32 %v2195_v30, %v2101_v55  ;;  %v2234_v29 = vmul.f32 %v2101_v55, %v2101_v55 }
 0x277   : > { %v1869_v63 = vpop.f32.mrf.mxu2  ;;  %v1958_v34 = vpop.f32.mrf.mxu3 }
 0x278   : > { %v2265_v43 = vadd.f32 %v2264_v2, %v2234_v29  ;;  %v1959_v23 = vadd.f32 %v1958_v34, %v1869_v63  ;;  %v1590_v58 = vpop.f32.mrf.mxu1  ;;  %v2050_v49 = vpop.f32.mrf.mxu0 }
 0x279   : > { %v1591_v6 = vadd.f32 %v1590_v58, %v3769_v47 }
 0x27a   : > { %v2048_v18 = vadd.f32 %v2047_v62, %v1959_v23 }
 0x27c   : > { %v2102_v21 = vadd.f32 %v2048_v18, %v1588_v13 }
 0x27e   : > { %v2977_v15 = vpack.c.bf16 %v2102_v21, %v2101_v55  ;;  %v2197_v44 = vadd.f32 %v2196_v38, %v2102_v21  ;;  %v2235_v40 = vmul.f32 %v2102_v21, %v2102_v21 }
 0x27f   : > { %v1872_v39 = vpop.f32.mrf.mxu2  ;;  %v1961_v27 = vpop.f32.mrf.mxu3 }
 0x280   : > { %3021 = vst [vmem:[%s3848_s20 + $0x40] sm:$0xff] %v2977_v15   ;;  %v2266_v46 = vadd.f32 %v2265_v43, %v2235_v40  ;;  %v1962_v10 = vadd.f32 %v1961_v27, %v1872_v39  ;;  %v1592_v11 = vpop.f32.mrf.mxu1  ;;  %v2052_v56 = vpop.f32.mrf.mxu0 }
 0x281   : > { %v1593_v9 = vadd.f32 %v1592_v11, %v3776_v35 }
 0x282   : > { %v2051_v24 = vadd.f32 %v2050_v49, %v1962_v10 }
 0x284   : > { %v2103_v4 = vadd.f32 %v2051_v24, %v1591_v6 }
 0x286   : > { %v2198_v28 = vadd.f32 %v2197_v44, %v2103_v4  ;;  %v2236_v61 = vmul.f32 %v2103_v4, %v2103_v4 }
 0x287   : > { %v1874_v16 = vpop.f32.mrf.mxu2  ;;  %v1963_v19 = vpop.f32.mrf.mxu3 }
 0x288   : > { %v2267_v0 = vadd.f32 %v2266_v46, %v2236_v61  ;;  %v1964_v20 = vadd.f32 %v1963_v19, %v1874_v16  ;;  %v1595_v50 = vpop.f32.mrf.mxu1  ;;  %v2055_v36 = vpop.f32.mrf.mxu0 }
 0x289   : > { %v1596_v45 = vadd.f32 %v1595_v50, %v3779_v60 }
 0x28a   : > { %v2053_v22 = vadd.f32 %v2052_v56, %v1964_v20 }
 0x28c   : > { %v2104_v14 = vadd.f32 %v2053_v22, %v1593_v9 }
 0x28e   : > { %v2982_v1 = vpack.c.bf16 %v2104_v14, %v2103_v4  ;;  %v2199_v52 = vadd.f32 %v2198_v28, %v2104_v14  ;;  %v2237_v26 = vmul.f32 %v2104_v14, %v2104_v14 }
 0x28f   : > { %v1877_v53 = vpop.f32.mrf.mxu2  ;;  %v1966_v47 = vpop.f32.mrf.mxu3 }
 0x290   : > { %3022 = vst [vmem:[%s3848_s20 + $0x48] sm:$0xff] %v2982_v1   ;;  %v2268_v8 = vadd.f32 %v2267_v0, %v2237_v26  ;;  %v1967_v30 = vadd.f32 %v1966_v47, %v1877_v53  ;;  %v1597_v41 = vpop.f32.mrf.mxu1  ;;  %v2057_v25 = vpop.f32.mrf.mxu0 }
 0x291   : > { %v1598_v63 = vadd.f32 %v1597_v41, %v3786_v51 }
 0x292   : > { %v2056_v2 = vadd.f32 %v2055_v36, %v1967_v30 }
 0x294   : > { %v2105_v42 = vadd.f32 %v2056_v2, %v1596_v45 }
 0x296   : > { %v2200_v37 = vadd.f32 %v2199_v52, %v2105_v42  ;;  %v2238_v62 = vmul.f32 %v2105_v42, %v2105_v42 }
 0x297   : > { %v1879_v35 = vpop.f32.mrf.mxu2  ;;  %v1968_v33 = vpop.f32.mrf.mxu3 }
 0x298   : > { %v2269_v31 = vadd.f32 %v2268_v8, %v2238_v62  ;;  %v1969_v55 = vadd.f32 %v1968_v33, %v1879_v35  ;;  %v1600_v38 = vpop.f32.mrf.mxu1  ;;  %v2060_v29 = vpop.f32.mrf.mxu0 }
 0x299   : > { %v1601_v40 = vadd.f32 %v1600_v38, %v3789_v59 }
 0x29a   : > { %v2058_v34 = vadd.f32 %v2057_v25, %v1969_v55 }
 0x29c   : > { %v2106_v43 = vadd.f32 %v2058_v34, %v1598_v63 }
 0x29e   : > { %v2987_v23 = vpack.c.bf16 %v2106_v43, %v2105_v42  ;;  %v2201_v58 = vadd.f32 %v2200_v37, %v2106_v43  ;;  %v2239_v49 = vmul.f32 %v2106_v43, %v2106_v43 }
 0x29f   : > { %v1882_v13 = vpop.f32.mrf.mxu2  ;;  %v1971_v60 = vpop.f32.mrf.mxu3 }
 0x2a0   : > { %3023 = vst [vmem:[%s3848_s20 + $0x50] sm:$0xff] %v2987_v23   ;;  %v2270_v18 = vadd.f32 %v2269_v31, %v2239_v49  ;;  %v1972_v21 = vadd.f32 %v1971_v60, %v1882_v13  ;;  %v1602_v15 = vpop.f32.mrf.mxu1  ;;  %v2062_v44 = vpop.f32.mrf.mxu0 }
 0x2a1   : > { %v1603_v28 = vadd.f32 %v1602_v15, %v3796_v48 }
 0x2a2   : > { %v2061_v39 = vadd.f32 %v2060_v29, %v1972_v21 }
 0x2a4   : > { %v2107_v27 = vadd.f32 %v2061_v39, %v1601_v40 }
 0x2a6   : > { %v2202_v46 = vadd.f32 %v2201_v58, %v2107_v27  ;;  %v2240_v10 = vmul.f32 %v2107_v27, %v2107_v27 }
 0x2a7   : > { %v1884_v51 = vpop.f32.mrf.mxu2  ;;  %v1973_v11 = vpop.f32.mrf.mxu3 }
 0x2a8   : > { %v2271_v56 = vadd.f32 %v2270_v18, %v2240_v10  ;;  %v1974_v6 = vadd.f32 %v1973_v11, %v1884_v51  ;;  %v1605_v24 = vpop.f32.mrf.mxu1  ;;  %v2065_v4 = vpop.f32.mrf.mxu0 }
 0x2a9   : > { %v1606_v1 = vadd.f32 %v1605_v24, %v3799_v54 }
 0x2aa   : > { %v2063_v61 = vadd.f32 %v2062_v44, %v1974_v6 }
 0x2ac   : > { %v2108_v16 = vadd.f32 %v2063_v61, %v1603_v28 }
 0x2ae   : > { %v2992_v19 = vpack.c.bf16 %v2108_v16, %v2107_v27  ;;  %v2203_v0 = vadd.f32 %v2202_v46, %v2108_v16  ;;  %v2241_v20 = vmul.f32 %v2108_v16, %v2108_v16 }
 0x2af   : > { %v1887_v50 = vpop.f32.mrf.mxu2  ;;  %v1976_v59 = vpop.f32.mrf.mxu3 }
 0x2b0   : > { %3024 = vst [vmem:[%s3848_s20 + $0x58] sm:$0xff] %v2992_v19   ;;  %v2272_v36 = vadd.f32 %v2271_v56, %v2241_v20  ;;  %v1977_v9 = vadd.f32 %v1976_v59, %v1887_v50  ;;  %v1607_v22 = vpop.f32.mrf.mxu1  ;;  %v2067_v14 = vpop.f32.mrf.mxu0 }
 0x2b1   : > { %v1608_v2 = vadd.f32 %v1607_v22, %v3806_v5 }
 0x2b2   : > { %v2066_v52 = vadd.f32 %v2065_v4, %v1977_v9 }
 0x2b4   : > { %v2109_v26 = vadd.f32 %v2066_v52, %v1606_v1 }
 0x2b6   : > { %v2204_v53 = vadd.f32 %v2203_v0, %v2109_v26  ;;  %v2242_v47 = vmul.f32 %v2109_v26, %v2109_v26 }
 0x2b7   : > { %v1889_v48 = vpop.f32.mrf.mxu2  ;;  %v1978_v8 = vpop.f32.mrf.mxu3 }
 0x2b8   : > { %v2273_v30 = vadd.f32 %v2272_v36, %v2242_v47  ;;  %v1979_v41 = vadd.f32 %v1978_v8, %v1889_v48  ;;  %v1610_v25 = vpop.f32.mrf.mxu1  ;;  %v2070_v45 = vpop.f32.mrf.mxu0 }
 0x2b9   : > { %v1611_v34 = vadd.f32 %v1610_v25, %v3809_v7 }
 0x2ba   : > { %v2068_v42 = vadd.f32 %v2067_v14, %v1979_v41 }
 0x2bc   : > { %v2110_v37 = vadd.f32 %v2068_v42, %v1608_v2 }
 0x2be   : > { %v2997_v62 = vpack.c.bf16 %v2110_v37, %v2109_v26  ;;  %v2205_v35 = vadd.f32 %v2204_v53, %v2110_v37  ;;  %v2243_v33 = vmul.f32 %v2110_v37, %v2110_v37 }
 0x2bf   : > { %v1892_v31 = vpop.f32.mrf.mxu2  ;;  %v1981_v54 = vpop.f32.mrf.mxu3 }
 0x2c0   : > { %3025 = vst [vmem:[%s3848_s20 + $0x60] sm:$0xff] %v2997_v62   ;;  %v2274_v55 = vadd.f32 %v2273_v30, %v2243_v33  ;;  %v1982_v38 = vadd.f32 %v1981_v54, %v1892_v31  ;;  %v1612_v29 = vpop.f32.mrf.mxu1  ;;  %v2072_v63 = vpop.f32.mrf.mxu0 }
 0x2c1   : > { %v1613_v15 = vadd.f32 %v1612_v29, %v3816_v12 }
 0x2c2   : > { %v2071_v43 = vadd.f32 %v2070_v45, %v1982_v38 }
 0x2c4   : > { %v2111_v23 = vadd.f32 %v2071_v43, %v1611_v34 }
 0x2c6   : > { %v2206_v58 = vadd.f32 %v2205_v35, %v2111_v23  ;;  %v2244_v49 = vmul.f32 %v2111_v23, %v2111_v23 }
 0x2c7   : > { %v1894_v5 = vpop.f32.mrf.mxu2  ;;  %v1983_v13 = vpop.f32.mrf.mxu3 }
 0x2c8   : > { %v2275_v60 = vadd.f32 %v2274_v55, %v2244_v49  ;;  %v1984_v18 = vadd.f32 %v1983_v13, %v1894_v5  ;;  %v1615_v21 = vpop.f32.mrf.mxu1  ;;  %v2075_v40 = vpop.f32.mrf.mxu0 }
 0x2c9   : > { %v1616_v6 = vadd.f32 %v1615_v21, %v3819_v3 }
 0x2ca   : > { %v2073_v44 = vadd.f32 %v2072_v63, %v1984_v18 }
 0x2cc   : > { %v2112_v39 = vadd.f32 %v2073_v44, %v1613_v15 }
 0x2ce   : > { %v3002_v27 = vpack.c.bf16 %v2112_v39, %v2111_v23  ;;  %v2207_v46 = vadd.f32 %v2206_v58, %v2112_v39  ;;  %v2245_v10 = vmul.f32 %v2112_v39, %v2112_v39 }
 0x2cf   : > { %v1897_v51 = vpop.f32.mrf.mxu2  ;;  %v1986_v7 = vpop.f32.mrf.mxu3 }
 0x2d0   : > { %3026 = vst [vmem:[%s3848_s20 + $0x68] sm:$0xff] %v3002_v27   ;;  %v2276_v11 = vadd.f32 %v2275_v60, %v2245_v10  ;;  %v1987_v56 = vadd.f32 %v1986_v7, %v1897_v51  ;;  %v1617_v4 = vpop.f32.mrf.mxu1  ;;  %v2077_v61 = vpop.f32.mrf.mxu0 }
 0x2d1   : > { %v1618_v59 = vadd.f32 %v1617_v4, %v3826_v57 }
 0x2d2   : > { %v2076_v24 = vadd.f32 %v2075_v40, %v1987_v56 }
 0x2d4   : > { %v2113_v28 = vadd.f32 %v2076_v24, %v1616_v6 }
 0x2d6   : > { %v2208_v16 = vadd.f32 %v2207_v46, %v2113_v28  ;;  %v2246_v12 = vmul.f32 %v2113_v28, %v2113_v28 }
 0x2d7   : > { %v1899_v19 = vpop.f32.mrf.mxu2  ;;  %v1988_v0 = vpop.f32.mrf.mxu3 }
 0x2d8   : > { %v2277_v20 = vadd.f32 %v2276_v11, %v2246_v12  ;;  %v1989_v50 = vadd.f32 %v1988_v0, %v1899_v19  ;;  %v1620_v22 = vpop.f32.mrf.mxu1  ;;  %v2080_v3 = vpop.f32.mrf.mxu0 }
 0x2d9   : > { %v1621_v8 = vadd.f32 %v1620_v22, %v3829_v17 }
 0x2da   : > { %v2078_v36 = vadd.f32 %v2077_v61, %v1989_v50 }
 0x2dc   : > { %v2114_v9 = vadd.f32 %v2078_v36, %v1618_v59 }
 0x2de   : > { %v3007_v14 = vpack.c.bf16 %v2114_v9, %v2113_v28  ;;  %v2209_v1 = vadd.f32 %v2208_v16, %v2114_v9  ;;  %v2247_v52 = vmul.f32 %v2114_v9, %v2114_v9 }
 0x2df   : > { %v1902_v26 = vpop.f32.mrf.mxu2  ;;  %v1991_v53 = vpop.f32.mrf.mxu3 }
 0x2e0   : > { %3027 = vst [vmem:[%s3848_s20 + $0x70] sm:$0xff] %v3007_v14   ;;  %v2278_v47 = vadd.f32 %v2277_v20, %v2247_v52  ;;  %v1992_v48 = vadd.f32 %v1991_v53, %v1902_v26  ;;  %v1622_v57 = vpop.f32.mrf.mxu1  ;;  %v2082_v35 = vpop.f32.mrf.mxu0 }
 0x2e1   : > { %v1623_v33 = vadd.f32 %v1622_v57, %v3836_v32 }
 0x2e2   : > { %v2081_v30 = vadd.f32 %v2080_v3, %v1992_v48 }
 0x2e4   : > { %v2115_v41 = vadd.f32 %v2081_v30, %v1621_v8 }
 0x2e6   : > { %v2210_v25 = vadd.f32 %v2209_v1, %v2115_v41  ;;  %v2248_v45 = vmul.f32 %v2115_v41, %v2115_v41 }
 0x2e7   : > { %v1904_v2 = vpop.f32.mrf.mxu2  ;;  %v1993_v42 = vpop.f32.mrf.mxu3 }
 0x2e8   : > { %v2279_v37 = vadd.f32 %v2278_v47, %v2248_v45  ;;  %v1994_v62 = vadd.f32 %v1993_v42, %v1904_v2 }
 0x2ea   : > { %v2083_v31 = vadd.f32 %v2082_v35, %v1994_v62 }
 0x2ec   : > { %v2116_v54 = vadd.f32 %v2083_v31, %v1623_v33 }
 0x2ee   : > { %v3012_v55 = vpack.c.bf16 %v2116_v54, %v2115_v41  ;;  %v2211_v38 = vadd.f32 %v2210_v25, %v2116_v54  ;;  %v2249_v29 = vmul.f32 %v2116_v54, %v2116_v54 }
 0x2f0   : > { %3028 = vst [vmem:[%s3848_s20 + $0x78] sm:$0xff] %v3012_v55   ;;  %v2212_v17 = vrot.slane %v2211_v38, 4  ;;  %v2280_v63 = vadd.f32 %v2279_v37, %v2249_v29 }
 0x2f2   : > { %v2213_v34 = vadd.f32 %v2212_v17, %v2211_v38  ;;  %v2281_v43 = vrot.slane %v2280_v63, 4 }
 0x2f4   : > { %v2214_v23 = vrot.slane %v2213_v34, 2  ;;  %v2282_v58 = vadd.f32 %v2281_v43, %v2280_v63 }
 0x2f6   : > { %v2215_v49 = vadd.f32 %v2214_v23, %v2213_v34  ;;  %v2283_v5 = vrot.slane %v2282_v58, 2 }
 0x2f8   : > { %v2216_v13 = vrot.slane %v2215_v49, 1  ;;  %v2284_v60 = vadd.f32 %v2283_v5, %v2282_v58 }
 0x2fa   : > { %v2285_v18 = vrot.slane %v2284_v60, 1  ;;  %v2217_v32 = vadd.f32 %v2216_v13, %v2215_v49 }
 0x2fc   : > { %v2286_v21 = vadd.f32 %v2285_v18, %v2284_v60 }
 0x2fe   : > { %v2288_v15 = vsel %vm2287_vm2, %v2217_v32, %v2286_v21 }
 0x2ff   : > { %2289 = vst [vmem:[%s181_s23] sm:$0x3] %v2288_v15 }
 0x300 PF: > { %s14_s12 = sadd.s32 1, %s3083_s12  }
 0x301   : > { %p11_p4 = scmp.ge.s32.totalorder %s14_s12, 4  }
 0x303   :  { %13 = sbr.rel (!%p11_p4) target bundleno = 1 (0x1), region = 72 }

// kernel: pam_cam_layer_forward.9
= control target key start
LH: loop header
LB: loop body
LE: loop exit
PB: predicated region body
PF: predicated region fallthrough
CT: control target
= control target key end

     0   :  { %s797_s18 = smov 0   ;;  %s799_s19 = smov 0   ;;  %s1034_s0 = inlined_call_operand.vmem [shape: bf16[2,256,128], index: 0, kind: input, shape index: {}]   ;;  %s1035_s1 = inlined_call_operand.vmem [shape: f32[1,128], index: 1, kind: input, shape index: {}]   ;;  %s1036_s2 = inlined_call_operand.vmem [shape: f32[1,128], index: 2, kind: input, shape index: {}]   ;;  %s1037_s3 = inlined_call_operand.vmem [shape: f32[1,128], index: 3, kind: input, shape index: {}]   ;;  %s1038_s4 = inlined_call_operand.vmem [shape: f32[1,128], index: 4, kind: input, shape index: {}]   ;;  %s1039_s5 = inlined_call_operand.vmem [shape: f32[2,256,128], index: 5, kind: output, shape index: {}]  }
   0x1   :  { %s801_s20 = smov 0  }
   0x2 LB: > { %s27_s21 = sadd.s32 1, %s761_s19  ;;  %p627_p0 = scmp.ge.s32.totalorder %s765_s20, 1  ;;  %s765_s20 = sphi %s801_s20, %s15_s20   ;;  %s761_s19 = sphi %s799_s19, %s1041_s19   ;;  %s757_s18 = sphi %s797_s18, %s1040_s18  }
   0x3   : > { %p29_p1 = scmp.ge.s32.totalorder %s27_s21, 2  ;;  %p208_p2 = scmp.lt.s32.totalorder %s765_s20, 3 }
   0x5   : > { %s1043_s21 = smov (%p29_p1, %s27_s21), 0  ;;  %p209_p3 = pnand %p627_p0, %p208_p2 }
   0x6   : > { %p245_p4 = scmp.lt.s32.totalorder (!%p209_p3), %s757_s18, 1 }
   0x7   : > { %212 = sbr.rel (%p209_p3) target bundleno = 72 (0x48), region = 40 }
   0xc   : > { %s1045_s18 = smov (!%p245_p4, %s757_s18), 1  ;;  %v826_v0 = vld [vmem:[%s1035_s1] ss:$0 sm:$0xff] }
   0xd   : > { %s634_s22 = sshll.u32 %s1045_s18, 7  ;;  %v834_v5 = vld [vmem:[%s1036_s2] ss:$0 sm:$0xff]  ;;  %s635_s9 = sshll.u32 %s1045_s18, 8 }
   0xe   : > { %s821_s25 = scalar_lea.vmem %s1034_s0, %s634_s22  ;;  %v841_v15 = vld [vmem:[%s1037_s3] ss:$0 sm:$0xff]  ;;  %s879_s12 = scalar_lea.vmem %s1039_s5, %s635_s9 }
   0xf   : > { %v637_v1 = vld [vmem:[%s821_s25] sm:$0xff]   ;;  %v700_v2 = vld [vmem:[%s821_s25 + $0x8] sm:$0xff]   ;;  %v701_v3 = vld [vmem:[%s821_s25 + $0x10] sm:$0xff]  }
  0x10   : > { %v638_v4 = vunpack.c.l.bf16 %v637_v1  ;;  %v639_v6 = vunpack.c.h.bf16 %v637_v1  ;;  %v642_v7 = vunpack.c.l.bf16 %v700_v2  ;;  %v643_v8 = vunpack.c.h.bf16 %v700_v2  ;;  %v702_v9 = vld [vmem:[%s821_s25 + $0x18] sm:$0xff]   ;;  %v854_v24 = vld [vmem:[%s1038_s4] ss:$0 sm:$0xff]  ;;  %v704_v49 = vld [vmem:[%s821_s25 + $0x28] sm:$0xff]  }
  0x11   : > { %v646_v10 = vunpack.c.l.bf16 %v701_v3  ;;  %v647_v11 = vunpack.c.h.bf16 %v701_v3  ;;  %v650_v12 = vunpack.c.l.bf16 %v702_v9  ;;  %v651_v13 = vunpack.c.h.bf16 %v702_v9  ;;  %v703_v48 = vld [vmem:[%s821_s25 + $0x20] sm:$0xff]   ;;  %v705_v54 = vld [vmem:[%s821_s25 + $0x30] sm:$0xff]   ;;  %v706_v55 = vld [vmem:[%s821_s25 + $0x38] sm:$0xff]  }
  0x12   : > { %v332_v14 = vsub.f32 %v638_v4, %v826_v0  ;;  %v333_v16 = vsub.f32 %v639_v6, %v826_v0  ;;  %v334_v17 = vsub.f32 %v642_v7, %v826_v0  ;;  %v335_v18 = vsub.f32 %v643_v8, %v826_v0 }
  0x13   : > { %v336_v19 = vsub.f32 %v646_v10, %v826_v0  ;;  %v337_v20 = vsub.f32 %v647_v11, %v826_v0  ;;  %v338_v21 = vsub.f32 %v650_v12, %v826_v0  ;;  %v339_v22 = vsub.f32 %v651_v13, %v826_v0 }
  0x14   : > { %v368_v23 = vmul.f32 %v834_v5, %v332_v14  ;;  %v369_v25 = vmul.f32 %v834_v5, %v333_v16  ;;  %v370_v26 = vmul.f32 %v834_v5, %v334_v17  ;;  %v371_v27 = vmul.f32 %v834_v5, %v335_v18 }
  0x15   : > { %v372_v28 = vmul.f32 %v834_v5, %v336_v19  ;;  %v373_v29 = vmul.f32 %v834_v5, %v337_v20  ;;  %v374_v30 = vmul.f32 %v834_v5, %v338_v21  ;;  %v375_v31 = vmul.f32 %v834_v5, %v339_v22 }
  0x16   : > { %v404_v32 = vmul.f32 %v841_v15, %v368_v23  ;;  %v405_v33 = vmul.f32 %v841_v15, %v369_v25  ;;  %v406_v34 = vmul.f32 %v841_v15, %v370_v26  ;;  %v407_v35 = vmul.f32 %v841_v15, %v371_v27 }
  0x17   : > { %v408_v36 = vmul.f32 %v841_v15, %v372_v28  ;;  %v409_v37 = vmul.f32 %v841_v15, %v373_v29  ;;  %v410_v38 = vmul.f32 %v841_v15, %v374_v30  ;;  %v411_v39 = vmul.f32 %v841_v15, %v375_v31 }
  0x18   : > { %v440_v40 = vadd.f32 %v854_v24, %v404_v32  ;;  %v441_v41 = vadd.f32 %v854_v24, %v405_v33  ;;  %v442_v42 = vadd.f32 %v854_v24, %v406_v34  ;;  %v443_v43 = vadd.f32 %v854_v24, %v407_v35 }
  0x19   : > { %v444_v44 = vadd.f32 %v854_v24, %v408_v36  ;;  %v445_v45 = vadd.f32 %v854_v24, %v409_v37  ;;  %v446_v46 = vadd.f32 %v854_v24, %v410_v38  ;;  %v447_v47 = vadd.f32 %v854_v24, %v411_v39 }
  0x1a   : > { %v472_v50 = vmax.f32 %v440_v40, 0.0  ;;  %v473_v51 = vmax.f32 %v441_v41, 0.0  ;;  %v474_v52 = vmax.f32 %v442_v42, 0.0  ;;  %v475_v53 = vmax.f32 %v443_v43, 0.0  ;;  %v707_v40 = vld [vmem:[%s821_s25 + $0x40] sm:$0xff]   ;;  %v708_v41 = vld [vmem:[%s821_s25 + $0x48] sm:$0xff]  }
  0x1b   : > { %v476_v56 = vmax.f32 %v444_v44, 0.0  ;;  %v477_v57 = vmax.f32 %v445_v45, 0.0  ;;  %v478_v58 = vmax.f32 %v446_v46, 0.0  ;;  %v479_v59 = vmax.f32 %v447_v47, 0.0  ;;  %v709_v46 = vld [vmem:[%s821_s25 + $0x50] sm:$0xff]   ;;  %v710_v47 = vld [vmem:[%s821_s25 + $0x58] sm:$0xff]  }
  0x1c   : > { %504 = vst [vmem:[%s879_s12] sm:$0xff] %v472_v50  ;;  %v654_v60 = vunpack.c.l.bf16 %v703_v48  ;;  %v655_v61 = vunpack.c.h.bf16 %v703_v48  ;;  %v658_v62 = vunpack.c.l.bf16 %v704_v49  ;;  %v659_v63 = vunpack.c.h.bf16 %v704_v49 }
  0x1d   : > { %505 = vst [vmem:[%s879_s12 + $0x8] sm:$0xff] %v473_v51  ;;  %v662_v1 = vunpack.c.l.bf16 %v705_v54  ;;  %v663_v2 = vunpack.c.h.bf16 %v705_v54  ;;  %v666_v3 = vunpack.c.l.bf16 %v706_v55  ;;  %v667_v4 = vunpack.c.h.bf16 %v706_v55 }
  0x1e   : > { %506 = vst [vmem:[%s879_s12 + $0x10] sm:$0xff] %v474_v52  ;;  %v340_v6 = vsub.f32 %v654_v60, %v826_v0  ;;  %v341_v7 = vsub.f32 %v655_v61, %v826_v0  ;;  %v342_v8 = vsub.f32 %v658_v62, %v826_v0  ;;  %v343_v9 = vsub.f32 %v659_v63, %v826_v0 }
  0x1f   : > { %507 = vst [vmem:[%s879_s12 + $0x18] sm:$0xff] %v475_v53  ;;  %v344_v10 = vsub.f32 %v662_v1, %v826_v0  ;;  %v345_v11 = vsub.f32 %v663_v2, %v826_v0  ;;  %v346_v12 = vsub.f32 %v666_v3, %v826_v0  ;;  %v347_v13 = vsub.f32 %v667_v4, %v826_v0 }
  0x20   : > { %508 = vst [vmem:[%s879_s12 + $0x20] sm:$0xff] %v476_v56  ;;  %v376_v14 = vmul.f32 %v834_v5, %v340_v6  ;;  %v377_v16 = vmul.f32 %v834_v5, %v341_v7  ;;  %v378_v17 = vmul.f32 %v834_v5, %v342_v8  ;;  %v379_v18 = vmul.f32 %v834_v5, %v343_v9 }
  0x21   : > { %509 = vst [vmem:[%s879_s12 + $0x28] sm:$0xff] %v477_v57  ;;  %v380_v19 = vmul.f32 %v834_v5, %v344_v10  ;;  %v381_v20 = vmul.f32 %v834_v5, %v345_v11  ;;  %v382_v21 = vmul.f32 %v834_v5, %v346_v12  ;;  %v383_v22 = vmul.f32 %v834_v5, %v347_v13 }
  0x22   : > { %510 = vst [vmem:[%s879_s12 + $0x30] sm:$0xff] %v478_v58  ;;  %v412_v23 = vmul.f32 %v841_v15, %v376_v14  ;;  %v413_v25 = vmul.f32 %v841_v15, %v377_v16  ;;  %v414_v26 = vmul.f32 %v841_v15, %v378_v17  ;;  %v415_v27 = vmul.f32 %v841_v15, %v379_v18 }
  0x23   : > { %511 = vst [vmem:[%s879_s12 + $0x38] sm:$0xff] %v479_v59  ;;  %v416_v28 = vmul.f32 %v841_v15, %v380_v19  ;;  %v417_v29 = vmul.f32 %v841_v15, %v381_v20  ;;  %v418_v30 = vmul.f32 %v841_v15, %v382_v21  ;;  %v419_v31 = vmul.f32 %v841_v15, %v383_v22 }
  0x24   : > { %v448_v32 = vadd.f32 %v854_v24, %v412_v23  ;;  %v449_v33 = vadd.f32 %v854_v24, %v413_v25  ;;  %v450_v34 = vadd.f32 %v854_v24, %v414_v26  ;;  %v451_v35 = vadd.f32 %v854_v24, %v415_v27 }
  0x25   : > { %v452_v36 = vadd.f32 %v854_v24, %v416_v28  ;;  %v453_v37 = vadd.f32 %v854_v24, %v417_v29  ;;  %v454_v38 = vadd.f32 %v854_v24, %v418_v30  ;;  %v455_v39 = vadd.f32 %v854_v24, %v419_v31 }
  0x26   : > { %v480_v42 = vmax.f32 %v448_v32, 0.0  ;;  %v481_v43 = vmax.f32 %v449_v33, 0.0  ;;  %v482_v44 = vmax.f32 %v450_v34, 0.0  ;;  %v483_v45 = vmax.f32 %v451_v35, 0.0  ;;  %v711_v32 = vld [vmem:[%s821_s25 + $0x60] sm:$0xff]   ;;  %v712_v33 = vld [vmem:[%s821_s25 + $0x68] sm:$0xff]  }
  0x27   : > { %v484_v48 = vmax.f32 %v452_v36, 0.0  ;;  %v485_v49 = vmax.f32 %v453_v37, 0.0  ;;  %v486_v50 = vmax.f32 %v454_v38, 0.0  ;;  %v487_v51 = vmax.f32 %v455_v39, 0.0  ;;  %v713_v38 = vld [vmem:[%s821_s25 + $0x70] sm:$0xff]   ;;  %v714_v39 = vld [vmem:[%s821_s25 + $0x78] sm:$0xff]  }
  0x28   : > { %512 = vst [vmem:[%s879_s12 + $0x40] sm:$0xff] %v480_v42  ;;  %v670_v52 = vunpack.c.l.bf16 %v707_v40  ;;  %v671_v53 = vunpack.c.h.bf16 %v707_v40  ;;  %v674_v54 = vunpack.c.l.bf16 %v708_v41  ;;  %v675_v55 = vunpack.c.h.bf16 %v708_v41 }
  0x29   : > { %513 = vst [vmem:[%s879_s12 + $0x48] sm:$0xff] %v481_v43  ;;  %v678_v56 = vunpack.c.l.bf16 %v709_v46  ;;  %v679_v57 = vunpack.c.h.bf16 %v709_v46  ;;  %v682_v58 = vunpack.c.l.bf16 %v710_v47  ;;  %v683_v59 = vunpack.c.h.bf16 %v710_v47 }
  0x2a   : > { %514 = vst [vmem:[%s879_s12 + $0x50] sm:$0xff] %v482_v44  ;;  %v348_v60 = vsub.f32 %v670_v52, %v826_v0  ;;  %v349_v61 = vsub.f32 %v671_v53, %v826_v0  ;;  %v350_v62 = vsub.f32 %v674_v54, %v826_v0  ;;  %v351_v63 = vsub.f32 %v675_v55, %v826_v0 }
  0x2b   : > { %515 = vst [vmem:[%s879_s12 + $0x58] sm:$0xff] %v483_v45  ;;  %v352_v1 = vsub.f32 %v678_v56, %v826_v0  ;;  %v353_v2 = vsub.f32 %v679_v57, %v826_v0  ;;  %v354_v3 = vsub.f32 %v682_v58, %v826_v0  ;;  %v355_v4 = vsub.f32 %v683_v59, %v826_v0 }
  0x2c   : > { %516 = vst [vmem:[%s879_s12 + $0x60] sm:$0xff] %v484_v48  ;;  %v384_v6 = vmul.f32 %v834_v5, %v348_v60  ;;  %v385_v7 = vmul.f32 %v834_v5, %v349_v61  ;;  %v386_v8 = vmul.f32 %v834_v5, %v350_v62  ;;  %v387_v9 = vmul.f32 %v834_v5, %v351_v63 }
  0x2d   : > { %517 = vst [vmem:[%s879_s12 + $0x68] sm:$0xff] %v485_v49  ;;  %v388_v10 = vmul.f32 %v834_v5, %v352_v1  ;;  %v389_v11 = vmul.f32 %v834_v5, %v353_v2  ;;  %v390_v12 = vmul.f32 %v834_v5, %v354_v3  ;;  %v391_v13 = vmul.f32 %v834_v5, %v355_v4 }
  0x2e   : > { %518 = vst [vmem:[%s879_s12 + $0x70] sm:$0xff] %v486_v50  ;;  %v420_v14 = vmul.f32 %v841_v15, %v384_v6  ;;  %v421_v16 = vmul.f32 %v841_v15, %v385_v7  ;;  %v422_v17 = vmul.f32 %v841_v15, %v386_v8  ;;  %v423_v18 = vmul.f32 %v841_v15, %v387_v9 }
  0x2f   : > { %519 = vst [vmem:[%s879_s12 + $0x78] sm:$0xff] %v487_v51  ;;  %v424_v19 = vmul.f32 %v841_v15, %v388_v10  ;;  %v425_v20 = vmul.f32 %v841_v15, %v389_v11  ;;  %v426_v21 = vmul.f32 %v841_v15, %v390_v12  ;;  %v427_v22 = vmul.f32 %v841_v15, %v391_v13 }
  0x30   : > { %v456_v23 = vadd.f32 %v854_v24, %v420_v14  ;;  %v457_v25 = vadd.f32 %v854_v24, %v421_v16  ;;  %v458_v26 = vadd.f32 %v854_v24, %v422_v17  ;;  %v459_v27 = vadd.f32 %v854_v24, %v423_v18 }
  0x31   : > { %v460_v28 = vadd.f32 %v854_v24, %v424_v19  ;;  %v461_v29 = vadd.f32 %v854_v24, %v425_v20  ;;  %v462_v30 = vadd.f32 %v854_v24, %v426_v21  ;;  %v463_v31 = vadd.f32 %v854_v24, %v427_v22 }
  0x32   : > { %v488_v34 = vmax.f32 %v456_v23, 0.0  ;;  %v489_v35 = vmax.f32 %v457_v25, 0.0  ;;  %v490_v36 = vmax.f32 %v458_v26, 0.0  ;;  %v491_v37 = vmax.f32 %v459_v27, 0.0 }
  0x33   : > { %v492_v40 = vmax.f32 %v460_v28, 0.0  ;;  %v493_v41 = vmax.f32 %v461_v29, 0.0  ;;  %v494_v42 = vmax.f32 %v462_v30, 0.0  ;;  %v495_v43 = vmax.f32 %v463_v31, 0.0 }
  0x34   : > { %520 = vst [vmem:[%s879_s12 + $0x80] sm:$0xff] %v488_v34  ;;  %v686_v44 = vunpack.c.l.bf16 %v711_v32  ;;  %v687_v45 = vunpack.c.h.bf16 %v711_v32  ;;  %v690_v46 = vunpack.c.l.bf16 %v712_v33  ;;  %v691_v47 = vunpack.c.h.bf16 %v712_v33 }
  0x35   : > { %521 = vst [vmem:[%s879_s12 + $0x88] sm:$0xff] %v489_v35  ;;  %v694_v48 = vunpack.c.l.bf16 %v713_v38  ;;  %v695_v49 = vunpack.c.h.bf16 %v713_v38  ;;  %v698_v50 = vunpack.c.l.bf16 %v714_v39  ;;  %v699_v51 = vunpack.c.h.bf16 %v714_v39 }
  0x36   : > { %522 = vst [vmem:[%s879_s12 + $0x90] sm:$0xff] %v490_v36  ;;  %v356_v52 = vsub.f32 %v686_v44, %v826_v0  ;;  %v357_v53 = vsub.f32 %v687_v45, %v826_v0  ;;  %v358_v54 = vsub.f32 %v690_v46, %v826_v0  ;;  %v359_v55 = vsub.f32 %v691_v47, %v826_v0 }
  0x37   : > { %523 = vst [vmem:[%s879_s12 + $0x98] sm:$0xff] %v491_v37  ;;  %v360_v56 = vsub.f32 %v694_v48, %v826_v0  ;;  %v361_v57 = vsub.f32 %v695_v49, %v826_v0  ;;  %v362_v58 = vsub.f32 %v698_v50, %v826_v0  ;;  %v363_v59 = vsub.f32 %v699_v51, %v826_v0 }
  0x38   : > { %524 = vst [vmem:[%s879_s12 + $0xa0] sm:$0xff] %v492_v40  ;;  %v392_v60 = vmul.f32 %v834_v5, %v356_v52  ;;  %v393_v61 = vmul.f32 %v834_v5, %v357_v53  ;;  %v394_v62 = vmul.f32 %v834_v5, %v358_v54  ;;  %v395_v63 = vmul.f32 %v834_v5, %v359_v55 }
  0x39   : > { %525 = vst [vmem:[%s879_s12 + $0xa8] sm:$0xff] %v493_v41  ;;  %v396_v1 = vmul.f32 %v834_v5, %v360_v56  ;;  %v397_v2 = vmul.f32 %v834_v5, %v361_v57  ;;  %v398_v3 = vmul.f32 %v834_v5, %v362_v58  ;;  %v399_v4 = vmul.f32 %v834_v5, %v363_v59 }
  0x3a   : > { %526 = vst [vmem:[%s879_s12 + $0xb0] sm:$0xff] %v494_v42  ;;  %v428_v0 = vmul.f32 %v841_v15, %v392_v60  ;;  %v429_v6 = vmul.f32 %v841_v15, %v393_v61  ;;  %v430_v7 = vmul.f32 %v841_v15, %v394_v62  ;;  %v431_v8 = vmul.f32 %v841_v15, %v395_v63 }
  0x3b   : > { %527 = vst [vmem:[%s879_s12 + $0xb8] sm:$0xff] %v495_v43  ;;  %v432_v9 = vmul.f32 %v841_v15, %v396_v1  ;;  %v433_v10 = vmul.f32 %v841_v15, %v397_v2  ;;  %v434_v11 = vmul.f32 %v841_v15, %v398_v3  ;;  %v435_v5 = vmul.f32 %v841_v15, %v399_v4 }
  0x3c   : > { %v464_v12 = vadd.f32 %v854_v24, %v428_v0  ;;  %v465_v13 = vadd.f32 %v854_v24, %v429_v6  ;;  %v466_v14 = vadd.f32 %v854_v24, %v430_v7  ;;  %v467_v16 = vadd.f32 %v854_v24, %v431_v8 }
  0x3d   : > { %v468_v17 = vadd.f32 %v854_v24, %v432_v9  ;;  %v469_v18 = vadd.f32 %v854_v24, %v433_v10  ;;  %v470_v21 = vadd.f32 %v854_v24, %v434_v11  ;;  %v471_v23 = vadd.f32 %v854_v24, %v435_v5 }
  0x3e   : > { %v496_v19 = vmax.f32 %v464_v12, 0.0  ;;  %v497_v20 = vmax.f32 %v465_v13, 0.0  ;;  %v498_v15 = vmax.f32 %v466_v14, 0.0  ;;  %v499_v22 = vmax.f32 %v467_v16, 0.0 }
  0x3f   : > { %v500_v25 = vmax.f32 %v468_v17, 0.0  ;;  %v501_v26 = vmax.f32 %v469_v18, 0.0  ;;  %v502_v27 = vmax.f32 %v470_v21, 0.0  ;;  %v503_v28 = vmax.f32 %v471_v23, 0.0 }
  0x40   : > { %528 = vst [vmem:[%s879_s12 + $0xc0] sm:$0xff] %v496_v19 }
  0x41   : > { %529 = vst [vmem:[%s879_s12 + $0xc8] sm:$0xff] %v497_v20 }
  0x42   : > { %530 = vst [vmem:[%s879_s12 + $0xd0] sm:$0xff] %v498_v15 }
  0x43   : > { %531 = vst [vmem:[%s879_s12 + $0xd8] sm:$0xff] %v499_v22 }
  0x44   : > { %532 = vst [vmem:[%s879_s12 + $0xe0] sm:$0xff] %v500_v25 }
  0x45   : > { %533 = vst [vmem:[%s879_s12 + $0xe8] sm:$0xff] %v501_v26 }
  0x46   : > { %534 = vst [vmem:[%s879_s12 + $0xf0] sm:$0xff] %v502_v27 }
  0x47   : > { %535 = vst [vmem:[%s879_s12 + $0xf8] sm:$0xff] %v503_v28 }
  0x48 PF: > { %s15_s20 = sadd.s32 1, %s765_s20   ;;  %s1040_s18 = smov %s761_s19 }
  0x49   : > { %p12_p5 = scmp.ge.s32.totalorder %s15_s20, 4   ;;  %s1041_s19 = smov %s1043_s21 }
  0x4b   :  { %14 = sbr.rel (!%p12_p5) target bundleno = 2 (0x2), region = 70 }

// kernel: pam_cam_layer_forward.7
= control target key start
LH: loop header
LB: loop body
LE: loop exit
PB: predicated region body
PF: predicated region fallthrough
CT: control target
= control target key end

     0   :  { %s6010_s0 = inlined_call_operand.<no memory space> [shape: f32[1,1], index: 0, kind: input, shape index: {}]   ;;  %s6011_s1 = inlined_call_operand.vmem [shape: bf16[2,256,384], index: 1, kind: input, shape index: {}, may-alias: {1,2,3}]   ;;  %s6012_s2 = inlined_call_operand.vmem [shape: bf16[2,256,384], index: 2, kind: input, shape index: {}, may-alias: {1,2,3}]   ;;  %s6013_s3 = inlined_call_operand.vmem [shape: bf16[2,256,384], index: 3, kind: input, shape index: {}, may-alias: {1,2,3}]   ;;  %s6014_s4 = inlined_call_operand.vmem [shape: bf16[2,256,128], index: 4, kind: input, shape index: {}]   ;;  %s6015_s5 = inlined_call_operand.vmem [shape: bf16[2,256,128], index: 5, kind: output, shape index: {}]  }
   0x1   :  { %10 = sst [smem:[#allocation5]] %s6010_s0 }
   0x2   :  { %s4401_s20 = smov 0   ;;  %s4403_s21 = smov 0  }
   0x3   :  { %s4405_s22 = smov 0   ;;  %s4407_s23 = smov 0  }
   0x4   :  { %s4409_s24 = smov 0  }
   0x5 LB: > { %s35_s0 = sadd.s32 1, %s4359_s23  ;;  %p72_p1 = scmp.ne.s32.totalorder %s4351_s21, %s4347_s20  ;;  %s4363_s24 = sphi %s4409_s24, %s16_s24   ;;  %s4359_s23 = sphi %s4407_s23, %s6238_s23   ;;  %s4355_s22 = sphi %s4405_s22, %s6237_s22   ;;  %s4351_s21 = sphi %s4403_s21, %s6236_s21   ;;  %s4347_s20 = sphi %s4401_s20, %s6235_s20  }
   0x6   : > { %p37_p0 = scmp.ge.s32.totalorder %s35_s0, 2  ;;  %p73_p2 = scmp.eq.s32.totalorder %s4363_s24, 0 }
   0x7   : > { %s65_s27 = sadd.s32 1, %s4351_s21  ;;  %p3525_p5 = scmp.ge.s32.totalorder %s4363_s24, 2 }
   0x8   : > { %s6240_s0 = smov (%p37_p0, %s35_s0), 0  ;;  %p4432_p3 = por %p73_p2, %p72_p1 }
   0x9   : > { %s60_s26 = ssub.s32 %s4359_s23, %s6240_s0  ;;  %213 = sbr.rel (%p3525_p5) target bundleno = 125 (0x7d), region = 20 }
   0xa   : > { %p63_p4 = scmp.eq.s32.totalorder %s60_s26, 0 }
   0xc   : > { %s4440_s28 = scalar_select %p63_p4, %s4351_s21, %s65_s27  }
   0xe   : > { %216 = sbr.rel (!%p4432_p3) target bundleno = 51 (0x33), region = 24  ;;  %s218_s29 = sand.u32 (%p4432_p3), 1, %s4351_s21  }
   0xf   : > { %s4022_s30 = smul.u32 (%p4432_p3), 384, %s4359_s23  ;;  %s3526_s6 = sshll.u32 (%p4432_p3), %s218_s29, 7 }
  0x10   : > { %s4455_s10 = scalar_lea.vmem (%p4432_p3), [#allocation6], %s3526_s6 }
  0x11   : > { %s4450_s9 = scalar_lea.vmem (%p4432_p3), %s6011_s1, %s4022_s30 }
  0x12   : > { %v243_v0 = vld [vmem:[%s4450_s9] sm:$0xf] (%p4432_p3)  ;;  %v245_v1 = vld [vmem:[%s4450_s9 + $0xc] sm:$0xf] (%p4432_p3)  ;;  %v247_v2 = vld [vmem:[%s4450_s9 + $0x18] sm:$0xf] (%p4432_p3) }
  0x13   : > { %244 = vst [vmem:[%s4455_s10] sm:$0xf] %v243_v0  ;;  %v249_v3 = vld [vmem:[%s4450_s9 + $0x24] sm:$0xf]  ;;  %v251_v4 = vld [vmem:[%s4450_s9 + $0x30] sm:$0xf] }
  0x14   : > { %246 = vst [vmem:[%s4455_s10 + $0x4] sm:$0xf] %v245_v1  ;;  %v253_v5 = vld [vmem:[%s4450_s9 + $0x3c] sm:$0xf]  ;;  %v255_v6 = vld [vmem:[%s4450_s9 + $0x48] sm:$0xf] }
  0x15   : > { %248 = vst [vmem:[%s4455_s10 + $0x8] sm:$0xf] %v247_v2  ;;  %v257_v7 = vld [vmem:[%s4450_s9 + $0x54] sm:$0xf]  ;;  %v259_v8 = vld [vmem:[%s4450_s9 + $0x60] sm:$0xf] }
  0x16   : > { %250 = vst [vmem:[%s4455_s10 + $0xc] sm:$0xf] %v249_v3  ;;  %v261_v9 = vld [vmem:[%s4450_s9 + $0x6c] sm:$0xf]  ;;  %v263_v10 = vld [vmem:[%s4450_s9 + $0x78] sm:$0xf] }
  0x17   : > { %252 = vst [vmem:[%s4455_s10 + $0x10] sm:$0xf] %v251_v4  ;;  %v265_v11 = vld [vmem:[%s4450_s9 + $0x84] sm:$0xf]  ;;  %v267_v12 = vld [vmem:[%s4450_s9 + $0x90] sm:$0xf] }
  0x18   : > { %254 = vst [vmem:[%s4455_s10 + $0x14] sm:$0xf] %v253_v5  ;;  %v269_v13 = vld [vmem:[%s4450_s9 + $0x9c] sm:$0xf]  ;;  %v271_v14 = vld [vmem:[%s4450_s9 + $0xa8] sm:$0xf] }
  0x19   : > { %256 = vst [vmem:[%s4455_s10 + $0x18] sm:$0xf] %v255_v6  ;;  %v273_v15 = vld [vmem:[%s4450_s9 + $0xb4] sm:$0xf]  ;;  %v275_v16 = vld [vmem:[%s4450_s9 + $0xc0] sm:$0xf] }
  0x1a   : > { %258 = vst [vmem:[%s4455_s10 + $0x1c] sm:$0xf] %v257_v7  ;;  %v277_v17 = vld [vmem:[%s4450_s9 + $0xcc] sm:$0xf]  ;;  %v279_v18 = vld [vmem:[%s4450_s9 + $0xd8] sm:$0xf] }
  0x1b   : > { %260 = vst [vmem:[%s4455_s10 + $0x20] sm:$0xf] %v259_v8  ;;  %v281_v19 = vld [vmem:[%s4450_s9 + $0xe4] sm:$0xf]  ;;  %v283_v20 = vld [vmem:[%s4450_s9 + $0xf0] sm:$0xf] }
  0x1c   : > { %262 = vst [vmem:[%s4455_s10 + $0x24] sm:$0xf] %v261_v9  ;;  %v285_v21 = vld [vmem:[%s4450_s9 + $0xfc] sm:$0xf]  ;;  %v287_v22 = vld [vmem:[%s4450_s9 + $0x108] sm:$0xf] }
  0x1d   : > { %264 = vst [vmem:[%s4455_s10 + $0x28] sm:$0xf] %v263_v10  ;;  %v289_v23 = vld [vmem:[%s4450_s9 + $0x114] sm:$0xf]  ;;  %v291_v24 = vld [vmem:[%s4450_s9 + $0x120] sm:$0xf] }
  0x1e   : > { %266 = vst [vmem:[%s4455_s10 + $0x2c] sm:$0xf] %v265_v11  ;;  %v293_v25 = vld [vmem:[%s4450_s9 + $0x12c] sm:$0xf]  ;;  %v295_v26 = vld [vmem:[%s4450_s9 + $0x138] sm:$0xf] }
  0x1f   : > { %268 = vst [vmem:[%s4455_s10 + $0x30] sm:$0xf] %v267_v12  ;;  %v297_v27 = vld [vmem:[%s4450_s9 + $0x144] sm:$0xf]  ;;  %v299_v28 = vld [vmem:[%s4450_s9 + $0x150] sm:$0xf] }
  0x20   : > { %270 = vst [vmem:[%s4455_s10 + $0x34] sm:$0xf] %v269_v13  ;;  %v301_v29 = vld [vmem:[%s4450_s9 + $0x15c] sm:$0xf]  ;;  %v303_v30 = vld [vmem:[%s4450_s9 + $0x168] sm:$0xf] }
  0x21   : > { %272 = vst [vmem:[%s4455_s10 + $0x38] sm:$0xf] %v271_v14  ;;  %v305_v31 = vld [vmem:[%s4450_s9 + $0x174] sm:$0xf] }
  0x22   : > { %274 = vst [vmem:[%s4455_s10 + $0x3c] sm:$0xf] %v273_v15 }
  0x23   : > { %276 = vst [vmem:[%s4455_s10 + $0x40] sm:$0xf] %v275_v16 }
  0x24   : > { %278 = vst [vmem:[%s4455_s10 + $0x44] sm:$0xf] %v277_v17 }
  0x25   : > { %280 = vst [vmem:[%s4455_s10 + $0x48] sm:$0xf] %v279_v18 }
  0x26   : > { %282 = vst [vmem:[%s4455_s10 + $0x4c] sm:$0xf] %v281_v19 }
  0x27   : > { %284 = vst [vmem:[%s4455_s10 + $0x50] sm:$0xf] %v283_v20 }
  0x28   : > { %286 = vst [vmem:[%s4455_s10 + $0x54] sm:$0xf] %v285_v21 }
  0x29   : > { %288 = vst [vmem:[%s4455_s10 + $0x58] sm:$0xf] %v287_v22 }
  0x2a   : > { %290 = vst [vmem:[%s4455_s10 + $0x5c] sm:$0xf] %v289_v23 }
  0x2b   : > { %292 = vst [vmem:[%s4455_s10 + $0x60] sm:$0xf] %v291_v24 }
  0x2c   : > { %294 = vst [vmem:[%s4455_s10 + $0x64] sm:$0xf] %v293_v25 }
  0x2d   : > { %296 = vst [vmem:[%s4455_s10 + $0x68] sm:$0xf] %v295_v26 }
  0x2e   : > { %298 = vst [vmem:[%s4455_s10 + $0x6c] sm:$0xf] %v297_v27 }
  0x2f   : > { %300 = vst [vmem:[%s4455_s10 + $0x70] sm:$0xf] %v299_v28 }
  0x30   : > { %302 = vst [vmem:[%s4455_s10 + $0x74] sm:$0xf] %v301_v29 }
  0x31   : > { %304 = vst [vmem:[%s4455_s10 + $0x78] sm:$0xf] %v303_v30 }
  0x32   : > { %306 = vst [vmem:[%s4455_s10 + $0x7c] sm:$0xf] %v305_v31 }
  0x33 PF: > { %394 = sbr.rel (!%p4432_p3) target bundleno = 88 (0x58), region = 65  ;;  %s396_s11 = sand.u32 (%p4432_p3), 1, %s4351_s21  }
  0x34   : > { %s3529_s12 = smul.u32 (%p4432_p3), 384, %s4359_s23  ;;  %s3528_s13 = sshll.u32 (%p4432_p3), %s396_s11, 7 }
  0x35   : > { %s4530_s17 = scalar_lea.vmem (%p4432_p3), [#allocation7], %s3528_s13 }
  0x36   : > { %s4525_s16 = scalar_lea.vmem (%p4432_p3), %s6012_s2, %s3529_s12 }
  0x37   : > { %v3530_v32 = vld [vmem:[%s4525_s16 + $0x4] sm:$0xf] (%p4432_p3)  ;;  %v3531_v33 = vld [vmem:[%s4525_s16 + $0x10] sm:$0xf] (%p4432_p3)  ;;  %v3532_v34 = vld [vmem:[%s4525_s16 + $0x1c] sm:$0xf] (%p4432_p3) }
  0x38   : > { %423 = vst [vmem:[%s4530_s17] sm:$0xf] %v3530_v32  ;;  %v3533_v35 = vld [vmem:[%s4525_s16 + $0x28] sm:$0xf]  ;;  %v3534_v36 = vld [vmem:[%s4525_s16 + $0x34] sm:$0xf] }
  0x39   : > { %425 = vst [vmem:[%s4530_s17 + $0x4] sm:$0xf] %v3531_v33  ;;  %v3535_v37 = vld [vmem:[%s4525_s16 + $0x40] sm:$0xf]  ;;  %v3536_v38 = vld [vmem:[%s4525_s16 + $0x4c] sm:$0xf] }
  0x3a   : > { %427 = vst [vmem:[%s4530_s17 + $0x8] sm:$0xf] %v3532_v34  ;;  %v3537_v39 = vld [vmem:[%s4525_s16 + $0x58] sm:$0xf]  ;;  %v3538_v40 = vld [vmem:[%s4525_s16 + $0x64] sm:$0xf] }
  0x3b   : > { %429 = vst [vmem:[%s4530_s17 + $0xc] sm:$0xf] %v3533_v35  ;;  %v3539_v41 = vld [vmem:[%s4525_s16 + $0x70] sm:$0xf]  ;;  %v3540_v42 = vld [vmem:[%s4525_s16 + $0x7c] sm:$0xf] }
  0x3c   : > { %431 = vst [vmem:[%s4530_s17 + $0x10] sm:$0xf] %v3534_v36  ;;  %v3541_v43 = vld [vmem:[%s4525_s16 + $0x88] sm:$0xf]  ;;  %v3542_v44 = vld [vmem:[%s4525_s16 + $0x94] sm:$0xf] }
  0x3d   : > { %433 = vst [vmem:[%s4530_s17 + $0x14] sm:$0xf] %v3535_v37  ;;  %v3543_v45 = vld [vmem:[%s4525_s16 + $0xa0] sm:$0xf]  ;;  %v3544_v46 = vld [vmem:[%s4525_s16 + $0xac] sm:$0xf] }
  0x3e   : > { %435 = vst [vmem:[%s4530_s17 + $0x18] sm:$0xf] %v3536_v38  ;;  %v3545_v47 = vld [vmem:[%s4525_s16 + $0xb8] sm:$0xf]  ;;  %v3546_v48 = vld [vmem:[%s4525_s16 + $0xc4] sm:$0xf] }
  0x3f   : > { %437 = vst [vmem:[%s4530_s17 + $0x1c] sm:$0xf] %v3537_v39  ;;  %v3547_v49 = vld [vmem:[%s4525_s16 + $0xd0] sm:$0xf]  ;;  %v3548_v50 = vld [vmem:[%s4525_s16 + $0xdc] sm:$0xf] }
  0x40   : > { %439 = vst [vmem:[%s4530_s17 + $0x20] sm:$0xf] %v3538_v40  ;;  %v3549_v51 = vld [vmem:[%s4525_s16 + $0xe8] sm:$0xf]  ;;  %v3550_v52 = vld [vmem:[%s4525_s16 + $0xf4] sm:$0xf] }
  0x41   : > { %441 = vst [vmem:[%s4530_s17 + $0x24] sm:$0xf] %v3539_v41  ;;  %v3551_v53 = vld [vmem:[%s4525_s16 + $0x100] sm:$0xf]  ;;  %v3552_v54 = vld [vmem:[%s4525_s16 + $0x10c] sm:$0xf] }
  0x42   : > { %443 = vst [vmem:[%s4530_s17 + $0x28] sm:$0xf] %v3540_v42  ;;  %v3553_v55 = vld [vmem:[%s4525_s16 + $0x118] sm:$0xf]  ;;  %v3554_v56 = vld [vmem:[%s4525_s16 + $0x124] sm:$0xf] }
  0x43   : > { %445 = vst [vmem:[%s4530_s17 + $0x2c] sm:$0xf] %v3541_v43  ;;  %v3555_v57 = vld [vmem:[%s4525_s16 + $0x130] sm:$0xf]  ;;  %v3556_v58 = vld [vmem:[%s4525_s16 + $0x13c] sm:$0xf] }
  0x44   : > { %447 = vst [vmem:[%s4530_s17 + $0x30] sm:$0xf] %v3542_v44  ;;  %v3557_v59 = vld [vmem:[%s4525_s16 + $0x148] sm:$0xf]  ;;  %v3558_v60 = vld [vmem:[%s4525_s16 + $0x154] sm:$0xf] }
  0x45   : > { %449 = vst [vmem:[%s4530_s17 + $0x34] sm:$0xf] %v3543_v45  ;;  %v3559_v61 = vld [vmem:[%s4525_s16 + $0x160] sm:$0xf]  ;;  %v3560_v62 = vld [vmem:[%s4525_s16 + $0x16c] sm:$0xf] }
  0x46   : > { %451 = vst [vmem:[%s4530_s17 + $0x38] sm:$0xf] %v3544_v46  ;;  %v3561_v63 = vld [vmem:[%s4525_s16 + $0x178] sm:$0xf] }
  0x47   : > { %453 = vst [vmem:[%s4530_s17 + $0x3c] sm:$0xf] %v3545_v47 }
  0x48   : > { %455 = vst [vmem:[%s4530_s17 + $0x40] sm:$0xf] %v3546_v48 }
  0x49   : > { %457 = vst [vmem:[%s4530_s17 + $0x44] sm:$0xf] %v3547_v49 }
  0x4a   : > { %459 = vst [vmem:[%s4530_s17 + $0x48] sm:$0xf] %v3548_v50 }
  0x4b   : > { %461 = vst [vmem:[%s4530_s17 + $0x4c] sm:$0xf] %v3549_v51 }
  0x4c   : > { %463 = vst [vmem:[%s4530_s17 + $0x50] sm:$0xf] %v3550_v52 }
  0x4d   : > { %465 = vst [vmem:[%s4530_s17 + $0x54] sm:$0xf] %v3551_v53 }
  0x4e   : > { %467 = vst [vmem:[%s4530_s17 + $0x58] sm:$0xf] %v3552_v54 }
  0x4f   : > { %469 = vst [vmem:[%s4530_s17 + $0x5c] sm:$0xf] %v3553_v55 }
  0x50   : > { %471 = vst [vmem:[%s4530_s17 + $0x60] sm:$0xf] %v3554_v56 }
  0x51   : > { %473 = vst [vmem:[%s4530_s17 + $0x64] sm:$0xf] %v3555_v57 }
  0x52   : > { %475 = vst [vmem:[%s4530_s17 + $0x68] sm:$0xf] %v3556_v58 }
  0x53   : > { %477 = vst [vmem:[%s4530_s17 + $0x6c] sm:$0xf] %v3557_v59 }
  0x54   : > { %479 = vst [vmem:[%s4530_s17 + $0x70] sm:$0xf] %v3558_v60 }
  0x55   : > { %481 = vst [vmem:[%s4530_s17 + $0x74] sm:$0xf] %v3559_v61 }
  0x56   : > { %483 = vst [vmem:[%s4530_s17 + $0x78] sm:$0xf] %v3560_v62 }
  0x57   : > { %485 = vst [vmem:[%s4530_s17 + $0x7c] sm:$0xf] %v3561_v63 }
  0x58 PF: > { %573 = sbr.rel (!%p4432_p3) target bundleno = 125 (0x7d), region = 106  ;;  %s575_s18 = sand.u32 (%p4432_p3), 1, %s4351_s21  }
  0x59   : > { %s3563_s19 = smul.u32 (%p4432_p3), 384, %s4359_s23  ;;  %s3562_s26 = sshll.u32 (%p4432_p3), %s575_s18, 7 }
  0x5a   : > { %s4605_s25 = scalar_lea.vmem (%p4432_p3), [#allocation8], %s3562_s26 }
  0x5b   : > { %s4600_s30 = scalar_lea.vmem (%p4432_p3), %s6013_s3, %s3563_s19 }
  0x5c   : > { %v3564_v0 = vld [vmem:[%s4600_s30 + $0x8] sm:$0xf] (%p4432_p3)  ;;  %v3565_v1 = vld [vmem:[%s4600_s30 + $0x14] sm:$0xf] (%p4432_p3)  ;;  %v3566_v2 = vld [vmem:[%s4600_s30 + $0x20] sm:$0xf] (%p4432_p3) }
  0x5d   : > { %602 = vst [vmem:[%s4605_s25] sm:$0xf] %v3564_v0  ;;  %v3567_v3 = vld [vmem:[%s4600_s30 + $0x2c] sm:$0xf]  ;;  %v3568_v4 = vld [vmem:[%s4600_s30 + $0x38] sm:$0xf] }
  0x5e   : > { %604 = vst [vmem:[%s4605_s25 + $0x4] sm:$0xf] %v3565_v1  ;;  %v3569_v5 = vld [vmem:[%s4600_s30 + $0x44] sm:$0xf]  ;;  %v3570_v6 = vld [vmem:[%s4600_s30 + $0x50] sm:$0xf] }
  0x5f   : > { %606 = vst [vmem:[%s4605_s25 + $0x8] sm:$0xf] %v3566_v2  ;;  %v3571_v7 = vld [vmem:[%s4600_s30 + $0x5c] sm:$0xf]  ;;  %v3572_v8 = vld [vmem:[%s4600_s30 + $0x68] sm:$0xf] }
  0x60   : > { %608 = vst [vmem:[%s4605_s25 + $0xc] sm:$0xf] %v3567_v3  ;;  %v3573_v9 = vld [vmem:[%s4600_s30 + $0x74] sm:$0xf]  ;;  %v3574_v10 = vld [vmem:[%s4600_s30 + $0x80] sm:$0xf] }
  0x61   : > { %610 = vst [vmem:[%s4605_s25 + $0x10] sm:$0xf] %v3568_v4  ;;  %v3575_v11 = vld [vmem:[%s4600_s30 + $0x8c] sm:$0xf]  ;;  %v3576_v12 = vld [vmem:[%s4600_s30 + $0x98] sm:$0xf] }
  0x62   : > { %612 = vst [vmem:[%s4605_s25 + $0x14] sm:$0xf] %v3569_v5  ;;  %v3577_v13 = vld [vmem:[%s4600_s30 + $0xa4] sm:$0xf]  ;;  %v3578_v14 = vld [vmem:[%s4600_s30 + $0xb0] sm:$0xf] }
  0x63   : > { %614 = vst [vmem:[%s4605_s25 + $0x18] sm:$0xf] %v3570_v6  ;;  %v3579_v15 = vld [vmem:[%s4600_s30 + $0xbc] sm:$0xf]  ;;  %v3580_v16 = vld [vmem:[%s4600_s30 + $0xc8] sm:$0xf] }
  0x64   : > { %616 = vst [vmem:[%s4605_s25 + $0x1c] sm:$0xf] %v3571_v7  ;;  %v3581_v17 = vld [vmem:[%s4600_s30 + $0xd4] sm:$0xf]  ;;  %v3582_v18 = vld [vmem:[%s4600_s30 + $0xe0] sm:$0xf] }
  0x65   : > { %618 = vst [vmem:[%s4605_s25 + $0x20] sm:$0xf] %v3572_v8  ;;  %v3583_v19 = vld [vmem:[%s4600_s30 + $0xec] sm:$0xf]  ;;  %v3584_v20 = vld [vmem:[%s4600_s30 + $0xf8] sm:$0xf] }
  0x66   : > { %620 = vst [vmem:[%s4605_s25 + $0x24] sm:$0xf] %v3573_v9  ;;  %v3585_v21 = vld [vmem:[%s4600_s30 + $0x104] sm:$0xf]  ;;  %v3586_v22 = vld [vmem:[%s4600_s30 + $0x110] sm:$0xf] }
  0x67   : > { %622 = vst [vmem:[%s4605_s25 + $0x28] sm:$0xf] %v3574_v10  ;;  %v3587_v23 = vld [vmem:[%s4600_s30 + $0x11c] sm:$0xf]  ;;  %v3588_v24 = vld [vmem:[%s4600_s30 + $0x128] sm:$0xf] }
  0x68   : > { %624 = vst [vmem:[%s4605_s25 + $0x2c] sm:$0xf] %v3575_v11  ;;  %v3589_v25 = vld [vmem:[%s4600_s30 + $0x134] sm:$0xf]  ;;  %v3590_v26 = vld [vmem:[%s4600_s30 + $0x140] sm:$0xf] }
  0x69   : > { %626 = vst [vmem:[%s4605_s25 + $0x30] sm:$0xf] %v3576_v12  ;;  %v3591_v27 = vld [vmem:[%s4600_s30 + $0x14c] sm:$0xf]  ;;  %v3592_v28 = vld [vmem:[%s4600_s30 + $0x158] sm:$0xf] }
  0x6a   : > { %628 = vst [vmem:[%s4605_s25 + $0x34] sm:$0xf] %v3577_v13  ;;  %v3593_v29 = vld [vmem:[%s4600_s30 + $0x164] sm:$0xf]  ;;  %v3594_v30 = vld [vmem:[%s4600_s30 + $0x170] sm:$0xf] }
  0x6b   : > { %630 = vst [vmem:[%s4605_s25 + $0x38] sm:$0xf] %v3578_v14  ;;  %v3595_v31 = vld [vmem:[%s4600_s30 + $0x17c] sm:$0xf] }
  0x6c   : > { %632 = vst [vmem:[%s4605_s25 + $0x3c] sm:$0xf] %v3579_v15 }
  0x6d   : > { %634 = vst [vmem:[%s4605_s25 + $0x40] sm:$0xf] %v3580_v16 }
  0x6e   : > { %636 = vst [vmem:[%s4605_s25 + $0x44] sm:$0xf] %v3581_v17 }
  0x6f   : > { %638 = vst [vmem:[%s4605_s25 + $0x48] sm:$0xf] %v3582_v18 }
  0x70   : > { %640 = vst [vmem:[%s4605_s25 + $0x4c] sm:$0xf] %v3583_v19 }
  0x71   : > { %642 = vst [vmem:[%s4605_s25 + $0x50] sm:$0xf] %v3584_v20 }
  0x72   : > { %644 = vst [vmem:[%s4605_s25 + $0x54] sm:$0xf] %v3585_v21 }
  0x73   : > { %646 = vst [vmem:[%s4605_s25 + $0x58] sm:$0xf] %v3586_v22 }
  0x74   : > { %648 = vst [vmem:[%s4605_s25 + $0x5c] sm:$0xf] %v3587_v23 }
  0x75   : > { %650 = vst [vmem:[%s4605_s25 + $0x60] sm:$0xf] %v3588_v24 }
  0x76   : > { %652 = vst [vmem:[%s4605_s25 + $0x64] sm:$0xf] %v3589_v25 }
  0x77   : > { %654 = vst [vmem:[%s4605_s25 + $0x68] sm:$0xf] %v3590_v26 }
  0x78   : > { %656 = vst [vmem:[%s4605_s25 + $0x6c] sm:$0xf] %v3591_v27 }
  0x79   : > { %658 = vst [vmem:[%s4605_s25 + $0x70] sm:$0xf] %v3592_v28 }
  0x7a   : > { %660 = vst [vmem:[%s4605_s25 + $0x74] sm:$0xf] %v3593_v29 }
  0x7b   : > { %662 = vst [vmem:[%s4605_s25 + $0x78] sm:$0xf] %v3594_v30 }
  0x7c   : > { %664 = vst [vmem:[%s4605_s25 + $0x7c] sm:$0xf] %v3595_v31 }
  0x7d PF: > { %p3596_p6 = scmp.ge.s32.totalorder %s4363_s24, 1  ;;  %p764_p7 = scmp.lt.s32.totalorder %s4363_s24, 3 }
  0x7f   : > { %p765_p8 = pnand %p3596_p6, %p764_p7 }
  0x81   : > { %768 = sbr.rel (%p765_p8) target bundleno = 1808 (0x710), region = 151 }
  0x86   : > { %s771_s6 = sand.u32 1, %s4347_s20   ;;  %vm860_vm0 = vcmask 7168   ;;  %v4365_v26 = vmov -inf   ;;  %p837_p9 = scmp.lt.s32.totalorder %s4355_s22, 1 }
  0x87   : > { %s4671_s7 = sshll.u32 %s771_s6, 7  ;;  %861 = vst.msk [vmem:[#allocation2] sm:$0xff] %vm860_vm0, %v4365_v26  ;;  %s2949_s10 = sld [smem:[#allocation5]] }
  0x88   : > { %s780_s8 = scalar_lea.vmem [#allocation7], %s4671_s7  ;;  %s4675_s20 = scalar_lea.vmem [#allocation6], %s4671_s7  ;;  %862 = vst.msk [vmem:[#allocation2 + $0x8] sm:$0xff] %vm860_vm0, %v4365_v26 }
  0x89   : > { %v3823_v32 = vld [vmem:[%s780_s8 + $0x38] sm:$0xff]  ;;  %v3822_v34 = vld [vmem:[%s780_s8 + $0x30] sm:$0xff]  ;;  %v3821_v36 = vld [vmem:[%s780_s8 + $0x28] sm:$0xff]  ;;  %863 = vst.msk [vmem:[#allocation2 + $0x10] sm:$0xff] %vm860_vm0, %v4365_v26  ;;  %s4994_s9 = scalar_lea.vmem [#allocation8], %s4671_s7  ;;  %s6242_s22 = smov (!%p837_p9, %s4355_s22), 1 }
  0x8a   : > { %v3831_v33 = vld [vmem:[%s780_s8 + $0x78] sm:$0xff]  ;;  %1245 = vmatpush.bf16.xpose.msra.mxu0 %v3823_v32  ;;  %v3830_v35 = vld [vmem:[%s780_s8 + $0x70] sm:$0xff]  ;;  %v3829_v37 = vld [vmem:[%s780_s8 + $0x68] sm:$0xff]  ;;  %864 = vst.msk [vmem:[#allocation2 + $0x18] sm:$0xff] %vm860_vm0, %v4365_v26  ;;  %s3798_s11 = sshll.u32 %s6242_s22, 7 }
  0x8b   : > { %1334 = vmatpush.bf16.xpose.msra.mxu1 %v3831_v33  ;;  %v3820_v38 = vld [vmem:[%s780_s8 + $0x20] sm:$0xff]  ;;  %v3819_v40 = vld [vmem:[%s780_s8 + $0x18] sm:$0xff]  ;;  %v3818_v42 = vld [vmem:[%s780_s8 + $0x10] sm:$0xff]  ;;  %865 = vst.msk [vmem:[#allocation2 + $0x20] sm:$0xff] %vm860_vm0, %v4365_v26  ;;  %s5790_s14 = scalar_lea.vmem %s6014_s4, %s3798_s11  ;;  %s5806_s17 = scalar_lea.vmem %s6015_s5, %s3798_s11 }
  0x8c   : > { %v3828_v39 = vld [vmem:[%s780_s8 + $0x60] sm:$0xff]  ;;  %v3827_v41 = vld [vmem:[%s780_s8 + $0x58] sm:$0xff]  ;;  %v3826_v43 = vld [vmem:[%s780_s8 + $0x50] sm:$0xff]  ;;  %866 = vst.msk [vmem:[#allocation2 + $0x28] sm:$0xff] %vm860_vm0, %v4365_v26 }
  0x8d   : > { %v3817_v44 = vld [vmem:[%s780_s8 + $0x8] sm:$0xff]  ;;  %v3816_v46 = vld [vmem:[%s780_s8] sm:$0xff]  ;;  %v3802_v50 = vld [vmem:[%s4675_s20 + $0x10] sm:$0xff]  ;;  %867 = vst.msk [vmem:[#allocation2 + $0x30] sm:$0xff] %vm860_vm0, %v4365_v26 }
  0x8e   : > { %v3825_v45 = vld [vmem:[%s780_s8 + $0x48] sm:$0xff]  ;;  %v3824_v47 = vld [vmem:[%s780_s8 + $0x40] sm:$0xff]  ;;  %v3803_v51 = vld [vmem:[%s4675_s20 + $0x18] sm:$0xff]  ;;  %868 = vst.msk [vmem:[#allocation2 + $0x38] sm:$0xff] %vm860_vm0, %v4365_v26 }
  0x8f   : > { %v3800_v48 = vld [vmem:[%s4675_s20] sm:$0xff]  ;;  %v3801_v49 = vld [vmem:[%s4675_s20 + $0x8] sm:$0xff]  ;;  %v3806_v54 = vld [vmem:[%s4675_s20 + $0x30] sm:$0xff]  ;;  %869 = vst.msk [vmem:[#allocation2 + $0x40] sm:$0xff] %vm860_vm0, %v4365_v26 }
  0x90   : > { %v3804_v52 = vld [vmem:[%s4675_s20 + $0x20] sm:$0xff]  ;;  %v3805_v53 = vld [vmem:[%s4675_s20 + $0x28] sm:$0xff]  ;;  %v3807_v55 = vld [vmem:[%s4675_s20 + $0x38] sm:$0xff]  ;;  %870 = vst.msk [vmem:[#allocation2 + $0x48] sm:$0xff] %vm860_vm0, %v4365_v26 }
  0x91   : > { %v3808_v56 = vld [vmem:[%s4675_s20 + $0x40] sm:$0xff]  ;;  %v3809_v4 = vld [vmem:[%s4675_s20 + $0x48] sm:$0xff]  ;;  %v3810_v28 = vld [vmem:[%s4675_s20 + $0x50] sm:$0xff]  ;;  %871 = vst.msk [vmem:[#allocation2 + $0x50] sm:$0xff] %vm860_vm0, %v4365_v26 }
  0x92   : > { %1246 = vmatpush.bf16.xpose.msra.mxu0 %v3822_v34  ;;  %872 = vst.msk [vmem:[#allocation2 + $0x58] sm:$0xff] %vm860_vm0, %v4365_v26 }
  0x93   : > { %1335 = vmatpush.bf16.xpose.msra.mxu1 %v3830_v35  ;;  %873 = vst.msk [vmem:[#allocation2 + $0x60] sm:$0xff] %vm860_vm0, %v4365_v26 }
  0x94   : > { %874 = vst.msk [vmem:[#allocation2 + $0x68] sm:$0xff] %vm860_vm0, %v4365_v26 }
  0x95   : > { %875 = vst.msk [vmem:[#allocation2 + $0x70] sm:$0xff] %vm860_vm0, %v4365_v26 }
  0x96   : > { %876 = vst.msk [vmem:[#allocation2 + $0x78] sm:$0xff] %vm860_vm0, %v4365_v26 }
  0x97   : > { %877 = vst.msk [vmem:[#allocation2 + $0x80] sm:$0xff] %vm860_vm0, %v4365_v26 }
  0x98   : > { %878 = vst.msk [vmem:[#allocation2 + $0x88] sm:$0xff] %vm860_vm0, %v4365_v26 }
  0x99   : > { %879 = vst.msk [vmem:[#allocation2 + $0x90] sm:$0xff] %vm860_vm0, %v4365_v26 }
  0x9a   : > { %1247 = vmatpush.bf16.xpose.msra.mxu0 %v3821_v36  ;;  %880 = vst.msk [vmem:[#allocation2 + $0x98] sm:$0xff] %vm860_vm0, %v4365_v26 }
  0x9b   : > { %1336 = vmatpush.bf16.xpose.msra.mxu1 %v3829_v37  ;;  %881 = vst.msk [vmem:[#allocation2 + $0xa0] sm:$0xff] %vm860_vm0, %v4365_v26 }
  0x9c   : > { %882 = vst.msk [vmem:[#allocation2 + $0xa8] sm:$0xff] %vm860_vm0, %v4365_v26 }
  0x9d   : > { %883 = vst.msk [vmem:[#allocation2 + $0xb0] sm:$0xff] %vm860_vm0, %v4365_v26 }
  0x9e   : > { %884 = vst.msk [vmem:[#allocation2 + $0xb8] sm:$0xff] %vm860_vm0, %v4365_v26 }
  0x9f   : > { %885 = vst.msk [vmem:[#allocation2 + $0xc0] sm:$0xff] %vm860_vm0, %v4365_v26 }
  0xa0   : > { %886 = vst.msk [vmem:[#allocation2 + $0xc8] sm:$0xff] %vm860_vm0, %v4365_v26 }
  0xa1   : > { %887 = vst.msk [vmem:[#allocation2 + $0xd0] sm:$0xff] %vm860_vm0, %v4365_v26 }
  0xa2   : > { %1248 = vmatpush.bf16.xpose.msra.mxu0 %v3820_v38  ;;  %888 = vst.msk [vmem:[#allocation2 + $0xd8] sm:$0xff] %vm860_vm0, %v4365_v26  ;;  %v4366_v38 = vmov 0  }
  0xa3   : > { %1337 = vmatpush.bf16.xpose.msra.mxu1 %v3828_v39  ;;  %4066 = vset.pattern.permute.xlu2 %v4366_v38  ;;  %889 = vst.msk [vmem:[#allocation2 + $0xe0] sm:$0xff] %vm860_vm0, %v4365_v26 }
  0xa4   : > { %4067 = vset.pattern.permute.xlu0 %v4366_v38  ;;  %4068 = vset.pattern.permute.xlu1 %v4366_v38  ;;  %890 = vst.msk [vmem:[#allocation2 + $0xe8] sm:$0xff] %vm860_vm0, %v4365_v26 }
  0xa5   : > { %891 = vst.msk [vmem:[#allocation2 + $0xf0] sm:$0xff] %vm860_vm0, %v4365_v26 }
  0xa6   : > { %892 = vst.msk [vmem:[#allocation2 + $0xf8] sm:$0xff] %vm860_vm0, %v4365_v26 }
  0xaa   : > { %1249 = vmatpush.bf16.xpose.msra.mxu0 %v3819_v40 }
  0xab   : > { %1338 = vmatpush.bf16.xpose.msra.mxu1 %v3827_v41  ;;  %v4367_v41 = vmov 0.0  }
  0xac   : > { %893 = vst.msk [vmem:[#allocation3] sm:$0xff] %vm860_vm0, %v4367_v41 }
  0xad   : > { %894 = vst.msk [vmem:[#allocation3 + $0x8] sm:$0xff] %vm860_vm0, %v4367_v41 }
  0xae   : > { %895 = vst.msk [vmem:[#allocation3 + $0x10] sm:$0xff] %vm860_vm0, %v4367_v41 }
  0xaf   : > { %896 = vst.msk [vmem:[#allocation3 + $0x18] sm:$0xff] %vm860_vm0, %v4367_v41 }
  0xb0   : > { %897 = vst.msk [vmem:[#allocation3 + $0x20] sm:$0xff] %vm860_vm0, %v4367_v41 }
  0xb1   : > { %898 = vst.msk [vmem:[#allocation3 + $0x28] sm:$0xff] %vm860_vm0, %v4367_v41 }
  0xb2   : > { %1250 = vmatpush.bf16.xpose.msra.mxu0 %v3818_v42  ;;  %899 = vst.msk [vmem:[#allocation3 + $0x30] sm:$0xff] %vm860_vm0, %v4367_v41 }
  0xb3   : > { %1339 = vmatpush.bf16.xpose.msra.mxu1 %v3826_v43  ;;  %v1423_v43 = vld [vmem:[#allocation2] sm:$0xff]  ;;  %900 = vst.msk [vmem:[#allocation3 + $0x38] sm:$0xff] %vm860_vm0, %v4367_v41 }
  0xb4   : > { %901 = vst.msk [vmem:[#allocation3 + $0x40] sm:$0xff] %vm860_vm0, %v4367_v41 }
  0xb5   : > { %902 = vst.msk [vmem:[#allocation3 + $0x48] sm:$0xff] %vm860_vm0, %v4367_v41 }
  0xb6   : > { %903 = vst.msk [vmem:[#allocation3 + $0x50] sm:$0xff] %vm860_vm0, %v4367_v41 }
  0xb7   : > { %904 = vst.msk [vmem:[#allocation3 + $0x58] sm:$0xff] %vm860_vm0, %v4367_v41 }
  0xb8   : > { %905 = vst.msk [vmem:[#allocation3 + $0x60] sm:$0xff] %vm860_vm0, %v4367_v41 }
  0xb9   : > { %906 = vst.msk [vmem:[#allocation3 + $0x68] sm:$0xff] %vm860_vm0, %v4367_v41 }
  0xba   : > { %1251 = vmatpush.bf16.xpose.msra.mxu0 %v3817_v44  ;;  %907 = vst.msk [vmem:[#allocation3 + $0x70] sm:$0xff] %vm860_vm0, %v4367_v41 }
  0xbb   : > { %1340 = vmatpush.bf16.xpose.msra.mxu1 %v3825_v45  ;;  %908 = vst.msk [vmem:[#allocation3 + $0x78] sm:$0xff] %vm860_vm0, %v4367_v41 }
  0xbc   : > { %909 = vst.msk [vmem:[#allocation3 + $0x80] sm:$0xff] %vm860_vm0, %v4367_v41 }
  0xbd   : > { %910 = vst.msk [vmem:[#allocation3 + $0x88] sm:$0xff] %vm860_vm0, %v4367_v41 }
  0xbe   : > { %911 = vst.msk [vmem:[#allocation3 + $0x90] sm:$0xff] %vm860_vm0, %v4367_v41 }
  0xbf   : > { %912 = vst.msk [vmem:[#allocation3 + $0x98] sm:$0xff] %vm860_vm0, %v4367_v41 }
  0xc0   : > { %913 = vst.msk [vmem:[#allocation3 + $0xa0] sm:$0xff] %vm860_vm0, %v4367_v41 }
  0xc1   : > { %914 = vst.msk [vmem:[#allocation3 + $0xa8] sm:$0xff] %vm860_vm0, %v4367_v41 }
  0xc2   : > { %1252 = vmatpush.bf16.xpose.msra.mxu0 %v3816_v46  ;;  %915 = vst.msk [vmem:[#allocation3 + $0xb0] sm:$0xff] %vm860_vm0, %v4367_v41 }
  0xc3   : > { %1341 = vmatpush.bf16.xpose.msra.mxu1 %v3824_v47  ;;  %916 = vst.msk [vmem:[#allocation3 + $0xb8] sm:$0xff] %vm860_vm0, %v4367_v41 }
  0xc4   : > { %917 = vst.msk [vmem:[#allocation3 + $0xc0] sm:$0xff] %vm860_vm0, %v4367_v41 }
  0xc5   : > { %918 = vst.msk [vmem:[#allocation3 + $0xc8] sm:$0xff] %vm860_vm0, %v4367_v41 }
  0xc6   : > { %919 = vst.msk [vmem:[#allocation3 + $0xd0] sm:$0xff] %vm860_vm0, %v4367_v41 }
  0xc7   : > { %920 = vst.msk [vmem:[#allocation3 + $0xd8] sm:$0xff] %vm860_vm0, %v4367_v41 }
  0xc8   : > { %921 = vst.msk [vmem:[#allocation3 + $0xe0] sm:$0xff] %vm860_vm0, %v4367_v41 }
  0xc9   : > { %1253 = vmatmul.bf16.vlgmr.msra.gmra.mxu0 %v3800_v48  ;;  %922 = vst.msk [vmem:[#allocation3 + $0xe8] sm:$0xff] %vm860_vm0, %v4367_v41 }
  0xca   : > { %1342 = vmatmul.bf16.vlgmr.msra.gmra.mxu1 %v3800_v48  ;;  %v3811_v48 = vld [vmem:[%s4675_s20 + $0x58] sm:$0xff]  ;;  %923 = vst.msk [vmem:[#allocation3 + $0xf0] sm:$0xff] %vm860_vm0, %v4367_v41 }
  0xcb   : > { %924 = vst.msk [vmem:[#allocation3 + $0xf8] sm:$0xff] %vm860_vm0, %v4367_v41 }
  0xd9   : > { %1258 = vmatmul.bf16.gmra.mxu0 %v3801_v49 }
  0xda   : > { %1347 = vmatmul.bf16.gmra.mxu1 %v3801_v49 }
  0xe9   : > { %1263 = vmatmul.bf16.gmra.mxu0 %v3802_v50 }
  0xea   : > { %1352 = vmatmul.bf16.gmra.mxu1 %v3802_v50  ;;  %v4842_v50 = vld [vmem:[#allocation2 + $0x8] sm:$0xff] }
  0xf9   : > { %1268 = vmatmul.bf16.gmra.mxu0 %v3803_v51 }
  0xfa   : > { %1357 = vmatmul.bf16.gmra.mxu1 %v3803_v51 }
 0x109   : > { %1273 = vmatmul.bf16.gmra.mxu0 %v3804_v52 }
 0x10a   : > { %1362 = vmatmul.bf16.gmra.mxu1 %v3804_v52 }
 0x119   : > { %1278 = vmatmul.bf16.gmra.mxu0 %v3805_v53 }
 0x11a   : > { %1367 = vmatmul.bf16.gmra.mxu1 %v3805_v53 }
 0x129   : > { %1283 = vmatmul.bf16.gmra.mxu0 %v3806_v54 }
 0x12a   : > { %1372 = vmatmul.bf16.gmra.mxu1 %v3806_v54 }
 0x139   : > { %1288 = vmatmul.bf16.gmra.mxu0 %v3807_v55 }
 0x13a   : > { %1377 = vmatmul.bf16.gmra.mxu1 %v3807_v55 }
 0x146   : > { %v4686_v57 = vpop.f32.mrf.mxu0 }
 0x147   : > { %v4688_v58 = vpop.f32.mrf.mxu1 }
 0x148   : > { %v1455_v59 = vmax.f32 %v4686_v57, %v4688_v58 }
 0x149   : > { %1293 = vmatmul.bf16.gmra.mxu0 %v3808_v56 }
 0x14a   : > { %1382 = vmatmul.bf16.gmra.mxu1 %v3808_v56  ;;  %1456 = vmax.xlane.f32.xlu0 %v1455_v59  ;;  %v4869_v59 = vld [vmem:[#allocation2 + $0x10] sm:$0xff] }
 0x14e   : > { %v4692_v60 = vpop.f32.mrf.mxu0 }
 0x14f   : > { %v4694_v61 = vpop.f32.mrf.mxu1 }
 0x150   : > { %v1458_v62 = vmax.f32 %v4692_v60, %v4694_v61 }
 0x152   : > { %1459 = vmax.xlane.f32.xlu0 %v1458_v62 }
 0x156   : > { %v4698_v63 = vpop.f32.mrf.mxu0 }
 0x157   : > { %v4700_v0 = vpop.f32.mrf.mxu1 }
 0x158   : > { %v1461_v1 = vmax.f32 %v4698_v63, %v4700_v0 }
 0x159   : > { %1298 = vmatmul.bf16.gmra.mxu0 %v3809_v4 }
 0x15a   : > { %1462 = vmax.xlane.f32.xlu1 %v1461_v1  ;;  %1387 = vmatmul.bf16.gmra.mxu1 %v3809_v4  ;;  %v4887_v4 = vld [vmem:[#allocation2 + $0x18] sm:$0xff] }
 0x15e   : > { %v4704_v2 = vpop.f32.mrf.mxu0 }
 0x15f   : > { %v4706_v3 = vpop.f32.mrf.mxu1 }
 0x160   : > { %v1464_v5 = vmax.f32 %v4704_v2, %v4706_v3 }
 0x162   : > { %1465 = vmax.xlane.f32.xlu1 %v1464_v5 }
 0x166   : > { %v4711_v6 = vpop.f32.mrf.mxu0 }
 0x167   : > { %v4713_v7 = vpop.f32.mrf.mxu1 }
 0x168   : > { %v1467_v8 = vmax.f32 %v4711_v6, %v4713_v7 }
 0x169   : > { %1303 = vmatmul.bf16.gmra.mxu0 %v3810_v28 }
 0x16a   : > { %1468 = vmax.xlane.f32.xlu2 %v1467_v8  ;;  %1392 = vmatmul.bf16.gmra.mxu1 %v3810_v28 }
 0x16e   : > { %v4717_v9 = vpop.f32.mrf.mxu0 }
 0x16f   : > { %v4719_v10 = vpop.f32.mrf.mxu1 }
 0x170   : > { %v1470_v11 = vmax.f32 %v4717_v9, %v4719_v10 }
 0x172   : > { %1471 = vmax.xlane.f32.xlu2 %v1470_v11 }
 0x176   : > { %v4723_v12 = vpop.f32.mrf.mxu0 }
 0x177   : > { %v4725_v13 = vpop.f32.mrf.mxu1 }
 0x178   : > { %v1473_v14 = vmax.f32 %v4723_v12, %v4725_v13 }
 0x179   : > { %1308 = vmatmul.bf16.gmra.mxu0 %v3811_v48 }
 0x17a   : > { %1474 = vmax.xlane.f32.xlu0 %v1473_v14  ;;  %1397 = vmatmul.bf16.gmra.mxu1 %v3811_v48 }
 0x17e   : > { %v4729_v15 = vpop.f32.mrf.mxu0 }
 0x17f   : > { %v4731_v16 = vpop.f32.mrf.mxu1 }
 0x180   : > { %v1476_v17 = vmax.f32 %v4729_v15, %v4731_v16 }
 0x182   : > { %1477 = vmax.xlane.f32.xlu1 %v1476_v17  ;;  %v1427_v17 = vld [vmem:[#allocation2 + $0x20] sm:$0xff] }
 0x186   : > { %v4735_v18 = vpop.f32.mrf.mxu0 }
 0x187   : > { %v4737_v19 = vpop.f32.mrf.mxu1 }
 0x188   : > { %v1479_v20 = vmax.f32 %v4735_v18, %v4737_v19 }
 0x18a   : > { %1480 = vmax.xlane.f32.xlu2 %v1479_v20 }
 0x18e   : > { %v4741_v21 = vpop.f32.mrf.mxu0 }
 0x18f   : > { %v4743_v22 = vpop.f32.mrf.mxu1 }
 0x190   : > { %v1482_v23 = vmax.f32 %v4741_v21, %v4743_v22 }
 0x192   : > { %1483 = vmax.xlane.f32.xlu0 %v1482_v23 }
 0x196   : > { %v4747_v24 = vpop.f32.mrf.mxu0 }
 0x197   : > { %v4749_v25 = vpop.f32.mrf.mxu1 }
 0x198   : > { %v1485_v27 = vmax.f32 %v4747_v24, %v4749_v25 }
 0x19a   : > { %1486 = vmax.xlane.f32.xlu1 %v1485_v27  ;;  %v4916_v27 = vld [vmem:[#allocation2 + $0x28] sm:$0xff] }
 0x19e   : > { %v4762_v29 = vpop.f32.mrf.mxu0 }
 0x19f   : > { %v4764_v30 = vpop.f32.mrf.mxu1 }
 0x1a0   : > { %v1488_v31 = vmax.f32 %v4762_v29, %v4764_v30 }
 0x1a2   : > { %1489 = vmax.xlane.f32.xlu2 %v1488_v31 }
 0x1a6   : > { %v4776_v32 = vpop.f32.mrf.mxu0 }
 0x1a7   : > { %6071 = vst [vmem:[#allocation9_spill] sm:$0xff] %v4776_v32  ;;  %v4778_v33 = vpop.f32.mrf.mxu1 }
 0x1a8   : > { %6072 = vst [vmem:[#allocation10_spill] sm:$0xff] %v4778_v33  ;;  %v1491_v34 = vmax.f32 %v4776_v32, %v4778_v33 }
 0x1aa   : > { %1492 = vmax.xlane.f32.xlu0 %v1491_v34  ;;  %v4923_v34 = vld [vmem:[#allocation2 + $0x30] sm:$0xff] }
 0x1ae   : > { %v4790_v35 = vpop.f32.mrf.mxu0 }
 0x1af   : > { %v4792_v36 = vpop.f32.mrf.mxu1 }
 0x1b0   : > { %6073 = vst [vmem:[#allocation11_spill] sm:$0xff] %v4792_v36  ;;  %v1494_v37 = vmax.f32 %v4790_v35, %v4792_v36  ;;  %v3814_v36 = vld [vmem:[%s4675_s20 + $0x70] sm:$0xff] }
 0x1b2   : > { %1495 = vmax.xlane.f32.xlu1 %v1494_v37  ;;  %v3812_v37 = vld [vmem:[%s4675_s20 + $0x60] sm:$0xff] }
 0x1b3   : > { %1313 = vmatmul.bf16.gmra.mxu0 %v3812_v37  ;;  %1402 = vmatmul.bf16.gmra.mxu1 %v3812_v37 }
 0x1b6   : > { %v4804_v39 = vpop.f32.mrf.mxu0 }
 0x1b7   : > { %6074 = vst [vmem:[#allocation12_spill] sm:$0xff] %v4804_v39  ;;  %v4806_v40 = vpop.f32.mrf.mxu1 }
 0x1b8   : > { %6075 = vst [vmem:[#allocation13_spill] sm:$0xff] %v4806_v40  ;;  %v1497_v42 = vmax.f32 %v4804_v39, %v4806_v40 }
 0x1ba   : > { %1498 = vmax.xlane.f32.xlu2 %v1497_v42 }
 0x1bd   : > { %v1457_v44 = vpop.xlane.xlu0 %1456 }
 0x1be   : > { %v1551_v45 = vmax.f32 %v1423_v43, %v1457_v44  ;;  %v4826_v46 = vpop.f32.mrf.mxu0  ;;  %v4935_v44 = vld [vmem:[#allocation2 + $0x38] sm:$0xff] }
 0x1bf   : > { %6076 = vst [vmem:[#allocation14_spill] sm:$0xff] %v4826_v46  ;;  %v4828_v47 = vpop.f32.mrf.mxu1 }
 0x1c0   : > { %6077 = vst [vmem:[#allocation15_spill] sm:$0xff] %v4828_v47  ;;  %v1500_v49 = vmax.f32 %v4826_v46, %v4828_v47  ;;  %v1583_v5 = vsub.f32 %v1423_v43, %v1551_v45 }
 0x1c1   : > { %2850 = vst.msk [vmem:[#allocation2] sm:$0xff] %vm860_vm0, %v1551_v45 }
 0x1c2   : > { %1501 = vmax.xlane.f32.xlu0 %v1500_v49  ;;  %v1615_v14 = vmul.f32 1.442695, %v1583_v5 }
 0x1c4   : > { %4069 = vpow2.f32 %v1615_v14 }
 0x1c5   : > { %v1460_v51 = vpop.xlane.xlu0 %1459 }
 0x1c6   : > { %v4851_v52 = vmax.f32 %v4842_v50, %v1460_v51  ;;  %v4853_v53 = vpop.f32.mrf.mxu0 }
 0x1c7   : > { %6078 = vst [vmem:[#allocation16_spill] sm:$0xff] %v4853_v53  ;;  %v4855_v54 = vpop.f32.mrf.mxu1 }
 0x1c8   : > { %6079 = vst [vmem:[#allocation17_spill] sm:$0xff] %v4855_v54  ;;  %v1503_v55 = vmax.f32 %v4853_v53, %v4855_v54  ;;  %v1584_v56 = vsub.f32 %v4842_v50, %v4851_v52 }
 0x1c9   : > { %2851 = vst.msk [vmem:[#allocation2 + $0x8] sm:$0xff] %vm860_vm0, %v4851_v52 }
 0x1ca   : > { %1504 = vmax.xlane.f32.xlu1 %v1503_v55  ;;  %v4913_v26 = vpop.eup %4069 }
 0x1cb   : > { %6080 = vst [vmem:[#allocation18_spill] sm:$0xff] %v4913_v26 }
 0x1cd   : > { %v1463_v62 = vpop.xlane.xlu1 %1462 }
 0x1ce   : > { %v1553_v1 = vmax.f32 %v4869_v59, %v1463_v62  ;;  %v4931_v42 = vpop.f32.mrf.mxu0  ;;  %v4948_v62 = vld [vmem:[#allocation2 + $0x40] sm:$0xff] }
 0x1cf   : > { %6081 = vst [vmem:[#allocation19_spill] sm:$0xff] %v4931_v42  ;;  %v4933_v43 = vpop.f32.mrf.mxu1 }
 0x1d0   : > { %2852 = vst.msk [vmem:[#allocation2 + $0x10] sm:$0xff] %vm860_vm0, %v1553_v1  ;;  %v1506_v49 = vmax.f32 %v4931_v42, %v4933_v43  ;;  %v3840_v42 = vld [vmem:[%s4994_s9 + $0x40] sm:$0xff] }
 0x1d1   : > { %6082 = vst [vmem:[#allocation20_spill] sm:$0xff] %v4933_v43  ;;  %v3843_v43 = vld [vmem:[%s4994_s9 + $0x58] sm:$0xff] }
 0x1d2   : > { %1681 = vperm.xlu2 %4066, %v1551_v45  }
 0x1d5   : > { %v1466_v8 = vpop.xlane.xlu1 %1465 }
 0x1d6   : > { %v4896_v11 = vmax.f32 %v4887_v4, %v1466_v8  ;;  %1686 = vperm.xlu0 %4067, %v4851_v52   ;;  %v4946_v55 = vpop.f32.mrf.mxu0 }
 0x1d7   : > { %v4944_v51 = vpop.f32.mrf.mxu1  ;;  %6084 = vst [vmem:[#allocation22_spill] sm:$0xff] %v4946_v55 }
 0x1d8   : > { %2853 = vst.msk [vmem:[#allocation2 + $0x18] sm:$0xff] %vm860_vm0, %v4896_v11  ;;  %v1509_v5 = vmax.f32 %v4946_v55, %v4944_v51  ;;  %v1586_v55 = vsub.f32 %v4887_v4, %v4896_v11 }
 0x1d9   : > { %6083 = vst [vmem:[#allocation21_spill] sm:$0xff] %v4944_v51 }
 0x1dd   : > { %v1469_v20 = vpop.xlane.xlu2 %1468 }
 0x1de   : > { %v4909_v23 = vmax.f32 %v1427_v17, %v1469_v20  ;;  %v4957_v20 = vld [vmem:[#allocation2 + $0x48] sm:$0xff] }
 0x1e0   : > { %2854 = vst.msk [vmem:[#allocation2 + $0x20] sm:$0xff] %vm860_vm0, %v4909_v23 }
 0x1e3   : > { %2290 = vperm.xlu1 %4068, %v4913_v26  }
 0x1e5   : > { %v1472_v28 = vpop.xlane.xlu2 %1471 }
 0x1e6   : > { %v4919_v31 = vmax.f32 %v4916_v27, %v1472_v28  ;;  %v1585_v28 = vsub.f32 %v4869_v59, %v1553_v1 }
 0x1e8   : > { %2855 = vst.msk [vmem:[#allocation2 + $0x28] sm:$0xff] %vm860_vm0, %v4919_v31 }
 0x1eb   : > { %1691 = vperm.xlu1 %4068, %v1553_v1   ;;  %v4974_v1 = vpop.f32.mrf.mxu0 }
 0x1ec   : > { %6085 = vst [vmem:[#allocation23_spill] sm:$0xff] %v4974_v1 }
 0x1ed   : > { %v1475_v38 = vpop.xlane.xlu0 %1474 }
 0x1ee   : > { %v4927_v41 = vmax.f32 %v4923_v34, %v1475_v38 }
 0x1f0   : > { %2856 = vst.msk [vmem:[#allocation2 + $0x30] sm:$0xff] %vm860_vm0, %v4927_v41 }
 0x1f5   : > { %v1478_v45 = vpop.xlane.xlu1 %1477 }
 0x1f6   : > { %v4938_v48 = vmax.f32 %v4935_v44, %v1478_v45  ;;  %v1617_v45 = vmul.f32 1.442695, %v1584_v56 }
 0x1f8   : > { %2857 = vst.msk [vmem:[#allocation2 + $0x38] sm:$0xff] %vm860_vm0, %v4938_v48  ;;  %4071 = vpow2.f32 %v1617_v45 }
 0x1fb   : > { %1507 = vmax.xlane.f32.xlu2 %v1506_v49  ;;  %v1619_v49 = vmul.f32 1.442695, %v1585_v28 }
 0x1fd   : > { %v1481_v8 = vpop.xlane.xlu2 %1480  ;;  %4073 = vpow2.f32 %v1619_v49  ;;  %v3839_v49 = vld [vmem:[%s4994_s9 + $0x38] sm:$0xff] }
 0x1fe   : > { %v4953_v14 = vmax.f32 %v4948_v62, %v1481_v8  ;;  %v4968_v8 = vld [vmem:[#allocation2 + $0x50] sm:$0xff]  ;;  %v4980_v52 = vpop.eup %4071  ;;  %2608 = vmatpush.bf16.msra.mxu2 %v3839_v49  ;;  %v3837_v49 = vld [vmem:[%s4994_s9 + $0x28] sm:$0xff] }
 0x1ff   : > { %6087 = vst [vmem:[#allocation25_spill] sm:$0xff] %v4980_v52 }
 0x200   : > { %2858 = vst.msk [vmem:[#allocation2 + $0x40] sm:$0xff] %vm860_vm0, %v4953_v14  ;;  %1510 = vmax.xlane.f32.xlu0 %v1509_v5  ;;  %v1587_v5 = vsub.f32 %v1427_v17, %v4909_v23  ;;  %v4985_v17 = vld [vmem:[#allocation2 + $0x58] sm:$0xff] }
 0x202   : > { %v1623_v50 = vmul.f32 1.442695, %v1587_v5  ;;  %v3847_v5 = vld [vmem:[%s4994_s9 + $0x78] sm:$0xff] }
 0x203   : > { %v4982_v56 = vpop.eup %4073  ;;  %2697 = vmatpush.bf16.msra.mxu3 %v3847_v5  ;;  %v3845_v5 = vld [vmem:[%s4994_s9 + $0x68] sm:$0xff] }
 0x204   : > { %6088 = vst [vmem:[#allocation26_spill] sm:$0xff] %v4982_v56  ;;  %4075 = vpow2.f32 %v1623_v50  ;;  %v3838_v50 = vld [vmem:[%s4994_s9 + $0x30] sm:$0xff] }
 0x205   : > { %v1484_v37 = vpop.xlane.xlu0 %1483  ;;  %2609 = vmatpush.bf16.msra.mxu2 %v3838_v50  ;;  %v3844_v50 = vld [vmem:[%s4994_s9 + $0x60] sm:$0xff] }
 0x206   : > { %v4961_v38 = vmax.f32 %v4957_v20, %v1484_v37  ;;  %v4976_v37 = vpop.f32.mrf.mxu1 }
 0x207   : > { %6086 = vst [vmem:[#allocation24_spill] sm:$0xff] %v4976_v37 }
 0x208   : > { %2859 = vst.msk [vmem:[#allocation2 + $0x48] sm:$0xff] %vm860_vm0, %v4961_v38 }
 0x209   : > { %2610 = vmatpush.bf16.msra.mxu2 %v3837_v49  ;;  %v3842_v49 = vld [vmem:[%s4994_s9 + $0x50] sm:$0xff] }
 0x20d   : > { %v1487_v51 = vpop.xlane.xlu1 %1486 }
 0x20e   : > { %v4972_v59 = vmax.f32 %v4968_v8, %v1487_v51  ;;  %v1512_v51 = vmax.f32 %v4974_v1, %v4976_v37  ;;  %v5005_v37 = vld [vmem:[#allocation2 + $0x60] sm:$0xff]  ;;  %v5050_v47 = vpop.f32.mrf.mxu1 }
 0x20f   : > { %6092 = vst [vmem:[#allocation30_spill] sm:$0xff] %v5050_v47 }
 0x210   : > { %2860 = vst.msk [vmem:[#allocation2 + $0x50] sm:$0xff] %vm860_vm0, %v4972_v59 }
 0x213   : > { %2295 = vperm.xlu2 %4066, %v4980_v52   ;;  %v3836_v52 = vld [vmem:[%s4994_s9 + $0x20] sm:$0xff] }
 0x214   : > { %2300 = vperm.xlu0 %4067, %v4982_v56   ;;  %2611 = vmatpush.bf16.msra.mxu2 %v3836_v52  ;;  %v5032_v52 = vld [vmem:[#allocation2 + $0x70] sm:$0xff] }
 0x215   : > { %v1490_v28 = vpop.xlane.xlu2 %1489  ;;  %1513 = vmax.xlane.f32.xlu1 %v1512_v51  ;;  %v3846_v51 = vld [vmem:[%s4994_s9 + $0x70] sm:$0xff] }
 0x216   : > { %v4991_v45 = vmax.f32 %v4985_v17, %v1490_v28  ;;  %v5002_v28 = vpop.eup %4075  ;;  %2698 = vmatpush.bf16.msra.mxu3 %v3846_v51  ;;  %v1621_v51 = vmul.f32 1.442695, %v1586_v55  ;;  %v3813_v55 = vld [vmem:[%s4675_s20 + $0x68] sm:$0xff] }
 0x217   : > { %6089 = vst [vmem:[#allocation27_spill] sm:$0xff] %v5002_v28  ;;  %1318 = vmatmul.bf16.gmra.mxu0 %v3813_v55  ;;  %1407 = vmatmul.bf16.gmra.mxu1 %v3813_v55  ;;  %v5046_v55 = vld [vmem:[#allocation2 + $0x78] sm:$0xff] }
 0x218   : > { %2861 = vst.msk [vmem:[#allocation2 + $0x58] sm:$0xff] %vm860_vm0, %v4991_v45  ;;  %4077 = vpow2.f32 %v1621_v51  ;;  %v3841_v51 = vld [vmem:[%s4994_s9 + $0x48] sm:$0xff] }
 0x219   : > { %6091 = vst [vmem:[#allocation29_spill] sm:$0xff] %v5046_v55 }
 0x21a   : > { %2699 = vmatpush.bf16.msra.mxu3 %v3845_v5 }
 0x21b   : > { %1696 = vperm.xlu2 %4066, %v4896_v11   ;;  %v3835_v11 = vld [vmem:[%s4994_s9 + $0x18] sm:$0xff] }
 0x21c   : > { %2310 = vperm.xlu0 %4067, %v5002_v28   ;;  %2612 = vmatpush.bf16.msra.mxu2 %v3835_v11  ;;  %v3832_v11 = vld [vmem:[%s4994_s9] sm:$0xff] }
 0x21d   : > { %v1493_v1 = vpop.xlane.xlu0 %1492 }
 0x21e   : > { %v5009_v56 = vmax.f32 %v5005_v37, %v1493_v1  ;;  %v5020_v1 = vld [vmem:[#allocation2 + $0x68] sm:$0xff]  ;;  %2700 = vmatpush.bf16.msra.mxu3 %v3844_v50 }
 0x220   : > { %2862 = vst.msk [vmem:[#allocation2 + $0x60] sm:$0xff] %vm860_vm0, %v5009_v56 }
 0x222   : > { %2701 = vmatpush.bf16.msra.mxu3 %v3843_v43  ;;  %v3833_v43 = vld [vmem:[%s4994_s9 + $0x8] sm:$0xff] }
 0x223   : > { %1701 = vperm.xlu2 %4066, %v4909_v23   ;;  %v3834_v23 = vld [vmem:[%s4994_s9 + $0x10] sm:$0xff] }
 0x224   : > { %2613 = vmatpush.bf16.msra.mxu2 %v3834_v23  ;;  %v5048_v23 = vpop.f32.mrf.mxu0 }
 0x225   : > { %v1496_v28 = vpop.xlane.xlu1 %1495 }
 0x226   : > { %v5023_v4 = vmax.f32 %v5020_v1, %v1496_v28  ;;  %v5034_v28 = vpop.eup %4077  ;;  %2702 = vmatpush.bf16.msra.mxu3 %v3842_v49 }
 0x227   : > { %6090 = vst [vmem:[#allocation28_spill] sm:$0xff] %v5034_v28  ;;  %1323 = vmatmul.bf16.gmra.mxu0 %v3814_v36  ;;  %1412 = vmatmul.bf16.gmra.mxu1 %v3814_v36 }
 0x228   : > { %2863 = vst.msk [vmem:[#allocation2 + $0x68] sm:$0xff] %vm860_vm0, %v5023_v4  ;;  %2614 = vmatpush.bf16.msra.mxu2 %v3833_v43 }
 0x22a   : > { %2703 = vmatpush.bf16.msra.mxu3 %v3841_v51 }
 0x22c   : > { %2615 = vmatpush.bf16.msra.mxu2 %v3832_v11  ;;  %v5060_v11 = vld [vmem:[#allocation2 + $0x80] sm:$0xff] }
 0x22d   : > { %v1499_v5 = vpop.xlane.xlu2 %1498 }
 0x22e   : > { %v5037_v50 = vmax.f32 %v5032_v52, %v1499_v5  ;;  %2305 = vperm.xlu1 %4068, %v5034_v28   ;;  %2704 = vmatpush.bf16.msra.mxu3 %v3840_v42 }
 0x230   : > { %2864 = vst.msk [vmem:[#allocation2 + $0x70] sm:$0xff] %vm860_vm0, %v5037_v50 }
 0x235   : > { %v1682_v49 = vpop.permute.xlu2 %1681  ;;  %v1502_v5 = vpop.xlane.xlu0 %1501 }
 0x236   : > { %v1839_v28 = vsub.f32 %v4686_v57, %v1682_v49  ;;  %v1840_v46 = vsub.f32 %v4688_v58, %v1682_v49  ;;  %v5055_v40 = vmax.f32 %v5046_v55, %v1502_v5  ;;  %1706 = vperm.xlu1 %4068, %v4919_v31   ;;  %v5066_v57 = vpop.f32.mrf.mxu0  ;;  %v5068_v58 = vpop.f32.mrf.mxu1 }
 0x237   : > { %6093 = vst [vmem:[#allocation31_spill] sm:$0xff] %v5066_v57 }
 0x238   : > { %v1903_v43 = vmul.f32 1.442695, %v1839_v28  ;;  %v1905_v51 = vmul.f32 1.442695, %v1840_v46  ;;  %2865 = vst.msk [vmem:[#allocation2 + $0x78] sm:$0xff] %vm860_vm0, %v5055_v40  ;;  %v1518_v28 = vmax.f32 %v5066_v57, %v5068_v58 }
 0x239   : > { %6094 = vst [vmem:[#allocation32_spill] sm:$0xff] %v5068_v58  ;;  %v1590_v58 = vsub.f32 %v4935_v44, %v4938_v48 }
 0x23a   : > { %4079 = vpow2.f32 %v1903_v43  ;;  %v1515_v43 = vmax.f32 %v5048_v23, %v5050_v47 }
 0x23b   : > { %4081 = vpow2.f32 %v1905_v51 }
 0x23d   : > { %v1505_v39 = vpop.xlane.xlu1 %1504 }
 0x23e   : > { %v5063_v42 = vmax.f32 %v5060_v11, %v1505_v39  ;;  %1716 = vperm.xlu1 %4068, %v4938_v48   ;;  %v5095_v36 = vpop.f32.mrf.mxu1 }
 0x23f   : > { %6095 = vst [vmem:[#allocation33_spill] sm:$0xff] %v5095_v36 }
 0x240   : > { %v4080_v49 = vpop.eup %4079  ;;  %2866 = vst.msk [vmem:[#allocation2 + $0x80] sm:$0xff] %vm860_vm0, %v5063_v42 }
 0x241   : > { %v4082_v46 = vpop.eup %4081 }
 0x242   : > { %v5074_v5 = vadd.f32 %v4082_v46, %v4080_v49 }
 0x246   : > { %1519 = vmax.xlane.f32.xlu0 %v1518_v28 }
 0x248   : > { %v1687_v39 = vpop.permute.xlu0 %1686 }
 0x249   : > { %v1841_v51 = vsub.f32 %v4692_v60, %v1687_v39  ;;  %v1842_v26 = vsub.f32 %v4694_v61, %v1687_v39  ;;  %v1629_v60 = vmul.f32 1.442695, %v1590_v58  ;;  %v1588_v61 = vsub.f32 %v4916_v27, %v4919_v31 }
 0x24b   : > { %v1907_v54 = vmul.f32 1.442695, %v1841_v51  ;;  %v1909_v53 = vmul.f32 1.442695, %v1842_v26  ;;  %v1589_v51 = vsub.f32 %v4923_v34, %v4927_v41 }
 0x24c   : > { %1516 = vmax.xlane.f32.xlu2 %v1515_v43  ;;  %v5114_v43 = vld [vmem:[#allocation2 + $0x90] sm:$0xff] }
 0x24d   : > { %4083 = vpow2.f32 %v1907_v54 }
 0x24e   : > { %4085 = vpow2.f32 %v1909_v53 }
 0x24f   : > { %4087 = vpow2.f32 %v1629_v60 }
 0x253   : > { %v4084_v33 = vpop.eup %4083 }
 0x254   : > { %v4086_v57 = vpop.eup %4085  ;;  %v2480_v28 = vpack.c.bf16 %v4084_v33, %v4080_v49  ;;  %v5107_v49 = vld [vmem:[#allocation2 + $0x88] sm:$0xff] }
 0x255   : > { %v5082_v32 = vpop.permute.xlu1 %2290  ;;  %v2481_v55 = vpack.c.bf16 %v4086_v57, %v4082_v46  ;;  %v5085_v47 = vadd.f32 %v4086_v57, %v4084_v33  ;;  %v5092_v33 = vpop.eup %4087  ;;  %v1625_v57 = vmul.f32 1.442695, %v1588_v61  ;;  %v3815_v61 = vld [vmem:[%s4675_s20 + $0x78] sm:$0xff] }
 0x256   : > { %2616 = vmatmul.bf16.vlgmr.msra.gmra.mxu2 %v2480_v28  ;;  %1328 = vmatmul.bf16.gmra.mxu0 %v3815_v61 }
 0x257   : > { %2705 = vmatmul.bf16.vlgmr.msra.gmra.mxu3 %v2481_v55  ;;  %v5097_v55 = vpop.f32.mrf.mxu0  ;;  %1417 = vmatmul.bf16.gmra.mxu1 %v3815_v61 }
 0x258   : > { %6096 = vst [vmem:[#allocation34_spill] sm:$0xff] %v5097_v55 }
 0x25a   : > { %1721 = vperm.xlu0 %4067, %v4953_v14  }
 0x25d   : > { %v1692_v53 = vpop.permute.xlu1 %1691 }
 0x25e   : > { %v1843_v54 = vsub.f32 %v4698_v63, %v1692_v53  ;;  %v1844_v26 = vsub.f32 %v4700_v0, %v1692_v53  ;;  %v1521_v63 = vmax.f32 %v5097_v55, %v5095_v36  ;;  %v1627_v53 = vmul.f32 1.442695, %v1589_v51 }
 0x260   : > { %v1911_v44 = vmul.f32 1.442695, %v1843_v54  ;;  %v1913_v48 = vmul.f32 1.442695, %v1844_v26  ;;  %v5126_v26 = vpop.f32.mrf.mxu0 }
 0x262   : > { %4089 = vpow2.f32 %v1911_v44  ;;  %2325 = vperm.xlu0 %4067, %v5092_v33   ;;  %v5128_v44 = vpop.f32.mrf.mxu1 }
 0x263   : > { %4091 = vpow2.f32 %v1913_v48 }
 0x264   : > { %1711 = vperm.xlu2 %4066, %v4927_v41   ;;  %4093 = vpow2.f32 %v1625_v57 }
 0x265   : > { %4095 = vpow2.f32 %v1627_v53  ;;  %v5139_v53 = vld [vmem:[#allocation2 + $0x98] sm:$0xff] }
 0x268   : > { %v4090_v0 = vpop.eup %4089  ;;  %1522 = vmax.xlane.f32.xlu1 %v1521_v63 }
 0x269   : > { %v4092_v27 = vpop.eup %4091 }
 0x26a   : > { %v5102_v31 = vadd.f32 %v4092_v27, %v4090_v0  ;;  %v5104_v58 = vpop.eup %4093  ;;  %v5135_v51 = vpop.f32.mrf.mxu1 }
 0x26b   : > { %v5132_v57 = vpop.eup %4095  ;;  %6099 = vst [vmem:[#allocation37_spill] sm:$0xff] %v5135_v51 }
 0x26c   : > { %2315 = vperm.xlu2 %4066, %v5104_v58   ;;  %6098 = vst [vmem:[#allocation36_spill] sm:$0xff] %v5132_v57 }
 0x26e   : > { %v1508_v46 = vpop.xlane.xlu2 %1507 }
 0x26f   : > { %v5110_v39 = vmax.f32 %v5107_v49, %v1508_v46 }
 0x271   : > { %2867 = vst.msk [vmem:[#allocation2 + $0x88] sm:$0xff] %vm860_vm0, %v5110_v39 }
 0x273   : > { %v1511_v28 = vpop.xlane.xlu0 %1510 }
 0x274   : > { %v5119_v60 = vmax.f32 %v5114_v43, %v1511_v28  ;;  %v5137_v28 = vpop.f32.mrf.mxu0 }
 0x275   : > { %6100 = vst [vmem:[#allocation38_spill] sm:$0xff] %v5137_v28 }
 0x276   : > { %v5122_v54 = vpop.permute.xlu2 %2295  ;;  %2868 = vst.msk [vmem:[#allocation2 + $0x90] sm:$0xff] %vm860_vm0, %v5119_v60 }
 0x277   : > { %6097 = vst [vmem:[#allocation35_spill] sm:$0xff] %v5122_v54 }
 0x27e   : > { %v1697_v48 = vpop.permute.xlu2 %1696 }
 0x27f   : > { %v1845_v34 = vsub.f32 %v4704_v2, %v1697_v48  ;;  %v1846_v41 = vsub.f32 %v4706_v3, %v1697_v48  ;;  %v1527_v48 = vmax.f32 %v5137_v28, %v5135_v51 }
 0x281   : > { %v1915_v63 = vmul.f32 1.442695, %v1845_v34  ;;  %v1917_v46 = vmul.f32 1.442695, %v1846_v41  ;;  %2320 = vperm.xlu1 %4068, %v5132_v57  }
 0x283   : > { %4097 = vpow2.f32 %v1915_v63 }
 0x284   : > { %4099 = vpow2.f32 %v1917_v46 }
 0x286   : > { %v1702_v61 = vpop.permute.xlu2 %1701 }
 0x287   : > { %v1847_v54 = vsub.f32 %v4711_v6, %v1702_v61  ;;  %v1848_v2 = vsub.f32 %v4713_v7, %v1702_v61 }
 0x288   : > { %v1514_v3 = vpop.xlane.xlu1 %1513 }
 0x289   : > { %v4098_v34 = vpop.eup %4097  ;;  %v1919_v41 = vmul.f32 1.442695, %v1847_v54  ;;  %v1921_v57 = vmul.f32 1.442695, %v1848_v2  ;;  %v5146_v63 = vmax.f32 %v5139_v53, %v1514_v3  ;;  %1731 = vperm.xlu1 %4068, %v4972_v59   ;;  %v1524_v2 = vmax.f32 %v5126_v26, %v5128_v44 }
 0x28a   : > { %v4100_v46 = vpop.eup %4099  ;;  %v2482_v36 = vpack.c.bf16 %v4098_v34, %v4090_v0  ;;  %v1593_v0 = vsub.f32 %v4968_v8, %v4972_v59 }
 0x28b   : > { %4101 = vpow2.f32 %v1919_v41  ;;  %2869 = vst.msk [vmem:[#allocation2 + $0x98] sm:$0xff] %vm860_vm0, %v5146_v63  ;;  %v2483_v6 = vpack.c.bf16 %v4100_v46, %v4092_v27  ;;  %v5151_v7 = vadd.f32 %v4100_v46, %v4098_v34 }
 0x28c   : > { %4103 = vpow2.f32 %v1921_v57  ;;  %2621 = vmatmul.bf16.gmra.mxu2 %v2482_v36  ;;  %1528 = vmax.xlane.f32.xlu0 %v1527_v48  ;;  %v1635_v41 = vmul.f32 1.442695, %v1593_v0  ;;  %v1591_v36 = vsub.f32 %v4948_v62, %v4953_v14  ;;  %v5166_v57 = vpop.permute.xlu0 %2300  ;;  %v5174_v62 = vpop.f32.mrf.mxu0 }
 0x28d   : > { %2710 = vmatmul.bf16.gmra.mxu3 %v2483_v6  ;;  %6104 = vst [vmem:[#allocation42_spill] sm:$0xff] %v5174_v62  ;;  %v2450_v55 = vmul.f32 0.0, %v5166_v57 }
 0x28e   : > { %4105 = vpow2.f32 %v1635_v41  ;;  %v1631_v48 = vmul.f32 1.442695, %v1591_v36 }
 0x290   : > { %4107 = vpow2.f32 %v1631_v48 }
 0x291   : > { %v4102_v54 = vpop.eup %4101 }
 0x292   : > { %v4104_v61 = vpop.eup %4103 }
 0x293   : > { %v5155_v3 = vadd.f32 %v4104_v61, %v4102_v54 }
 0x294   : > { %v5164_v27 = vpop.eup %4105  ;;  %v5176_v0 = vpop.permute.xlu0 %2310 }
 0x295   : > { %1525 = vmax.xlane.f32.xlu2 %v1524_v2  ;;  %6102 = vst [vmem:[#allocation40_spill] sm:$0xff] %v5164_v27  ;;  %v5172_v2 = vpop.f32.mrf.mxu1 }
 0x296   : > { %6103 = vst [vmem:[#allocation41_spill] sm:$0xff] %v5172_v2  ;;  %v5182_v36 = vpop.eup %4107 }
 0x297   : > { %6105 = vst [vmem:[#allocation43_spill] sm:$0xff] %v5182_v36 }
 0x2a0   : > { %v5159_v51 = vpop.permute.xlu1 %2305  ;;  %1736 = vperm.xlu0 %4067, %v4991_v45  }
 0x2a1   : > { %6101 = vst [vmem:[#allocation39_spill] sm:$0xff] %v5159_v51 }
 0x2a8   : > { %v1707_v34 = vpop.permute.xlu1 %1706  ;;  %2340 = vperm.xlu0 %4067, %v5164_v27  }
 0x2a9   : > { %v1849_v46 = vsub.f32 %v4717_v9, %v1707_v34  ;;  %v1850_v8 = vsub.f32 %v4719_v10, %v1707_v34  ;;  %v1530_v10 = vmax.f32 %v5174_v62, %v5172_v2 }
 0x2ab   : > { %v1923_v59 = vmul.f32 1.442695, %v1849_v46  ;;  %v1925_v6 = vmul.f32 1.442695, %v1850_v8 }
 0x2ad   : > { %4109 = vpow2.f32 %v1923_v59  ;;  %1726 = vperm.xlu2 %4066, %v4961_v38  }
 0x2ae   : > { %4111 = vpow2.f32 %v1925_v6 }
 0x2b0   : > { %v1717_v14 = vpop.permute.xlu1 %1716 }
 0x2b1   : > { %v1853_v41 = vsub.f32 %v4729_v15, %v1717_v14  ;;  %v1854_v9 = vsub.f32 %v4731_v16, %v1717_v14  ;;  %v5187_v15 = vld [vmem:[#allocation2 + $0xa8] sm:$0xff] }
 0x2b3   : > { %v4110_v48 = vpop.eup %4109  ;;  %v1931_v34 = vmul.f32 1.442695, %v1853_v41  ;;  %v1933_v46 = vmul.f32 1.442695, %v1854_v9  ;;  %1531 = vmax.xlane.f32.xlu1 %v1530_v10 }
 0x2b4   : > { %v4112_v8 = vpop.eup %4111  ;;  %v2484_v59 = vpack.c.bf16 %v4110_v48, %v4102_v54  ;;  %v1592_v54 = vsub.f32 %v4957_v20, %v4961_v38 }
 0x2b5   : > { %4113 = vpow2.f32 %v1931_v34  ;;  %2330 = vperm.xlu2 %4066, %v5182_v36   ;;  %v2485_v6 = vpack.c.bf16 %v4112_v8, %v4104_v61  ;;  %v5185_v51 = vadd.f32 %v4112_v8, %v4110_v48  ;;  %v5196_v61 = vld [vmem:[#allocation2 + $0xa0] sm:$0xff]  ;;  %v5203_v8 = vpop.f32.mrf.mxu1 }
 0x2b6   : > { %4115 = vpow2.f32 %v1933_v46  ;;  %2626 = vmatmul.bf16.gmra.mxu2 %v2484_v59  ;;  %v1633_v46 = vmul.f32 1.442695, %v1592_v54  ;;  %6106 = vst [vmem:[#allocation44_spill] sm:$0xff] %v5203_v8  ;;  %v5205_v59 = vpop.f32.mrf.mxu0 }
 0x2b7   : > { %2715 = vmatmul.bf16.gmra.mxu3 %v2485_v6  ;;  %6107 = vst [vmem:[#allocation45_spill] sm:$0xff] %v5205_v59 }
 0x2b8   : > { %4117 = vpow2.f32 %v1633_v46 }
 0x2b9   : > { %v1520_v16 = vpop.xlane.xlu0 %1519 }
 0x2ba   : > { %v5190_v14 = vmax.f32 %v5187_v15, %v1520_v16 }
 0x2bb   : > { %v4114_v41 = vpop.eup %4113 }
 0x2bc   : > { %v4116_v9 = vpop.eup %4115  ;;  %2871 = vst.msk [vmem:[#allocation2 + $0xa8] sm:$0xff] %vm860_vm0, %v5190_v14 }
 0x2bd   : > { %v5198_v10 = vadd.f32 %v4116_v9, %v4114_v41 }
 0x2be   : > { %v5211_v62 = vpop.eup %4117  ;;  %v5215_v54 = vpop.f32.mrf.mxu0 }
 0x2bf   : > { %v1517_v48 = vpop.xlane.xlu2 %1516  ;;  %6108 = vst [vmem:[#allocation46_spill] sm:$0xff] %v5211_v62 }
 0x2c0   : > { %v5201_v34 = vmax.f32 %v5196_v61, %v1517_v48  ;;  %v5213_v48 = vpop.f32.mrf.mxu1  ;;  %6110 = vst [vmem:[#allocation48_spill] sm:$0xff] %v5215_v54 }
 0x2c1   : > { %6109 = vst [vmem:[#allocation47_spill] sm:$0xff] %v5213_v48  ;;  %v1536_v46 = vmax.f32 %v5215_v54, %v5213_v48  ;;  %v2448_v48 = vmul.f32 0.0, %v5082_v32 }
 0x2c2   : > { %2870 = vst.msk [vmem:[#allocation2 + $0xa0] sm:$0xff] %vm860_vm0, %v5201_v34 }
 0x2c7   : > { %v1712_v6 = vpop.permute.xlu2 %1711 }
 0x2c8   : > { %v1851_v20 = vsub.f32 %v4723_v12, %v1712_v6  ;;  %v1852_v38 = vsub.f32 %v4725_v13, %v1712_v6 }
 0x2ca   : > { %v1927_v16 = vmul.f32 1.442695, %v1851_v20  ;;  %v1929_v2 = vmul.f32 1.442695, %v1852_v38  ;;  %v5223_v38 = vld [vmem:[#allocation2 + $0xb0] sm:$0xff] }
 0x2cc   : > { %4119 = vpow2.f32 %v1927_v16  ;;  %2335 = vperm.xlu1 %4068, %v5211_v62   ;;  %v1722_v32 = vpop.permute.xlu0 %1721 }
 0x2cd   : > { %4121 = vpow2.f32 %v1929_v2  ;;  %v1533_v2 = vmax.f32 %v5205_v59, %v5203_v8 }
 0x2d2   : > { %v4120_v36 = vpop.eup %4119  ;;  %1537 = vmax.xlane.f32.xlu0 %v1536_v46 }
 0x2d3   : > { %v4122_v12 = vpop.eup %4121  ;;  %v2486_v28 = vpack.c.bf16 %v4114_v41, %v4120_v36 }
 0x2d4   : > { %1746 = vperm.xlu1 %4068, %v5023_v4   ;;  %v2487_v13 = vpack.c.bf16 %v4116_v9, %v4122_v12  ;;  %v5221_v6 = vadd.f32 %v4122_v12, %v4120_v36 }
 0x2d5   : > { %2631 = vmatmul.bf16.gmra.mxu2 %v2486_v28  ;;  %v1596_v28 = vsub.f32 %v5020_v1, %v5023_v4  ;;  %v5248_v1 = vpop.f32.mrf.mxu1  ;;  %v5250_v4 = vpop.f32.mrf.mxu0 }
 0x2d6   : > { %2720 = vmatmul.bf16.gmra.mxu3 %v2487_v13  ;;  %v5246_v13 = vpop.permute.xlu0 %2325  ;;  %6114 = vst [vmem:[#allocation52_spill] sm:$0xff] %v5248_v1 }
 0x2d7   : > { %v1641_v36 = vmul.f32 1.442695, %v1596_v28  ;;  %6113 = vst [vmem:[#allocation51_spill] sm:$0xff] %v5246_v13 }
 0x2d8   : > { %6115 = vst [vmem:[#allocation53_spill] sm:$0xff] %v5250_v4 }
 0x2d9   : > { %v2617_v20 = vpop.f32.mrf.mxu2  ;;  %4123 = vpow2.f32 %v1641_v36 }
 0x2da   : > { %v2706_v16 = vpop.f32.mrf.mxu3 }
 0x2db   : > { %v2707_v54 = vadd.f32 %v2706_v16, %v2617_v20  ;;  %v1523_v46 = vpop.xlane.xlu1 %1522  ;;  %v1539_v20 = vmax.f32 %v5250_v4, %v5248_v1  ;;  %v1855_v1 = vsub.f32 %v4735_v18, %v1722_v32 }
 0x2dc   : > { %v5229_v41 = vmax.f32 %v5223_v38, %v1523_v46  ;;  %v5258_v46 = vld [vmem:[#allocation2 + $0xc0] sm:$0xff] }
 0x2dd   : > { %v5231_v62 = vadd.f32 %v2707_v54, %v2448_v48  ;;  %v1594_v48 = vsub.f32 %v4985_v17, %v4991_v45 }
 0x2de   : > { %2872 = vst.msk [vmem:[#allocation2 + $0xb0] sm:$0xff] %vm860_vm0, %v5229_v41  ;;  %1534 = vmax.xlane.f32.xlu2 %v1533_v2 }
 0x2df   : > { %6111 = vst [vmem:[#allocation49_spill] sm:$0xff] %v5231_v62  ;;  %v5238_v9 = vpop.eup %4123  ;;  %v1637_v54 = vmul.f32 1.442695, %v1594_v48  ;;  %v5286_v62 = vpop.f32.mrf.mxu0 }
 0x2e0   : > { %6112 = vst [vmem:[#allocation50_spill] sm:$0xff] %v5238_v9 }
 0x2e1   : > { %4125 = vpow2.f32 %v1637_v54  ;;  %v5261_v54 = vpop.permute.xlu2 %2315 }
 0x2e2   : > { %6117 = vst [vmem:[#allocation55_spill] sm:$0xff] %v5261_v54 }
 0x2e6   : > { %1751 = vperm.xlu0 %4067, %v5037_v50  }
 0x2e7   : > { %v5256_v45 = vpop.eup %4125  ;;  %v5297_v27 = vpop.f32.mrf.mxu0 }
 0x2e8   : > { %6116 = vst [vmem:[#allocation54_spill] sm:$0xff] %v5256_v45 }
 0x2e9   : > { %6121 = vst [vmem:[#allocation59_spill] sm:$0xff] %v5297_v27 }
 0x2ee   : > { %2355 = vperm.xlu0 %4067, %v5238_v9  }
 0x2f3   : > { %v5243_v12 = vpop.permute.xlu1 %2320 }
 0x2f6   : > { %1741 = vperm.xlu2 %4066, %v5009_v56  }
 0x2fb   : > { %v1732_v16 = vpop.permute.xlu1 %1731 }
 0x2fc   : > { %v1859_v2 = vsub.f32 %v4747_v24, %v1732_v16  ;;  %v1860_v17 = vsub.f32 %v4749_v25, %v1732_v16  ;;  %v5270_v25 = vld [vmem:[#allocation2 + $0xb8] sm:$0xff] }
 0x2fe   : > { %v1943_v28 = vmul.f32 1.442695, %v1859_v2  ;;  %v1945_v36 = vmul.f32 1.442695, %v1860_v17  ;;  %2345 = vperm.xlu2 %4066, %v5256_v45   ;;  %1540 = vmax.xlane.f32.xlu1 %v1539_v20  ;;  %v5274_v2 = vpop.f32.mrf.mxu2  ;;  %v1595_v20 = vsub.f32 %v5005_v37, %v5009_v56  ;;  %v5278_v17 = vpop.f32.mrf.mxu3  ;;  %v1856_v56 = vsub.f32 %v4737_v19, %v1722_v32 }
 0x2ff   : > { %v1529_v48 = vpop.xlane.xlu0 %1528  ;;  %6118 = vst [vmem:[#allocation56_spill] sm:$0xff] %v5274_v2 }
 0x300   : > { %4127 = vpow2.f32 %v1943_v28  ;;  %v5264_v13 = vmax.f32 %v5258_v46, %v1529_v48  ;;  %6119 = vst [vmem:[#allocation57_spill] sm:$0xff] %v5278_v17  ;;  %v5284_v48 = vpop.f32.mrf.mxu1  ;;  %v1639_v37 = vmul.f32 1.442695, %v1595_v20  ;;  %v1935_v17 = vmul.f32 1.442695, %v1855_v1 }
 0x301   : > { %4129 = vpow2.f32 %v1945_v36  ;;  %6120 = vst [vmem:[#allocation58_spill] sm:$0xff] %v5284_v48  ;;  %v1937_v4 = vmul.f32 1.442695, %v1856_v56 }
 0x302   : > { %2874 = vst.msk [vmem:[#allocation2 + $0xc0] sm:$0xff] %vm860_vm0, %v5264_v13  ;;  %4131 = vpow2.f32 %v1639_v37 }
 0x303   : > { %4133 = vpow2.f32 %v1935_v17 }
 0x304   : > { %4135 = vpow2.f32 %v1937_v4 }
 0x306   : > { %v5268_v24 = vpop.eup %4127 }
 0x307   : > { %v5272_v16 = vpop.eup %4129 }
 0x308   : > { %v1526_v28 = vpop.xlane.xlu2 %1525  ;;  %v5282_v36 = vadd.f32 %v5272_v16, %v5268_v24  ;;  %v5299_v18 = vpop.f32.mrf.mxu1 }
 0x309   : > { %v5289_v54 = vmax.f32 %v5270_v25, %v1526_v28  ;;  %6122 = vst [vmem:[#allocation60_spill] sm:$0xff] %v5299_v18 }
 0x30b   : > { %2873 = vst.msk [vmem:[#allocation2 + $0xb8] sm:$0xff] %vm860_vm0, %v5289_v54 }
 0x30f   : > { %v2622_v2 = vpop.f32.mrf.mxu2 }
 0x310   : > { %v2711_v45 = vpop.f32.mrf.mxu3  ;;  %v1727_v8 = vpop.permute.xlu2 %1726 }
 0x311   : > { %v2712_v59 = vadd.f32 %v2711_v45, %v2622_v2  ;;  %v1857_v9 = vsub.f32 %v4741_v21, %v1727_v8  ;;  %v1858_v28 = vsub.f32 %v4743_v22, %v1727_v8  ;;  %v1545_v21 = vmax.f32 %v5297_v27, %v5299_v18  ;;  %v5308_v2 = vpop.eup %4131 }
 0x312   : > { %v1737_v20 = vpop.permute.xlu0 %1736  ;;  %6124 = vst [vmem:[#allocation62_spill] sm:$0xff] %v5308_v2  ;;  %v5311_v57 = vpop.eup %4133 }
 0x313   : > { %v1939_v19 = vmul.f32 1.442695, %v1857_v9  ;;  %v1941_v32 = vmul.f32 1.442695, %v1858_v28  ;;  %v1861_v1 = vsub.f32 %v4762_v29, %v1737_v20  ;;  %v1862_v37 = vsub.f32 %v4764_v30, %v1737_v20  ;;  %v5313_v29 = vpop.eup %4135  ;;  %v5323_v20 = vld [vmem:[#allocation2 + $0xc8] sm:$0xff] }
 0x314   : > { %v5306_v45 = vadd.f32 %v2712_v59, %v2450_v55 }
 0x315   : > { %4137 = vpow2.f32 %v1939_v19  ;;  %v1947_v22 = vmul.f32 1.442695, %v1861_v1  ;;  %v1949_v8 = vmul.f32 1.442695, %v1862_v37  ;;  %v1542_v19 = vmax.f32 %v5286_v62, %v5284_v48 }
 0x316   : > { %6123 = vst [vmem:[#allocation61_spill] sm:$0xff] %v5306_v45  ;;  %4139 = vpow2.f32 %v1941_v32 }
 0x317   : > { %4141 = vpow2.f32 %v1947_v22  ;;  %2350 = vperm.xlu1 %4068, %v5308_v2   ;;  %v6153_v2 = vld [vmem:[#allocation20_spill] sm:$0xff] }
 0x318   : > { %4143 = vpow2.f32 %v1949_v8  ;;  %1546 = vmax.xlane.f32.xlu0 %v1545_v21  ;;  %v1599_v21 = vsub.f32 %v5060_v11, %v5063_v42  ;;  %v5336_v8 = vpop.f32.mrf.mxu2  ;;  %v2452_v11 = vmul.f32 0.0, %v5176_v0 }
 0x319   : > { %6125 = vst [vmem:[#allocation63_spill] sm:$0xff] %v5336_v8 }
 0x31a   : > { %v1647_v22 = vmul.f32 1.442695, %v1599_v21 }
 0x31b   : > { %v4138_v30 = vpop.eup %4137 }
 0x31c   : > { %v4140_v9 = vpop.eup %4139  ;;  %v2488_v55 = vpack.c.bf16 %v4138_v30, %v5311_v57  ;;  %4145 = vpow2.f32 %v1647_v22 }
 0x31d   : > { %v4142_v59 = vpop.eup %4141  ;;  %v2489_v4 = vpack.c.bf16 %v4140_v9, %v5313_v29  ;;  %v5317_v17 = vadd.f32 %v4140_v9, %v4138_v30  ;;  %v5338_v30 = vpop.f32.mrf.mxu3  ;;  %v1597_v9 = vsub.f32 %v5032_v52, %v5037_v50  ;;  %v5354_v52 = vld [vmem:[#allocation2 + $0xd8] sm:$0xff] }
 0x31e   : > { %v4144_v56 = vpop.eup %4143  ;;  %2636 = vmatmul.bf16.gmra.mxu2 %v2488_v55  ;;  %v2490_v37 = vpack.c.bf16 %v4142_v59, %v5268_v24  ;;  %6126 = vst [vmem:[#allocation64_spill] sm:$0xff] %v5338_v30  ;;  %v5356_v50 = vpop.f32.mrf.mxu1  ;;  %v6137_v30 = vld [vmem:[#allocation29_spill] sm:$0xff] }
 0x31f   : > { %2725 = vmatmul.bf16.gmra.mxu3 %v2489_v4  ;;  %1761 = vperm.xlu1 %4068, %v5063_v42   ;;  %v5320_v28 = vadd.f32 %v4144_v56, %v4142_v59  ;;  %v5347_v4 = vpop.permute.xlu0 %2340  ;;  %6130 = vst [vmem:[#allocation68_spill] sm:$0xff] %v5356_v50  ;;  %v1598_v8 = vsub.f32 %v6137_v30, %v5055_v40 }
 0x320   : > { %2096 = vadd.xlane.f32.xlu0 %v5074_v5  ;;  %v2491_v5 = vpack.c.bf16 %v4144_v56, %v5272_v16  ;;  %v1643_v16 = vmul.f32 1.442695, %v1597_v9  ;;  %6127 = vst [vmem:[#allocation65_spill] sm:$0xff] %v5347_v4 }
 0x322   : > { %v5343_v59 = vpop.eup %4145  ;;  %4147 = vpow2.f32 %v1643_v16 }
 0x326   : > { %v1532_v32 = vpop.xlane.xlu1 %1531 }
 0x327   : > { %v5328_v1 = vmax.f32 %v5323_v20, %v1532_v32  ;;  %1543 = vmax.xlane.f32.xlu2 %v1542_v19  ;;  %v5358_v32 = vpop.f32.mrf.mxu0 }
 0x328   : > { %6131 = vst [vmem:[#allocation69_spill] sm:$0xff] %v5358_v32  ;;  %v1548_v22 = vmax.f32 %v5358_v32, %v5356_v50  ;;  %v6139_v32 = vld [vmem:[#allocation10_spill] sm:$0xff] }
 0x329   : > { %2875 = vst.msk [vmem:[#allocation2 + $0xc8] sm:$0xff] %vm860_vm0, %v5328_v1 }
 0x32e   : > { %2641 = vmatmul.bf16.gmra.mxu2 %v2490_v37  ;;  %v5361_v37 = vpop.eup %4147 }
 0x32f   : > { %2730 = vmatmul.bf16.gmra.mxu3 %v2491_v5  ;;  %6132 = vst [vmem:[#allocation70_spill] sm:$0xff] %v5361_v37 }
 0x334   : > { %1766 = vperm.xlu0 %4067, %v5110_v39  }
 0x339   : > { %v2627_v55 = vpop.f32.mrf.mxu2 }
 0x33a   : > { %v2716_v24 = vpop.f32.mrf.mxu3 }
 0x33b   : > { %v2717_v42 = vadd.f32 %v2716_v24, %v2627_v55  ;;  %v6133_v55 = vld [vmem:[#allocation11_spill] sm:$0xff] }
 0x33c   : > { %2370 = vperm.xlu0 %4067, %v5343_v59  }
 0x33d   : > { %v5349_v56 = vadd.f32 %v2717_v42, %v2452_v11  ;;  %v5373_v11 = vpop.permute.xlu2 %2330 }
 0x33e   : > { %v5351_v19 = vpop.permute.xlu1 %2335  ;;  %6134 = vst [vmem:[#allocation11_spill] sm:$0xff] %v5373_v11  ;;  %v2454_v11 = vmul.f32 0.0, %v5243_v12 }
 0x33f   : > { %6128 = vst [vmem:[#allocation66_spill] sm:$0xff] %v5349_v56  ;;  %1756 = vperm.xlu2 %4066, %v5055_v40  }
 0x340   : > { %6129 = vst [vmem:[#allocation67_spill] sm:$0xff] %v5351_v19 }
 0x341   : > { %v5377_v4 = vpop.f32.mrf.mxu2 }
 0x342   : > { %6135 = vst [vmem:[#allocation71_spill] sm:$0xff] %v5377_v4  ;;  %v6138_v4 = vld [vmem:[#allocation9_spill] sm:$0xff] }
 0x344   : > { %1781 = vperm.xlu0 %4067, %v5201_v34  }
 0x345   : > { %v1538_v0 = vpop.xlane.xlu0 %1537 }
 0x346   : > { %v1747_v21 = vpop.permute.xlu1 %1746  ;;  %v5364_v5 = vmax.f32 %v5354_v52, %v1538_v0  ;;  %v5375_v0 = vld [vmem:[#allocation2 + $0xd0] sm:$0xff] }
 0x347   : > { %v1865_v9 = vsub.f32 %v4790_v35, %v1747_v21  ;;  %v1866_v24 = vsub.f32 %v6133_v55, %v1747_v21  ;;  %2360 = vperm.xlu2 %4066, %v5361_v37   ;;  %v5379_v35 = vpop.f32.mrf.mxu3 }
 0x348   : > { %2877 = vst.msk [vmem:[#allocation2 + $0xd8] sm:$0xff] %vm860_vm0, %v5364_v5 }
 0x349   : > { %v1955_v42 = vmul.f32 1.442695, %v1865_v9  ;;  %v1957_v16 = vmul.f32 1.442695, %v1866_v24  ;;  %1549 = vmax.xlane.f32.xlu1 %v1548_v22  ;;  %6136 = vst [vmem:[#allocation72_spill] sm:$0xff] %v5379_v35 }
 0x34a   : > { %v1645_v22 = vmul.f32 1.442695, %v1598_v8 }
 0x34b   : > { %4149 = vpow2.f32 %v1955_v42 }
 0x34c   : > { %4151 = vpow2.f32 %v1957_v16 }
 0x34d   : > { %4153 = vpow2.f32 %v1645_v22 }
 0x351   : > { %v4150_v19 = vpop.eup %4149  ;;  %v1535_v21 = vpop.xlane.xlu2 %1534 }
 0x352   : > { %v4152_v55 = vpop.eup %4151  ;;  %v5382_v56 = vmax.f32 %v5375_v0, %v1535_v21 }
 0x353   : > { %v5386_v9 = vadd.f32 %v4152_v55, %v4150_v19  ;;  %v5395_v30 = vpop.eup %4153 }
 0x354   : > { %2876 = vst.msk [vmem:[#allocation2 + $0xd0] sm:$0xff] %vm860_vm0, %v5382_v56 }
 0x355   : > { %6141 = vst [vmem:[#allocation9_spill] sm:$0xff] %v5395_v30 }
 0x358   : > { %v2632_v24 = vpop.f32.mrf.mxu2 }
 0x359   : > { %v2721_v42 = vpop.f32.mrf.mxu3  ;;  %v1742_v16 = vpop.permute.xlu2 %1741 }
 0x35a   : > { %v2722_v35 = vadd.f32 %v2721_v42, %v2632_v24  ;;  %v1863_v50 = vsub.f32 %v6138_v4, %v1742_v16  ;;  %v1864_v21 = vsub.f32 %v6139_v32, %v1742_v16  ;;  %v5401_v4 = vld [vmem:[#allocation2 + $0xe0] sm:$0xff]  ;;  %v1602_v32 = vsub.f32 %v5139_v53, %v5146_v63  ;;  %v6145_v16 = vld [vmem:[#allocation16_spill] sm:$0xff] }
 0x35c   : > { %v1951_v37 = vmul.f32 1.442695, %v1863_v50  ;;  %v1953_v18 = vmul.f32 1.442695, %v1864_v21  ;;  %v5393_v40 = vadd.f32 %v2722_v35, %v2454_v11  ;;  %v5421_v11 = vld [vmem:[#allocation2 + $0xf0] sm:$0xff] }
 0x35e   : > { %6140 = vst [vmem:[#allocation29_spill] sm:$0xff] %v5393_v40  ;;  %4155 = vpow2.f32 %v1951_v37 }
 0x35f   : > { %4157 = vpow2.f32 %v1953_v18 }
 0x361   : > { %v5433_v42 = vpop.permute.xlu2 %2345 }
 0x362   : > { %2365 = vperm.xlu1 %4068, %v5395_v30   ;;  %6144 = vst [vmem:[#allocation74_spill] sm:$0xff] %v5433_v42  ;;  %v6151_v30 = vld [vmem:[#allocation15_spill] sm:$0xff] }
 0x364   : > { %v4156_v8 = vpop.eup %4155 }
 0x365   : > { %v4158_v27 = vpop.eup %4157  ;;  %v2492_v45 = vpack.c.bf16 %v4150_v19, %v4156_v8  ;;  %v1752_v19 = vpop.permute.xlu0 %1751 }
 0x366   : > { %v2493_v12 = vpack.c.bf16 %v4152_v55, %v4158_v27  ;;  %v5398_v24 = vadd.f32 %v4158_v27, %v4156_v8  ;;  %v1653_v27 = vmul.f32 1.442695, %v1602_v32  ;;  %v6146_v8 = vld [vmem:[#allocation17_spill] sm:$0xff] }
 0x367   : > { %2646 = vmatmul.bf16.gmra.mxu2 %v2492_v45 }
 0x368   : > { %2735 = vmatmul.bf16.gmra.mxu3 %v2493_v12  ;;  %4159 = vpow2.f32 %v1653_v27 }
 0x36e   : > { %2108 = vadd.xlane.f32.xlu0 %v5155_v3  ;;  %v5411_v45 = vpop.eup %4159  ;;  %v1600_v3 = vsub.f32 %v5107_v49, %v5110_v39  ;;  %v2031_v39 = vld [vmem:[#allocation3] sm:$0xff] }
 0x36f   : > { %6142 = vst [vmem:[#allocation10_spill] sm:$0xff] %v5411_v45 }
 0x370   : > { %2099 = vadd.xlane.f32.xlu2 %v5085_v47  ;;  %v5416_v47 = vpop.permute.xlu0 %2355  ;;  %v1649_v37 = vmul.f32 1.442695, %v1600_v3 }
 0x371   : > { %v1541_v50 = vpop.xlane.xlu1 %1540 }
 0x372   : > { %v5405_v18 = vmax.f32 %v5401_v4, %v1541_v50  ;;  %4161 = vpow2.f32 %v1649_v37  ;;  %v6147_v50 = vld [vmem:[#allocation18_spill] sm:$0xff] }
 0x373   : > { %v2063_v32 = vmul.f32 %v6147_v50, %v2031_v39  ;;  %v6148_v39 = vld [vmem:[#allocation12_spill] sm:$0xff] }
 0x374   : > { %2878 = vst.msk [vmem:[#allocation2 + $0xe0] sm:$0xff] %vm860_vm0, %v5405_v18 }
 0x378   : > { %v5430_v49 = vpop.eup %4161 }
 0x379   : > { %6143 = vst [vmem:[#allocation73_spill] sm:$0xff] %v5430_v49 }
 0x382   : > { %2385 = vperm.xlu0 %4067, %v5411_v45  }
 0x388   : > { %1771 = vperm.xlu2 %4066, %v5119_v60  }
 0x389   : > { %v5419_v53 = vpop.permute.xlu1 %2350 }
 0x38a   : > { %1796 = vperm.xlu0 %4067, %v5289_v54  }
 0x38b   : > { %v1547_v35 = vpop.xlane.xlu0 %1546 }
 0x38c   : > { %v5425_v55 = vmax.f32 %v5421_v11, %v1547_v35  ;;  %2102 = vadd.xlane.f32.xlu1 %v5102_v31  ;;  %v5439_v35 = vld [vmem:[#allocation2 + $0xe8] sm:$0xff] }
 0x38e   : > { %2880 = vst.msk [vmem:[#allocation2 + $0xf0] sm:$0xff] %vm860_vm0, %v5425_v55 }
 0x390   : > { %2375 = vperm.xlu2 %4066, %v5430_v49  }
 0x391   : > { %v1762_v22 = vpop.permute.xlu1 %1761 }
 0x392   : > { %v1871_v21 = vsub.f32 %v6145_v16, %v1762_v22  ;;  %v1872_v12 = vsub.f32 %v6146_v8, %v1762_v22  ;;  %v1601_v22 = vsub.f32 %v5114_v43, %v5119_v60  ;;  %v1867_v8 = vsub.f32 %v6148_v39, %v1752_v19 }
 0x393   : > { %v2097_v27 = vpop.xlane.xlu0 %2096 }
 0x394   : > { %v1967_v3 = vmul.f32 1.442695, %v1871_v21  ;;  %v1969_v31 = vmul.f32 1.442695, %v1872_v12  ;;  %v2191_v37 = vadd.f32 %v2097_v27, %v2063_v32  ;;  %v6149_v21 = vld [vmem:[#allocation13_spill] sm:$0xff] }
 0x395   : > { %v1868_v12 = vsub.f32 %v6149_v21, %v1752_v19  ;;  %v1651_v32 = vmul.f32 1.442695, %v1601_v22  ;;  %v1959_v27 = vmul.f32 1.442695, %v1867_v8  ;;  %v6152_v19 = vld [vmem:[#allocation19_spill] sm:$0xff] }
 0x396   : > { %4163 = vpow2.f32 %v1967_v3  ;;  %2224 = vst.msk [vmem:[#allocation3] sm:$0xff] %vm860_vm0, %v2191_v37 }
 0x397   : > { %4165 = vpow2.f32 %v1969_v31  ;;  %v1961_v3 = vmul.f32 1.442695, %v1868_v12 }
 0x398   : > { %4167 = vpow2.f32 %v1651_v32 }
 0x399   : > { %4169 = vpow2.f32 %v1959_v27 }
 0x39a   : > { %v1544_v40 = vpop.xlane.xlu2 %1543  ;;  %4171 = vpow2.f32 %v1961_v3 }
 0x39b   : > { %v5442_v49 = vmax.f32 %v5439_v35, %v1544_v40  ;;  %v6150_v40 = vld [vmem:[#allocation14_spill] sm:$0xff] }
 0x39c   : > { %v4164_v42 = vpop.eup %4163 }
 0x39d   : > { %v4166_v16 = vpop.eup %4165  ;;  %2879 = vst.msk [vmem:[#allocation2 + $0xe8] sm:$0xff] %vm860_vm0, %v5442_v49 }
 0x39e   : > { %v5450_v50 = vadd.f32 %v4166_v16, %v4164_v42  ;;  %v5457_v48 = vpop.eup %4167 }
 0x39f   : > { %6154 = vst [vmem:[#allocation16_spill] sm:$0xff] %v5457_v48 }
 0x3a2   : > { %v1757_v31 = vpop.permute.xlu2 %1756 }
 0x3a3   : > { %v1869_v37 = vsub.f32 %v6150_v40, %v1757_v31  ;;  %v1870_v45 = vsub.f32 %v6151_v30, %v1757_v31  ;;  %v5459_v40 = vpop.eup %4169 }
 0x3a4   : > { %v5461_v30 = vpop.eup %4171 }
 0x3a5   : > { %v1963_v43 = vmul.f32 1.442695, %v1869_v37  ;;  %v1965_v60 = vmul.f32 1.442695, %v1870_v45  ;;  %1776 = vperm.xlu1 %4068, %v5146_v63  }
 0x3a6   : > { %v1767_v39 = vpop.permute.xlu0 %1766 }
 0x3a7   : > { %4173 = vpow2.f32 %v1963_v43  ;;  %v1873_v21 = vsub.f32 %v6152_v19, %v1767_v39  ;;  %v1874_v22 = vsub.f32 %v6153_v2, %v1767_v39  ;;  %v1605_v43 = vsub.f32 %v5223_v38, %v5229_v41 }
 0x3a8   : > { %4175 = vpow2.f32 %v1965_v60  ;;  %v5474_v60 = vld [vmem:[#allocation2 + $0xf8] sm:$0xff] }
 0x3a9   : > { %v1971_v8 = vmul.f32 1.442695, %v1873_v21  ;;  %v1973_v12 = vmul.f32 1.442695, %v1874_v22  ;;  %v1659_v19 = vmul.f32 1.442695, %v1605_v43  ;;  %v5476_v21 = vpop.f32.mrf.mxu2 }
 0x3aa   : > { %6155 = vst [vmem:[#allocation17_spill] sm:$0xff] %v5476_v21 }
 0x3ab   : > { %4177 = vpow2.f32 %v1971_v8  ;;  %v5481_v8 = vpop.f32.mrf.mxu3 }
 0x3ac   : > { %4179 = vpow2.f32 %v1973_v12  ;;  %6156 = vst [vmem:[#allocation18_spill] sm:$0xff] %v5481_v8 }
 0x3ad   : > { %v4174_v45 = vpop.eup %4173  ;;  %2380 = vperm.xlu1 %4068, %v5457_v48   ;;  %4181 = vpow2.f32 %v1659_v19  ;;  %v2032_v19 = vld [vmem:[#allocation3 + $0x8] sm:$0xff] }
 0x3ae   : > { %v4176_v63 = vpop.eup %4175  ;;  %v2494_v32 = vpack.c.bf16 %v4174_v45, %v5459_v40 }
 0x3af   : > { %v2495_v27 = vpack.c.bf16 %v4176_v63, %v5461_v30  ;;  %v5466_v2 = vadd.f32 %v4176_v63, %v4174_v45  ;;  %v1603_v63 = vsub.f32 %v5196_v61, %v5201_v34  ;;  %v5512_v34 = vpop.permute.xlu2 %2360 }
 0x3b0   : > { %2651 = vmatmul.bf16.gmra.mxu2 %v2494_v32 }
 0x3b1   : > { %v4178_v3 = vpop.eup %4177  ;;  %2740 = vmatmul.bf16.gmra.mxu3 %v2495_v27  ;;  %v1655_v32 = vmul.f32 1.442695, %v1603_v63  ;;  %v5496_v27 = vpop.permute.xlu0 %2370 }
 0x3b2   : > { %v4180_v31 = vpop.eup %4179  ;;  %v2496_v12 = vpack.c.bf16 %v4178_v3, %v4164_v42  ;;  %6159 = vst [vmem:[#allocation14_spill] sm:$0xff] %v5496_v27  ;;  %v6165_v27 = vld [vmem:[#allocation25_spill] sm:$0xff] }
 0x3b3   : > { %v5468_v37 = vadd.f32 %v4180_v31, %v4178_v3  ;;  %v5487_v38 = vpop.f32.mrf.mxu3  ;;  %v5489_v45 = vpop.eup %4181  ;;  %4183 = vpow2.f32 %v1655_v32 }
 0x3b4   : > { %2117 = vadd.xlane.f32.xlu0 %v5198_v10  ;;  %v2497_v10 = vpack.c.bf16 %v4180_v31, %v4166_v16  ;;  %6157 = vst [vmem:[#allocation12_spill] sm:$0xff] %v5487_v38 }
 0x3b9   : > { %2105 = vadd.xlane.f32.xlu2 %v5151_v7  ;;  %v5485_v7 = vpop.f32.mrf.mxu2  ;;  %v5503_v3 = vpop.eup %4183 }
 0x3ba   : > { %6161 = vst [vmem:[#allocation19_spill] sm:$0xff] %v5503_v3  ;;  %v5507_v43 = vpop.permute.xlu0 %1781 }
 0x3bb   : > { %v5498_v16 = vpop.f32.mrf.mxu3 }
 0x3bc   : > { %v1550_v39 = vpop.xlane.xlu1 %1549  ;;  %6160 = vst [vmem:[#allocation15_spill] sm:$0xff] %v5498_v16 }
 0x3bd   : > { %v5479_v22 = vmax.f32 %v5474_v60, %v1550_v39  ;;  %v2035_v39 = vld [vmem:[#allocation3 + $0x20] sm:$0xff] }
 0x3bf   : > { %2881 = vst.msk [vmem:[#allocation2 + $0xf8] sm:$0xff] %vm860_vm0, %v5479_v22 }
 0x3c0   : > { %2656 = vmatmul.bf16.gmra.mxu2 %v2496_v12  ;;  %v6164_v12 = vld [vmem:[#allocation27_spill] sm:$0xff] }
 0x3c1   : > { %2745 = vmatmul.bf16.gmra.mxu3 %v2497_v10  ;;  %v5494_v42 = vpop.f32.mrf.mxu2  ;;  %v2067_v10 = vmul.f32 %v6164_v12, %v2035_v39 }
 0x3c2   : > { %6158 = vst [vmem:[#allocation13_spill] sm:$0xff] %v5494_v42 }
 0x3c3   : > { %v5510_v61 = vpop.f32.mrf.mxu3 }
 0x3c4   : > { %6163 = vst [vmem:[#allocation75_spill] sm:$0xff] %v5510_v61  ;;  %v1604_v61 = vsub.f32 %v5187_v15, %v5190_v14 }
 0x3c6   : > { %v1657_v21 = vmul.f32 1.442695, %v1604_v61  ;;  %v2461_v61 = vmul.f32 0.0, %v5416_v47 }
 0x3c8   : > { %2400 = vperm.xlu0 %4067, %v5489_v45   ;;  %4185 = vpow2.f32 %v1657_v21  ;;  %v6170_v21 = vld [vmem:[#allocation26_spill] sm:$0xff] }
 0x3c9   : > { %v5505_v31 = vpop.f32.mrf.mxu2 }
 0x3ca   : > { %6162 = vst [vmem:[#allocation20_spill] sm:$0xff] %v5505_v31 }
 0x3cb   : > { %v5518_v31 = vpop.f32.mrf.mxu3 }
 0x3cc   : > { %6167 = vst [vmem:[#allocation25_spill] sm:$0xff] %v5518_v31 }
 0x3d0   : > { %1811 = vperm.xlu0 %4067, %v5382_v56  }
 0x3d1   : > { %1786 = vperm.xlu2 %4066, %v5190_v14   ;;  %v5516_v16 = vpop.f32.mrf.mxu2 }
 0x3d2   : > { %6166 = vst [vmem:[#allocation27_spill] sm:$0xff] %v5516_v16  ;;  %v2460_v16 = vmul.f32 0.0, %v5419_v53 }
 0x3d4   : > { %v5533_v53 = vpop.permute.xlu1 %2365 }
 0x3d7   : > { %2111 = vadd.xlane.f32.xlu1 %v5185_v51  ;;  %v2064_v51 = vmul.f32 %v6165_v27, %v2032_v19  ;;  %v6169_v27 = vld [vmem:[#allocation21_spill] sm:$0xff] }
 0x3d9   : > { %2390 = vperm.xlu2 %4066, %v5503_v3  }
 0x3e1   : > { %v2109_v63 = vpop.xlane.xlu0 %2108 }
 0x3e2   : > { %v2195_v32 = vadd.f32 %v2109_v63, %v2067_v10  ;;  %v6168_v10 = vld [vmem:[#allocation22_spill] sm:$0xff] }
 0x3e3   : > { %v2100_v42 = vpop.xlane.xlu2 %2099 }
 0x3e4   : > { %2228 = vst.msk [vmem:[#allocation3 + $0x20] sm:$0xff] %vm860_vm0, %v2195_v32  ;;  %v2192_v8 = vadd.f32 %v2100_v42, %v2064_v51 }
 0x3e6   : > { %2225 = vst.msk [vmem:[#allocation3 + $0x8] sm:$0xff] %vm860_vm0, %v2192_v8  ;;  %v5530_v8 = vpop.eup %4185 }
 0x3ea   : > { %v2647_v3 = vpop.f32.mrf.mxu2 }
 0x3eb   : > { %v1772_v39 = vpop.permute.xlu2 %1771  ;;  %v2736_v12 = vpop.f32.mrf.mxu3 }
 0x3ec   : > { %v1875_v63 = vsub.f32 %v6168_v10, %v1772_v39  ;;  %v1876_v19 = vsub.f32 %v6169_v27, %v1772_v39  ;;  %v2737_v48 = vadd.f32 %v2736_v12, %v2647_v3 }
 0x3ee   : > { %v1975_v31 = vmul.f32 1.442695, %v1875_v63  ;;  %v1977_v38 = vmul.f32 1.442695, %v1876_v19  ;;  %v5527_v42 = vadd.f32 %v2737_v48, %v2460_v16  ;;  %v1608_v16 = vsub.f32 %v5323_v20, %v5328_v1  ;;  %v6171_v19 = vld [vmem:[#allocation23_spill] sm:$0xff] }
 0x3f0   : > { %4187 = vpow2.f32 %v1975_v31  ;;  %1791 = vperm.xlu1 %4068, %v5229_v41   ;;  %v2033_v41 = vld [vmem:[#allocation3 + $0x10] sm:$0xff]  ;;  %v1665_v12 = vmul.f32 1.442695, %v1608_v16 }
 0x3f1   : > { %4189 = vpow2.f32 %v1977_v38  ;;  %v2065_v38 = vmul.f32 %v6170_v21, %v2033_v41 }
 0x3f2   : > { %v2649_v15 = vpop.f32.mrf.mxu2  ;;  %4191 = vpow2.f32 %v1665_v12 }
 0x3f3   : > { %v2738_v14 = vpop.f32.mrf.mxu3 }
 0x3f4   : > { %v2739_v32 = vadd.f32 %v2738_v14, %v2649_v15  ;;  %v5551_v63 = vpop.permute.xlu0 %2385  ;;  %v6172_v14 = vld [vmem:[#allocation24_spill] sm:$0xff] }
 0x3f6   : > { %v4188_v51 = vpop.eup %4187  ;;  %v5535_v3 = vadd.f32 %v2739_v32, %v2461_v61 }
 0x3f7   : > { %v4190_v39 = vpop.eup %4189 }
 0x3f8   : > { %2395 = vperm.xlu1 %4068, %v5530_v8   ;;  %v5538_v48 = vadd.f32 %v4190_v39, %v4188_v51  ;;  %v5546_v10 = vpop.eup %4191 }
 0x3fa   : > { %2126 = vadd.xlane.f32.xlu0 %v5282_v36  ;;  %v1606_v36 = vsub.f32 %v5270_v25, %v5289_v54  ;;  %v2119_v54 = vadd.f32 %v5313_v29, %v5311_v57  ;;  %v2034_v29 = vld [vmem:[#allocation3 + $0x18] sm:$0xff] }
 0x3fc   : > { %v1661_v20 = vmul.f32 1.442695, %v1606_v36  ;;  %v5557_v41 = vpop.permute.xlu0 %1796 }
 0x3fe   : > { %4193 = vpow2.f32 %v1661_v20 }
 0x3ff   : > { %v2103_v47 = vpop.xlane.xlu1 %2102 }
 0x400   : > { %v2193_v31 = vadd.f32 %v2103_v47, %v2065_v38  ;;  %v2038_v47 = vld [vmem:[#allocation3 + $0x38] sm:$0xff] }
 0x401   : > { %v2070_v20 = vmul.f32 %v5092_v33, %v2038_v47  ;;  %v1607_v33 = vsub.f32 %v5258_v46, %v5264_v13  ;;  %v2462_v47 = vmul.f32 0.0, %v5512_v34 }
 0x402   : > { %2226 = vst.msk [vmem:[#allocation3 + $0x10] sm:$0xff] %vm860_vm0, %v2193_v31  ;;  %2114 = vadd.xlane.f32.xlu2 %v5221_v6  ;;  %v5564_v31 = vpop.permute.xlu2 %2375 }
 0x404   : > { %v5561_v25 = vpop.eup %4193 }
 0x40e   : > { %2415 = vperm.xlu0 %4067, %v5546_v10  }
 0x416   : > { %1826 = vperm.xlu0 %4067, %v5442_v49  }
 0x417   : > { %v1777_v27 = vpop.permute.xlu1 %1776 }
 0x418   : > { %v1877_v15 = vsub.f32 %v6171_v19, %v1777_v27  ;;  %v1878_v61 = vsub.f32 %v6172_v14, %v1777_v27  ;;  %v6173_v19 = vld [vmem:[#allocation28_spill] sm:$0xff] }
 0x41a   : > { %v1979_v6 = vmul.f32 1.442695, %v1877_v15  ;;  %v1981_v32 = vmul.f32 1.442695, %v1878_v61  ;;  %1801 = vperm.xlu2 %4066, %v5264_v13   ;;  %v2066_v15 = vmul.f32 %v6173_v19, %v2034_v29 }
 0x41c   : > { %4195 = vpow2.f32 %v1979_v6 }
 0x41d   : > { %4197 = vpow2.f32 %v1981_v32 }
 0x422   : > { %v4196_v21 = vpop.eup %4195  ;;  %2405 = vperm.xlu2 %4066, %v5561_v25   ;;  %2120 = vadd.xlane.f32.xlu1 %v2119_v54 }
 0x423   : > { %v4198_v38 = vpop.eup %4197  ;;  %v2498_v16 = vpack.c.bf16 %v4196_v21, %v4188_v51  ;;  %v1879_v51 = vsub.f32 %v5048_v23, %v5507_v43 }
 0x424   : > { %v2499_v12 = vpack.c.bf16 %v4198_v38, %v4190_v39  ;;  %v5566_v36 = vadd.f32 %v4198_v38, %v4196_v21  ;;  %v6174_v39 = vld [vmem:[#allocation30_spill] sm:$0xff] }
 0x425   : > { %2661 = vmatmul.bf16.gmra.mxu2 %v2498_v16  ;;  %v1880_v6 = vsub.f32 %v6174_v39, %v5507_v43  ;;  %v1983_v32 = vmul.f32 1.442695, %v1879_v51  ;;  %v1663_v43 = vmul.f32 1.442695, %v1607_v33 }
 0x426   : > { %2750 = vmatmul.bf16.gmra.mxu3 %v2499_v12 }
 0x427   : > { %v2118_v27 = vpop.xlane.xlu0 %2117  ;;  %v1985_v21 = vmul.f32 1.442695, %v1880_v6  ;;  %4199 = vpow2.f32 %v1983_v32  ;;  %v5595_v32 = vpop.permute.xlu1 %2380 }
 0x428   : > { %v2198_v57 = vadd.f32 %v2118_v27, %v2070_v20  ;;  %v6175_v20 = vld [vmem:[#allocation31_spill] sm:$0xff] }
 0x429   : > { %4201 = vpow2.f32 %v1985_v21 }
 0x42a   : > { %2231 = vst.msk [vmem:[#allocation3 + $0x38] sm:$0xff] %vm860_vm0, %v2198_v57  ;;  %v6176_v57 = vld [vmem:[#allocation32_spill] sm:$0xff] }
 0x42c   : > { %v2106_v14 = vpop.xlane.xlu2 %2105 }
 0x42d   : > { %v2194_v61 = vadd.f32 %v2106_v14, %v2066_v15  ;;  %v5584_v13 = vpop.eup %4199 }
 0x42f   : > { %2227 = vst.msk [vmem:[#allocation3 + $0x18] sm:$0xff] %vm860_vm0, %v2194_v61  ;;  %v5586_v46 = vpop.eup %4201 }
 0x433   : > { %v2652_v54 = vpop.f32.mrf.mxu2 }
 0x434   : > { %v2741_v38 = vpop.f32.mrf.mxu3  ;;  %v1787_v16 = vpop.permute.xlu2 %1786 }
 0x435   : > { %v2742_v12 = vadd.f32 %v2741_v38, %v2652_v54  ;;  %v1881_v27 = vsub.f32 %v6175_v20, %v1787_v16  ;;  %v1882_v23 = vsub.f32 %v6176_v57, %v1787_v16  ;;  %v2036_v54 = vld [vmem:[#allocation3 + $0x28] sm:$0xff] }
 0x437   : > { %v1987_v29 = vmul.f32 1.442695, %v1881_v27  ;;  %v1989_v19 = vmul.f32 1.442695, %v1882_v23  ;;  %v5581_v15 = vadd.f32 %v2742_v12, %v2462_v47  ;;  %v1885_v12 = vsub.f32 %v5126_v26, %v5557_v41  ;;  %v6177_v23 = vld [vmem:[#allocation34_spill] sm:$0xff]  ;;  %v2041_v26 = vld [vmem:[#allocation3 + $0x50] sm:$0xff] }
 0x439   : > { %4203 = vpow2.f32 %v1987_v29 }
 0x43a   : > { %4205 = vpow2.f32 %v1989_v19  ;;  %v5606_v47 = vpop.permute.xlu0 %2400  ;;  %v6178_v19 = vld [vmem:[#allocation33_spill] sm:$0xff] }
 0x43b   : > { %1806 = vperm.xlu1 %4068, %v5328_v1   ;;  %4207 = vpow2.f32 %v1663_v43  ;;  %v1611_v1 = vsub.f32 %v5401_v4, %v5405_v18  ;;  %v1609_v4 = vsub.f32 %v5375_v0, %v5382_v56 }
 0x43d   : > { %v1671_v33 = vmul.f32 1.442695, %v1611_v1  ;;  %v1667_v20 = vmul.f32 1.442695, %v1609_v4 }
 0x43f   : > { %v4204_v34 = vpop.eup %4203  ;;  %4209 = vpow2.f32 %v1671_v33 }
 0x440   : > { %v4206_v14 = vpop.eup %4205  ;;  %2135 = vadd.xlane.f32.xlu0 %v5386_v9  ;;  %v2500_v61 = vpack.c.bf16 %v4204_v34, %v5584_v13  ;;  %v2068_v9 = vmul.f32 %v5104_v58, %v2036_v54  ;;  %v1886_v58 = vsub.f32 %v5128_v44, %v5557_v41  ;;  %4211 = vpow2.f32 %v1667_v20  ;;  %v5627_v54 = vpop.permute.xlu2 %2390  ;;  %v6180_v20 = vld [vmem:[#allocation36_spill] sm:$0xff] }
 0x441   : > { %v2501_v51 = vpack.c.bf16 %v4206_v14, %v5586_v46  ;;  %v5591_v39 = vadd.f32 %v4206_v14, %v4204_v34  ;;  %v5593_v6 = vpop.eup %4207 }
 0x442   : > { %2666 = vmatmul.bf16.gmra.mxu2 %v2500_v61  ;;  %v1997_v27 = vmul.f32 1.442695, %v1886_v58  ;;  %v5617_v34 = vpop.permute.xlu0 %1811  ;;  %v6179_v61 = vld [vmem:[#allocation40_spill] sm:$0xff]  ;;  %v2037_v58 = vld [vmem:[#allocation3 + $0x30] sm:$0xff] }
 0x443   : > { %2755 = vmatmul.bf16.gmra.mxu3 %v2501_v51  ;;  %2410 = vperm.xlu1 %4068, %v5593_v6   ;;  %v2073_v51 = vmul.f32 %v6179_v61, %v2041_v26 }
 0x445   : > { %v5603_v16 = vpop.eup %4209 }
 0x446   : > { %v5619_v44 = vpop.eup %4211 }
 0x44a   : > { %v2112_v21 = vpop.xlane.xlu1 %2111 }
 0x44b   : > { %v2196_v38 = vadd.f32 %v2112_v21, %v2068_v9  ;;  %2123 = vadd.xlane.f32.xlu2 %v5317_v17  ;;  %v1995_v17 = vmul.f32 1.442695, %v1885_v12 }
 0x44d   : > { %2229 = vst.msk [vmem:[#allocation3 + $0x28] sm:$0xff] %vm860_vm0, %v2196_v38  ;;  %4213 = vpow2.f32 %v1995_v17  ;;  %v2069_v17 = vmul.f32 %v6180_v20, %v2037_v58 }
 0x44e   : > { %4215 = vpow2.f32 %v1997_v27 }
 0x453   : > { %v5621_v41 = vpop.eup %4213 }
 0x454   : > { %2430 = vperm.xlu0 %4067, %v5603_v16   ;;  %v5624_v14 = vpop.eup %4215 }
 0x462   : > { %v1792_v57 = vpop.permute.xlu1 %1791 }
 0x463   : > { %v1883_v29 = vsub.f32 %v6177_v23, %v1792_v57  ;;  %v1884_v43 = vsub.f32 %v6178_v19, %v1792_v57  ;;  %1816 = vperm.xlu2 %4066, %v5364_v5   ;;  %v6181_v23 = vld [vmem:[#allocation38_spill] sm:$0xff]  ;;  %v6182_v19 = vld [vmem:[#allocation37_spill] sm:$0xff] }
 0x465   : > { %v1991_v56 = vmul.f32 1.442695, %v1883_v29  ;;  %v1993_v0 = vmul.f32 1.442695, %v1884_v43 }
 0x467   : > { %4217 = vpow2.f32 %v1991_v56  ;;  %v1610_v56 = vsub.f32 %v5354_v52, %v5364_v5  ;;  %v2887_v5 = vld [vmem:[#allocation3 + $0x10] sm:$0xff] }
 0x468   : > { %4219 = vpow2.f32 %v1993_v0 }
 0x469   : > { %v1669_v61 = vmul.f32 1.442695, %v1610_v56 }
 0x46a   : > { %v5649_v52 = vpop.permute.xlu1 %2395 }
 0x46b   : > { %2420 = vperm.xlu2 %4066, %v5619_v44  }
 0x46d   : > { %v4218_v1 = vpop.eup %4217  ;;  %v2127_v33 = vpop.xlane.xlu0 %2126  ;;  %2129 = vadd.xlane.f32.xlu1 %v5320_v28 }
 0x46e   : > { %v4220_v9 = vpop.eup %4219  ;;  %v2201_v21 = vadd.f32 %v2127_v33, %v2073_v51  ;;  %v2502_v38 = vpack.c.bf16 %v5621_v41, %v4218_v1  ;;  %v1614_v51 = vsub.f32 %v5474_v60, %v5479_v22  ;;  %v2039_v60 = vld [vmem:[#allocation3 + $0x40] sm:$0xff] }
 0x46f   : > { %v2503_v4 = vpack.c.bf16 %v5624_v14, %v4220_v9  ;;  %v5632_v12 = vadd.f32 %v4220_v9, %v4218_v1 }
 0x470   : > { %2234 = vst.msk [vmem:[#allocation3 + $0x50] sm:$0xff] %vm860_vm0, %v2201_v21  ;;  %2671 = vmatmul.bf16.gmra.mxu2 %v2502_v38  ;;  %v1677_v1 = vmul.f32 1.442695, %v1614_v51  ;;  %v6186_v51 = vld [vmem:[#allocation50_spill] sm:$0xff] }
 0x471   : > { %2760 = vmatmul.bf16.gmra.mxu3 %v2503_v4 }
 0x475   : > { %v2115_v27 = vpop.xlane.xlu2 %2114 }
 0x476   : > { %v2197_v57 = vadd.f32 %v2115_v27, %v2069_v17 }
 0x478   : > { %2230 = vst.msk [vmem:[#allocation3 + $0x30] sm:$0xff] %vm860_vm0, %v2197_v57  ;;  %v1612_v57 = vsub.f32 %v5439_v35, %v5442_v49 }
 0x47d   : > { %v1802_v28 = vpop.permute.xlu2 %1801 }
 0x47e   : > { %v1887_v29 = vsub.f32 %v6181_v23, %v1802_v28  ;;  %v1888_v43 = vsub.f32 %v6182_v19, %v1802_v28  ;;  %2144 = vadd.xlane.f32.xlu0 %v5450_v50  ;;  %v1673_v28 = vmul.f32 1.442695, %v1612_v57  ;;  %v2040_v57 = vld [vmem:[#allocation3 + $0x48] sm:$0xff] }
 0x480   : > { %v1999_v0 = vmul.f32 1.442695, %v1887_v29  ;;  %v2001_v26 = vmul.f32 1.442695, %v1888_v43  ;;  %v5658_v27 = vpop.permute.xlu0 %2415  ;;  %v6184_v29 = vld [vmem:[#allocation42_spill] sm:$0xff]  ;;  %v6185_v43 = vld [vmem:[#allocation41_spill] sm:$0xff] }
 0x482   : > { %4221 = vpow2.f32 %v1999_v0  ;;  %v2044_v0 = vld [vmem:[#allocation3 + $0x68] sm:$0xff] }
 0x483   : > { %4223 = vpow2.f32 %v2001_v26 }
 0x484   : > { %4225 = vpow2.f32 %v1669_v61 }
 0x485   : > { %4227 = vpow2.f32 %v1677_v1  ;;  %v2076_v1 = vmul.f32 %v6186_v51, %v2044_v0 }
 0x486   : > { %1821 = vperm.xlu1 %4068, %v5405_v18   ;;  %4229 = vrcp.f32 %v2887_v5  ;;  %v6183_v18 = vld [vmem:[#allocation43_spill] sm:$0xff] }
 0x487   : > { %v2071_v4 = vmul.f32 %v6183_v18, %v2039_v60  ;;  %4231 = vpow2.f32 %v1673_v28  ;;  %v5671_v60 = vpop.permute.xlu2 %2405  ;;  %v2137_v18 = vadd.f32 %v5461_v30, %v5459_v40  ;;  %v6189_v40 = vld [vmem:[#allocation44_spill] sm:$0xff] }
 0x488   : > { %v4222_v33 = vpop.eup %4221  ;;  %v5662_v23 = vpop.permute.xlu0 %1826  ;;  %v1892_v30 = vsub.f32 %v6189_v40, %v5617_v34 }
 0x489   : > { %v4224_v9 = vpop.eup %4223 }
 0x48a   : > { %v5645_v21 = vadd.f32 %v4224_v9, %v4222_v33  ;;  %v5647_v50 = vpop.eup %4225 }
 0x48b   : > { %v5652_v38 = vpop.eup %4227 }
 0x48c   : > { %v4230_v17 = vpop.eup %4229 }
 0x48d   : > { %v5668_v5 = vpop.eup %4231 }
 0x48e   : > { %2425 = vperm.xlu1 %4068, %v5647_v50  }
 0x492   : > { %2445 = vperm.xlu0 %4067, %v5652_v38  }
 0x494   : > { %2132 = vadd.xlane.f32.xlu2 %v5398_v24 }
 0x495   : > { %v2121_v58 = vpop.xlane.xlu1 %2120 }
 0x496   : > { %v2199_v20 = vadd.f32 %v2121_v58, %v2071_v4 }
 0x498   : > { %2232 = vst.msk [vmem:[#allocation3 + $0x40] sm:$0xff] %vm860_vm0, %v2199_v20 }
 0x49a   : > { %2994 = vperm.xlu0 %4067, %v4230_v17  }
 0x4ac   : > { %1831 = vperm.xlu2 %4066, %v5425_v55  }
 0x4ad   : > { %v1807_v24 = vpop.permute.xlu1 %1806 }
 0x4ae   : > { %v1889_v19 = vsub.f32 %v6184_v29, %v1807_v24  ;;  %v1890_v56 = vsub.f32 %v6185_v43, %v1807_v24  ;;  %v6187_v24 = vld [vmem:[#allocation46_spill] sm:$0xff] }
 0x4af   : > { %v2072_v29 = vmul.f32 %v6187_v24, %v2040_v57 }
 0x4b0   : > { %v2003_v26 = vmul.f32 1.442695, %v1889_v19  ;;  %v2005_v61 = vmul.f32 1.442695, %v1890_v56  ;;  %v6188_v56 = vld [vmem:[#allocation45_spill] sm:$0xff] }
 0x4b1   : > { %v1891_v0 = vsub.f32 %v6188_v56, %v5617_v34  ;;  %v2890_v34 = vld [vmem:[#allocation3 + $0x28] sm:$0xff] }
 0x4b2   : > { %4233 = vpow2.f32 %v2003_v26  ;;  %v6192_v56 = vld [vmem:[#allocation54_spill] sm:$0xff] }
 0x4b3   : > { %4235 = vpow2.f32 %v2005_v61  ;;  %v2136_v49 = vpop.xlane.xlu0 %2135  ;;  %v6190_v61 = vld [vmem:[#allocation48_spill] sm:$0xff] }
 0x4b4   : > { %v2204_v35 = vadd.f32 %v2136_v49, %v2076_v1  ;;  %2435 = vperm.xlu2 %4066, %v5668_v5   ;;  %v6191_v1 = vld [vmem:[#allocation47_spill] sm:$0xff] }
 0x4b6   : > { %2237 = vst.msk [vmem:[#allocation3 + $0x68] sm:$0xff] %vm860_vm0, %v2204_v35 }
 0x4b8   : > { %v4234_v4 = vpop.eup %4233  ;;  %2138 = vadd.xlane.f32.xlu1 %v2137_v18 }
 0x4b9   : > { %v4236_v58 = vpop.eup %4235  ;;  %v2504_v20 = vpack.c.bf16 %v4234_v4, %v4222_v33  ;;  %v2007_v33 = vmul.f32 1.442695, %v1891_v0 }
 0x4ba   : > { %v2505_v17 = vpack.c.bf16 %v4236_v58, %v4224_v9  ;;  %v5676_v28 = vadd.f32 %v4236_v58, %v4234_v4  ;;  %v2009_v9 = vmul.f32 1.442695, %v1892_v30  ;;  %v1613_v4 = vsub.f32 %v5421_v11, %v5425_v55 }
 0x4bb   : > { %2676 = vmatmul.bf16.gmra.mxu2 %v2504_v20  ;;  %4237 = vpow2.f32 %v2007_v33 }
 0x4bc   : > { %2765 = vmatmul.bf16.gmra.mxu3 %v2505_v17  ;;  %4239 = vpow2.f32 %v2009_v9  ;;  %v1675_v58 = vmul.f32 1.442695, %v1613_v4  ;;  %v2885_v9 = vld [vmem:[#allocation3] sm:$0xff] }
 0x4be   : > { %v2124_v19 = vpop.xlane.xlu2 %2123 }
 0x4bf   : > { %v2200_v43 = vadd.f32 %v2124_v19, %v2072_v29 }
 0x4c1   : > { %2233 = vst.msk [vmem:[#allocation3 + $0x48] sm:$0xff] %vm860_vm0, %v2200_v43  ;;  %v5689_v20 = vpop.eup %4237  ;;  %v5700_v43 = vpop.permute.xlu1 %2410 }
 0x4c4   : > { %2153 = vadd.xlane.f32.xlu0 %v5566_v36  ;;  %v5691_v36 = vpop.eup %4239 }
 0x4c6   : > { %v1817_v26 = vpop.permute.xlu2 %1816  ;;  %v5706_v33 = vpop.permute.xlu0 %2430 }
 0x4c7   : > { %v1893_v51 = vsub.f32 %v6190_v61, %v1817_v26  ;;  %v1894_v49 = vsub.f32 %v6191_v1, %v1817_v26  ;;  %v2047_v26 = vld [vmem:[#allocation3 + $0x80] sm:$0xff] }
 0x4c8   : > { %v2079_v61 = vmul.f32 %v5343_v59, %v2047_v26 }
 0x4c9   : > { %v2011_v35 = vmul.f32 1.442695, %v1893_v51  ;;  %v2013_v18 = vmul.f32 1.442695, %v1894_v49  ;;  %v1897_v49 = vsub.f32 %v5286_v62, %v5662_v23 }
 0x4cb   : > { %4241 = vpow2.f32 %v2011_v35  ;;  %v2019_v4 = vmul.f32 1.442695, %v1897_v49 }
 0x4cc   : > { %4243 = vpow2.f32 %v2013_v18 }
 0x4cd   : > { %4245 = vrcp.f32 %v2890_v34 }
 0x4ce   : > { %4247 = vpow2.f32 %v1675_v58  ;;  %v5716_v62 = vpop.permute.xlu2 %2420 }
 0x4cf   : > { %4249 = vrcp.f32 %v2885_v9 }
 0x4d0   : > { %4251 = vpow2.f32 %v2019_v4 }
 0x4d1   : > { %v4242_v17 = vpop.eup %4241  ;;  %1836 = vperm.xlu1 %4068, %v5479_v22   ;;  %v2042_v22 = vld [vmem:[#allocation3 + $0x58] sm:$0xff] }
 0x4d2   : > { %v4244_v57 = vpop.eup %4243  ;;  %v2506_v24 = vpack.c.bf16 %v4242_v17, %v5689_v20  ;;  %v2074_v0 = vmul.f32 %v6192_v56, %v2042_v22 }
 0x4d3   : > { %v2507_v29 = vpack.c.bf16 %v4244_v57, %v5691_v36  ;;  %v5696_v11 = vadd.f32 %v4244_v57, %v4242_v17  ;;  %v4246_v55 = vpop.eup %4245  ;;  %v6194_v17 = vld [vmem:[#allocation53_spill] sm:$0xff] }
 0x4d4   : > { %2681 = vmatmul.bf16.gmra.mxu2 %v2506_v24  ;;  %v5698_v19 = vpop.eup %4247  ;;  %v6195_v24 = vld [vmem:[#allocation52_spill] sm:$0xff] }
 0x4d5   : > { %2770 = vmatmul.bf16.gmra.mxu3 %v2507_v29  ;;  %v4250_v35 = vpop.eup %4249 }
 0x4d6   : > { %v5718_v22 = vpop.eup %4251 }
 0x4d8   : > { %3009 = vperm.xlu0 %4067, %v4246_v55  }
 0x4d9   : > { %2440 = vperm.xlu1 %4068, %v5698_v19  }
 0x4dd   : > { %2141 = vadd.xlane.f32.xlu2 %v5466_v2  ;;  %v6193_v2 = vld [vmem:[#allocation58_spill] sm:$0xff] }
 0x4de   : > { %v1898_v18 = vsub.f32 %v6193_v2, %v5662_v23  ;;  %v6197_v2 = vld [vmem:[#allocation61_spill] sm:$0xff] }
 0x4e0   : > { %v2130_v40 = vpop.xlane.xlu1 %2129  ;;  %v2021_v58 = vmul.f32 1.442695, %v1898_v18 }
 0x4e1   : > { %v2202_v30 = vadd.f32 %v2130_v40, %v2074_v0  ;;  %v2043_v0 = vld [vmem:[#allocation3 + $0x60] sm:$0xff] }
 0x4e2   : > { %4253 = vpow2.f32 %v2021_v58  ;;  %v6198_v58 = vld [vmem:[#allocation59_spill] sm:$0xff] }
 0x4e3   : > { %2235 = vst.msk [vmem:[#allocation3 + $0x58] sm:$0xff] %vm860_vm0, %v2202_v30 }
 0x4e8   : > { %v5720_v23 = vpop.eup %4253 }
 0x4f1   : > { %v2145_v51 = vpop.xlane.xlu0 %2144 }
 0x4f2   : > { %v2207_v1 = vadd.f32 %v2145_v51, %v2079_v61  ;;  %v6196_v51 = vld [vmem:[#allocation62_spill] sm:$0xff] }
 0x4f4   : > { %2240 = vst.msk [vmem:[#allocation3 + $0x80] sm:$0xff] %vm860_vm0, %v2207_v1  ;;  %v2075_v1 = vmul.f32 %v6196_v51, %v2043_v0  ;;  %v2045_v51 = vld [vmem:[#allocation3 + $0x70] sm:$0xff] }
 0x4f5   : > { %2984 = vperm.xlu2 %4066, %v4250_v35  }
 0x4f8   : > { %v1822_v34 = vpop.permute.xlu1 %1821 }
 0x4f9   : > { %v1895_v57 = vsub.f32 %v6194_v17, %v1822_v34  ;;  %v1896_v29 = vsub.f32 %v6195_v24, %v1822_v34  ;;  %v6199_v17 = vld [vmem:[#allocation60_spill] sm:$0xff]  ;;  %v2886_v24 = vld [vmem:[#allocation3 + $0x8] sm:$0xff] }
 0x4fb   : > { %v2015_v59 = vmul.f32 1.442695, %v1895_v57  ;;  %v2017_v55 = vmul.f32 1.442695, %v1896_v29 }
 0x4fd   : > { %4255 = vpow2.f32 %v2015_v59 }
 0x4fe   : > { %4257 = vpow2.f32 %v2017_v55 }
 0x502   : > { %2162 = vadd.xlane.f32.xlu0 %v5632_v12 }
 0x503   : > { %v4256_v56 = vpop.eup %4255  ;;  %2147 = vadd.xlane.f32.xlu1 %v5468_v37  ;;  %v2893_v37 = vld [vmem:[#allocation3 + $0x40] sm:$0xff] }
 0x504   : > { %v4258_v40 = vpop.eup %4257  ;;  %v5724_v30 = vpop.permute.xlu0 %2445  ;;  %v2508_v9 = vpack.c.bf16 %v5718_v22, %v4256_v56  ;;  %4259 = vrcp.f32 %v2893_v37  ;;  %v2888_v37 = vld [vmem:[#allocation3 + $0x18] sm:$0xff] }
 0x505   : > { %v2509_v26 = vpack.c.bf16 %v5720_v23, %v4258_v40  ;;  %v5728_v61 = vadd.f32 %v4258_v40, %v4256_v56  ;;  %4261 = vrcp.f32 %v2886_v24  ;;  %v6202_v24 = vld [vmem:[#allocation69_spill] sm:$0xff] }
 0x506   : > { %2686 = vmatmul.bf16.gmra.mxu2 %v2508_v9 }
 0x507   : > { %2775 = vmatmul.bf16.gmra.mxu3 %v2509_v26  ;;  %v2133_v49 = vpop.xlane.xlu2 %2132  ;;  %v5740_v26 = vpop.permute.xlu1 %2425 }
 0x508   : > { %v2203_v35 = vadd.f32 %v2133_v49, %v2075_v1  ;;  %v6200_v1 = vld [vmem:[#allocation70_spill] sm:$0xff] }
 0x509   : > { %v2077_v49 = vmul.f32 %v6200_v1, %v2045_v51  ;;  %v6204_v51 = vld [vmem:[#allocation71_spill] sm:$0xff]  ;;  %v6205_v1 = vld [vmem:[#allocation72_spill] sm:$0xff] }
 0x50a   : > { %2236 = vst.msk [vmem:[#allocation3 + $0x60] sm:$0xff] %vm860_vm0, %v2203_v35  ;;  %v4260_v55 = vpop.eup %4259 }
 0x50b   : > { %v4262_v56 = vpop.eup %4261 }
 0x50c   : > { %v2995_v12 = vpop.permute.xlu0 %2994 }
 0x50d   : > { %v5733_v18 = vmul.f32 %v2995_v12, %v6197_v2  ;;  %v2050_v2 = vld [vmem:[#allocation3 + $0x98] sm:$0xff] }
 0x50f   : > { %v1832_v4 = vpop.permute.xlu2 %1831 }
 0x510   : > { %v1899_v34 = vsub.f32 %v6198_v58, %v1832_v4  ;;  %v1900_v57 = vsub.f32 %v6199_v17, %v1832_v4  ;;  %v6201_v58 = vld [vmem:[#allocation10_spill] sm:$0xff] }
 0x512   : > { %v2023_v29 = vmul.f32 1.442695, %v1899_v34  ;;  %v2025_v59 = vmul.f32 1.442695, %v1900_v57  ;;  %v2082_v34 = vmul.f32 %v6201_v58, %v2050_v2 }
 0x514   : > { %4263 = vpow2.f32 %v2023_v29 }
 0x515   : > { %4265 = vpow2.f32 %v2025_v59  ;;  %v6203_v59 = vld [vmem:[#allocation68_spill] sm:$0xff] }
 0x516   : > { %3024 = vperm.xlu0 %4067, %v4260_v55   ;;  %4267 = vrcp.f32 %v2888_v37  ;;  %v6206_v37 = vld [vmem:[#allocation55_spill] sm:$0xff] }
 0x517   : > { %v2453_v2 = vmul.f32 0.0, %v6206_v37  ;;  %v2048_v37 = vld [vmem:[#allocation3 + $0x88] sm:$0xff] }
 0x51a   : > { %v4264_v0 = vpop.eup %4263 }
 0x51b   : > { %v4266_v40 = vpop.eup %4265 }
 0x51c   : > { %2989 = vperm.xlu1 %4068, %v4262_v56   ;;  %v5737_v9 = vadd.f32 %v4266_v40, %v4264_v0  ;;  %v4268_v4 = vpop.eup %4267  ;;  %v2155_v56 = vadd.f32 %v5586_v46, %v5584_v13 }
 0x51e   : > { %2150 = vadd.xlane.f32.xlu2 %v5538_v48 }
 0x52b   : > { %v2139_v35 = vpop.xlane.xlu1 %2138 }
 0x52c   : > { %v2205_v12 = vadd.f32 %v2139_v35, %v2077_v49  ;;  %v2719_v49 = vadd.f32 %v6205_v1, %v6204_v51 }
 0x52e   : > { %2238 = vst.msk [vmem:[#allocation3 + $0x70] sm:$0xff] %vm860_vm0, %v2205_v12 }
 0x536   : > { %2999 = vperm.xlu2 %4066, %v4268_v4   ;;  %v5754_v4 = vpop.permute.xlu2 %2435 }
 0x537   : > { %v2154_v17 = vpop.xlane.xlu0 %2153 }
 0x538   : > { %v2210_v57 = vadd.f32 %v2154_v17, %v2082_v34  ;;  %v2896_v34 = vld [vmem:[#allocation3 + $0x58] sm:$0xff] }
 0x53a   : > { %2243 = vst.msk [vmem:[#allocation3 + $0x98] sm:$0xff] %vm860_vm0, %v2210_v57  ;;  %v2046_v57 = vld [vmem:[#allocation3 + $0x78] sm:$0xff] }
 0x540   : > { %2171 = vadd.xlane.f32.xlu0 %v5676_v28  ;;  %v2791_v28 = vadd.f32 %v2719_v49, %v2453_v2  ;;  %v2889_v49 = vld [vmem:[#allocation3 + $0x20] sm:$0xff] }
 0x543   : > { %v1837_v48 = vpop.permute.xlu1 %1836 }
 0x544   : > { %v1901_v29 = vsub.f32 %v6202_v24, %v1837_v48  ;;  %v1902_v55 = vsub.f32 %v6203_v59, %v1837_v48  ;;  %v6207_v48 = vld [vmem:[#allocation9_spill] sm:$0xff] }
 0x545   : > { %v2078_v24 = vmul.f32 %v6207_v48, %v2046_v57 }
 0x546   : > { %v2027_v35 = vmul.f32 1.442695, %v1901_v29  ;;  %v2029_v12 = vmul.f32 1.442695, %v1902_v55  ;;  %2156 = vadd.xlane.f32.xlu1 %v2155_v56 }
 0x548   : > { %4269 = vpow2.f32 %v2027_v35 }
 0x549   : > { %4271 = vpow2.f32 %v2029_v12  ;;  %v2891_v12 = vld [vmem:[#allocation3 + $0x30] sm:$0xff] }
 0x54a   : > { %v3010_v58 = vpop.permute.xlu0 %3009  ;;  %4273 = vrcp.f32 %v2896_v34 }
 0x54b   : > { %v5756_v17 = vmul.f32 %v3010_v58, %v2791_v28  ;;  %4275 = vrcp.f32 %v2889_v49  ;;  %v6208_v58 = vld [vmem:[#allocation73_spill] sm:$0xff]  ;;  %v2899_v49 = vld [vmem:[#allocation3 + $0x70] sm:$0xff] }
 0x54c   : > { %4277 = vrcp.f32 %v2891_v12  ;;  %v2080_v34 = vmul.f32 %v6208_v58, %v2048_v37  ;;  %v2049_v58 = vld [vmem:[#allocation3 + $0x90] sm:$0xff] }
 0x54d   : > { %4279 = vrcp.f32 %v2899_v49 }
 0x54e   : > { %v4270_v13 = vpop.eup %4269 }
 0x54f   : > { %v4272_v46 = vpop.eup %4271  ;;  %v2510_v29 = vpack.c.bf16 %v4270_v13, %v4264_v0  ;;  %v5763_v0 = vpop.permute.xlu1 %2440 }
 0x550   : > { %v2142_v59 = vpop.xlane.xlu2 %2141  ;;  %v2511_v55 = vpack.c.bf16 %v4272_v46, %v4266_v40  ;;  %v5759_v56 = vadd.f32 %v4272_v46, %v4270_v13  ;;  %v4274_v1 = vpop.eup %4273  ;;  %v2053_v40 = vld [vmem:[#allocation3 + $0xb0] sm:$0xff] }
 0x551   : > { %v2206_v51 = vadd.f32 %v2142_v59, %v2078_v24  ;;  %2691 = vmatmul.bf16.gmra.mxu2 %v2510_v29  ;;  %v4276_v35 = vpop.eup %4275  ;;  %v2085_v2 = vmul.f32 %v5489_v45, %v2053_v40  ;;  %v6210_v45 = vld [vmem:[#allocation11_spill] sm:$0xff] }
 0x552   : > { %2780 = vmatmul.bf16.gmra.mxu3 %v2511_v55  ;;  %v4278_v57 = vpop.eup %4277  ;;  %v2456_v29 = vmul.f32 0.0, %v6210_v45  ;;  %v2164_v55 = vadd.f32 %v5624_v14, %v5621_v41  ;;  %v3849_v14 = vld [vmem:[%s5790_s14] sm:$0xff]  }
 0x553   : > { %2239 = vst.msk [vmem:[#allocation3 + $0x78] sm:$0xff] %vm860_vm0, %v2206_v51 }
 0x554   : > { %3039 = vperm.xlu0 %4067, %v4274_v1  }
 0x558   : > { %v2985_v51 = vpop.permute.xlu2 %2984 }
 0x55f   : > { %2159 = vadd.xlane.f32.xlu2 %v5591_v39  ;;  %3004 = vperm.xlu1 %4068, %v4276_v35   ;;  %v6209_v39 = vld [vmem:[#allocation12_spill] sm:$0xff]  ;;  %v6212_v35 = vld [vmem:[#allocation57_spill] sm:$0xff] }
 0x560   : > { %v2727_v24 = vadd.f32 %v6209_v39, %v5485_v7  ;;  %v6213_v7 = vld [vmem:[#allocation35_spill] sm:$0xff] }
 0x561   : > { %v2449_v37 = vmul.f32 0.0, %v6213_v7 }
 0x562   : > { %v2794_v59 = vadd.f32 %v2727_v24, %v2456_v29  ;;  %v6215_v24 = vld [vmem:[#allocation16_spill] sm:$0xff]  ;;  %v4280_v29 = vpop.eup %4279 }
 0x563   : > { %v2081_v45 = vmul.f32 %v6215_v24, %v2049_v58 }
 0x575   : > { %v2163_v28 = vpop.xlane.xlu0 %2162 }
 0x576   : > { %v2213_v13 = vadd.f32 %v2163_v28, %v2085_v2  ;;  %v2148_v46 = vpop.xlane.xlu1 %2147  ;;  %v6214_v2 = vld [vmem:[#allocation49_spill] sm:$0xff] }
 0x577   : > { %v2208_v48 = vadd.f32 %v2148_v46, %v2080_v34  ;;  %3014 = vperm.xlu2 %4066, %v4278_v57   ;;  %v3142_v41 = vmul.f32 %v2985_v51, %v6214_v2  ;;  %v5794_v34 = vstv %s2949_s10 }
 0x578   : > { %2246 = vst.msk [vmem:[#allocation3 + $0xb0] sm:$0xff] %vm860_vm0, %v2213_v13  ;;  %v3850_v13 = vunpack.c.l.bf16 %v3849_v14 }
 0x579   : > { %2241 = vst.msk [vmem:[#allocation3 + $0x88] sm:$0xff] %vm860_vm0, %v2208_v48  ;;  %v3175_v46 = vmul.f32 %v5794_v34, %v3142_v41  ;;  %v3851_v48 = vunpack.c.h.bf16 %v3849_v14  ;;  %v3992_v41 = vld [vmem:[%s5790_s14 + $0x8] sm:$0xff]  }
 0x57e   : > { %2180 = vadd.xlane.f32.xlu0 %v5728_v61  ;;  %v6211_v61 = vld [vmem:[#allocation56_spill] sm:$0xff] }
 0x57f   : > { %v2709_v12 = vadd.f32 %v6212_v35, %v6211_v61  ;;  %v6216_v61 = vld [vmem:[#allocation63_spill] sm:$0xff]  ;;  %v6217_v35 = vld [vmem:[#allocation64_spill] sm:$0xff] }
 0x581   : > { %v2787_v28 = vadd.f32 %v2709_v12, %v2449_v37  ;;  %v2714_v12 = vadd.f32 %v6217_v35, %v6216_v61  ;;  %v6218_v37 = vld [vmem:[#allocation39_spill] sm:$0xff]  ;;  %v2051_v61 = vld [vmem:[#allocation3 + $0xa0] sm:$0xff] }
 0x582   : > { %v2451_v2 = vmul.f32 0.0, %v6218_v37 }
 0x584   : > { %v2789_v14 = vadd.f32 %v2714_v12, %v2451_v2  ;;  %v6219_v12 = vld [vmem:[#allocation19_spill] sm:$0xff] }
 0x585   : > { %v6220_v2 = vld [vmem:[#allocation27_spill] sm:$0xff] }
 0x588   : > { %v3025_v1 = vpop.permute.xlu0 %3024 }
 0x589   : > { %v5782_v40 = vmul.f32 %v3025_v1, %v2794_v59  ;;  %2165 = vadd.xlane.f32.xlu1 %v2164_v55  ;;  %v3271_v1 = vadd.f32 %v3850_v13, %v3175_v46  ;;  %v3177_v13 = vmul.f32 %v5794_v34, %v5733_v18  ;;  %v3855_v46 = vunpack.c.h.bf16 %v3992_v41 }
 0x58e   : > { %v2990_v57 = vpop.permute.xlu1 %2989 }
 0x58f   : > { %v3143_v39 = vmul.f32 %v2990_v57, %v2787_v28  ;;  %v2892_v28 = vld [vmem:[#allocation3 + $0x38] sm:$0xff]  ;;  %v3854_v57 = vunpack.c.l.bf16 %v3992_v41  ;;  %v6221_v41 = vld [vmem:[#allocation25_spill] sm:$0xff] }
 0x590   : > { %4281 = vrcp.f32 %v2892_v28 }
 0x591   : > { %v3176_v59 = vmul.f32 %v5794_v34, %v3143_v39  ;;  %v2151_v55 = vpop.xlane.xlu2 %2150  ;;  %v3273_v24 = vadd.f32 %v3854_v57, %v3177_v13  ;;  %v2902_v13 = vld [vmem:[#allocation3 + $0x88] sm:$0xff] }
 0x592   : > { %v2209_v51 = vadd.f32 %v2151_v55, %v2081_v45  ;;  %3054 = vperm.xlu0 %4067, %v4280_v29   ;;  %v2894_v55 = vld [vmem:[#allocation3 + $0x48] sm:$0xff] }
 0x593   : > { %v3272_v49 = vadd.f32 %v3851_v48, %v3176_v59  ;;  %4283 = vrcp.f32 %v2894_v55 }
 0x594   : > { %2242 = vst.msk [vmem:[#allocation3 + $0x90] sm:$0xff] %vm860_vm0, %v2209_v51  ;;  %v2056_v51 = vld [vmem:[#allocation3 + $0xc8] sm:$0xff]  ;;  %4285 = vrcp.f32 %v2902_v13 }
 0x595   : > { %v3915_v7 = vpack.c.bf16 %v3272_v49, %v3271_v1  ;;  %v2088_v1 = vmul.f32 %v5546_v10, %v2056_v51  ;;  %v6222_v10 = vld [vmem:[#allocation74_spill] sm:$0xff]  ;;  %v3180_v51 = vmul.f32 %v5794_v34, %v5756_v17 }
 0x596   : > { %v4282_v59 = vpop.eup %4281  ;;  %v2459_v28 = vmul.f32 0.0, %v6222_v10 }
 0x597   : > { %3916 = vst [vmem:[%s5806_s17] sm:$0xff] %v3915_v7   ;;  %v2083_v7 = vmul.f32 %v6219_v12, %v2051_v61 }
 0x599   : > { %v3000_v58 = vpop.permute.xlu2 %2999  ;;  %v4284_v35 = vpop.eup %4283 }
 0x59a   : > { %v3145_v48 = vmul.f32 %v3000_v58, %v2789_v14  ;;  %v2734_v14 = vadd.f32 %v6221_v41, %v6220_v2  ;;  %v2897_v2 = vld [vmem:[#allocation3 + $0x60] sm:$0xff] }
 0x59c   : > { %v3178_v39 = vmul.f32 %v5794_v34, %v3145_v48  ;;  %v2797_v58 = vadd.f32 %v2734_v14, %v2459_v28  ;;  %v2173_v48 = vadd.f32 %v5691_v36, %v5689_v20 }
 0x59e   : > { %v3274_v45 = vadd.f32 %v3855_v46, %v3178_v39  ;;  %v2052_v39 = vld [vmem:[#allocation3 + $0xa8] sm:$0xff] }
 0x5a0   : > { %v3920_v29 = vpack.c.bf16 %v3274_v45, %v3273_v24  ;;  %2168 = vadd.xlane.f32.xlu2 %v5645_v21  ;;  %v4286_v45 = vpop.eup %4285 }
 0x5a2   : > { %4007 = vst [vmem:[%s5806_s17 + $0x8] sm:$0xff] %v3920_v29   ;;  %3019 = vperm.xlu1 %4068, %v4282_v59   ;;  %v3993_v29 = vld [vmem:[%s5790_s14 + $0x10] sm:$0xff]   ;;  %v2084_v59 = vmul.f32 %v5530_v8, %v2052_v39 }
 0x5a3   : > { %v3859_v55 = vunpack.c.h.bf16 %v3993_v29  ;;  %v2895_v8 = vld [vmem:[#allocation3 + $0x50] sm:$0xff] }
 0x5b3   : > { %v2172_v49 = vpop.xlane.xlu0 %2171 }
 0x5b4   : > { %v2216_v18 = vadd.f32 %v2172_v49, %v2088_v1  ;;  %v3858_v1 = vunpack.c.l.bf16 %v3993_v29  ;;  %v6223_v49 = vld [vmem:[#allocation66_spill] sm:$0xff]  ;;  %v2182_v29 = vadd.f32 %v5720_v23, %v5718_v22 }
 0x5b6   : > { %2249 = vst.msk [vmem:[#allocation3 + $0xc8] sm:$0xff] %vm860_vm0, %v2216_v18 }
 0x5b8   : > { %3029 = vperm.xlu2 %4066, %v4284_v35   ;;  %v3276_v35 = vadd.f32 %v3859_v55, %v3180_v51  ;;  %v2055_v55 = vld [vmem:[#allocation3 + $0xc0] sm:$0xff]  ;;  %v6226_v51 = vld [vmem:[#allocation51_spill] sm:$0xff] }
 0x5b9   : > { %v2157_v37 = vpop.xlane.xlu1 %2156 }
 0x5ba   : > { %v2211_v21 = vadd.f32 %v2157_v37, %v2083_v7 }
 0x5bc   : > { %2244 = vst.msk [vmem:[#allocation3 + $0xa0] sm:$0xff] %vm860_vm0, %v2211_v21  ;;  %2189 = vadd.xlane.f32.xlu0 %v5759_v56  ;;  %v2059_v21 = vld [vmem:[#allocation3 + $0xe0] sm:$0xff] }
 0x5bd   : > { %v2091_v41 = vmul.f32 %v5603_v16, %v2059_v21 }
 0x5c3   : > { %v2905_v24 = vld [vmem:[#allocation3 + $0xa0] sm:$0xff] }
 0x5c4   : > { %4287 = vrcp.f32 %v2905_v24 }
 0x5c5   : > { %4289 = vrcp.f32 %v2895_v8  ;;  %v6228_v8 = vld [vmem:[#allocation13_spill] sm:$0xff] }
 0x5c6   : > { %v3040_v57 = vpop.permute.xlu0 %3039  ;;  %4291 = vrcp.f32 %v2897_v2 }
 0x5c7   : > { %v5825_v46 = vmul.f32 %v3040_v57, %v2797_v58  ;;  %v2054_v58 = vld [vmem:[#allocation3 + $0xb8] sm:$0xff] }
 0x5c8   : > { %v2086_v57 = vmul.f32 %v5561_v25, %v2054_v58 }
 0x5ca   : > { %v4288_v7 = vpop.eup %4287 }
 0x5cb   : > { %v4290_v17 = vpop.eup %4289 }
 0x5cc   : > { %2174 = vadd.xlane.f32.xlu1 %v2173_v48  ;;  %v4292_v28 = vpop.eup %4291 }
 0x5d0   : > { %3069 = vperm.xlu0 %4067, %v4286_v45  }
 0x5d1   : > { %v3005_v56 = vpop.permute.xlu1 %3004 }
 0x5d2   : > { %v3146_v18 = vmul.f32 %v3005_v56, %v6223_v49  ;;  %v2160_v61 = vpop.xlane.xlu2 %2159  ;;  %v6224_v56 = vld [vmem:[#allocation17_spill] sm:$0xff] }
 0x5d3   : > { %v2212_v20 = vadd.f32 %v2160_v61, %v2084_v59  ;;  %v6225_v59 = vld [vmem:[#allocation18_spill] sm:$0xff]  ;;  %v6227_v49 = vld [vmem:[#allocation29_spill] sm:$0xff]  ;;  %v2087_v61 = vmul.f32 %v5593_v6, %v2055_v55 }
 0x5d4   : > { %v3179_v36 = vmul.f32 %v5794_v34, %v3146_v18  ;;  %v2724_v25 = vadd.f32 %v6225_v59, %v6224_v56  ;;  %v3995_v6 = vld [vmem:[%s5790_s14 + $0x20] sm:$0xff]  }
 0x5d5   : > { %2245 = vst.msk [vmem:[#allocation3 + $0xa8] sm:$0xff] %vm860_vm0, %v2212_v20  ;;  %v2901_v55 = vld [vmem:[#allocation3 + $0x80] sm:$0xff] }
 0x5d6   : > { %v3275_v12 = vadd.f32 %v3858_v1, %v3179_v36  ;;  %v2455_v1 = vmul.f32 0.0, %v6226_v51 }
 0x5d8   : > { %v3925_v37 = vpack.c.bf16 %v3276_v35, %v3275_v12  ;;  %3084 = vperm.xlu0 %4067, %v4288_v7   ;;  %v2793_v36 = vadd.f32 %v2724_v25, %v2455_v1  ;;  %v2062_v1 = vld [vmem:[#allocation3 + $0xf8] sm:$0xff] }
 0x5da   : > { %4008 = vst [vmem:[%s5806_s17 + $0x10] sm:$0xff] %v3925_v37   ;;  %v3015_v24 = vpop.permute.xlu2 %3014 }
 0x5db   : > { %v3148_v18 = vmul.f32 %v3015_v24, %v6227_v49  ;;  %v2904_v49 = vld [vmem:[#allocation3 + $0x98] sm:$0xff] }
 0x5dd   : > { %v3181_v22 = vmul.f32 %v5794_v34, %v3148_v18 }
 0x5e1   : > { %2177 = vadd.xlane.f32.xlu2 %v5696_v11 }
 0x5e5   : > { %3034 = vperm.xlu1 %4068, %v4290_v17   ;;  %v6229_v17 = vld [vmem:[#allocation15_spill] sm:$0xff] }
 0x5e6   : > { %v2729_v21 = vadd.f32 %v6229_v17, %v6228_v8  ;;  %v2906_v17 = vld [vmem:[#allocation3 + $0xa8] sm:$0xff] }
 0x5f1   : > { %v2181_v14 = vpop.xlane.xlu0 %2180 }
 0x5f2   : > { %v2219_v10 = vadd.f32 %v2181_v14, %v2091_v41  ;;  %v6230_v41 = vld [vmem:[#allocation67_spill] sm:$0xff] }
 0x5f3   : > { %v2457_v14 = vmul.f32 0.0, %v6230_v41 }
 0x5f4   : > { %2252 = vst.msk [vmem:[#allocation3 + $0xe0] sm:$0xff] %vm860_vm0, %v2219_v10 }
 0x5f5   : > { %v2795_v58 = vadd.f32 %v2729_v21, %v2457_v14  ;;  %v5870_v14 = vpop.f32.mrf.mxu2 }
 0x5f9   : > { %3044 = vperm.xlu2 %4066, %v4292_v28  }
 0x5fc   : > { %v2166_v13 = vpop.xlane.xlu1 %2165 }
 0x5fd   : > { %v2214_v48 = vadd.f32 %v2166_v13, %v2086_v57 }
 0x5ff   : > { %2247 = vst.msk [vmem:[#allocation3 + $0xb8] sm:$0xff] %vm860_vm0, %v2214_v48  ;;  %v3866_v48 = vunpack.c.l.bf16 %v3995_v6 }
 0x604   : > { %v3055_v11 = vpop.permute.xlu0 %3054 }
 0x605   : > { %v5843_v39 = vmul.f32 %v3055_v11, %v5581_v15  ;;  %v3994_v15 = vld [vmem:[%s5790_s14 + $0x18] sm:$0xff]   ;;  %v3183_v11 = vmul.f32 %v5794_v34, %v5782_v40  ;;  %v2094_v40 = vmul.f32 %v5652_v38, %v2062_v1  ;;  %v3996_v1 = vld [vmem:[%s5790_s14 + $0x28] sm:$0xff]  }
 0x606   : > { %v2908_v16 = vld [vmem:[#allocation3 + $0xb8] sm:$0xff]  ;;  %v3862_v7 = vunpack.c.l.bf16 %v3994_v15  ;;  %v3863_v23 = vunpack.c.h.bf16 %v3994_v15 }
 0x607   : > { %4293 = vrcp.f32 %v2908_v16  ;;  %v3867_v16 = vunpack.c.h.bf16 %v3995_v6  ;;  %v3279_v56 = vadd.f32 %v3866_v48, %v3183_v11  ;;  %v2058_v48 = vld [vmem:[#allocation3 + $0xd8] sm:$0xff] }
 0x608   : > { %v3277_v10 = vadd.f32 %v3862_v7, %v3181_v22  ;;  %v2057_v7 = vld [vmem:[#allocation3 + $0xd0] sm:$0xff]  ;;  %v2910_v22 = vld [vmem:[#allocation3 + $0xc8] sm:$0xff] }
 0x609   : > { %v2089_v38 = vmul.f32 %v5619_v44, %v2057_v7  ;;  %v5872_v44 = vpop.f32.mrf.mxu3 }
 0x60d   : > { %v4294_v45 = vpop.eup %4293 }
 0x60e   : > { %3099 = vperm.xlu0 %4067, %v4294_v45  }
 0x60f   : > { %2183 = vadd.xlane.f32.xlu1 %v2182_v29  ;;  %v2898_v29 = vld [vmem:[#allocation3 + $0x68] sm:$0xff] }
 0x610   : > { %4295 = vrcp.f32 %v2898_v29 }
 0x611   : > { %4297 = vrcp.f32 %v2901_v55 }
 0x612   : > { %4299 = vrcp.f32 %v2904_v49 }
 0x613   : > { %v2169_v20 = vpop.xlane.xlu2 %2168 }
 0x614   : > { %v2215_v35 = vadd.f32 %v2169_v20, %v2087_v61  ;;  %v3020_v12 = vpop.permute.xlu1 %3019  ;;  %v2900_v20 = vld [vmem:[#allocation3 + $0x78] sm:$0xff] }
 0x615   : > { %v3149_v37 = vmul.f32 %v3020_v12, %v2793_v36  ;;  %4301 = vrcp.f32 %v2900_v20  ;;  %v2907_v36 = vld [vmem:[#allocation3 + $0xb0] sm:$0xff]  ;;  %v3186_v20 = vmul.f32 %v5794_v34, %v5825_v46 }
 0x616   : > { %2248 = vst.msk [vmem:[#allocation3 + $0xc0] sm:$0xff] %vm860_vm0, %v2215_v35  ;;  %v4296_v51 = vpop.eup %4295  ;;  %v2903_v35 = vld [vmem:[#allocation3 + $0x90] sm:$0xff]  ;;  %4303 = vrcp.f32 %v2907_v36  ;;  %v3870_v36 = vunpack.c.l.bf16 %v3996_v1 }
 0x617   : > { %v3182_v2 = vmul.f32 %v5794_v34, %v3149_v37  ;;  %v4298_v18 = vpop.eup %4297  ;;  %4305 = vrcp.f32 %v2903_v35 }
 0x618   : > { %4307 = vrcp.f32 %v2910_v22 }
 0x619   : > { %v3278_v28 = vadd.f32 %v3863_v23, %v3182_v2  ;;  %4309 = vrcp.f32 %v2906_v17  ;;  %v2913_v2 = vld [vmem:[#allocation3 + $0xe0] sm:$0xff] }
 0x61a   : > { %4311 = vrcp.f32 %v2913_v2 }
 0x61b   : > { %v3930_v57 = vpack.c.bf16 %v3278_v28, %v3277_v10  ;;  %v3030_v13 = vpop.permute.xlu2 %3029 }
 0x61c   : > { %v3151_v24 = vmul.f32 %v3030_v13, %v2795_v58 }
 0x61d   : > { %4009 = vst [vmem:[%s5806_s17 + $0x18] sm:$0xff] %v3930_v57   ;;  %v2909_v6 = vld [vmem:[#allocation3 + $0xc0] sm:$0xff] }
 0x61e   : > { %v3184_v45 = vmul.f32 %v5794_v34, %v3151_v24  ;;  %v6231_v24 = vld [vmem:[#allocation20_spill] sm:$0xff] }
 0x620   : > { %v3280_v59 = vadd.f32 %v3867_v16, %v3184_v45  ;;  %v5874_v16 = vpop.f32.mrf.mxu2  ;;  %v6232_v45 = vld [vmem:[#allocation75_spill] sm:$0xff] }
 0x621   : > { %v2732_v29 = vadd.f32 %v6232_v45, %v6231_v24 }
 0x622   : > { %v3935_v25 = vpack.c.bf16 %v3280_v59, %v3279_v56  ;;  %2186 = vadd.xlane.f32.xlu2 %v5737_v9  ;;  %v4300_v9 = vpop.eup %4299  ;;  %v5878_v56 = vpop.f32.mrf.mxu3  ;;  %v2090_v59 = vmul.f32 %v5647_v50, %v2058_v48 }
 0x623   : > { %v4302_v12 = vpop.eup %4301 }
 0x624   : > { %4010 = vst [vmem:[%s5806_s17 + $0x20] sm:$0xff] %v3935_v25   ;;  %v4304_v23 = vpop.eup %4303  ;;  %v6233_v25 = vld [vmem:[#allocation65_spill] sm:$0xff] }
 0x625   : > { %v4306_v21 = vpop.eup %4305  ;;  %v2458_v55 = vmul.f32 0.0, %v6233_v25 }
 0x626   : > { %v4308_v41 = vpop.eup %4307 }
 0x627   : > { %v4310_v10 = vpop.eup %4309  ;;  %v2796_v49 = vadd.f32 %v2732_v29, %v2458_v55 }
 0x628   : > { %3049 = vperm.xlu1 %4068, %v4296_v51   ;;  %v4312_v57 = vpop.eup %4311  ;;  %v2659_v35 = vpop.f32.mrf.mxu2 }
 0x62f   : > { %v2190_v15 = vpop.xlane.xlu0 %2189 }
 0x630   : > { %v2222_v61 = vadd.f32 %v2190_v15, %v2094_v40  ;;  %3064 = vperm.xlu1 %4068, %v4298_v18  }
 0x632   : > { %2255 = vst.msk [vmem:[#allocation3 + $0xf8] sm:$0xff] %vm860_vm0, %v2222_v61  ;;  %v3871_v61 = vunpack.c.h.bf16 %v3996_v1 }
 0x638   : > { %3079 = vperm.xlu1 %4068, %v4300_v9  }
 0x639   : > { %v2916_v58 = vld [vmem:[#allocation3 + $0xf8] sm:$0xff] }
 0x63a   : > { %3059 = vperm.xlu2 %4066, %v4302_v12   ;;  %v3282_v12 = vadd.f32 %v3871_v61, %v3186_v20  ;;  %v2463_v20 = vmul.f32 0.0, %v5533_v53 }
 0x63f   : > { %v2175_v37 = vpop.xlane.xlu1 %2174 }
 0x640   : > { %v2217_v8 = vadd.f32 %v2175_v37, %v2089_v38  ;;  %3094 = vperm.xlu1 %4068, %v4304_v23   ;;  %v2748_v38 = vpop.f32.mrf.mxu3  ;;  %v2662_v37 = vpop.f32.mrf.mxu2 }
 0x642   : > { %2250 = vst.msk [vmem:[#allocation3 + $0xd0] sm:$0xff] %vm860_vm0, %v2217_v8  ;;  %3074 = vperm.xlu2 %4066, %v4306_v21  }
 0x648   : > { %3109 = vperm.xlu1 %4068, %v4308_v41   ;;  %v2751_v17 = vpop.f32.mrf.mxu3  ;;  %v5888_v21 = vpop.f32.mrf.mxu2 }
 0x649   : > { %v2911_v28 = vld [vmem:[#allocation3 + $0xd0] sm:$0xff] }
 0x64a   : > { %3089 = vperm.xlu2 %4066, %v4310_v10   ;;  %4313 = vrcp.f32 %v2911_v28 }
 0x64b   : > { %4315 = vrcp.f32 %v2909_v6  ;;  %v2060_v6 = vld [vmem:[#allocation3 + $0xe8] sm:$0xff] }
 0x64c   : > { %4317 = vrcp.f32 %v2916_v58  ;;  %v2092_v58 = vmul.f32 %v5668_v5, %v2060_v6 }
 0x650   : > { %v4314_v13 = vpop.eup %4313  ;;  %3124 = vperm.xlu1 %4068, %v4312_v57   ;;  %v5890_v46 = vpop.f32.mrf.mxu3 }
 0x651   : > { %v4316_v11 = vpop.eup %4315  ;;  %3114 = vperm.xlu0 %4067, %v4314_v13   ;;  %v5892_v2 = vpop.f32.mrf.mxu2 }
 0x652   : > { %3104 = vperm.xlu2 %4066, %v4316_v11   ;;  %v4318_v18 = vpop.eup %4317 }
 0x654   : > { %v2178_v51 = vpop.xlane.xlu2 %2177 }
 0x655   : > { %v2218_v40 = vadd.f32 %v2178_v51, %v2090_v59  ;;  %v2061_v59 = vld [vmem:[#allocation3 + $0xf0] sm:$0xff] }
 0x656   : > { %v2093_v5 = vmul.f32 %v5698_v19, %v2061_v59 }
 0x657   : > { %2251 = vst.msk [vmem:[#allocation3 + $0xd8] sm:$0xff] %vm860_vm0, %v2218_v40  ;;  %v3035_v15 = vpop.permute.xlu1 %3034 }
 0x658   : > { %v3152_v9 = vmul.f32 %v3035_v15, %v2796_v49  ;;  %3139 = vperm.xlu1 %4068, %v4318_v18   ;;  %v5894_v41 = vpop.f32.mrf.mxu3  ;;  %v2744_v49 = vadd.f32 %v5872_v44, %v5870_v14  ;;  %v3997_v18 = vld [vmem:[%s5790_s14 + $0x30] sm:$0xff]   ;;  %v2749_v15 = vadd.f32 %v2748_v38, %v2659_v35  ;;  %v2747_v35 = vadd.f32 %v5878_v56, %v5874_v16 }
 0x659   : > { %v5896_v10 = vpop.f32.mrf.mxu2  ;;  %v2752_v56 = vadd.f32 %v2751_v17, %v2662_v37 }
 0x65a   : > { %v3185_v50 = vmul.f32 %v5794_v34, %v3152_v9  ;;  %v3070_v9 = vpop.permute.xlu0 %3069  ;;  %v2801_v44 = vadd.f32 %v2744_v49, %v2463_v20 }
 0x65c   : > { %v3281_v7 = vadd.f32 %v3870_v36, %v3185_v50  ;;  %v3045_v45 = vpop.permute.xlu2 %3044  ;;  %v2465_v36 = vmul.f32 0.0, %v5564_v31 }
 0x65d   : > { %v3154_v40 = vmul.f32 %v3045_v45, %v5527_v42 }
 0x65e   : > { %v3940_v22 = vpack.c.bf16 %v3282_v12, %v3281_v7  ;;  %v2912_v23 = vld [vmem:[#allocation3 + $0xd8] sm:$0xff]  ;;  %v3874_v7 = vunpack.c.l.bf16 %v3997_v18  ;;  %v2803_v38 = vadd.f32 %v2749_v15, %v2465_v36 }
 0x65f   : > { %4319 = vrcp.f32 %v2912_v23  ;;  %v3998_v12 = vld [vmem:[%s5790_s14 + $0x38] sm:$0xff]   ;;  %v3187_v42 = vmul.f32 %v5794_v34, %v3154_v40 }
 0x660   : > { %4011 = vst [vmem:[%s5806_s17 + $0x28] sm:$0xff] %v3940_v22   ;;  %v5898_v28 = vpop.f32.mrf.mxu3  ;;  %v3875_v22 = vunpack.c.h.bf16 %v3997_v18  ;;  %v3878_v23 = vunpack.c.l.bf16 %v3998_v12  ;;  %v3879_v6 = vunpack.c.h.bf16 %v3998_v12 }
 0x661   : > { %v5902_v48 = vpop.f32.mrf.mxu2  ;;  %v3283_v45 = vadd.f32 %v3874_v7, %v3187_v42 }
 0x662   : > { %v3085_v37 = vpop.permute.xlu0 %3084 }
 0x665   : > { %v4320_v8 = vpop.eup %4319 }
 0x666   : > { %3119 = vperm.xlu2 %4066, %v4320_v8   ;;  %v3189_v8 = vmul.f32 %v5794_v34, %v5843_v39 }
 0x668   : > { %v5904_v11 = vpop.f32.mrf.mxu3  ;;  %v3285_v40 = vadd.f32 %v3878_v23, %v3189_v8 }
 0x669   : > { %v5906_v29 = vpop.f32.mrf.mxu2 }
 0x670   : > { %v5908_v55 = vpop.f32.mrf.mxu3 }
 0x671   : > { %v5916_v61 = vpop.f32.mrf.mxu2 }
 0x678   : > { %v5920_v19 = vpop.f32.mrf.mxu3 }
 0x680   : > { %v2768_v12 = vpop.f32.mrf.mxu3 }
 0x682   : > { %v2184_v57 = vpop.xlane.xlu1 %2183 }
 0x683   : > { %v2220_v13 = vadd.f32 %v2184_v57, %v2092_v58  ;;  %v6234_v57 = vld [vmem:[#allocation14_spill] sm:$0xff] }
 0x685   : > { %2253 = vst.msk [vmem:[#allocation3 + $0xe8] sm:$0xff] %vm860_vm0, %v2220_v13  ;;  %v2464_v13 = vmul.f32 0.0, %v6234_v57  ;;  %v4001_v57 = vld [vmem:[%s5790_s14 + $0x50] sm:$0xff]  }
 0x68c   : > { %v2914_v24 = vld [vmem:[#allocation3 + $0xe8] sm:$0xff] }
 0x68d   : > { %4321 = vrcp.f32 %v2914_v24  ;;  %v3159_v24 = vmul.f32 %v3070_v9, %v2803_v38  ;;  %v2757_v9 = vadd.f32 %v5894_v41, %v5892_v2  ;;  %v2467_v2 = vmul.f32 0.0, %v5551_v63 }
 0x68f   : > { %v3192_v15 = vmul.f32 %v5794_v34, %v3159_v24 }
 0x693   : > { %v4322_v25 = vpop.eup %4321 }
 0x694   : > { %3129 = vperm.xlu0 %4067, %v4322_v25   ;;  %v3999_v25 = vld [vmem:[%s5790_s14 + $0x40] sm:$0xff]  }
 0x695   : > { %v2187_v51 = vpop.xlane.xlu2 %2186  ;;  %v3883_v18 = vunpack.c.h.bf16 %v3999_v25  ;;  %v3882_v20 = vunpack.c.l.bf16 %v3999_v25 }
 0x696   : > { %v2221_v1 = vadd.f32 %v2187_v51, %v2093_v5  ;;  %v2802_v51 = vadd.f32 %v2747_v35, %v2464_v13 }
 0x697   : > { %v3288_v41 = vadd.f32 %v3883_v18, %v3192_v15  ;;  %v4002_v18 = vld [vmem:[%s5790_s14 + $0x58] sm:$0xff]  }
 0x698   : > { %2254 = vst.msk [vmem:[#allocation3 + $0xf0] sm:$0xff] %vm860_vm0, %v2221_v1  ;;  %v2466_v1 = vmul.f32 0.0, %v5595_v32  ;;  %v2754_v32 = vadd.f32 %v5890_v46, %v5888_v21  ;;  %v2759_v21 = vadd.f32 %v5898_v28, %v5896_v10 }
 0x69a   : > { %v3050_v50 = vpop.permute.xlu1 %3049  ;;  %v2805_v8 = vadd.f32 %v2754_v32, %v2467_v2  ;;  %v3895_v32 = vunpack.c.h.bf16 %v4002_v18 }
 0x69b   : > { %v3155_v14 = vmul.f32 %v3050_v50, %v5535_v3  ;;  %v5938_v50 = vpop.f32.mrf.mxu2 }
 0x69d   : > { %v3188_v53 = vmul.f32 %v5794_v34, %v3155_v14  ;;  %v3060_v31 = vpop.permute.xlu2 %3059 }
 0x69e   : > { %v3157_v58 = vmul.f32 %v3060_v31, %v2801_v44  ;;  %v2468_v44 = vmul.f32 0.0, %v5627_v54  ;;  %v2764_v31 = vadd.f32 %v5908_v55, %v5906_v29  ;;  %v2469_v54 = vmul.f32 0.0, %v5649_v52  ;;  %v2771_v55 = vpop.f32.mrf.mxu3 }
 0x69f   : > { %v3284_v3 = vadd.f32 %v3875_v22, %v3188_v53  ;;  %v2915_v59 = vld [vmem:[#allocation3 + $0xf0] sm:$0xff]  ;;  %v2804_v22 = vadd.f32 %v2752_v56, %v2466_v1  ;;  %v4000_v53 = vld [vmem:[%s5790_s14 + $0x48] sm:$0xff]   ;;  %v2762_v29 = vadd.f32 %v5904_v11, %v5902_v48  ;;  %v2470_v1 = vmul.f32 0.0, %v5606_v47 }
 0x6a0   : > { %v3190_v16 = vmul.f32 %v5794_v34, %v3157_v58  ;;  %4323 = vrcp.f32 %v2915_v59  ;;  %v2806_v46 = vadd.f32 %v2757_v9, %v2468_v44  ;;  %v3886_v13 = vunpack.c.l.bf16 %v4000_v53 }
 0x6a1   : > { %v3945_v5 = vpack.c.bf16 %v3284_v3, %v3283_v45  ;;  %v3887_v45 = vunpack.c.h.bf16 %v4000_v53  ;;  %v3100_v3 = vpop.permute.xlu0 %3099  ;;  %v2807_v59 = vadd.f32 %v2759_v21, %v2469_v54  ;;  %v2767_v48 = vadd.f32 %v5920_v19, %v5916_v61 }
 0x6a2   : > { %v3286_v39 = vadd.f32 %v3879_v6, %v3190_v16  ;;  %v3065_v49 = vpop.permute.xlu1 %3064  ;;  %v2471_v6 = vmul.f32 0.0, %v5671_v60  ;;  %v3162_v63 = vmul.f32 %v3085_v37, %v2806_v46  ;;  %v3890_v16 = vunpack.c.l.bf16 %v4001_v57  ;;  %v4003_v46 = vld [vmem:[%s5790_s14 + $0x60] sm:$0xff]  }
 0x6a3   : > { %4012 = vst [vmem:[%s5806_s17 + $0x30] sm:$0xff] %v3945_v5   ;;  %v3158_v36 = vmul.f32 %v3065_v49, %v2802_v51  ;;  %v2682_v28 = vpop.f32.mrf.mxu2  ;;  %v3891_v5 = vunpack.c.h.bf16 %v4001_v57  ;;  %v3899_v54 = vunpack.c.h.bf16 %v4003_v46 }
 0x6a4   : > { %v3950_v17 = vpack.c.bf16 %v3286_v39, %v3285_v40  ;;  %v2809_v52 = vadd.f32 %v2764_v31, %v2471_v6  ;;  %v3195_v56 = vmul.f32 %v5794_v34, %v3162_v63 }
 0x6a5   : > { %v3191_v7 = vmul.f32 %v5794_v34, %v3158_v36  ;;  %v3075_v42 = vpop.permute.xlu2 %3074  ;;  %v2472_v36 = vmul.f32 0.0, %v5700_v43  ;;  %v2473_v43 = vmul.f32 0.0, %v5658_v27  ;;  %v2475_v27 = vmul.f32 0.0, %v5740_v26 }
 0x6a6   : > { %v4324_v14 = vpop.eup %4323  ;;  %4013 = vst [vmem:[%s5806_s17 + $0x38] sm:$0xff] %v3950_v17   ;;  %v3160_v38 = vmul.f32 %v3075_v42, %v2804_v22  ;;  %v3165_v40 = vmul.f32 %v3100_v3, %v2809_v52  ;;  %v3291_v9 = vadd.f32 %v3890_v16, %v3195_v56 }
 0x6a7   : > { %v3287_v35 = vadd.f32 %v3882_v20, %v3191_v7  ;;  %3134 = vperm.xlu2 %4066, %v4324_v14   ;;  %v2808_v20 = vadd.f32 %v2762_v29, %v2470_v1  ;;  %v3894_v7 = vunpack.c.l.bf16 %v4002_v18  ;;  %v2769_v14 = vadd.f32 %v2768_v12, %v5938_v50 }
 0x6a8   : > { %v3193_v24 = vmul.f32 %v5794_v34, %v3160_v38  ;;  %v3198_v47 = vmul.f32 %v5794_v34, %v3165_v40  ;;  %v2810_v44 = vadd.f32 %v2767_v48, %v2472_v36  ;;  %v3898_v50 = vunpack.c.l.bf16 %v4003_v46 }
 0x6a9   : > { %v3955_v23 = vpack.c.bf16 %v3288_v41, %v3287_v35  ;;  %v2773_v41 = vpop.f32.mrf.mxu3  ;;  %v2811_v31 = vadd.f32 %v2769_v14, %v2473_v43  ;;  %v2479_v36 = vmul.f32 0.0, %v5724_v30 }
 0x6aa   : > { %v3080_v58 = vpop.permute.xlu1 %3079  ;;  %v3289_v39 = vadd.f32 %v3886_v13, %v3193_v24  ;;  %v3294_v35 = vadd.f32 %v3895_v32, %v3198_v47  ;;  %v2478_v47 = vmul.f32 0.0, %v5763_v0 }
 0x6ab   : > { %4014 = vst [vmem:[%s5806_s17 + $0x40] sm:$0xff] %v3955_v23   ;;  %v3161_v10 = vmul.f32 %v3080_v58, %v2805_v8  ;;  %v2684_v2 = vpop.f32.mrf.mxu2  ;;  %v2772_v58 = vadd.f32 %v2771_v55, %v2682_v28 }
 0x6ac   : > { %v2774_v23 = vadd.f32 %v2773_v41, %v2684_v2 }
 0x6ad   : > { %v3194_v60 = vmul.f32 %v5794_v34, %v3161_v10  ;;  %v3090_v25 = vpop.permute.xlu2 %3089 }
 0x6ae   : > { %v3163_v51 = vmul.f32 %v3090_v25, %v2807_v59  ;;  %v2813_v24 = vadd.f32 %v2774_v23, %v2475_v27  ;;  %v4004_v59 = vld [vmem:[%s5790_s14 + $0x68] sm:$0xff]  }
 0x6af   : > { %v3290_v49 = vadd.f32 %v3887_v45, %v3194_v60  ;;  %v2474_v45 = vmul.f32 0.0, %v5716_v62  ;;  %v3903_v25 = vunpack.c.h.bf16 %v4004_v59  ;;  %v3902_v26 = vunpack.c.l.bf16 %v4004_v59 }
 0x6b0   : > { %v3196_v15 = vmul.f32 %v5794_v34, %v3163_v51 }
 0x6b1   : > { %v3960_v11 = vpack.c.bf16 %v3290_v49, %v3289_v39  ;;  %v2812_v52 = vadd.f32 %v2772_v58, %v2474_v45  ;;  %v2776_v1 = vpop.f32.mrf.mxu3 }
 0x6b2   : > { %v3292_v37 = vadd.f32 %v3891_v5, %v3196_v15  ;;  %v3095_v17 = vpop.permute.xlu1 %3094 }
 0x6b3   : > { %4015 = vst [vmem:[%s5806_s17 + $0x48] sm:$0xff] %v3960_v11   ;;  %v3164_v42 = vmul.f32 %v3095_v17, %v2808_v20  ;;  %v2687_v62 = vpop.f32.mrf.mxu2 }
 0x6b4   : > { %v3965_v22 = vpack.c.bf16 %v3292_v37, %v3291_v9  ;;  %v2777_v32 = vadd.f32 %v2776_v1, %v2687_v62 }
 0x6b5   : > { %v3197_v61 = vmul.f32 %v5794_v34, %v3164_v42  ;;  %v3105_v19 = vpop.permute.xlu2 %3104  ;;  %v2476_v42 = vmul.f32 0.0, %v5706_v33 }
 0x6b6   : > { %4016 = vst [vmem:[%s5806_s17 + $0x50] sm:$0xff] %v3965_v22   ;;  %v3166_v21 = vmul.f32 %v3105_v19, %v2810_v44  ;;  %v4006_v22 = vld [vmem:[%s5790_s14 + $0x78] sm:$0xff]  }
 0x6b7   : > { %v3293_v38 = vadd.f32 %v3894_v7, %v3197_v61  ;;  %v2814_v19 = vadd.f32 %v2777_v32, %v2476_v42  ;;  %v3911_v43 = vunpack.c.h.bf16 %v4006_v22  ;;  %v3910_v41 = vunpack.c.l.bf16 %v4006_v22 }
 0x6b8   : > { %v3199_v12 = vmul.f32 %v5794_v34, %v3166_v21  ;;  %v4005_v21 = vld [vmem:[%s5790_s14 + $0x70] sm:$0xff]  }
 0x6b9   : > { %v3970_v53 = vpack.c.bf16 %v3294_v35, %v3293_v38  ;;  %v2778_v39 = vpop.f32.mrf.mxu3  ;;  %v2477_v35 = vmul.f32 0.0, %v5754_v4  ;;  %v3906_v23 = vunpack.c.l.bf16 %v4005_v21 }
 0x6ba   : > { %v3110_v8 = vpop.permute.xlu1 %3109  ;;  %v3295_v57 = vadd.f32 %v3898_v50, %v3199_v12  ;;  %v3907_v50 = vunpack.c.h.bf16 %v4005_v21 }
 0x6bb   : > { %4017 = vst [vmem:[%s5806_s17 + $0x58] sm:$0xff] %v3970_v53   ;;  %v3167_v6 = vmul.f32 %v3110_v8, %v2811_v31  ;;  %v2689_v40 = vpop.f32.mrf.mxu2 }
 0x6bc   : > { %v2779_v61 = vadd.f32 %v2778_v39, %v2689_v40 }
 0x6bd   : > { %v3200_v63 = vmul.f32 %v5794_v34, %v3167_v6 }
 0x6be   : > { %v2815_v46 = vadd.f32 %v2779_v61, %v2477_v35 }
 0x6bf   : > { %v3296_v13 = vadd.f32 %v3899_v54, %v3200_v63 }
 0x6c0   : > { %v3120_v10 = vpop.permute.xlu2 %3119 }
 0x6c1   : > { %v3975_v3 = vpack.c.bf16 %v3296_v13, %v3295_v57  ;;  %v3169_v29 = vmul.f32 %v3120_v10, %v2813_v24  ;;  %v2781_v18 = vpop.f32.mrf.mxu3 }
 0x6c2   : > { %v3125_v15 = vpop.permute.xlu1 %3124 }
 0x6c3   : > { %4018 = vst [vmem:[%s5806_s17 + $0x60] sm:$0xff] %v3975_v3   ;;  %v3115_v60 = vpop.permute.xlu0 %3114  ;;  %v3202_v16 = vmul.f32 %v5794_v34, %v3169_v29  ;;  %v2692_v49 = vpop.f32.mrf.mxu2  ;;  %v3170_v38 = vmul.f32 %v3125_v15, %v2814_v19 }
 0x6c4   : > { %v3168_v56 = vmul.f32 %v3115_v60, %v2812_v52  ;;  %v2782_v37 = vadd.f32 %v2781_v18, %v2692_v49 }
 0x6c5   : > { %v3298_v55 = vadd.f32 %v3903_v25, %v3202_v16  ;;  %v3203_v8 = vmul.f32 %v5794_v34, %v3170_v38 }
 0x6c6   : > { %v3201_v28 = vmul.f32 %v5794_v34, %v3168_v56  ;;  %v2816_v14 = vadd.f32 %v2782_v37, %v2478_v47 }
 0x6c7   : > { %v3299_v27 = vadd.f32 %v3906_v23, %v3203_v8 }
 0x6c8   : > { %v3297_v5 = vadd.f32 %v3902_v26, %v3201_v28 }
 0x6c9   : > { %v2783_v11 = vpop.f32.mrf.mxu3 }
 0x6ca   : > { %v3980_v51 = vpack.c.bf16 %v3298_v55, %v3297_v5  ;;  %v3140_v9 = vpop.permute.xlu1 %3139 }
 0x6cb   : > { %v2694_v48 = vpop.f32.mrf.mxu2 }
 0x6cc   : > { %4019 = vst [vmem:[%s5806_s17 + $0x68] sm:$0xff] %v3980_v51   ;;  %v2784_v20 = vadd.f32 %v2783_v11, %v2694_v48 }
 0x6ce   : > { %v2817_v17 = vadd.f32 %v2784_v20, %v2479_v36 }
 0x6d0   : > { %v3173_v7 = vmul.f32 %v3140_v9, %v2817_v17 }
 0x6d2   : > { %v3206_v2 = vmul.f32 %v5794_v34, %v3173_v7 }
 0x6d4   : > { %v3302_v33 = vadd.f32 %v3911_v43, %v3206_v2 }
 0x701   : > { %v3135_v44 = vpop.permute.xlu2 %3134 }
 0x702   : > { %v3172_v30 = vmul.f32 %v3135_v44, %v2816_v14 }
 0x704   : > { %v3205_v0 = vmul.f32 %v5794_v34, %v3172_v30 }
 0x706   : > { %v3301_v53 = vadd.f32 %v3910_v41, %v3205_v0  ;;  %v3130_v31 = vpop.permute.xlu0 %3129 }
 0x707   : > { %v3171_v12 = vmul.f32 %v3130_v31, %v2815_v46 }
 0x708   : > { %v3990_v54 = vpack.c.bf16 %v3302_v33, %v3301_v53 }
 0x709   : > { %v3204_v6 = vmul.f32 %v5794_v34, %v3171_v12 }
 0x70a   : > { %4021 = vst [vmem:[%s5806_s17 + $0x78] sm:$0xff] %v3990_v54  }
 0x70b   : > { %v3300_v4 = vadd.f32 %v3907_v50, %v3204_v6 }
 0x70d   : > { %v3985_v63 = vpack.c.bf16 %v3300_v4, %v3299_v27 }
 0x70f   : > { %4020 = vst [vmem:[%s5806_s17 + $0x70] sm:$0xff] %v3985_v63  }
 0x710 PF: > { %s16_s24 = sadd.s32 1, %s4363_s24   ;;  %s6235_s20 = smov %s4351_s21 }
 0x711   : > { %p13_p10 = scmp.ge.s32.totalorder %s16_s24, 4   ;;  %s6236_s21 = smov %s4440_s28 }
 0x712   : > { %s6237_s22 = smov %s4359_s23  ;;  %s6238_s23 = smov %s6240_s0 }
 0x713   :  { %15 = sbr.rel (!%p13_p10) target bundleno = 5 (0x5), region = 225 }

</bundles_post_ra>
